<compile_context>
chip_gen: v5e
topology: v5e:2x2
jax: 0.10.0
libtpu: 0.0.40
codegen_flags: <defaults>
</compile_context>

<pallas_src>
import functools

import jax
import jax.numpy as jnp
from jax.experimental import pallas as pl
from jax.experimental.pallas import tpu as pltpu

_VMEM_LIMIT = 64 * 1024 * 1024


# ----------------------- stage 1: hoisted input projection -------------------
def _in_proj_kernel(x_ref, w_ref, b_ref, gi_ref):
    """gi = x @ [W_ih_fwd | W_ih_bwd] + folded biases for a block of rows.
    One MXU matmul (bf16 operands, f32 accumulate), single lane-dense output."""
    gi_ref[...] = (jnp.dot(x_ref[...].astype(jnp.bfloat16), w_ref[...],
                           preferred_element_type=jnp.float32)
                   + b_ref[...])


# ----------------------- stage 2: bidirectional recurrence -------------------
def _bi_gru_scan_kernel(gi_ref, h0_ref, wh_ref, bhnf_ref, bhnb_ref,
                        lnw_ref, lnb_ref, out_ref, hn_ref, *, apply_ln):
    """Whole-sequence bidirectional GRU recurrence in one invocation.

    gi_ref : (T, B, 6H) precomputed input projections, cols [0,3H)=fwd gates
             of time t, cols [3H,6H)=bwd gates of time t (order r, z, n).
    wh_ref : (2H, 6H) block-diagonal [[Whh_f, 0], [0, Whh_b]] -> the two
             per-step hidden matmuls become ONE matmul of the (B, 2H) carry.
    out_ref: (T, B, 2H) combined output, written directly inside the loop.
    hn_ref : (2, B, H) final hidden states.
    LayerNorm fused as a second lane-dense pass when apply_ln=True.
    """
    T, B, H6 = gi_ref.shape
    H = H6 // 6

    # Hoist loop-invariant operands out of the recurrence.
    wh = wh_ref[...]            # (2H, 6H) bf16 block-diagonal
    bhn_f = bhnf_ref[...]       # (1, H) hidden bias of the n-gate (fwd)
    bhn_b = bhnb_ref[...]       # (1, H) hidden bias of the n-gate (bwd)

    def step(t, h):
        tb = T - 1 - t
        gi_t = gi_ref[t]        # (B, 6H) gates at time t      (fwd uses cols [0,3H))
        gi_r = gi_ref[tb]       # (B, 6H) gates at time T-1-t  (bwd uses cols [3H,6H))

        # ONE fused MXU matmul per timestep for both directions.
        gh = jnp.dot(h.astype(jnp.bfloat16), wh,
                     preferred_element_type=jnp.float32)        # (B, 6H)

        # forward direction (time t); gi already holds b_ih (+ b_hh for r,z).
        r_f = jax.nn.sigmoid(gi_t[:, :H] + gh[:, :H])
        z_f = jax.nn.sigmoid(gi_t[:, H:2 * H] + gh[:, H:2 * H])
        n_f = jnp.tanh(gi_t[:, 2 * H:3 * H] + r_f * (gh[:, 2 * H:3 * H] + bhn_f))
        h_f = (1.0 - z_f) * n_f + z_f * h[:, :H]

        # backward direction (time T-1-t)
        r_b = jax.nn.sigmoid(gi_r[:, 3 * H:4 * H] + gh[:, 3 * H:4 * H])
        z_b = jax.nn.sigmoid(gi_r[:, 4 * H:5 * H] + gh[:, 4 * H:5 * H])
        n_b = jnp.tanh(gi_r[:, 5 * H:] + r_b * (gh[:, 5 * H:] + bhn_b))
        h_b = (1.0 - z_b) * n_b + z_b * h[:, H:]

        # Direct output writes (no scratch round-trip).
        out_ref[t, :, :H] = h_f.astype(out_ref.dtype)
        out_ref[tb, :, H:] = h_b.astype(out_ref.dtype)
        return jnp.concatenate([h_f, h_b], axis=-1)

    h = jax.lax.fori_loop(0, T, step, h0_ref[...],
                          unroll=True if T <= 32 else 8)

    # Explicit final-hidden-state writes.
    hn_ref[0] = h[:, :H].astype(hn_ref.dtype)
    hn_ref[1] = h[:, H:].astype(hn_ref.dtype)

    if apply_ln:
        # Fused LayerNorm as an in-place, lane-dense second pass over out_ref.
        y = out_ref[...].astype(jnp.float32)                    # (T, B, 2H)
        mean = jnp.mean(y, axis=-1, keepdims=True)
        yc = y - mean
        var = jnp.mean(yc * yc, axis=-1, keepdims=True)
        rstd = jax.lax.rsqrt(var + 1e-5)                        # torch default eps
        out_ref[...] = (yc * rstd * lnw_ref[...] + lnb_ref[...]).astype(out_ref.dtype)


# ------------------------------ layer wrapper --------------------------------
def _bi_gru_layer(x2d, T, B, h0_f, h0_b, p, ln_w, ln_b, apply_ln):
    """One bidirectional GRU layer (+ optionally fused LayerNorm).

    x2d: (T*B, D) time-major flattened input (row = t*B + b).
    Returns out (T, B, 2H) and hn (2, B, H)."""
    TB, D = x2d.shape
    H = p["wh_f"].shape[0]

    # Fused fwd|bwd input weight (D, 6H), bf16 operand for the MXU.
    wi = jnp.concatenate([p["wi_f"], p["wi_b"]], axis=1).astype(jnp.bfloat16)

    def _fold(bi, bh):                       # fold b_ih + b_hh for r,z gates
        bi = bi.reshape(3 * H)
        bh = bh.reshape(3 * H)
        return jnp.concatenate([bi[:2 * H] + bh[:2 * H], bi[2 * H:]])

    bias = jnp.concatenate([_fold(p["bi_f"], p["bh_f"]),
                            _fold(p["bi_b"], p["bh_b"])]).reshape(1, 6 * H)
    bhn_f = p["bh_f"].reshape(3 * H)[2 * H:].reshape(1, H)
    bhn_b = p["bh_b"].reshape(3 * H)[2 * H:].reshape(1, H)

    # Block-diagonal hidden weight (2H, 6H): ONE matmul per step for both dirs.
    zero = jnp.zeros((H, 3 * H), p["wh_f"].dtype)
    wh_blk = jnp.concatenate(
        [jnp.concatenate([p["wh_f"], zero], axis=1),
         jnp.concatenate([zero, p["wh_b"]], axis=1)],
        axis=0).astype(jnp.bfloat16)

    # ---- stage 1: tiled MXU matmul over all timesteps ------------------------
    bm = 512
    if TB <= bm:
        bm, TBp, x_in = TB, TB, x2d          # small: one full-extent block
    else:
        TBp = pl.cdiv(TB, bm) * bm
        x_in = jnp.pad(x2d, ((0, TBp - TB), (0, 0))) if TBp != TB else x2d

    gi = pl.pallas_call(
        _in_proj_kernel,
        out_shape=jax.ShapeDtypeStruct((TBp, 6 * H), jnp.float32),
        grid=(TBp // bm,),
        in_specs=[pl.BlockSpec((bm, D), lambda i: (i, 0)),
                  pl.BlockSpec((D, 6 * H), lambda i: (0, 0)),
                  pl.BlockSpec((1, 6 * H), lambda i: (0, 0))],
        out_specs=pl.BlockSpec((bm, 6 * H), lambda i: (i, 0)),
        compiler_params=pltpu.CompilerParams(
            dimension_semantics=("parallel",),
            vmem_limit_bytes=_VMEM_LIMIT),
    )(x_in, wi, bias)
    gi = gi[:TB].reshape(T, B, 6 * H)

    # Combined (B, 2H) initial hidden state [h0_fwd | h0_bwd].
    h0 = jnp.concatenate([h0_f, h0_b], axis=-1).astype(jnp.float32)

    # ---- stage 2: sequential recurrence, whole sequence resident in VMEM -----
    out, hn = pl.pallas_call(
        functools.partial(_bi_gru_scan_kernel, apply_ln=apply_ln),
        out_shape=(jax.ShapeDtypeStruct((T, B, 2 * H), jnp.float32),
                   jax.ShapeDtypeStruct((2, B, H), jnp.float32)),
        compiler_params=pltpu.CompilerParams(vmem_limit_bytes=_VMEM_LIMIT),
    )(gi, h0, wh_blk, bhn_f, bhn_b,
      ln_w.reshape(1, 1, 2 * H).astype(jnp.float32),
      ln_b.reshape(1, 1, 2 * H).astype(jnp.float32))
    return out, hn


# ------------------------------ module wrapper --------------------------------
def birnn_block_forward(x, h0, layer_params, ln_w, ln_b):
    """Equivalent of BiRNNBlock.forward (eval semantics, normalise=True)."""
    nlayers = len(layer_params)
    T, B, D0 = x.shape
    H = layer_params[0]["wh_f"].shape[0]
    if h0 is None:
        h0 = jnp.zeros((2 * nlayers, B, H), jnp.float32)

    cur2d = x.reshape(T * B, D0)
    hn = []
    out3d = None
    for l, p in enumerate(layer_params):
        apply_ln = (l == nlayers - 1)        # LayerNorm fused into last layer
        out3d, hn_l = _bi_gru_layer(cur2d, T, B, h0[2 * l], h0[2 * l + 1], p,
                                    ln_w, ln_b, apply_ln)
        hn.append(hn_l)
        # Inter-layer activations in bf16: identical matmul numerics (they are
        # cast to bf16 on the MXU anyway), half the stage-1 HBM bytes.
        cur2d = out3d.reshape(T * B, 2 * H).astype(jnp.bfloat16)
    # TODO(synk): dropout omitted — module default dropout=0.0 means nn.Dropout
    #             is never created, so forward has no dropout op.
    return out3d, jnp.concatenate(hn, axis=0)


# ------------------------- pure-JAX reference check ---------------------------
def _gru_dir_ref(x, h0, wi, wh, bi, bh, reverse, mm_dtype):
    H = h0.shape[-1]
    wi_c = wi.astype(mm_dtype)
    wh_c = wh.astype(mm_dtype)

    def cell(h, xt):
        gi = jnp.dot(xt.astype(mm_dtype), wi_c,
                     preferred_element_type=jnp.float32) + bi
        gh = jnp.dot(h.astype(mm_dtype), wh_c,
                     preferred_element_type=jnp.float32) + bh
        r = jax.nn.sigmoid(gi[:, :H] + gh[:, :H])
        z = jax.nn.sigmoid(gi[:, H:2 * H] + gh[:, H:2 * H])
        n = jnp.tanh(gi[:, 2 * H:] + r * gh[:, 2 * H:])
        hn = (1.0 - z) * n + z * h
        return hn, hn

    xs = x[::-1] if reverse else x
    hT, ys = jax.lax.scan(cell, h0, xs)
    if reverse:
        ys = ys[::-1]
    return ys, hT


def birnn_block_ref(x, h0, layer_params, ln_w, ln_b, mm_dtype):
    nlayers = len(layer_params)
    T, B, _ = x.shape
    H = layer_params[0]["wh_f"].shape[0]
    if h0 is None:
        h0 = jnp.zeros((2 * nlayers, B, H), jnp.float32)
    hn = []
    out = x
    for l, p in enumerate(layer_params):
        yf, hf = _gru_dir_ref(out, h0[2 * l], p["wi_f"], p["wh_f"],
                              p["bi_f"], p["bh_f"], False, mm_dtype)
        yb, hb = _gru_dir_ref(out, h0[2 * l + 1], p["wi_b"], p["wh_b"],
                              p["bi_b"], p["bh_b"], True, mm_dtype)
        out = jnp.concatenate([yf, yb], axis=-1)
        hn += [hf, hb]
    mean = jnp.mean(out, axis=-1, keepdims=True)
    var = jnp.mean((out - mean) ** 2, axis=-1, keepdims=True)
    out = (out - mean) / jnp.sqrt(var + 1e-5) * ln_w + ln_b
    return out, jnp.stack(hn, axis=0)


# ----------------------------------- main --------------------------------------
if __name__ == "__main__":
    T, B, IN_DIM, OUT_DIM, NLAYERS = 8, 2, 16, 32, 2

    key = jax.random.PRNGKey(0)
    keys = jax.random.split(key, 1 + 8 * NLAYERS)
    x = jax.random.normal(keys[0], (T, B, IN_DIM), jnp.float32)

    # Deterministic param init mirroring torch.nn.GRU: U(-1/sqrt(H), 1/sqrt(H)).
    bound = 1.0 / (OUT_DIM ** 0.5)

    def u(kk, shape):
        return jax.random.uniform(kk, shape, jnp.float32, -bound, bound)

    layer_params = []
    ki = 1
    for l in range(NLAYERS):
        d_in = IN_DIM if l == 0 else 2 * OUT_DIM
        layer_params.append({
            "wi_f": u(keys[ki + 0], (d_in, 3 * OUT_DIM)),
            "wh_f": u(keys[ki + 1], (OUT_DIM, 3 * OUT_DIM)),
            "bi_f": u(keys[ki + 2], (1, 3 * OUT_DIM)),
            "bh_f": u(keys[ki + 3], (1, 3 * OUT_DIM)),
            "wi_b": u(keys[ki + 4], (d_in, 3 * OUT_DIM)),
            "wh_b": u(keys[ki + 5], (OUT_DIM, 3 * OUT_DIM)),
            "bi_b": u(keys[ki + 6], (1, 3 * OUT_DIM)),
            "bh_b": u(keys[ki + 7], (1, 3 * OUT_DIM)),
        })
        ki += 8

    ln_w = jnp.ones((2 * OUT_DIM,), jnp.float32)     # LayerNorm default init
    ln_b = jnp.zeros((2 * OUT_DIM,), jnp.float32)

    # jit so weight fusion / bias folding constant-folds and both pallas_calls
    # per layer dispatch as one executable.
    fwd = jax.jit(lambda xx: birnn_block_forward(xx, None, layer_params,
                                                 ln_w, ln_b))
    out, hn = fwd(x)
    out = jax.block_until_ready(out)
    hn = jax.block_until_ready(hn)

    assert out.shape == (T, B, 2 * OUT_DIM)
    assert hn.shape == (2 * NLAYERS, B, OUT_DIM)

    # Tight check vs a reference using identical bf16-matmul numerics.
    out_r, hn_r = birnn_block_ref(x, None, layer_params, ln_w, ln_b,
                                  jnp.bfloat16)
    assert jnp.allclose(out, out_r, atol=5e-3, rtol=5e-3)
    assert jnp.allclose(hn, hn_r, atol=5e-3, rtol=5e-3)

    # Loose sanity check vs full-f32 math (bf16 MXU error budget).
    out_f, hn_f = birnn_block_ref(x, None, layer_params, ln_w, ln_b,
                                  jnp.float32)
    assert jnp.allclose(out, out_f, atol=5e-2, rtol=5e-2)
    assert jnp.allclose(hn, hn_f, atol=5e-2, rtol=5e-2)

    print("KERNEL_OK")
</pallas_src>

<mosaic_0001>
module attributes {stable_mosaic.version = 11 : i64} {
  func.func @_in_proj_kernel(%arg0: i32, %arg1: memref<16x16xf32, #tpu.memory_space<vmem>>, %arg2: memref<16x192xbf16, #tpu.memory_space<vmem>>, %arg3: memref<1x192xf32, #tpu.memory_space<vmem>>, %arg4: memref<16x192xf32, #tpu.memory_space<vmem>>) attributes {dimension_semantics = [#tpu.dimension_semantics<parallel>], iteration_bounds = array<i64: 1>, scalar_prefetch = 0 : i64, scratch_operands = 0 : i64, tpu.core_type = #tpu.core_type<tc>, window_params = [{transform_indices = @transform_0, window_bounds = array<i64: 16, 16>}, {pipeline_mode = #tpu.pipeline_mode<synchronous>, transform_indices = @transform_1, window_bounds = array<i64: 16, 192>}, {pipeline_mode = #tpu.pipeline_mode<synchronous>, transform_indices = @transform_2, window_bounds = array<i64: 1, 192>}, {transform_indices = @transform_3, window_bounds = array<i64: 16, 192>}]} {
    %c0 = arith.constant 0 : index
    %c0_0 = arith.constant 0 : index
    %0 = vector.load %arg1[%c0, %c0_0] : memref<16x16xf32, #tpu.memory_space<vmem>>, vector<16x16xf32>
    %1 = arith.truncf %0 : vector<16x16xf32> to vector<16x16xbf16>
    %c0_1 = arith.constant 0 : index
    %c0_2 = arith.constant 0 : index
    %2 = vector.load %arg2[%c0_1, %c0_2] : memref<16x192xbf16, #tpu.memory_space<vmem>>, vector<16x192xbf16>
    %cst = arith.constant dense<0.000000e+00> : vector<16x192xf32>
    %3 = tpu.matmul %1, %2, %cst {dimension_numbers = #tpu.dot_dimension_numbers<[1], [0], [0], [1], [0, 0, 1, 1], [], []>} : vector<16x16xbf16>, vector<16x192xbf16>, vector<16x192xf32> -> vector<16x192xf32>
    %c0_3 = arith.constant 0 : index
    %c0_4 = arith.constant 0 : index
    %4 = vector.load %arg3[%c0_3, %c0_4] : memref<1x192xf32, #tpu.memory_space<vmem>>, vector<1x192xf32>
    %5 = vector.broadcast %4 : vector<1x192xf32> to vector<16x192xf32>
    %6 = arith.addf %3, %5 : vector<16x192xf32>
    %c0_5 = arith.constant 0 : index
    %c0_6 = arith.constant 0 : index
    %7 = vector.load %arg4[%c0_5, %c0_6] : memref<16x192xf32, #tpu.memory_space<vmem>>, vector<16x192xf32>
    tpu.vector_store %arg4[%c0_5, %c0_6], %6 {strides = array<i32>} : memref<16x192xf32, #tpu.memory_space<vmem>>, vector<16x192xf32>,
    return
  }
  func.func @transform_0(%arg0: i32) -> (i32, i32) {
    %c0_i32 = arith.constant 0 : i32
    %c0_i32_0 = arith.constant 0 : i32
    return %arg0, %c0_i32 : i32, i32
  }
  func.func @transform_1(%arg0: i32) -> (i32, i32) {
    %c0_i32 = arith.constant 0 : i32
    %c0_i32_0 = arith.constant 0 : i32
    %c0_i32_1 = arith.constant 0 : i32
    return %c0_i32, %c0_i32_0 : i32, i32
  }
  func.func @transform_2(%arg0: i32) -> (i32, i32) {
    %c0_i32 = arith.constant 0 : i32
    %c0_i32_0 = arith.constant 0 : i32
    %c0_i32_1 = arith.constant 0 : i32
    return %c0_i32, %c0_i32_0 : i32, i32
  }
  func.func @transform_3(%arg0: i32) -> (i32, i32) {
    %c0_i32 = arith.constant 0 : i32
    %c0_i32_0 = arith.constant 0 : i32
    return %arg0, %c0_i32 : i32, i32
  }
}

module attributes {stable_mosaic.version = 11 : i64} {
  func.func @_in_proj_kernel(%arg0: i32, %arg1: memref<16x64xbf16, #tpu.memory_space<vmem>>, %arg2: memref<64x192xbf16, #tpu.memory_space<vmem>>, %arg3: memref<1x192xf32, #tpu.memory_space<vmem>>, %arg4: memref<16x192xf32, #tpu.memory_space<vmem>>) attributes {dimension_semantics = [#tpu.dimension_semantics<parallel>], iteration_bounds = array<i64: 1>, scalar_prefetch = 0 : i64, scratch_operands = 0 : i64, tpu.core_type = #tpu.core_type<tc>, window_params = [{transform_indices = @transform_0, window_bounds = array<i64: 16, 64>}, {pipeline_mode = #tpu.pipeline_mode<synchronous>, transform_indices = @transform_1, window_bounds = array<i64: 64, 192>}, {pipeline_mode = #tpu.pipeline_mode<synchronous>, transform_indices = @transform_2, window_bounds = array<i64: 1, 192>}, {transform_indices = @transform_3, window_bounds = array<i64: 16, 192>}]} {
    %c0 = arith.constant 0 : index
    %c0_0 = arith.constant 0 : index
    %0 = vector.load %arg1[%c0, %c0_0] : memref<16x64xbf16, #tpu.memory_space<vmem>>, vector<16x64xbf16>
    %c0_1 = arith.constant 0 : index
    %c0_2 = arith.constant 0 : index
    %1 = vector.load %arg2[%c0_1, %c0_2] : memref<64x192xbf16, #tpu.memory_space<vmem>>, vector<64x192xbf16>
    %cst = arith.constant dense<0.000000e+00> : vector<16x192xf32>
    %2 = tpu.matmul %0, %1, %cst {dimension_numbers = #tpu.dot_dimension_numbers<[1], [0], [0], [1], [0, 0, 1, 1], [], []>} : vector<16x64xbf16>, vector<64x192xbf16>, vector<16x192xf32> -> vector<16x192xf32>
    %c0_3 = arith.constant 0 : index
    %c0_4 = arith.constant 0 : index
    %3 = vector.load %arg3[%c0_3, %c0_4] : memref<1x192xf32, #tpu.memory_space<vmem>>, vector<1x192xf32>
    %4 = vector.broadcast %3 : vector<1x192xf32> to vector<16x192xf32>
    %5 = arith.addf %2, %4 : vector<16x192xf32>
    %c0_5 = arith.constant 0 : index
    %c0_6 = arith.constant 0 : index
    %6 = vector.load %arg4[%c0_5, %c0_6] : memref<16x192xf32, #tpu.memory_space<vmem>>, vector<16x192xf32>
    tpu.vector_store %arg4[%c0_5, %c0_6], %5 {strides = array<i32>} : memref<16x192xf32, #tpu.memory_space<vmem>>, vector<16x192xf32>,
    return
  }
  func.func @transform_0(%arg0: i32) -> (i32, i32) {
    %c0_i32 = arith.constant 0 : i32
    %c0_i32_0 = arith.constant 0 : i32
    return %arg0, %c0_i32 : i32, i32
  }
  func.func @transform_1(%arg0: i32) -> (i32, i32) {
    %c0_i32 = arith.constant 0 : i32
    %c0_i32_0 = arith.constant 0 : i32
    %c0_i32_1 = arith.constant 0 : i32
    return %c0_i32, %c0_i32_0 : i32, i32
  }
  func.func @transform_2(%arg0: i32) -> (i32, i32) {
    %c0_i32 = arith.constant 0 : i32
    %c0_i32_0 = arith.constant 0 : i32
    %c0_i32_1 = arith.constant 0 : i32
    return %c0_i32, %c0_i32_0 : i32, i32
  }
  func.func @transform_3(%arg0: i32) -> (i32, i32) {
    %c0_i32 = arith.constant 0 : i32
    %c0_i32_0 = arith.constant 0 : i32
    return %arg0, %c0_i32 : i32, i32
  }
}

module attributes {stable_mosaic.version = 11 : i64} {
  func.func @_bi_gru_scan_kernel(%arg0: memref<8x2x192xf32, #tpu.memory_space<vmem>>, %arg1: memref<2x64xf32, #tpu.memory_space<vmem>>, %arg2: memref<64x192xbf16, #tpu.memory_space<vmem>>, %arg3: memref<1x32xf32, #tpu.memory_space<vmem>>, %arg4: memref<1x32xf32, #tpu.memory_space<vmem>>, %arg5: memref<1x1x64xf32, #tpu.memory_space<vmem>>, %arg6: memref<1x1x64xf32, #tpu.memory_space<vmem>>, %arg7: memref<8x2x64xf32, #tpu.memory_space<vmem>>, %arg8: memref<2x2x32xf32, #tpu.memory_space<vmem>>) attributes {dimension_semantics = [], scalar_prefetch = 0 : i64, scratch_operands = 0 : i64, tpu.core_type = #tpu.core_type<tc>} {
    %c0 = arith.constant 0 : index
    %c0_0 = arith.constant 0 : index
    %0 = vector.load %arg2[%c0, %c0_0] : memref<64x192xbf16, #tpu.memory_space<vmem>>, vector<64x192xbf16>
    %c0_1 = arith.constant 0 : index
    %c0_2 = arith.constant 0 : index
    %1 = vector.load %arg3[%c0_1, %c0_2] : memref<1x32xf32, #tpu.memory_space<vmem>>, vector<1x32xf32>
    %c0_3 = arith.constant 0 : index
    %c0_4 = arith.constant 0 : index
    %2 = vector.load %arg4[%c0_3, %c0_4] : memref<1x32xf32, #tpu.memory_space<vmem>>, vector<1x32xf32>
    %c0_5 = arith.constant 0 : index
    %c0_6 = arith.constant 0 : index
    %3 = vector.load %arg1[%c0_5, %c0_6] : memref<2x64xf32, #tpu.memory_space<vmem>>, vector<2x64xf32>
    %c0_i32 = arith.constant 0 : i32
    %c7_i32 = arith.constant 7 : i32
    %4 = arith.subi %c7_i32, %c0_i32 : i32
    %5 = arith.index_cast %c0_i32 : i32 to index
    %c0_7 = arith.constant 0 : index
    %c0_8 = arith.constant 0 : index
    %6 = vector.load %arg0[%5, %c0_7, %c0_8] : memref<8x2x192xf32, #tpu.memory_space<vmem>>, vector<1x2x192xf32>
    %7 = vector.shape_cast %6 : vector<1x2x192xf32> to vector<2x192xf32>
    %8 = arith.index_cast %4 : i32 to index
    %c0_9 = arith.constant 0 : index
    %c0_10 = arith.constant 0 : index
    %9 = vector.load %arg0[%8, %c0_9, %c0_10] : memref<8x2x192xf32, #tpu.memory_space<vmem>>, vector<1x2x192xf32>
    %10 = vector.shape_cast %9 : vector<1x2x192xf32> to vector<2x192xf32>
    %11 = arith.truncf %3 : vector<2x64xf32> to vector<2x64xbf16>
    %cst = arith.constant dense<0.000000e+00> : vector<2x192xf32>
    %12 = tpu.matmul %11, %0, %cst {dimension_numbers = #tpu.dot_dimension_numbers<[1], [0], [0], [1], [0, 0, 1, 1], [], []>} : vector<2x64xbf16>, vector<64x192xbf16>, vector<2x192xf32> -> vector<2x192xf32>
    %13 = vector.extract_strided_slice %7 {offsets = [0, 0], sizes = [2, 32], strides = [1, 1]} : vector<2x192xf32> to vector<2x32xf32>
    %14 = vector.extract_strided_slice %12 {offsets = [0, 0], sizes = [2, 32], strides = [1, 1]} : vector<2x192xf32> to vector<2x32xf32>
    %15 = arith.addf %13, %14 : vector<2x32xf32>
    %16 = arith.negf %15 : vector<2x32xf32>
    %17 = math.exp %16 : vector<2x32xf32>
    %cst_11 = arith.constant 1.000000e+00 : f32
    %18 = vector.broadcast %cst_11 : f32 to vector<2x32xf32>
    %19 = arith.addf %18, %17 : vector<2x32xf32>
    %20 = arith.divf %18, %19 : vector<2x32xf32>
    %21 = vector.extract_strided_slice %7 {offsets = [0, 32], sizes = [2, 32], strides = [1, 1]} : vector<2x192xf32> to vector<2x32xf32>
    %22 = vector.extract_strided_slice %12 {offsets = [0, 32], sizes = [2, 32], strides = [1, 1]} : vector<2x192xf32> to vector<2x32xf32>
    %23 = arith.addf %21, %22 : vector<2x32xf32>
    %24 = arith.negf %23 : vector<2x32xf32>
    %25 = math.exp %24 : vector<2x32xf32>
    %cst_12 = arith.constant 1.000000e+00 : f32
    %26 = vector.broadcast %cst_12 : f32 to vector<2x32xf32>
    %27 = arith.addf %26, %25 : vector<2x32xf32>
    %28 = arith.divf %26, %27 : vector<2x32xf32>
    %29 = vector.extract_strided_slice %7 {offsets = [0, 64], sizes = [2, 32], strides = [1, 1]} : vector<2x192xf32> to vector<2x32xf32>
    %30 = vector.extract_strided_slice %12 {offsets = [0, 64], sizes = [2, 32], strides = [1, 1]} : vector<2x192xf32> to vector<2x32xf32>
    %31 = vector.broadcast %1 : vector<1x32xf32> to vector<2x32xf32>
    %32 = arith.addf %30, %31 : vector<2x32xf32>
    %33 = arith.mulf %20, %32 : vector<2x32xf32>
    %34 = arith.addf %29, %33 : vector<2x32xf32>
    %35 = math.tanh %34 : vector<2x32xf32>
    %cst_13 = arith.constant 1.000000e+00 : f32
    %36 = vector.broadcast %cst_13 : f32 to vector<2x32xf32>
    %37 = arith.subf %36, %28 : vector<2x32xf32>
    %38 = arith.mulf %37, %35 : vector<2x32xf32>
    %39 = vector.extract_strided_slice %3 {offsets = [0, 0], sizes = [2, 32], strides = [1, 1]} : vector<2x64xf32> to vector<2x32xf32>
    %40 = arith.mulf %28, %39 : vector<2x32xf32>
    %41 = arith.addf %38, %40 : vector<2x32xf32>
    %42 = vector.extract_strided_slice %10 {offsets = [0, 96], sizes = [2, 32], strides = [1, 1]} : vector<2x192xf32> to vector<2x32xf32>
    %43 = vector.extract_strided_slice %12 {offsets = [0, 96], sizes = [2, 32], strides = [1, 1]} : vector<2x192xf32> to vector<2x32xf32>
    %44 = arith.addf %42, %43 : vector<2x32xf32>
    %45 = arith.negf %44 : vector<2x32xf32>
    %46 = math.exp %45 : vector<2x32xf32>
    %cst_14 = arith.constant 1.000000e+00 : f32
    %47 = vector.broadcast %cst_14 : f32 to vector<2x32xf32>
    %48 = arith.addf %47, %46 : vector<2x32xf32>
    %49 = arith.divf %47, %48 : vector<2x32xf32>
    %50 = vector.extract_strided_slice %10 {offsets = [0, 128], sizes = [2, 32], strides = [1, 1]} : vector<2x192xf32> to vector<2x32xf32>
    %51 = vector.extract_strided_slice %12 {offsets = [0, 128], sizes = [2, 32], strides = [1, 1]} : vector<2x192xf32> to vector<2x32xf32>
    %52 = arith.addf %50, %51 : vector<2x32xf32>
    %53 = arith.negf %52 : vector<2x32xf32>
    %54 = math.exp %53 : vector<2x32xf32>
    %cst_15 = arith.constant 1.000000e+00 : f32
    %55 = vector.broadcast %cst_15 : f32 to vector<2x32xf32>
    %56 = arith.addf %55, %54 : vector<2x32xf32>
    %57 = arith.divf %55, %56 : vector<2x32xf32>
    %58 = vector.extract_strided_slice %10 {offsets = [0, 160], sizes = [2, 32], strides = [1, 1]} : vector<2x192xf32> to vector<2x32xf32>
    %59 = vector.extract_strided_slice %12 {offsets = [0, 160], sizes = [2, 32], strides = [1, 1]} : vector<2x192xf32> to vector<2x32xf32>
    %60 = vector.broadcast %2 : vector<1x32xf32> to vector<2x32xf32>
    %61 = arith.addf %59, %60 : vector<2x32xf32>
    %62 = arith.mulf %49, %61 : vector<2x32xf32>
    %63 = arith.addf %58, %62 : vector<2x32xf32>
    %64 = math.tanh %63 : vector<2x32xf32>
    %cst_16 = arith.constant 1.000000e+00 : f32
    %65 = vector.broadcast %cst_16 : f32 to vector<2x32xf32>
    %66 = arith.subf %65, %57 : vector<2x32xf32>
    %67 = arith.mulf %66, %64 : vector<2x32xf32>
    %68 = vector.extract_strided_slice %3 {offsets = [0, 32], sizes = [2, 32], strides = [1, 1]} : vector<2x64xf32> to vector<2x32xf32>
    %69 = arith.mulf %57, %68 : vector<2x32xf32>
    %70 = arith.addf %67, %69 : vector<2x32xf32>
    %71 = arith.index_cast %c0_i32 : i32 to index
    %c0_17 = arith.constant 0 : index
    %c0_18 = arith.constant 0 : index
    %72 = vector.load %arg7[%71, %c0_17, %c0_18] : memref<8x2x64xf32, #tpu.memory_space<vmem>>, vector<1x2x32xf32>
    %73 = vector.shape_cast %72 : vector<1x2x32xf32> to vector<2x32xf32>
    %74 = vector.shape_cast %41 : vector<2x32xf32> to vector<1x2x32xf32>
    tpu.vector_store %arg7[%71, %c0_17, %c0_18], %74 {strides = array<i32>} : memref<8x2x64xf32, #tpu.memory_space<vmem>>, vector<1x2x32xf32>,
    %75 = arith.index_cast %4 : i32 to index
    %c0_19 = arith.constant 0 : index
    %c32 = arith.constant 32 : index
    %76 = vector.load %arg7[%75, %c0_19, %c32] : memref<8x2x64xf32, #tpu.memory_space<vmem>>, vector<1x2x32xf32>
    %77 = vector.shape_cast %76 : vector<1x2x32xf32> to vector<2x32xf32>
    %78 = vector.shape_cast %70 : vector<2x32xf32> to vector<1x2x32xf32>
    tpu.vector_store %arg7[%75, %c0_19, %c32], %78 {strides = array<i32>} : memref<8x2x64xf32, #tpu.memory_space<vmem>>, vector<1x2x32xf32>,
    %79 = tpu.concatenate %41, %70 in 1 : vector<2x32xf32>, vector<2x32xf32> -> vector<2x64xf32>
    %c1_i32 = arith.constant 1 : i32
    %c7_i32_20 = arith.constant 7 : i32
    %80 = arith.subi %c7_i32_20, %c1_i32 : i32
    %81 = arith.index_cast %c1_i32 : i32 to index
    %c0_21 = arith.constant 0 : index
    %c0_22 = arith.constant 0 : index
    %82 = vector.load %arg0[%81, %c0_21, %c0_22] : memref<8x2x192xf32, #tpu.memory_space<vmem>>, vector<1x2x192xf32>
    %83 = vector.shape_cast %82 : vector<1x2x192xf32> to vector<2x192xf32>
    %84 = arith.index_cast %80 : i32 to index
    %c0_23 = arith.constant 0 : index
    %c0_24 = arith.constant 0 : index
    %85 = vector.load %arg0[%84, %c0_23, %c0_24] : memref<8x2x192xf32, #tpu.memory_space<vmem>>, vector<1x2x192xf32>
    %86 = vector.shape_cast %85 : vector<1x2x192xf32> to vector<2x192xf32>
    %87 = arith.truncf %79 : vector<2x64xf32> to vector<2x64xbf16>
    %cst_25 = arith.constant dense<0.000000e+00> : vector<2x192xf32>
    %88 = tpu.matmul %87, %0, %cst_25 {dimension_numbers = #tpu.dot_dimension_numbers<[1], [0], [0], [1], [0, 0, 1, 1], [], []>} : vector<2x64xbf16>, vector<64x192xbf16>, vector<2x192xf32> -> vector<2x192xf32>
    %89 = vector.extract_strided_slice %83 {offsets = [0, 0], sizes = [2, 32], strides = [1, 1]} : vector<2x192xf32> to vector<2x32xf32>
    %90 = vector.extract_strided_slice %88 {offsets = [0, 0], sizes = [2, 32], strides = [1, 1]} : vector<2x192xf32> to vector<2x32xf32>
    %91 = arith.addf %89, %90 : vector<2x32xf32>
    %92 = arith.negf %91 : vector<2x32xf32>
    %93 = math.exp %92 : vector<2x32xf32>
    %cst_26 = arith.constant 1.000000e+00 : f32
    %94 = vector.broadcast %cst_26 : f32 to vector<2x32xf32>
    %95 = arith.addf %94, %93 : vector<2x32xf32>
    %96 = arith.divf %94, %95 : vector<2x32xf32>
    %97 = vector.extract_strided_slice %83 {offsets = [0, 32], sizes = [2, 32], strides = [1, 1]} : vector<2x192xf32> to vector<2x32xf32>
    %98 = vector.extract_strided_slice %88 {offsets = [0, 32], sizes = [2, 32], strides = [1, 1]} : vector<2x192xf32> to vector<2x32xf32>
    %99 = arith.addf %97, %98 : vector<2x32xf32>
    %100 = arith.negf %99 : vector<2x32xf32>
    %101 = math.exp %100 : vector<2x32xf32>
    %cst_27 = arith.constant 1.000000e+00 : f32
    %102 = vector.broadcast %cst_27 : f32 to vector<2x32xf32>
    %103 = arith.addf %102, %101 : vector<2x32xf32>
    %104 = arith.divf %102, %103 : vector<2x32xf32>
    %105 = vector.extract_strided_slice %83 {offsets = [0, 64], sizes = [2, 32], strides = [1, 1]} : vector<2x192xf32> to vector<2x32xf32>
    %106 = vector.extract_strided_slice %88 {offsets = [0, 64], sizes = [2, 32], strides = [1, 1]} : vector<2x192xf32> to vector<2x32xf32>
    %107 = vector.broadcast %1 : vector<1x32xf32> to vector<2x32xf32>
    %108 = arith.addf %106, %107 : vector<2x32xf32>
    %109 = arith.mulf %96, %108 : vector<2x32xf32>
    %110 = arith.addf %105, %109 : vector<2x32xf32>
    %111 = math.tanh %110 : vector<2x32xf32>
    %cst_28 = arith.constant 1.000000e+00 : f32
    %112 = vector.broadcast %cst_28 : f32 to vector<2x32xf32>
    %113 = arith.subf %112, %104 : vector<2x32xf32>
    %114 = arith.mulf %113, %111 : vector<2x32xf32>
    %115 = vector.extract_strided_slice %79 {offsets = [0, 0], sizes = [2, 32], strides = [1, 1]} : vector<2x64xf32> to vector<2x32xf32>
    %116 = arith.mulf %104, %115 : vector<2x32xf32>
    %117 = arith.addf %114, %116 : vector<2x32xf32>
    %118 = vector.extract_strided_slice %86 {offsets = [0, 96], sizes = [2, 32], strides = [1, 1]} : vector<2x192xf32> to vector<2x32xf32>
    %119 = vector.extract_strided_slice %88 {offsets = [0, 96], sizes = [2, 32], strides = [1, 1]} : vector<2x192xf32> to vector<2x32xf32>
    %120 = arith.addf %118, %119 : vector<2x32xf32>
    %121 = arith.negf %120 : vector<2x32xf32>
    %122 = math.exp %121 : vector<2x32xf32>
    %cst_29 = arith.constant 1.000000e+00 : f32
    %123 = vector.broadcast %cst_29 : f32 to vector<2x32xf32>
    %124 = arith.addf %123, %122 : vector<2x32xf32>
    %125 = arith.divf %123, %124 : vector<2x32xf32>
    %126 = vector.extract_strided_slice %86 {offsets = [0, 128], sizes = [2, 32], strides = [1, 1]} : vector<2x192xf32> to vector<2x32xf32>
    %127 = vector.extract_strided_slice %88 {offsets = [0, 128], sizes = [2, 32], strides = [1, 1]} : vector<2x192xf32> to vector<2x32xf32>
    %128 = arith.addf %126, %127 : vector<2x32xf32>
    %129 = arith.negf %128 : vector<2x32xf32>
    %130 = math.exp %129 : vector<2x32xf32>
    %cst_30 = arith.constant 1.000000e+00 : f32
    %131 = vector.broadcast %cst_30 : f32 to vector<2x32xf32>
    %132 = arith.addf %131, %130 : vector<2x32xf32>
    %133 = arith.divf %131, %132 : vector<2x32xf32>
    %134 = vector.extract_strided_slice %86 {offsets = [0, 160], sizes = [2, 32], strides = [1, 1]} : vector<2x192xf32> to vector<2x32xf32>
    %135 = vector.extract_strided_slice %88 {offsets = [0, 160], sizes = [2, 32], strides = [1, 1]} : vector<2x192xf32> to vector<2x32xf32>
    %136 = vector.broadcast %2 : vector<1x32xf32> to vector<2x32xf32>
    %137 = arith.addf %135, %136 : vector<2x32xf32>
    %138 = arith.mulf %125, %137 : vector<2x32xf32>
    %139 = arith.addf %134, %138 : vector<2x32xf32>
    %140 = math.tanh %139 : vector<2x32xf32>
    %cst_31 = arith.constant 1.000000e+00 : f32
    %141 = vector.broadcast %cst_31 : f32 to vector<2x32xf32>
    %142 = arith.subf %141, %133 : vector<2x32xf32>
    %143 = arith.mulf %142, %140 : vector<2x32xf32>
    %144 = vector.extract_strided_slice %79 {offsets = [0, 32], sizes = [2, 32], strides = [1, 1]} : vector<2x64xf32> to vector<2x32xf32>
    %145 = arith.mulf %133, %144 : vector<2x32xf32>
    %146 = arith.addf %143, %145 : vector<2x32xf32>
    %147 = arith.index_cast %c1_i32 : i32 to index
    %c0_32 = arith.constant 0 : index
    %c0_33 = arith.constant 0 : index
    %148 = vector.load %arg7[%147, %c0_32, %c0_33] : memref<8x2x64xf32, #tpu.memory_space<vmem>>, vector<1x2x32xf32>
    %149 = vector.shape_cast %148 : vector<1x2x32xf32> to vector<2x32xf32>
    %150 = vector.shape_cast %117 : vector<2x32xf32> to vector<1x2x32xf32>
    tpu.vector_store %arg7[%147, %c0_32, %c0_33], %150 {strides = array<i32>} : memref<8x2x64xf32, #tpu.memory_space<vmem>>, vector<1x2x32xf32>,
    %151 = arith.index_cast %80 : i32 to index
    %c0_34 = arith.constant 0 : index
    %c32_35 = arith.constant 32 : index
    %152 = vector.load %arg7[%151, %c0_34, %c32_35] : memref<8x2x64xf32, #tpu.memory_space<vmem>>, vector<1x2x32xf32>
    %153 = vector.shape_cast %152 : vector<1x2x32xf32> to vector<2x32xf32>
    %154 = vector.shape_cast %146 : vector<2x32xf32> to vector<1x2x32xf32>
    tpu.vector_store %arg7[%151, %c0_34, %c32_35], %154 {strides = array<i32>} : memref<8x2x64xf32, #tpu.memory_space<vmem>>, vector<1x2x32xf32>,
    %155 = tpu.concatenate %117, %146 in 1 : vector<2x32xf32>, vector<2x32xf32> -> vector<2x64xf32>
    %c2_i32 = arith.constant 2 : i32
    %c7_i32_36 = arith.constant 7 : i32
    %156 = arith.subi %c7_i32_36, %c2_i32 : i32
    %157 = arith.index_cast %c2_i32 : i32 to index
    %c0_37 = arith.constant 0 : index
    %c0_38 = arith.constant 0 : index
    %158 = vector.load %arg0[%157, %c0_37, %c0_38] : memref<8x2x192xf32, #tpu.memory_space<vmem>>, vector<1x2x192xf32>
    %159 = vector.shape_cast %158 : vector<1x2x192xf32> to vector<2x192xf32>
    %160 = arith.index_cast %156 : i32 to index
    %c0_39 = arith.constant 0 : index
    %c0_40 = arith.constant 0 : index
    %161 = vector.load %arg0[%160, %c0_39, %c0_40] : memref<8x2x192xf32, #tpu.memory_space<vmem>>, vector<1x2x192xf32>
    %162 = vector.shape_cast %161 : vector<1x2x192xf32> to vector<2x192xf32>
    %163 = arith.truncf %155 : vector<2x64xf32> to vector<2x64xbf16>
    %cst_41 = arith.constant dense<0.000000e+00> : vector<2x192xf32>
    %164 = tpu.matmul %163, %0, %cst_41 {dimension_numbers = #tpu.dot_dimension_numbers<[1], [0], [0], [1], [0, 0, 1, 1], [], []>} : vector<2x64xbf16>, vector<64x192xbf16>, vector<2x192xf32> -> vector<2x192xf32>
    %165 = vector.extract_strided_slice %159 {offsets = [0, 0], sizes = [2, 32], strides = [1, 1]} : vector<2x192xf32> to vector<2x32xf32>
    %166 = vector.extract_strided_slice %164 {offsets = [0, 0], sizes = [2, 32], strides = [1, 1]} : vector<2x192xf32> to vector<2x32xf32>
    %167 = arith.addf %165, %166 : vector<2x32xf32>
    %168 = arith.negf %167 : vector<2x32xf32>
    %169 = math.exp %168 : vector<2x32xf32>
    %cst_42 = arith.constant 1.000000e+00 : f32
    %170 = vector.broadcast %cst_42 : f32 to vector<2x32xf32>
    %171 = arith.addf %170, %169 : vector<2x32xf32>
    %172 = arith.divf %170, %171 : vector<2x32xf32>
    %173 = vector.extract_strided_slice %159 {offsets = [0, 32], sizes = [2, 32], strides = [1, 1]} : vector<2x192xf32> to vector<2x32xf32>
    %174 = vector.extract_strided_slice %164 {offsets = [0, 32], sizes = [2, 32], strides = [1, 1]} : vector<2x192xf32> to vector<2x32xf32>
    %175 = arith.addf %173, %174 : vector<2x32xf32>
    %176 = arith.negf %175 : vector<2x32xf32>
    %177 = math.exp %176 : vector<2x32xf32>
    %cst_43 = arith.constant 1.000000e+00 : f32
    %178 = vector.broadcast %cst_43 : f32 to vector<2x32xf32>
    %179 = arith.addf %178, %177 : vector<2x32xf32>
    %180 = arith.divf %178, %179 : vector<2x32xf32>
    %181 = vector.extract_strided_slice %159 {offsets = [0, 64], sizes = [2, 32], strides = [1, 1]} : vector<2x192xf32> to vector<2x32xf32>
    %182 = vector.extract_strided_slice %164 {offsets = [0, 64], sizes = [2, 32], strides = [1, 1]} : vector<2x192xf32> to vector<2x32xf32>
    %183 = vector.broadcast %1 : vector<1x32xf32> to vector<2x32xf32>
    %184 = arith.addf %182, %183 : vector<2x32xf32>
    %185 = arith.mulf %172, %184 : vector<2x32xf32>
    %186 = arith.addf %181, %185 : vector<2x32xf32>
    %187 = math.tanh %186 : vector<2x32xf32>
    %cst_44 = arith.constant 1.000000e+00 : f32
    %188 = vector.broadcast %cst_44 : f32 to vector<2x32xf32>
    %189 = arith.subf %188, %180 : vector<2x32xf32>
    %190 = arith.mulf %189, %187 : vector<2x32xf32>
    %191 = vector.extract_strided_slice %155 {offsets = [0, 0], sizes = [2, 32], strides = [1, 1]} : vector<2x64xf32> to vector<2x32xf32>
    %192 = arith.mulf %180, %191 : vector<2x32xf32>
    %193 = arith.addf %190, %192 : vector<2x32xf32>
    %194 = vector.extract_strided_slice %162 {offsets = [0, 96], sizes = [2, 32], strides = [1, 1]} : vector<2x192xf32> to vector<2x32xf32>
    %195 = vector.extract_strided_slice %164 {offsets = [0, 96], sizes = [2, 32], strides = [1, 1]} : vector<2x192xf32> to vector<2x32xf32>
    %196 = arith.addf %194, %195 : vector<2x32xf32>
    %197 = arith.negf %196 : vector<2x32xf32>
    %198 = math.exp %197 : vector<2x32xf32>
    %cst_45 = arith.constant 1.000000e+00 : f32
    %199 = vector.broadcast %cst_45 : f32 to vector<2x32xf32>
    %200 = arith.addf %199, %198 : vector<2x32xf32>
    %201 = arith.divf %199, %200 : vector<2x32xf32>
    %202 = vector.extract_strided_slice %162 {offsets = [0, 128], sizes = [2, 32], strides = [1, 1]} : vector<2x192xf32> to vector<2x32xf32>
    %203 = vector.extract_strided_slice %164 {offsets = [0, 128], sizes = [2, 32], strides = [1, 1]} : vector<2x192xf32> to vector<2x32xf32>
    %204 = arith.addf %202, %203 : vector<2x32xf32>
    %205 = arith.negf %204 : vector<2x32xf32>
    %206 = math.exp %205 : vector<2x32xf32>
    %cst_46 = arith.constant 1.000000e+00 : f32
    %207 = vector.broadcast %cst_46 : f32 to vector<2x32xf32>
    %208 = arith.addf %207, %206 : vector<2x32xf32>
    %209 = arith.divf %207, %208 : vector<2x32xf32>
    %210 = vector.extract_strided_slice %162 {offsets = [0, 160], sizes = [2, 32], strides = [1, 1]} : vector<2x192xf32> to vector<2x32xf32>
    %211 = vector.extract_strided_slice %164 {offsets = [0, 160], sizes = [2, 32], strides = [1, 1]} : vector<2x192xf32> to vector<2x32xf32>
    %212 = vector.broadcast %2 : vector<1x32xf32> to vector<2x32xf32>
    %213 = arith.addf %211, %212 : vector<2x32xf32>
    %214 = arith.mulf %201, %213 : vector<2x32xf32>
    %215 = arith.addf %210, %214 : vector<2x32xf32>
    %216 = math.tanh %215 : vector<2x32xf32>
    %cst_47 = arith.constant 1.000000e+00 : f32
    %217 = vector.broadcast %cst_47 : f32 to vector<2x32xf32>
    %218 = arith.subf %217, %209 : vector<2x32xf32>
    %219 = arith.mulf %218, %216 : vector<2x32xf32>
    %220 = vector.extract_strided_slice %155 {offsets = [0, 32], sizes = [2, 32], strides = [1, 1]} : vector<2x64xf32> to vector<2x32xf32>
    %221 = arith.mulf %209, %220 : vector<2x32xf32>
    %222 = arith.addf %219, %221 : vector<2x32xf32>
    %223 = arith.index_cast %c2_i32 : i32 to index
    %c0_48 = arith.constant 0 : index
    %c0_49 = arith.constant 0 : index
    %224 = vector.load %arg7[%223, %c0_48, %c0_49] : memref<8x2x64xf32, #tpu.memory_space<vmem>>, vector<1x2x32xf32>
    %225 = vector.shape_cast %224 : vector<1x2x32xf32> to vector<2x32xf32>
    %226 = vector.shape_cast %193 : vector<2x32xf32> to vector<1x2x32xf32>
    tpu.vector_store %arg7[%223, %c0_48, %c0_49], %226 {strides = array<i32>} : memref<8x2x64xf32, #tpu.memory_space<vmem>>, vector<1x2x32xf32>,
    %227 = arith.index_cast %156 : i32 to index
    %c0_50 = arith.constant 0 : index
    %c32_51 = arith.constant 32 : index
    %228 = vector.load %arg7[%227, %c0_50, %c32_51] : memref<8x2x64xf32, #tpu.memory_space<vmem>>, vector<1x2x32xf32>
    %229 = vector.shape_cast %228 : vector<1x2x32xf32> to vector<2x32xf32>
    %230 = vector.shape_cast %222 : vector<2x32xf32> to vector<1x2x32xf32>
    tpu.vector_store %arg7[%227, %c0_50, %c32_51], %230 {strides = array<i32>} : memref<8x2x64xf32, #tpu.memory_space<vmem>>, vector<1x2x32xf32>,
    %231 = tpu.concatenate %193, %222 in 1 : vector<2x32xf32>, vector<2x32xf32> -> vector<2x64xf32>
    %c3_i32 = arith.constant 3 : i32
    %c7_i32_52 = arith.constant 7 : i32
    %232 = arith.subi %c7_i32_52, %c3_i32 : i32
    %233 = arith.index_cast %c3_i32 : i32 to index
    %c0_53 = arith.constant 0 : index
    %c0_54 = arith.constant 0 : index
    %234 = vector.load %arg0[%233, %c0_53, %c0_54] : memref<8x2x192xf32, #tpu.memory_space<vmem>>, vector<1x2x192xf32>
    %235 = vector.shape_cast %234 : vector<1x2x192xf32> to vector<2x192xf32>
    %236 = arith.index_cast %232 : i32 to index
    %c0_55 = arith.constant 0 : index
    %c0_56 = arith.constant 0 : index
    %237 = vector.load %arg0[%236, %c0_55, %c0_56] : memref<8x2x192xf32, #tpu.memory_space<vmem>>, vector<1x2x192xf32>
    %238 = vector.shape_cast %237 : vector<1x2x192xf32> to vector<2x192xf32>
    %239 = arith.truncf %231 : vector<2x64xf32> to vector<2x64xbf16>
    %cst_57 = arith.constant dense<0.000000e+00> : vector<2x192xf32>
    %240 = tpu.matmul %239, %0, %cst_57 {dimension_numbers = #tpu.dot_dimension_numbers<[1], [0], [0], [1], [0, 0, 1, 1], [], []>} : vector<2x64xbf16>, vector<64x192xbf16>, vector<2x192xf32> -> vector<2x192xf32>
    %241 = vector.extract_strided_slice %235 {offsets = [0, 0], sizes = [2, 32], strides = [1, 1]} : vector<2x192xf32> to vector<2x32xf32>
    %242 = vector.extract_strided_slice %240 {offsets = [0, 0], sizes = [2, 32], strides = [1, 1]} : vector<2x192xf32> to vector<2x32xf32>
    %243 = arith.addf %241, %242 : vector<2x32xf32>
    %244 = arith.negf %243 : vector<2x32xf32>
    %245 = math.exp %244 : vector<2x32xf32>
    %cst_58 = arith.constant 1.000000e+00 : f32
    %246 = vector.broadcast %cst_58 : f32 to vector<2x32xf32>
    %247 = arith.addf %246, %245 : vector<2x32xf32>
    %248 = arith.divf %246, %247 : vector<2x32xf32>
    %249 = vector.extract_strided_slice %235 {offsets = [0, 32], sizes = [2, 32], strides = [1, 1]} : vector<2x192xf32> to vector<2x32xf32>
    %250 = vector.extract_strided_slice %240 {offsets = [0, 32], sizes = [2, 32], strides = [1, 1]} : vector<2x192xf32> to vector<2x32xf32>
    %251 = arith.addf %249, %250 : vector<2x32xf32>
    %252 = arith.negf %251 : vector<2x32xf32>
    %253 = math.exp %252 : vector<2x32xf32>
    %cst_59 = arith.constant 1.000000e+00 : f32
    %254 = vector.broadcast %cst_59 : f32 to vector<2x32xf32>
    %255 = arith.addf %254, %253 : vector<2x32xf32>
    %256 = arith.divf %254, %255 : vector<2x32xf32>
    %257 = vector.extract_strided_slice %235 {offsets = [0, 64], sizes = [2, 32], strides = [1, 1]} : vector<2x192xf32> to vector<2x32xf32>
    %258 = vector.extract_strided_slice %240 {offsets = [0, 64], sizes = [2, 32], strides = [1, 1]} : vector<2x192xf32> to vector<2x32xf32>
    %259 = vector.broadcast %1 : vector<1x32xf32> to vector<2x32xf32>
    %260 = arith.addf %258, %259 : vector<2x32xf32>
    %261 = arith.mulf %248, %260 : vector<2x32xf32>
    %262 = arith.addf %257, %261 : vector<2x32xf32>
    %263 = math.tanh %262 : vector<2x32xf32>
    %cst_60 = arith.constant 1.000000e+00 : f32
    %264 = vector.broadcast %cst_60 : f32 to vector<2x32xf32>
    %265 = arith.subf %264, %256 : vector<2x32xf32>
    %266 = arith.mulf %265, %263 : vector<2x32xf32>
    %267 = vector.extract_strided_slice %231 {offsets = [0, 0], sizes = [2, 32], strides = [1, 1]} : vector<2x64xf32> to vector<2x32xf32>
    %268 = arith.mulf %256, %267 : vector<2x32xf32>
    %269 = arith.addf %266, %268 : vector<2x32xf32>
    %270 = vector.extract_strided_slice %238 {offsets = [0, 96], sizes = [2, 32], strides = [1, 1]} : vector<2x192xf32> to vector<2x32xf32>
    %271 = vector.extract_strided_slice %240 {offsets = [0, 96], sizes = [2, 32], strides = [1, 1]} : vector<2x192xf32> to vector<2x32xf32>
    %272 = arith.addf %270, %271 : vector<2x32xf32>
    %273 = arith.negf %272 : vector<2x32xf32>
    %274 = math.exp %273 : vector<2x32xf32>
    %cst_61 = arith.constant 1.000000e+00 : f32
    %275 = vector.broadcast %cst_61 : f32 to vector<2x32xf32>
    %276 = arith.addf %275, %274 : vector<2x32xf32>
    %277 = arith.divf %275, %276 : vector<2x32xf32>
    %278 = vector.extract_strided_slice %238 {offsets = [0, 128], sizes = [2, 32], strides = [1, 1]} : vector<2x192xf32> to vector<2x32xf32>
    %279 = vector.extract_strided_slice %240 {offsets = [0, 128], sizes = [2, 32], strides = [1, 1]} : vector<2x192xf32> to vector<2x32xf32>
    %280 = arith.addf %278, %279 : vector<2x32xf32>
    %281 = arith.negf %280 : vector<2x32xf32>
    %282 = math.exp %281 : vector<2x32xf32>
    %cst_62 = arith.constant 1.000000e+00 : f32
    %283 = vector.broadcast %cst_62 : f32 to vector<2x32xf32>
    %284 = arith.addf %283, %282 : vector<2x32xf32>
    %285 = arith.divf %283, %284 : vector<2x32xf32>
    %286 = vector.extract_strided_slice %238 {offsets = [0, 160], sizes = [2, 32], strides = [1, 1]} : vector<2x192xf32> to vector<2x32xf32>
    %287 = vector.extract_strided_slice %240 {offsets = [0, 160], sizes = [2, 32], strides = [1, 1]} : vector<2x192xf32> to vector<2x32xf32>
    %288 = vector.broadcast %2 : vector<1x32xf32> to vector<2x32xf32>
    %289 = arith.addf %287, %288 : vector<2x32xf32>
    %290 = arith.mulf %277, %289 : vector<2x32xf32>
    %291 = arith.addf %286, %290 : vector<2x32xf32>
    %292 = math.tanh %291 : vector<2x32xf32>
    %cst_63 = arith.constant 1.000000e+00 : f32
    %293 = vector.broadcast %cst_63 : f32 to vector<2x32xf32>
    %294 = arith.subf %293, %285 : vector<2x32xf32>
    %295 = arith.mulf %294, %292 : vector<2x32xf32>
    %296 = vector.extract_strided_slice %231 {offsets = [0, 32], sizes = [2, 32], strides = [1, 1]} : vector<2x64xf32> to vector<2x32xf32>
    %297 = arith.mulf %285, %296 : vector<2x32xf32>
    %298 = arith.addf %295, %297 : vector<2x32xf32>
    %299 = arith.index_cast %c3_i32 : i32 to index
    %c0_64 = arith.constant 0 : index
    %c0_65 = arith.constant 0 : index
    %300 = vector.load %arg7[%299, %c0_64, %c0_65] : memref<8x2x64xf32, #tpu.memory_space<vmem>>, vector<1x2x32xf32>
    %301 = vector.shape_cast %300 : vector<1x2x32xf32> to vector<2x32xf32>
    %302 = vector.shape_cast %269 : vector<2x32xf32> to vector<1x2x32xf32>
    tpu.vector_store %arg7[%299, %c0_64, %c0_65], %302 {strides = array<i32>} : memref<8x2x64xf32, #tpu.memory_space<vmem>>, vector<1x2x32xf32>,
    %303 = arith.index_cast %232 : i32 to index
    %c0_66 = arith.constant 0 : index
    %c32_67 = arith.constant 32 : index
    %304 = vector.load %arg7[%303, %c0_66, %c32_67] : memref<8x2x64xf32, #tpu.memory_space<vmem>>, vector<1x2x32xf32>
    %305 = vector.shape_cast %304 : vector<1x2x32xf32> to vector<2x32xf32>
    %306 = vector.shape_cast %298 : vector<2x32xf32> to vector<1x2x32xf32>
    tpu.vector_store %arg7[%303, %c0_66, %c32_67], %306 {strides = array<i32>} : memref<8x2x64xf32, #tpu.memory_space<vmem>>, vector<1x2x32xf32>,
    %307 = tpu.concatenate %269, %298 in 1 : vector<2x32xf32>, vector<2x32xf32> -> vector<2x64xf32>
    %c4_i32 = arith.constant 4 : i32
    %c7_i32_68 = arith.constant 7 : i32
    %308 = arith.subi %c7_i32_68, %c4_i32 : i32
    %309 = arith.index_cast %c4_i32 : i32 to index
    %c0_69 = arith.constant 0 : index
    %c0_70 = arith.constant 0 : index
    %310 = vector.load %arg0[%309, %c0_69, %c0_70] : memref<8x2x192xf32, #tpu.memory_space<vmem>>, vector<1x2x192xf32>
    %311 = vector.shape_cast %310 : vector<1x2x192xf32> to vector<2x192xf32>
    %312 = arith.index_cast %308 : i32 to index
    %c0_71 = arith.constant 0 : index
    %c0_72 = arith.constant 0 : index
    %313 = vector.load %arg0[%312, %c0_71, %c0_72] : memref<8x2x192xf32, #tpu.memory_space<vmem>>, vector<1x2x192xf32>
    %314 = vector.shape_cast %313 : vector<1x2x192xf32> to vector<2x192xf32>
    %315 = arith.truncf %307 : vector<2x64xf32> to vector<2x64xbf16>
    %cst_73 = arith.constant dense<0.000000e+00> : vector<2x192xf32>
    %316 = tpu.matmul %315, %0, %cst_73 {dimension_numbers = #tpu.dot_dimension_numbers<[1], [0], [0], [1], [0, 0, 1, 1], [], []>} : vector<2x64xbf16>, vector<64x192xbf16>, vector<2x192xf32> -> vector<2x192xf32>
    %317 = vector.extract_strided_slice %311 {offsets = [0, 0], sizes = [2, 32], strides = [1, 1]} : vector<2x192xf32> to vector<2x32xf32>
    %318 = vector.extract_strided_slice %316 {offsets = [0, 0], sizes = [2, 32], strides = [1, 1]} : vector<2x192xf32> to vector<2x32xf32>
    %319 = arith.addf %317, %318 : vector<2x32xf32>
    %320 = arith.negf %319 : vector<2x32xf32>
    %321 = math.exp %320 : vector<2x32xf32>
    %cst_74 = arith.constant 1.000000e+00 : f32
    %322 = vector.broadcast %cst_74 : f32 to vector<2x32xf32>
    %323 = arith.addf %322, %321 : vector<2x32xf32>
    %324 = arith.divf %322, %323 : vector<2x32xf32>
    %325 = vector.extract_strided_slice %311 {offsets = [0, 32], sizes = [2, 32], strides = [1, 1]} : vector<2x192xf32> to vector<2x32xf32>
    %326 = vector.extract_strided_slice %316 {offsets = [0, 32], sizes = [2, 32], strides = [1, 1]} : vector<2x192xf32> to vector<2x32xf32>
    %327 = arith.addf %325, %326 : vector<2x32xf32>
    %328 = arith.negf %327 : vector<2x32xf32>
    %329 = math.exp %328 : vector<2x32xf32>
    %cst_75 = arith.constant 1.000000e+00 : f32
    %330 = vector.broadcast %cst_75 : f32 to vector<2x32xf32>
    %331 = arith.addf %330, %329 : vector<2x32xf32>
    %332 = arith.divf %330, %331 : vector<2x32xf32>
    %333 = vector.extract_strided_slice %311 {offsets = [0, 64], sizes = [2, 32], strides = [1, 1]} : vector<2x192xf32> to vector<2x32xf32>
    %334 = vector.extract_strided_slice %316 {offsets = [0, 64], sizes = [2, 32], strides = [1, 1]} : vector<2x192xf32> to vector<2x32xf32>
    %335 = vector.broadcast %1 : vector<1x32xf32> to vector<2x32xf32>
    %336 = arith.addf %334, %335 : vector<2x32xf32>
    %337 = arith.mulf %324, %336 : vector<2x32xf32>
    %338 = arith.addf %333, %337 : vector<2x32xf32>
    %339 = math.tanh %338 : vector<2x32xf32>
    %cst_76 = arith.constant 1.000000e+00 : f32
    %340 = vector.broadcast %cst_76 : f32 to vector<2x32xf32>
    %341 = arith.subf %340, %332 : vector<2x32xf32>
    %342 = arith.mulf %341, %339 : vector<2x32xf32>
    %343 = vector.extract_strided_slice %307 {offsets = [0, 0], sizes = [2, 32], strides = [1, 1]} : vector<2x64xf32> to vector<2x32xf32>
    %344 = arith.mulf %332, %343 : vector<2x32xf32>
    %345 = arith.addf %342, %344 : vector<2x32xf32>
    %346 = vector.extract_strided_slice %314 {offsets = [0, 96], sizes = [2, 32], strides = [1, 1]} : vector<2x192xf32> to vector<2x32xf32>
    %347 = vector.extract_strided_slice %316 {offsets = [0, 96], sizes = [2, 32], strides = [1, 1]} : vector<2x192xf32> to vector<2x32xf32>
    %348 = arith.addf %346, %347 : vector<2x32xf32>
    %349 = arith.negf %348 : vector<2x32xf32>
    %350 = math.exp %349 : vector<2x32xf32>
    %cst_77 = arith.constant 1.000000e+00 : f32
    %351 = vector.broadcast %cst_77 : f32 to vector<2x32xf32>
    %352 = arith.addf %351, %350 : vector<2x32xf32>
    %353 = arith.divf %351, %352 : vector<2x32xf32>
    %354 = vector.extract_strided_slice %314 {offsets = [0, 128], sizes = [2, 32], strides = [1, 1]} : vector<2x192xf32> to vector<2x32xf32>
    %355 = vector.extract_strided_slice %316 {offsets = [0, 128], sizes = [2, 32], strides = [1, 1]} : vector<2x192xf32> to vector<2x32xf32>
    %356 = arith.addf %354, %355 : vector<2x32xf32>
    %357 = arith.negf %356 : vector<2x32xf32>
    %358 = math.exp %357 : vector<2x32xf32>
    %cst_78 = arith.constant 1.000000e+00 : f32
    %359 = vector.broadcast %cst_78 : f32 to vector<2x32xf32>
    %360 = arith.addf %359, %358 : vector<2x32xf32>
    %361 = arith.divf %359, %360 : vector<2x32xf32>
    %362 = vector.extract_strided_slice %314 {offsets = [0, 160], sizes = [2, 32], strides = [1, 1]} : vector<2x192xf32> to vector<2x32xf32>
    %363 = vector.extract_strided_slice %316 {offsets = [0, 160], sizes = [2, 32], strides = [1, 1]} : vector<2x192xf32> to vector<2x32xf32>
    %364 = vector.broadcast %2 : vector<1x32xf32> to vector<2x32xf32>
    %365 = arith.addf %363, %364 : vector<2x32xf32>
    %366 = arith.mulf %353, %365 : vector<2x32xf32>
    %367 = arith.addf %362, %366 : vector<2x32xf32>
    %368 = math.tanh %367 : vector<2x32xf32>
    %cst_79 = arith.constant 1.000000e+00 : f32
    %369 = vector.broadcast %cst_79 : f32 to vector<2x32xf32>
    %370 = arith.subf %369, %361 : vector<2x32xf32>
    %371 = arith.mulf %370, %368 : vector<2x32xf32>
    %372 = vector.extract_strided_slice %307 {offsets = [0, 32], sizes = [2, 32], strides = [1, 1]} : vector<2x64xf32> to vector<2x32xf32>
    %373 = arith.mulf %361, %372 : vector<2x32xf32>
    %374 = arith.addf %371, %373 : vector<2x32xf32>
    %375 = arith.index_cast %c4_i32 : i32 to index
    %c0_80 = arith.constant 0 : index
    %c0_81 = arith.constant 0 : index
    %376 = vector.load %arg7[%375, %c0_80, %c0_81] : memref<8x2x64xf32, #tpu.memory_space<vmem>>, vector<1x2x32xf32>
    %377 = vector.shape_cast %376 : vector<1x2x32xf32> to vector<2x32xf32>
    %378 = vector.shape_cast %345 : vector<2x32xf32> to vector<1x2x32xf32>
    tpu.vector_store %arg7[%375, %c0_80, %c0_81], %378 {strides = array<i32>} : memref<8x2x64xf32, #tpu.memory_space<vmem>>, vector<1x2x32xf32>,
    %379 = arith.index_cast %308 : i32 to index
    %c0_82 = arith.constant 0 : index
    %c32_83 = arith.constant 32 : index
    %380 = vector.load %arg7[%379, %c0_82, %c32_83] : memref<8x2x64xf32, #tpu.memory_space<vmem>>, vector<1x2x32xf32>
    %381 = vector.shape_cast %380 : vector<1x2x32xf32> to vector<2x32xf32>
    %382 = vector.shape_cast %374 : vector<2x32xf32> to vector<1x2x32xf32>
    tpu.vector_store %arg7[%379, %c0_82, %c32_83], %382 {strides = array<i32>} : memref<8x2x64xf32, #tpu.memory_space<vmem>>, vector<1x2x32xf32>,
    %383 = tpu.concatenate %345, %374 in 1 : vector<2x32xf32>, vector<2x32xf32> -> vector<2x64xf32>
    %c5_i32 = arith.constant 5 : i32
    %c7_i32_84 = arith.constant 7 : i32
    %384 = arith.subi %c7_i32_84, %c5_i32 : i32
    %385 = arith.index_cast %c5_i32 : i32 to index
    %c0_85 = arith.constant 0 : index
    %c0_86 = arith.constant 0 : index
    %386 = vector.load %arg0[%385, %c0_85, %c0_86] : memref<8x2x192xf32, #tpu.memory_space<vmem>>, vector<1x2x192xf32>
    %387 = vector.shape_cast %386 : vector<1x2x192xf32> to vector<2x192xf32>
    %388 = arith.index_cast %384 : i32 to index
    %c0_87 = arith.constant 0 : index
    %c0_88 = arith.constant 0 : index
    %389 = vector.load %arg0[%388, %c0_87, %c0_88] : memref<8x2x192xf32, #tpu.memory_space<vmem>>, vector<1x2x192xf32>
    %390 = vector.shape_cast %389 : vector<1x2x192xf32> to vector<2x192xf32>
    %391 = arith.truncf %383 : vector<2x64xf32> to vector<2x64xbf16>
    %cst_89 = arith.constant dense<0.000000e+00> : vector<2x192xf32>
    %392 = tpu.matmul %391, %0, %cst_89 {dimension_numbers = #tpu.dot_dimension_numbers<[1], [0], [0], [1], [0, 0, 1, 1], [], []>} : vector<2x64xbf16>, vector<64x192xbf16>, vector<2x192xf32> -> vector<2x192xf32>
    %393 = vector.extract_strided_slice %387 {offsets = [0, 0], sizes = [2, 32], strides = [1, 1]} : vector<2x192xf32> to vector<2x32xf32>
    %394 = vector.extract_strided_slice %392 {offsets = [0, 0], sizes = [2, 32], strides = [1, 1]} : vector<2x192xf32> to vector<2x32xf32>
    %395 = arith.addf %393, %394 : vector<2x32xf32>
    %396 = arith.negf %395 : vector<2x32xf32>
    %397 = math.exp %396 : vector<2x32xf32>
    %cst_90 = arith.constant 1.000000e+00 : f32
    %398 = vector.broadcast %cst_90 : f32 to vector<2x32xf32>
    %399 = arith.addf %398, %397 : vector<2x32xf32>
    %400 = arith.divf %398, %399 : vector<2x32xf32>
    %401 = vector.extract_strided_slice %387 {offsets = [0, 32], sizes = [2, 32], strides = [1, 1]} : vector<2x192xf32> to vector<2x32xf32>
    %402 = vector.extract_strided_slice %392 {offsets = [0, 32], sizes = [2, 32], strides = [1, 1]} : vector<2x192xf32> to vector<2x32xf32>
    %403 = arith.addf %401, %402 : vector<2x32xf32>
    %404 = arith.negf %403 : vector<2x32xf32>
    %405 = math.exp %404 : vector<2x32xf32>
    %cst_91 = arith.constant 1.000000e+00 : f32
    %406 = vector.broadcast %cst_91 : f32 to vector<2x32xf32>
    %407 = arith.addf %406, %405 : vector<2x32xf32>
    %408 = arith.divf %406, %407 : vector<2x32xf32>
    %409 = vector.extract_strided_slice %387 {offsets = [0, 64], sizes = [2, 32], strides = [1, 1]} : vector<2x192xf32> to vector<2x32xf32>
    %410 = vector.extract_strided_slice %392 {offsets = [0, 64], sizes = [2, 32], strides = [1, 1]} : vector<2x192xf32> to vector<2x32xf32>
    %411 = vector.broadcast %1 : vector<1x32xf32> to vector<2x32xf32>
    %412 = arith.addf %410, %411 : vector<2x32xf32>
    %413 = arith.mulf %400, %412 : vector<2x32xf32>
    %414 = arith.addf %409, %413 : vector<2x32xf32>
    %415 = math.tanh %414 : vector<2x32xf32>
    %cst_92 = arith.constant 1.000000e+00 : f32
    %416 = vector.broadcast %cst_92 : f32 to vector<2x32xf32>
    %417 = arith.subf %416, %408 : vector<2x32xf32>
    %418 = arith.mulf %417, %415 : vector<2x32xf32>
    %419 = vector.extract_strided_slice %383 {offsets = [0, 0], sizes = [2, 32], strides = [1, 1]} : vector<2x64xf32> to vector<2x32xf32>
    %420 = arith.mulf %408, %419 : vector<2x32xf32>
    %421 = arith.addf %418, %420 : vector<2x32xf32>
    %422 = vector.extract_strided_slice %390 {offsets = [0, 96], sizes = [2, 32], strides = [1, 1]} : vector<2x192xf32> to vector<2x32xf32>
    %423 = vector.extract_strided_slice %392 {offsets = [0, 96], sizes = [2, 32], strides = [1, 1]} : vector<2x192xf32> to vector<2x32xf32>
    %424 = arith.addf %422, %423 : vector<2x32xf32>
    %425 = arith.negf %424 : vector<2x32xf32>
    %426 = math.exp %425 : vector<2x32xf32>
    %cst_93 = arith.constant 1.000000e+00 : f32
    %427 = vector.broadcast %cst_93 : f32 to vector<2x32xf32>
    %428 = arith.addf %427, %426 : vector<2x32xf32>
    %429 = arith.divf %427, %428 : vector<2x32xf32>
    %430 = vector.extract_strided_slice %390 {offsets = [0, 128], sizes = [2, 32], strides = [1, 1]} : vector<2x192xf32> to vector<2x32xf32>
    %431 = vector.extract_strided_slice %392 {offsets = [0, 128], sizes = [2, 32], strides = [1, 1]} : vector<2x192xf32> to vector<2x32xf32>
    %432 = arith.addf %430, %431 : vector<2x32xf32>
    %433 = arith.negf %432 : vector<2x32xf32>
    %434 = math.exp %433 : vector<2x32xf32>
    %cst_94 = arith.constant 1.000000e+00 : f32
    %435 = vector.broadcast %cst_94 : f32 to vector<2x32xf32>
    %436 = arith.addf %435, %434 : vector<2x32xf32>
    %437 = arith.divf %435, %436 : vector<2x32xf32>
    %438 = vector.extract_strided_slice %390 {offsets = [0, 160], sizes = [2, 32], strides = [1, 1]} : vector<2x192xf32> to vector<2x32xf32>
    %439 = vector.extract_strided_slice %392 {offsets = [0, 160], sizes = [2, 32], strides = [1, 1]} : vector<2x192xf32> to vector<2x32xf32>
    %440 = vector.broadcast %2 : vector<1x32xf32> to vector<2x32xf32>
    %441 = arith.addf %439, %440 : vector<2x32xf32>
    %442 = arith.mulf %429, %441 : vector<2x32xf32>
    %443 = arith.addf %438, %442 : vector<2x32xf32>
    %444 = math.tanh %443 : vector<2x32xf32>
    %cst_95 = arith.constant 1.000000e+00 : f32
    %445 = vector.broadcast %cst_95 : f32 to vector<2x32xf32>
    %446 = arith.subf %445, %437 : vector<2x32xf32>
    %447 = arith.mulf %446, %444 : vector<2x32xf32>
    %448 = vector.extract_strided_slice %383 {offsets = [0, 32], sizes = [2, 32], strides = [1, 1]} : vector<2x64xf32> to vector<2x32xf32>
    %449 = arith.mulf %437, %448 : vector<2x32xf32>
    %450 = arith.addf %447, %449 : vector<2x32xf32>
    %451 = arith.index_cast %c5_i32 : i32 to index
    %c0_96 = arith.constant 0 : index
    %c0_97 = arith.constant 0 : index
    %452 = vector.load %arg7[%451, %c0_96, %c0_97] : memref<8x2x64xf32, #tpu.memory_space<vmem>>, vector<1x2x32xf32>
    %453 = vector.shape_cast %452 : vector<1x2x32xf32> to vector<2x32xf32>
    %454 = vector.shape_cast %421 : vector<2x32xf32> to vector<1x2x32xf32>
    tpu.vector_store %arg7[%451, %c0_96, %c0_97], %454 {strides = array<i32>} : memref<8x2x64xf32, #tpu.memory_space<vmem>>, vector<1x2x32xf32>,
    %455 = arith.index_cast %384 : i32 to index
    %c0_98 = arith.constant 0 : index
    %c32_99 = arith.constant 32 : index
    %456 = vector.load %arg7[%455, %c0_98, %c32_99] : memref<8x2x64xf32, #tpu.memory_space<vmem>>, vector<1x2x32xf32>
    %457 = vector.shape_cast %456 : vector<1x2x32xf32> to vector<2x32xf32>
    %458 = vector.shape_cast %450 : vector<2x32xf32> to vector<1x2x32xf32>
    tpu.vector_store %arg7[%455, %c0_98, %c32_99], %458 {strides = array<i32>} : memref<8x2x64xf32, #tpu.memory_space<vmem>>, vector<1x2x32xf32>,
    %459 = tpu.concatenate %421, %450 in 1 : vector<2x32xf32>, vector<2x32xf32> -> vector<2x64xf32>
    %c6_i32 = arith.constant 6 : i32
    %c7_i32_100 = arith.constant 7 : i32
    %460 = arith.subi %c7_i32_100, %c6_i32 : i32
    %461 = arith.index_cast %c6_i32 : i32 to index
    %c0_101 = arith.constant 0 : index
    %c0_102 = arith.constant 0 : index
    %462 = vector.load %arg0[%461, %c0_101, %c0_102] : memref<8x2x192xf32, #tpu.memory_space<vmem>>, vector<1x2x192xf32>
    %463 = vector.shape_cast %462 : vector<1x2x192xf32> to vector<2x192xf32>
    %464 = arith.index_cast %460 : i32 to index
    %c0_103 = arith.constant 0 : index
    %c0_104 = arith.constant 0 : index
    %465 = vector.load %arg0[%464, %c0_103, %c0_104] : memref<8x2x192xf32, #tpu.memory_space<vmem>>, vector<1x2x192xf32>
    %466 = vector.shape_cast %465 : vector<1x2x192xf32> to vector<2x192xf32>
    %467 = arith.truncf %459 : vector<2x64xf32> to vector<2x64xbf16>
    %cst_105 = arith.constant dense<0.000000e+00> : vector<2x192xf32>
    %468 = tpu.matmul %467, %0, %cst_105 {dimension_numbers = #tpu.dot_dimension_numbers<[1], [0], [0], [1], [0, 0, 1, 1], [], []>} : vector<2x64xbf16>, vector<64x192xbf16>, vector<2x192xf32> -> vector<2x192xf32>
    %469 = vector.extract_strided_slice %463 {offsets = [0, 0], sizes = [2, 32], strides = [1, 1]} : vector<2x192xf32> to vector<2x32xf32>
    %470 = vector.extract_strided_slice %468 {offsets = [0, 0], sizes = [2, 32], strides = [1, 1]} : vector<2x192xf32> to vector<2x32xf32>
    %471 = arith.addf %469, %470 : vector<2x32xf32>
    %472 = arith.negf %471 : vector<2x32xf32>
    %473 = math.exp %472 : vector<2x32xf32>
    %cst_106 = arith.constant 1.000000e+00 : f32
    %474 = vector.broadcast %cst_106 : f32 to vector<2x32xf32>
    %475 = arith.addf %474, %473 : vector<2x32xf32>
    %476 = arith.divf %474, %475 : vector<2x32xf32>
    %477 = vector.extract_strided_slice %463 {offsets = [0, 32], sizes = [2, 32], strides = [1, 1]} : vector<2x192xf32> to vector<2x32xf32>
    %478 = vector.extract_strided_slice %468 {offsets = [0, 32], sizes = [2, 32], strides = [1, 1]} : vector<2x192xf32> to vector<2x32xf32>
    %479 = arith.addf %477, %478 : vector<2x32xf32>
    %480 = arith.negf %479 : vector<2x32xf32>
    %481 = math.exp %480 : vector<2x32xf32>
    %cst_107 = arith.constant 1.000000e+00 : f32
    %482 = vector.broadcast %cst_107 : f32 to vector<2x32xf32>
    %483 = arith.addf %482, %481 : vector<2x32xf32>
    %484 = arith.divf %482, %483 : vector<2x32xf32>
    %485 = vector.extract_strided_slice %463 {offsets = [0, 64], sizes = [2, 32], strides = [1, 1]} : vector<2x192xf32> to vector<2x32xf32>
    %486 = vector.extract_strided_slice %468 {offsets = [0, 64], sizes = [2, 32], strides = [1, 1]} : vector<2x192xf32> to vector<2x32xf32>
    %487 = vector.broadcast %1 : vector<1x32xf32> to vector<2x32xf32>
    %488 = arith.addf %486, %487 : vector<2x32xf32>
    %489 = arith.mulf %476, %488 : vector<2x32xf32>
    %490 = arith.addf %485, %489 : vector<2x32xf32>
    %491 = math.tanh %490 : vector<2x32xf32>
    %cst_108 = arith.constant 1.000000e+00 : f32
    %492 = vector.broadcast %cst_108 : f32 to vector<2x32xf32>
    %493 = arith.subf %492, %484 : vector<2x32xf32>
    %494 = arith.mulf %493, %491 : vector<2x32xf32>
    %495 = vector.extract_strided_slice %459 {offsets = [0, 0], sizes = [2, 32], strides = [1, 1]} : vector<2x64xf32> to vector<2x32xf32>
    %496 = arith.mulf %484, %495 : vector<2x32xf32>
    %497 = arith.addf %494, %496 : vector<2x32xf32>
    %498 = vector.extract_strided_slice %466 {offsets = [0, 96], sizes = [2, 32], strides = [1, 1]} : vector<2x192xf32> to vector<2x32xf32>
    %499 = vector.extract_strided_slice %468 {offsets = [0, 96], sizes = [2, 32], strides = [1, 1]} : vector<2x192xf32> to vector<2x32xf32>
    %500 = arith.addf %498, %499 : vector<2x32xf32>
    %501 = arith.negf %500 : vector<2x32xf32>
    %502 = math.exp %501 : vector<2x32xf32>
    %cst_109 = arith.constant 1.000000e+00 : f32
    %503 = vector.broadcast %cst_109 : f32 to vector<2x32xf32>
    %504 = arith.addf %503, %502 : vector<2x32xf32>
    %505 = arith.divf %503, %504 : vector<2x32xf32>
    %506 = vector.extract_strided_slice %466 {offsets = [0, 128], sizes = [2, 32], strides = [1, 1]} : vector<2x192xf32> to vector<2x32xf32>
    %507 = vector.extract_strided_slice %468 {offsets = [0, 128], sizes = [2, 32], strides = [1, 1]} : vector<2x192xf32> to vector<2x32xf32>
    %508 = arith.addf %506, %507 : vector<2x32xf32>
    %509 = arith.negf %508 : vector<2x32xf32>
    %510 = math.exp %509 : vector<2x32xf32>
    %cst_110 = arith.constant 1.000000e+00 : f32
    %511 = vector.broadcast %cst_110 : f32 to vector<2x32xf32>
    %512 = arith.addf %511, %510 : vector<2x32xf32>
    %513 = arith.divf %511, %512 : vector<2x32xf32>
    %514 = vector.extract_strided_slice %466 {offsets = [0, 160], sizes = [2, 32], strides = [1, 1]} : vector<2x192xf32> to vector<2x32xf32>
    %515 = vector.extract_strided_slice %468 {offsets = [0, 160], sizes = [2, 32], strides = [1, 1]} : vector<2x192xf32> to vector<2x32xf32>
    %516 = vector.broadcast %2 : vector<1x32xf32> to vector<2x32xf32>
    %517 = arith.addf %515, %516 : vector<2x32xf32>
    %518 = arith.mulf %505, %517 : vector<2x32xf32>
    %519 = arith.addf %514, %518 : vector<2x32xf32>
    %520 = math.tanh %519 : vector<2x32xf32>
    %cst_111 = arith.constant 1.000000e+00 : f32
    %521 = vector.broadcast %cst_111 : f32 to vector<2x32xf32>
    %522 = arith.subf %521, %513 : vector<2x32xf32>
    %523 = arith.mulf %522, %520 : vector<2x32xf32>
    %524 = vector.extract_strided_slice %459 {offsets = [0, 32], sizes = [2, 32], strides = [1, 1]} : vector<2x64xf32> to vector<2x32xf32>
    %525 = arith.mulf %513, %524 : vector<2x32xf32>
    %526 = arith.addf %523, %525 : vector<2x32xf32>
    %527 = arith.index_cast %c6_i32 : i32 to index
    %c0_112 = arith.constant 0 : index
    %c0_113 = arith.constant 0 : index
    %528 = vector.load %arg7[%527, %c0_112, %c0_113] : memref<8x2x64xf32, #tpu.memory_space<vmem>>, vector<1x2x32xf32>
    %529 = vector.shape_cast %528 : vector<1x2x32xf32> to vector<2x32xf32>
    %530 = vector.shape_cast %497 : vector<2x32xf32> to vector<1x2x32xf32>
    tpu.vector_store %arg7[%527, %c0_112, %c0_113], %530 {strides = array<i32>} : memref<8x2x64xf32, #tpu.memory_space<vmem>>, vector<1x2x32xf32>,
    %531 = arith.index_cast %460 : i32 to index
    %c0_114 = arith.constant 0 : index
    %c32_115 = arith.constant 32 : index
    %532 = vector.load %arg7[%531, %c0_114, %c32_115] : memref<8x2x64xf32, #tpu.memory_space<vmem>>, vector<1x2x32xf32>
    %533 = vector.shape_cast %532 : vector<1x2x32xf32> to vector<2x32xf32>
    %534 = vector.shape_cast %526 : vector<2x32xf32> to vector<1x2x32xf32>
    tpu.vector_store %arg7[%531, %c0_114, %c32_115], %534 {strides = array<i32>} : memref<8x2x64xf32, #tpu.memory_space<vmem>>, vector<1x2x32xf32>,
    %535 = tpu.concatenate %497, %526 in 1 : vector<2x32xf32>, vector<2x32xf32> -> vector<2x64xf32>
    %c7_i32_116 = arith.constant 7 : i32
    %c7_i32_117 = arith.constant 7 : i32
    %536 = arith.subi %c7_i32_117, %c7_i32_116 : i32
    %537 = arith.index_cast %c7_i32_116 : i32 to index
    %c0_118 = arith.constant 0 : index
    %c0_119 = arith.constant 0 : index
    %538 = vector.load %arg0[%537, %c0_118, %c0_119] : memref<8x2x192xf32, #tpu.memory_space<vmem>>, vector<1x2x192xf32>
    %539 = vector.shape_cast %538 : vector<1x2x192xf32> to vector<2x192xf32>
    %540 = arith.index_cast %536 : i32 to index
    %c0_120 = arith.constant 0 : index
    %c0_121 = arith.constant 0 : index
    %541 = vector.load %arg0[%540, %c0_120, %c0_121] : memref<8x2x192xf32, #tpu.memory_space<vmem>>, vector<1x2x192xf32>
    %542 = vector.shape_cast %541 : vector<1x2x192xf32> to vector<2x192xf32>
    %543 = arith.truncf %535 : vector<2x64xf32> to vector<2x64xbf16>
    %cst_122 = arith.constant dense<0.000000e+00> : vector<2x192xf32>
    %544 = tpu.matmul %543, %0, %cst_122 {dimension_numbers = #tpu.dot_dimension_numbers<[1], [0], [0], [1], [0, 0, 1, 1], [], []>} : vector<2x64xbf16>, vector<64x192xbf16>, vector<2x192xf32> -> vector<2x192xf32>
    %545 = vector.extract_strided_slice %539 {offsets = [0, 0], sizes = [2, 32], strides = [1, 1]} : vector<2x192xf32> to vector<2x32xf32>
    %546 = vector.extract_strided_slice %544 {offsets = [0, 0], sizes = [2, 32], strides = [1, 1]} : vector<2x192xf32> to vector<2x32xf32>
    %547 = arith.addf %545, %546 : vector<2x32xf32>
    %548 = arith.negf %547 : vector<2x32xf32>
    %549 = math.exp %548 : vector<2x32xf32>
    %cst_123 = arith.constant 1.000000e+00 : f32
    %550 = vector.broadcast %cst_123 : f32 to vector<2x32xf32>
    %551 = arith.addf %550, %549 : vector<2x32xf32>
    %552 = arith.divf %550, %551 : vector<2x32xf32>
    %553 = vector.extract_strided_slice %539 {offsets = [0, 32], sizes = [2, 32], strides = [1, 1]} : vector<2x192xf32> to vector<2x32xf32>
    %554 = vector.extract_strided_slice %544 {offsets = [0, 32], sizes = [2, 32], strides = [1, 1]} : vector<2x192xf32> to vector<2x32xf32>
    %555 = arith.addf %553, %554 : vector<2x32xf32>
    %556 = arith.negf %555 : vector<2x32xf32>
    %557 = math.exp %556 : vector<2x32xf32>
    %cst_124 = arith.constant 1.000000e+00 : f32
    %558 = vector.broadcast %cst_124 : f32 to vector<2x32xf32>
    %559 = arith.addf %558, %557 : vector<2x32xf32>
    %560 = arith.divf %558, %559 : vector<2x32xf32>
    %561 = vector.extract_strided_slice %539 {offsets = [0, 64], sizes = [2, 32], strides = [1, 1]} : vector<2x192xf32> to vector<2x32xf32>
    %562 = vector.extract_strided_slice %544 {offsets = [0, 64], sizes = [2, 32], strides = [1, 1]} : vector<2x192xf32> to vector<2x32xf32>
    %563 = vector.broadcast %1 : vector<1x32xf32> to vector<2x32xf32>
    %564 = arith.addf %562, %563 : vector<2x32xf32>
    %565 = arith.mulf %552, %564 : vector<2x32xf32>
    %566 = arith.addf %561, %565 : vector<2x32xf32>
    %567 = math.tanh %566 : vector<2x32xf32>
    %cst_125 = arith.constant 1.000000e+00 : f32
    %568 = vector.broadcast %cst_125 : f32 to vector<2x32xf32>
    %569 = arith.subf %568, %560 : vector<2x32xf32>
    %570 = arith.mulf %569, %567 : vector<2x32xf32>
    %571 = vector.extract_strided_slice %535 {offsets = [0, 0], sizes = [2, 32], strides = [1, 1]} : vector<2x64xf32> to vector<2x32xf32>
    %572 = arith.mulf %560, %571 : vector<2x32xf32>
    %573 = arith.addf %570, %572 : vector<2x32xf32>
    %574 = vector.extract_strided_slice %542 {offsets = [0, 96], sizes = [2, 32], strides = [1, 1]} : vector<2x192xf32> to vector<2x32xf32>
    %575 = vector.extract_strided_slice %544 {offsets = [0, 96], sizes = [2, 32], strides = [1, 1]} : vector<2x192xf32> to vector<2x32xf32>
    %576 = arith.addf %574, %575 : vector<2x32xf32>
    %577 = arith.negf %576 : vector<2x32xf32>
    %578 = math.exp %577 : vector<2x32xf32>
    %cst_126 = arith.constant 1.000000e+00 : f32
    %579 = vector.broadcast %cst_126 : f32 to vector<2x32xf32>
    %580 = arith.addf %579, %578 : vector<2x32xf32>
    %581 = arith.divf %579, %580 : vector<2x32xf32>
    %582 = vector.extract_strided_slice %542 {offsets = [0, 128], sizes = [2, 32], strides = [1, 1]} : vector<2x192xf32> to vector<2x32xf32>
    %583 = vector.extract_strided_slice %544 {offsets = [0, 128], sizes = [2, 32], strides = [1, 1]} : vector<2x192xf32> to vector<2x32xf32>
    %584 = arith.addf %582, %583 : vector<2x32xf32>
    %585 = arith.negf %584 : vector<2x32xf32>
    %586 = math.exp %585 : vector<2x32xf32>
    %cst_127 = arith.constant 1.000000e+00 : f32
    %587 = vector.broadcast %cst_127 : f32 to vector<2x32xf32>
    %588 = arith.addf %587, %586 : vector<2x32xf32>
    %589 = arith.divf %587, %588 : vector<2x32xf32>
    %590 = vector.extract_strided_slice %542 {offsets = [0, 160], sizes = [2, 32], strides = [1, 1]} : vector<2x192xf32> to vector<2x32xf32>
    %591 = vector.extract_strided_slice %544 {offsets = [0, 160], sizes = [2, 32], strides = [1, 1]} : vector<2x192xf32> to vector<2x32xf32>
    %592 = vector.broadcast %2 : vector<1x32xf32> to vector<2x32xf32>
    %593 = arith.addf %591, %592 : vector<2x32xf32>
    %594 = arith.mulf %581, %593 : vector<2x32xf32>
    %595 = arith.addf %590, %594 : vector<2x32xf32>
    %596 = math.tanh %595 : vector<2x32xf32>
    %cst_128 = arith.constant 1.000000e+00 : f32
    %597 = vector.broadcast %cst_128 : f32 to vector<2x32xf32>
    %598 = arith.subf %597, %589 : vector<2x32xf32>
    %599 = arith.mulf %598, %596 : vector<2x32xf32>
    %600 = vector.extract_strided_slice %535 {offsets = [0, 32], sizes = [2, 32], strides = [1, 1]} : vector<2x64xf32> to vector<2x32xf32>
    %601 = arith.mulf %589, %600 : vector<2x32xf32>
    %602 = arith.addf %599, %601 : vector<2x32xf32>
    %603 = arith.index_cast %c7_i32_116 : i32 to index
    %c0_129 = arith.constant 0 : index
    %c0_130 = arith.constant 0 : index
    %604 = vector.load %arg7[%603, %c0_129, %c0_130] : memref<8x2x64xf32, #tpu.memory_space<vmem>>, vector<1x2x32xf32>
    %605 = vector.shape_cast %604 : vector<1x2x32xf32> to vector<2x32xf32>
    %606 = vector.shape_cast %573 : vector<2x32xf32> to vector<1x2x32xf32>
    tpu.vector_store %arg7[%603, %c0_129, %c0_130], %606 {strides = array<i32>} : memref<8x2x64xf32, #tpu.memory_space<vmem>>, vector<1x2x32xf32>,
    %607 = arith.index_cast %536 : i32 to index
    %c0_131 = arith.constant 0 : index
    %c32_132 = arith.constant 32 : index
    %608 = vector.load %arg7[%607, %c0_131, %c32_132] : memref<8x2x64xf32, #tpu.memory_space<vmem>>, vector<1x2x32xf32>
    %609 = vector.shape_cast %608 : vector<1x2x32xf32> to vector<2x32xf32>
    %610 = vector.shape_cast %602 : vector<2x32xf32> to vector<1x2x32xf32>
    tpu.vector_store %arg7[%607, %c0_131, %c32_132], %610 {strides = array<i32>} : memref<8x2x64xf32, #tpu.memory_space<vmem>>, vector<1x2x32xf32>,
    %611 = tpu.concatenate %573, %602 in 1 : vector<2x32xf32>, vector<2x32xf32> -> vector<2x64xf32>
    %c8_i32 = arith.constant 8 : i32
    %612 = vector.extract_strided_slice %611 {offsets = [0, 0], sizes = [2, 32], strides = [1, 1]} : vector<2x64xf32> to vector<2x32xf32>
    %c0_133 = arith.constant 0 : index
    %c0_134 = arith.constant 0 : index
    %c0_135 = arith.constant 0 : index
    %613 = vector.load %arg8[%c0_133, %c0_134, %c0_135] : memref<2x2x32xf32, #tpu.memory_space<vmem>>, vector<1x2x32xf32>
    %614 = vector.shape_cast %613 : vector<1x2x32xf32> to vector<2x32xf32>
    %615 = vector.shape_cast %612 : vector<2x32xf32> to vector<1x2x32xf32>
    tpu.vector_store %arg8[%c0_133, %c0_134, %c0_135], %615 {strides = array<i32>} : memref<2x2x32xf32, #tpu.memory_space<vmem>>, vector<1x2x32xf32>,
    %616 = vector.extract_strided_slice %611 {offsets = [0, 32], sizes = [2, 32], strides = [1, 1]} : vector<2x64xf32> to vector<2x32xf32>
    %c1 = arith.constant 1 : index
    %c0_136 = arith.constant 0 : index
    %c0_137 = arith.constant 0 : index
    %617 = vector.load %arg8[%c1, %c0_136, %c0_137] : memref<2x2x32xf32, #tpu.memory_space<vmem>>, vector<1x2x32xf32>
    %618 = vector.shape_cast %617 : vector<1x2x32xf32> to vector<2x32xf32>
    %619 = vector.shape_cast %616 : vector<2x32xf32> to vector<1x2x32xf32>
    tpu.vector_store %arg8[%c1, %c0_136, %c0_137], %619 {strides = array<i32>} : memref<2x2x32xf32, #tpu.memory_space<vmem>>, vector<1x2x32xf32>,
    return
  }
}

module attributes {stable_mosaic.version = 11 : i64} {
  func.func @_bi_gru_scan_kernel(%arg0: memref<8x2x192xf32, #tpu.memory_space<vmem>>, %arg1: memref<2x64xf32, #tpu.memory_space<vmem>>, %arg2: memref<64x192xbf16, #tpu.memory_space<vmem>>, %arg3: memref<1x32xf32, #tpu.memory_space<vmem>>, %arg4: memref<1x32xf32, #tpu.memory_space<vmem>>, %arg5: memref<1x1x64xf32, #tpu.memory_space<vmem>>, %arg6: memref<1x1x64xf32, #tpu.memory_space<vmem>>, %arg7: memref<8x2x64xf32, #tpu.memory_space<vmem>>, %arg8: memref<2x2x32xf32, #tpu.memory_space<vmem>>) attributes {dimension_semantics = [], scalar_prefetch = 0 : i64, scratch_operands = 0 : i64, tpu.core_type = #tpu.core_type<tc>} {
    %c0 = arith.constant 0 : index
    %c0_0 = arith.constant 0 : index
    %0 = vector.load %arg2[%c0, %c0_0] : memref<64x192xbf16, #tpu.memory_space<vmem>>, vector<64x192xbf16>
    %c0_1 = arith.constant 0 : index
    %c0_2 = arith.constant 0 : index
    %1 = vector.load %arg3[%c0_1, %c0_2] : memref<1x32xf32, #tpu.memory_space<vmem>>, vector<1x32xf32>
    %c0_3 = arith.constant 0 : index
    %c0_4 = arith.constant 0 : index
    %2 = vector.load %arg4[%c0_3, %c0_4] : memref<1x32xf32, #tpu.memory_space<vmem>>, vector<1x32xf32>
    %c0_5 = arith.constant 0 : index
    %c0_6 = arith.constant 0 : index
    %3 = vector.load %arg1[%c0_5, %c0_6] : memref<2x64xf32, #tpu.memory_space<vmem>>, vector<2x64xf32>
    %c0_i32 = arith.constant 0 : i32
    %c7_i32 = arith.constant 7 : i32
    %4 = arith.subi %c7_i32, %c0_i32 : i32
    %5 = arith.index_cast %c0_i32 : i32 to index
    %c0_7 = arith.constant 0 : index
    %c0_8 = arith.constant 0 : index
    %6 = vector.load %arg0[%5, %c0_7, %c0_8] : memref<8x2x192xf32, #tpu.memory_space<vmem>>, vector<1x2x192xf32>
    %7 = vector.shape_cast %6 : vector<1x2x192xf32> to vector<2x192xf32>
    %8 = arith.index_cast %4 : i32 to index
    %c0_9 = arith.constant 0 : index
    %c0_10 = arith.constant 0 : index
    %9 = vector.load %arg0[%8, %c0_9, %c0_10] : memref<8x2x192xf32, #tpu.memory_space<vmem>>, vector<1x2x192xf32>
    %10 = vector.shape_cast %9 : vector<1x2x192xf32> to vector<2x192xf32>
    %11 = arith.truncf %3 : vector<2x64xf32> to vector<2x64xbf16>
    %cst = arith.constant dense<0.000000e+00> : vector<2x192xf32>
    %12 = tpu.matmul %11, %0, %cst {dimension_numbers = #tpu.dot_dimension_numbers<[1], [0], [0], [1], [0, 0, 1, 1], [], []>} : vector<2x64xbf16>, vector<64x192xbf16>, vector<2x192xf32> -> vector<2x192xf32>
    %13 = vector.extract_strided_slice %7 {offsets = [0, 0], sizes = [2, 32], strides = [1, 1]} : vector<2x192xf32> to vector<2x32xf32>
    %14 = vector.extract_strided_slice %12 {offsets = [0, 0], sizes = [2, 32], strides = [1, 1]} : vector<2x192xf32> to vector<2x32xf32>
    %15 = arith.addf %13, %14 : vector<2x32xf32>
    %16 = arith.negf %15 : vector<2x32xf32>
    %17 = math.exp %16 : vector<2x32xf32>
    %cst_11 = arith.constant 1.000000e+00 : f32
    %18 = vector.broadcast %cst_11 : f32 to vector<2x32xf32>
    %19 = arith.addf %18, %17 : vector<2x32xf32>
    %20 = arith.divf %18, %19 : vector<2x32xf32>
    %21 = vector.extract_strided_slice %7 {offsets = [0, 32], sizes = [2, 32], strides = [1, 1]} : vector<2x192xf32> to vector<2x32xf32>
    %22 = vector.extract_strided_slice %12 {offsets = [0, 32], sizes = [2, 32], strides = [1, 1]} : vector<2x192xf32> to vector<2x32xf32>
    %23 = arith.addf %21, %22 : vector<2x32xf32>
    %24 = arith.negf %23 : vector<2x32xf32>
    %25 = math.exp %24 : vector<2x32xf32>
    %cst_12 = arith.constant 1.000000e+00 : f32
    %26 = vector.broadcast %cst_12 : f32 to vector<2x32xf32>
    %27 = arith.addf %26, %25 : vector<2x32xf32>
    %28 = arith.divf %26, %27 : vector<2x32xf32>
    %29 = vector.extract_strided_slice %7 {offsets = [0, 64], sizes = [2, 32], strides = [1, 1]} : vector<2x192xf32> to vector<2x32xf32>
    %30 = vector.extract_strided_slice %12 {offsets = [0, 64], sizes = [2, 32], strides = [1, 1]} : vector<2x192xf32> to vector<2x32xf32>
    %31 = vector.broadcast %1 : vector<1x32xf32> to vector<2x32xf32>
    %32 = arith.addf %30, %31 : vector<2x32xf32>
    %33 = arith.mulf %20, %32 : vector<2x32xf32>
    %34 = arith.addf %29, %33 : vector<2x32xf32>
    %35 = math.tanh %34 : vector<2x32xf32>
    %cst_13 = arith.constant 1.000000e+00 : f32
    %36 = vector.broadcast %cst_13 : f32 to vector<2x32xf32>
    %37 = arith.subf %36, %28 : vector<2x32xf32>
    %38 = arith.mulf %37, %35 : vector<2x32xf32>
    %39 = vector.extract_strided_slice %3 {offsets = [0, 0], sizes = [2, 32], strides = [1, 1]} : vector<2x64xf32> to vector<2x32xf32>
    %40 = arith.mulf %28, %39 : vector<2x32xf32>
    %41 = arith.addf %38, %40 : vector<2x32xf32>
    %42 = vector.extract_strided_slice %10 {offsets = [0, 96], sizes = [2, 32], strides = [1, 1]} : vector<2x192xf32> to vector<2x32xf32>
    %43 = vector.extract_strided_slice %12 {offsets = [0, 96], sizes = [2, 32], strides = [1, 1]} : vector<2x192xf32> to vector<2x32xf32>
    %44 = arith.addf %42, %43 : vector<2x32xf32>
    %45 = arith.negf %44 : vector<2x32xf32>
    %46 = math.exp %45 : vector<2x32xf32>
    %cst_14 = arith.constant 1.000000e+00 : f32
    %47 = vector.broadcast %cst_14 : f32 to vector<2x32xf32>
    %48 = arith.addf %47, %46 : vector<2x32xf32>
    %49 = arith.divf %47, %48 : vector<2x32xf32>
    %50 = vector.extract_strided_slice %10 {offsets = [0, 128], sizes = [2, 32], strides = [1, 1]} : vector<2x192xf32> to vector<2x32xf32>
    %51 = vector.extract_strided_slice %12 {offsets = [0, 128], sizes = [2, 32], strides = [1, 1]} : vector<2x192xf32> to vector<2x32xf32>
    %52 = arith.addf %50, %51 : vector<2x32xf32>
    %53 = arith.negf %52 : vector<2x32xf32>
    %54 = math.exp %53 : vector<2x32xf32>
    %cst_15 = arith.constant 1.000000e+00 : f32
    %55 = vector.broadcast %cst_15 : f32 to vector<2x32xf32>
    %56 = arith.addf %55, %54 : vector<2x32xf32>
    %57 = arith.divf %55, %56 : vector<2x32xf32>
    %58 = vector.extract_strided_slice %10 {offsets = [0, 160], sizes = [2, 32], strides = [1, 1]} : vector<2x192xf32> to vector<2x32xf32>
    %59 = vector.extract_strided_slice %12 {offsets = [0, 160], sizes = [2, 32], strides = [1, 1]} : vector<2x192xf32> to vector<2x32xf32>
    %60 = vector.broadcast %2 : vector<1x32xf32> to vector<2x32xf32>
    %61 = arith.addf %59, %60 : vector<2x32xf32>
    %62 = arith.mulf %49, %61 : vector<2x32xf32>
    %63 = arith.addf %58, %62 : vector<2x32xf32>
    %64 = math.tanh %63 : vector<2x32xf32>
    %cst_16 = arith.constant 1.000000e+00 : f32
    %65 = vector.broadcast %cst_16 : f32 to vector<2x32xf32>
    %66 = arith.subf %65, %57 : vector<2x32xf32>
    %67 = arith.mulf %66, %64 : vector<2x32xf32>
    %68 = vector.extract_strided_slice %3 {offsets = [0, 32], sizes = [2, 32], strides = [1, 1]} : vector<2x64xf32> to vector<2x32xf32>
    %69 = arith.mulf %57, %68 : vector<2x32xf32>
    %70 = arith.addf %67, %69 : vector<2x32xf32>
    %71 = arith.index_cast %c0_i32 : i32 to index
    %c0_17 = arith.constant 0 : index
    %c0_18 = arith.constant 0 : index
    %72 = vector.load %arg7[%71, %c0_17, %c0_18] : memref<8x2x64xf32, #tpu.memory_space<vmem>>, vector<1x2x32xf32>
    %73 = vector.shape_cast %72 : vector<1x2x32xf32> to vector<2x32xf32>
    %74 = vector.shape_cast %41 : vector<2x32xf32> to vector<1x2x32xf32>
    tpu.vector_store %arg7[%71, %c0_17, %c0_18], %74 {strides = array<i32>} : memref<8x2x64xf32, #tpu.memory_space<vmem>>, vector<1x2x32xf32>,
    %75 = arith.index_cast %4 : i32 to index
    %c0_19 = arith.constant 0 : index
    %c32 = arith.constant 32 : index
    %76 = vector.load %arg7[%75, %c0_19, %c32] : memref<8x2x64xf32, #tpu.memory_space<vmem>>, vector<1x2x32xf32>
    %77 = vector.shape_cast %76 : vector<1x2x32xf32> to vector<2x32xf32>
    %78 = vector.shape_cast %70 : vector<2x32xf32> to vector<1x2x32xf32>
    tpu.vector_store %arg7[%75, %c0_19, %c32], %78 {strides = array<i32>} : memref<8x2x64xf32, #tpu.memory_space<vmem>>, vector<1x2x32xf32>,
    %79 = tpu.concatenate %41, %70 in 1 : vector<2x32xf32>, vector<2x32xf32> -> vector<2x64xf32>
    %c1_i32 = arith.constant 1 : i32
    %c7_i32_20 = arith.constant 7 : i32
    %80 = arith.subi %c7_i32_20, %c1_i32 : i32
    %81 = arith.index_cast %c1_i32 : i32 to index
    %c0_21 = arith.constant 0 : index
    %c0_22 = arith.constant 0 : index
    %82 = vector.load %arg0[%81, %c0_21, %c0_22] : memref<8x2x192xf32, #tpu.memory_space<vmem>>, vector<1x2x192xf32>
    %83 = vector.shape_cast %82 : vector<1x2x192xf32> to vector<2x192xf32>
    %84 = arith.index_cast %80 : i32 to index
    %c0_23 = arith.constant 0 : index
    %c0_24 = arith.constant 0 : index
    %85 = vector.load %arg0[%84, %c0_23, %c0_24] : memref<8x2x192xf32, #tpu.memory_space<vmem>>, vector<1x2x192xf32>
    %86 = vector.shape_cast %85 : vector<1x2x192xf32> to vector<2x192xf32>
    %87 = arith.truncf %79 : vector<2x64xf32> to vector<2x64xbf16>
    %cst_25 = arith.constant dense<0.000000e+00> : vector<2x192xf32>
    %88 = tpu.matmul %87, %0, %cst_25 {dimension_numbers = #tpu.dot_dimension_numbers<[1], [0], [0], [1], [0, 0, 1, 1], [], []>} : vector<2x64xbf16>, vector<64x192xbf16>, vector<2x192xf32> -> vector<2x192xf32>
    %89 = vector.extract_strided_slice %83 {offsets = [0, 0], sizes = [2, 32], strides = [1, 1]} : vector<2x192xf32> to vector<2x32xf32>
    %90 = vector.extract_strided_slice %88 {offsets = [0, 0], sizes = [2, 32], strides = [1, 1]} : vector<2x192xf32> to vector<2x32xf32>
    %91 = arith.addf %89, %90 : vector<2x32xf32>
    %92 = arith.negf %91 : vector<2x32xf32>
    %93 = math.exp %92 : vector<2x32xf32>
    %cst_26 = arith.constant 1.000000e+00 : f32
    %94 = vector.broadcast %cst_26 : f32 to vector<2x32xf32>
    %95 = arith.addf %94, %93 : vector<2x32xf32>
    %96 = arith.divf %94, %95 : vector<2x32xf32>
    %97 = vector.extract_strided_slice %83 {offsets = [0, 32], sizes = [2, 32], strides = [1, 1]} : vector<2x192xf32> to vector<2x32xf32>
    %98 = vector.extract_strided_slice %88 {offsets = [0, 32], sizes = [2, 32], strides = [1, 1]} : vector<2x192xf32> to vector<2x32xf32>
    %99 = arith.addf %97, %98 : vector<2x32xf32>
    %100 = arith.negf %99 : vector<2x32xf32>
    %101 = math.exp %100 : vector<2x32xf32>
    %cst_27 = arith.constant 1.000000e+00 : f32
    %102 = vector.broadcast %cst_27 : f32 to vector<2x32xf32>
    %103 = arith.addf %102, %101 : vector<2x32xf32>
    %104 = arith.divf %102, %103 : vector<2x32xf32>
    %105 = vector.extract_strided_slice %83 {offsets = [0, 64], sizes = [2, 32], strides = [1, 1]} : vector<2x192xf32> to vector<2x32xf32>
    %106 = vector.extract_strided_slice %88 {offsets = [0, 64], sizes = [2, 32], strides = [1, 1]} : vector<2x192xf32> to vector<2x32xf32>
    %107 = vector.broadcast %1 : vector<1x32xf32> to vector<2x32xf32>
    %108 = arith.addf %106, %107 : vector<2x32xf32>
    %109 = arith.mulf %96, %108 : vector<2x32xf32>
    %110 = arith.addf %105, %109 : vector<2x32xf32>
    %111 = math.tanh %110 : vector<2x32xf32>
    %cst_28 = arith.constant 1.000000e+00 : f32
    %112 = vector.broadcast %cst_28 : f32 to vector<2x32xf32>
    %113 = arith.subf %112, %104 : vector<2x32xf32>
    %114 = arith.mulf %113, %111 : vector<2x32xf32>
    %115 = vector.extract_strided_slice %79 {offsets = [0, 0], sizes = [2, 32], strides = [1, 1]} : vector<2x64xf32> to vector<2x32xf32>
    %116 = arith.mulf %104, %115 : vector<2x32xf32>
    %117 = arith.addf %114, %116 : vector<2x32xf32>
    %118 = vector.extract_strided_slice %86 {offsets = [0, 96], sizes = [2, 32], strides = [1, 1]} : vector<2x192xf32> to vector<2x32xf32>
    %119 = vector.extract_strided_slice %88 {offsets = [0, 96], sizes = [2, 32], strides = [1, 1]} : vector<2x192xf32> to vector<2x32xf32>
    %120 = arith.addf %118, %119 : vector<2x32xf32>
    %121 = arith.negf %120 : vector<2x32xf32>
    %122 = math.exp %121 : vector<2x32xf32>
    %cst_29 = arith.constant 1.000000e+00 : f32
    %123 = vector.broadcast %cst_29 : f32 to vector<2x32xf32>
    %124 = arith.addf %123, %122 : vector<2x32xf32>
    %125 = arith.divf %123, %124 : vector<2x32xf32>
    %126 = vector.extract_strided_slice %86 {offsets = [0, 128], sizes = [2, 32], strides = [1, 1]} : vector<2x192xf32> to vector<2x32xf32>
    %127 = vector.extract_strided_slice %88 {offsets = [0, 128], sizes = [2, 32], strides = [1, 1]} : vector<2x192xf32> to vector<2x32xf32>
    %128 = arith.addf %126, %127 : vector<2x32xf32>
    %129 = arith.negf %128 : vector<2x32xf32>
    %130 = math.exp %129 : vector<2x32xf32>
    %cst_30 = arith.constant 1.000000e+00 : f32
    %131 = vector.broadcast %cst_30 : f32 to vector<2x32xf32>
    %132 = arith.addf %131, %130 : vector<2x32xf32>
    %133 = arith.divf %131, %132 : vector<2x32xf32>
    %134 = vector.extract_strided_slice %86 {offsets = [0, 160], sizes = [2, 32], strides = [1, 1]} : vector<2x192xf32> to vector<2x32xf32>
    %135 = vector.extract_strided_slice %88 {offsets = [0, 160], sizes = [2, 32], strides = [1, 1]} : vector<2x192xf32> to vector<2x32xf32>
    %136 = vector.broadcast %2 : vector<1x32xf32> to vector<2x32xf32>
    %137 = arith.addf %135, %136 : vector<2x32xf32>
    %138 = arith.mulf %125, %137 : vector<2x32xf32>
    %139 = arith.addf %134, %138 : vector<2x32xf32>
    %140 = math.tanh %139 : vector<2x32xf32>
    %cst_31 = arith.constant 1.000000e+00 : f32
    %141 = vector.broadcast %cst_31 : f32 to vector<2x32xf32>
    %142 = arith.subf %141, %133 : vector<2x32xf32>
    %143 = arith.mulf %142, %140 : vector<2x32xf32>
    %144 = vector.extract_strided_slice %79 {offsets = [0, 32], sizes = [2, 32], strides = [1, 1]} : vector<2x64xf32> to vector<2x32xf32>
    %145 = arith.mulf %133, %144 : vector<2x32xf32>
    %146 = arith.addf %143, %145 : vector<2x32xf32>
    %147 = arith.index_cast %c1_i32 : i32 to index
    %c0_32 = arith.constant 0 : index
    %c0_33 = arith.constant 0 : index
    %148 = vector.load %arg7[%147, %c0_32, %c0_33] : memref<8x2x64xf32, #tpu.memory_space<vmem>>, vector<1x2x32xf32>
    %149 = vector.shape_cast %148 : vector<1x2x32xf32> to vector<2x32xf32>
    %150 = vector.shape_cast %117 : vector<2x32xf32> to vector<1x2x32xf32>
    tpu.vector_store %arg7[%147, %c0_32, %c0_33], %150 {strides = array<i32>} : memref<8x2x64xf32, #tpu.memory_space<vmem>>, vector<1x2x32xf32>,
    %151 = arith.index_cast %80 : i32 to index
    %c0_34 = arith.constant 0 : index
    %c32_35 = arith.constant 32 : index
    %152 = vector.load %arg7[%151, %c0_34, %c32_35] : memref<8x2x64xf32, #tpu.memory_space<vmem>>, vector<1x2x32xf32>
    %153 = vector.shape_cast %152 : vector<1x2x32xf32> to vector<2x32xf32>
    %154 = vector.shape_cast %146 : vector<2x32xf32> to vector<1x2x32xf32>
    tpu.vector_store %arg7[%151, %c0_34, %c32_35], %154 {strides = array<i32>} : memref<8x2x64xf32, #tpu.memory_space<vmem>>, vector<1x2x32xf32>,
    %155 = tpu.concatenate %117, %146 in 1 : vector<2x32xf32>, vector<2x32xf32> -> vector<2x64xf32>
    %c2_i32 = arith.constant 2 : i32
    %c7_i32_36 = arith.constant 7 : i32
    %156 = arith.subi %c7_i32_36, %c2_i32 : i32
    %157 = arith.index_cast %c2_i32 : i32 to index
    %c0_37 = arith.constant 0 : index
    %c0_38 = arith.constant 0 : index
    %158 = vector.load %arg0[%157, %c0_37, %c0_38] : memref<8x2x192xf32, #tpu.memory_space<vmem>>, vector<1x2x192xf32>
    %159 = vector.shape_cast %158 : vector<1x2x192xf32> to vector<2x192xf32>
    %160 = arith.index_cast %156 : i32 to index
    %c0_39 = arith.constant 0 : index
    %c0_40 = arith.constant 0 : index
    %161 = vector.load %arg0[%160, %c0_39, %c0_40] : memref<8x2x192xf32, #tpu.memory_space<vmem>>, vector<1x2x192xf32>
    %162 = vector.shape_cast %161 : vector<1x2x192xf32> to vector<2x192xf32>
    %163 = arith.truncf %155 : vector<2x64xf32> to vector<2x64xbf16>
    %cst_41 = arith.constant dense<0.000000e+00> : vector<2x192xf32>
    %164 = tpu.matmul %163, %0, %cst_41 {dimension_numbers = #tpu.dot_dimension_numbers<[1], [0], [0], [1], [0, 0, 1, 1], [], []>} : vector<2x64xbf16>, vector<64x192xbf16>, vector<2x192xf32> -> vector<2x192xf32>
    %165 = vector.extract_strided_slice %159 {offsets = [0, 0], sizes = [2, 32], strides = [1, 1]} : vector<2x192xf32> to vector<2x32xf32>
    %166 = vector.extract_strided_slice %164 {offsets = [0, 0], sizes = [2, 32], strides = [1, 1]} : vector<2x192xf32> to vector<2x32xf32>
    %167 = arith.addf %165, %166 : vector<2x32xf32>
    %168 = arith.negf %167 : vector<2x32xf32>
    %169 = math.exp %168 : vector<2x32xf32>
    %cst_42 = arith.constant 1.000000e+00 : f32
    %170 = vector.broadcast %cst_42 : f32 to vector<2x32xf32>
    %171 = arith.addf %170, %169 : vector<2x32xf32>
    %172 = arith.divf %170, %171 : vector<2x32xf32>
    %173 = vector.extract_strided_slice %159 {offsets = [0, 32], sizes = [2, 32], strides = [1, 1]} : vector<2x192xf32> to vector<2x32xf32>
    %174 = vector.extract_strided_slice %164 {offsets = [0, 32], sizes = [2, 32], strides = [1, 1]} : vector<2x192xf32> to vector<2x32xf32>
    %175 = arith.addf %173, %174 : vector<2x32xf32>
    %176 = arith.negf %175 : vector<2x32xf32>
    %177 = math.exp %176 : vector<2x32xf32>
    %cst_43 = arith.constant 1.000000e+00 : f32
    %178 = vector.broadcast %cst_43 : f32 to vector<2x32xf32>
    %179 = arith.addf %178, %177 : vector<2x32xf32>
    %180 = arith.divf %178, %179 : vector<2x32xf32>
    %181 = vector.extract_strided_slice %159 {offsets = [0, 64], sizes = [2, 32], strides = [1, 1]} : vector<2x192xf32> to vector<2x32xf32>
    %182 = vector.extract_strided_slice %164 {offsets = [0, 64], sizes = [2, 32], strides = [1, 1]} : vector<2x192xf32> to vector<2x32xf32>
    %183 = vector.broadcast %1 : vector<1x32xf32> to vector<2x32xf32>
    %184 = arith.addf %182, %183 : vector<2x32xf32>
    %185 = arith.mulf %172, %184 : vector<2x32xf32>
    %186 = arith.addf %181, %185 : vector<2x32xf32>
    %187 = math.tanh %186 : vector<2x32xf32>
    %cst_44 = arith.constant 1.000000e+00 : f32
    %188 = vector.broadcast %cst_44 : f32 to vector<2x32xf32>
    %189 = arith.subf %188, %180 : vector<2x32xf32>
    %190 = arith.mulf %189, %187 : vector<2x32xf32>
    %191 = vector.extract_strided_slice %155 {offsets = [0, 0], sizes = [2, 32], strides = [1, 1]} : vector<2x64xf32> to vector<2x32xf32>
    %192 = arith.mulf %180, %191 : vector<2x32xf32>
    %193 = arith.addf %190, %192 : vector<2x32xf32>
    %194 = vector.extract_strided_slice %162 {offsets = [0, 96], sizes = [2, 32], strides = [1, 1]} : vector<2x192xf32> to vector<2x32xf32>
    %195 = vector.extract_strided_slice %164 {offsets = [0, 96], sizes = [2, 32], strides = [1, 1]} : vector<2x192xf32> to vector<2x32xf32>
    %196 = arith.addf %194, %195 : vector<2x32xf32>
    %197 = arith.negf %196 : vector<2x32xf32>
    %198 = math.exp %197 : vector<2x32xf32>
    %cst_45 = arith.constant 1.000000e+00 : f32
    %199 = vector.broadcast %cst_45 : f32 to vector<2x32xf32>
    %200 = arith.addf %199, %198 : vector<2x32xf32>
    %201 = arith.divf %199, %200 : vector<2x32xf32>
    %202 = vector.extract_strided_slice %162 {offsets = [0, 128], sizes = [2, 32], strides = [1, 1]} : vector<2x192xf32> to vector<2x32xf32>
    %203 = vector.extract_strided_slice %164 {offsets = [0, 128], sizes = [2, 32], strides = [1, 1]} : vector<2x192xf32> to vector<2x32xf32>
    %204 = arith.addf %202, %203 : vector<2x32xf32>
    %205 = arith.negf %204 : vector<2x32xf32>
    %206 = math.exp %205 : vector<2x32xf32>
    %cst_46 = arith.constant 1.000000e+00 : f32
    %207 = vector.broadcast %cst_46 : f32 to vector<2x32xf32>
    %208 = arith.addf %207, %206 : vector<2x32xf32>
    %209 = arith.divf %207, %208 : vector<2x32xf32>
    %210 = vector.extract_strided_slice %162 {offsets = [0, 160], sizes = [2, 32], strides = [1, 1]} : vector<2x192xf32> to vector<2x32xf32>
    %211 = vector.extract_strided_slice %164 {offsets = [0, 160], sizes = [2, 32], strides = [1, 1]} : vector<2x192xf32> to vector<2x32xf32>
    %212 = vector.broadcast %2 : vector<1x32xf32> to vector<2x32xf32>
    %213 = arith.addf %211, %212 : vector<2x32xf32>
    %214 = arith.mulf %201, %213 : vector<2x32xf32>
    %215 = arith.addf %210, %214 : vector<2x32xf32>
    %216 = math.tanh %215 : vector<2x32xf32>
    %cst_47 = arith.constant 1.000000e+00 : f32
    %217 = vector.broadcast %cst_47 : f32 to vector<2x32xf32>
    %218 = arith.subf %217, %209 : vector<2x32xf32>
    %219 = arith.mulf %218, %216 : vector<2x32xf32>
    %220 = vector.extract_strided_slice %155 {offsets = [0, 32], sizes = [2, 32], strides = [1, 1]} : vector<2x64xf32> to vector<2x32xf32>
    %221 = arith.mulf %209, %220 : vector<2x32xf32>
    %222 = arith.addf %219, %221 : vector<2x32xf32>
    %223 = arith.index_cast %c2_i32 : i32 to index
    %c0_48 = arith.constant 0 : index
    %c0_49 = arith.constant 0 : index
    %224 = vector.load %arg7[%223, %c0_48, %c0_49] : memref<8x2x64xf32, #tpu.memory_space<vmem>>, vector<1x2x32xf32>
    %225 = vector.shape_cast %224 : vector<1x2x32xf32> to vector<2x32xf32>
    %226 = vector.shape_cast %193 : vector<2x32xf32> to vector<1x2x32xf32>
    tpu.vector_store %arg7[%223, %c0_48, %c0_49], %226 {strides = array<i32>} : memref<8x2x64xf32, #tpu.memory_space<vmem>>, vector<1x2x32xf32>,
    %227 = arith.index_cast %156 : i32 to index
    %c0_50 = arith.constant 0 : index
    %c32_51 = arith.constant 32 : index
    %228 = vector.load %arg7[%227, %c0_50, %c32_51] : memref<8x2x64xf32, #tpu.memory_space<vmem>>, vector<1x2x32xf32>
    %229 = vector.shape_cast %228 : vector<1x2x32xf32> to vector<2x32xf32>
    %230 = vector.shape_cast %222 : vector<2x32xf32> to vector<1x2x32xf32>
    tpu.vector_store %arg7[%227, %c0_50, %c32_51], %230 {strides = array<i32>} : memref<8x2x64xf32, #tpu.memory_space<vmem>>, vector<1x2x32xf32>,
    %231 = tpu.concatenate %193, %222 in 1 : vector<2x32xf32>, vector<2x32xf32> -> vector<2x64xf32>
    %c3_i32 = arith.constant 3 : i32
    %c7_i32_52 = arith.constant 7 : i32
    %232 = arith.subi %c7_i32_52, %c3_i32 : i32
    %233 = arith.index_cast %c3_i32 : i32 to index
    %c0_53 = arith.constant 0 : index
    %c0_54 = arith.constant 0 : index
    %234 = vector.load %arg0[%233, %c0_53, %c0_54] : memref<8x2x192xf32, #tpu.memory_space<vmem>>, vector<1x2x192xf32>
    %235 = vector.shape_cast %234 : vector<1x2x192xf32> to vector<2x192xf32>
    %236 = arith.index_cast %232 : i32 to index
    %c0_55 = arith.constant 0 : index
    %c0_56 = arith.constant 0 : index
    %237 = vector.load %arg0[%236, %c0_55, %c0_56] : memref<8x2x192xf32, #tpu.memory_space<vmem>>, vector<1x2x192xf32>
    %238 = vector.shape_cast %237 : vector<1x2x192xf32> to vector<2x192xf32>
    %239 = arith.truncf %231 : vector<2x64xf32> to vector<2x64xbf16>
    %cst_57 = arith.constant dense<0.000000e+00> : vector<2x192xf32>
    %240 = tpu.matmul %239, %0, %cst_57 {dimension_numbers = #tpu.dot_dimension_numbers<[1], [0], [0], [1], [0, 0, 1, 1], [], []>} : vector<2x64xbf16>, vector<64x192xbf16>, vector<2x192xf32> -> vector<2x192xf32>
    %241 = vector.extract_strided_slice %235 {offsets = [0, 0], sizes = [2, 32], strides = [1, 1]} : vector<2x192xf32> to vector<2x32xf32>
    %242 = vector.extract_strided_slice %240 {offsets = [0, 0], sizes = [2, 32], strides = [1, 1]} : vector<2x192xf32> to vector<2x32xf32>
    %243 = arith.addf %241, %242 : vector<2x32xf32>
    %244 = arith.negf %243 : vector<2x32xf32>
    %245 = math.exp %244 : vector<2x32xf32>
    %cst_58 = arith.constant 1.000000e+00 : f32
    %246 = vector.broadcast %cst_58 : f32 to vector<2x32xf32>
    %247 = arith.addf %246, %245 : vector<2x32xf32>
    %248 = arith.divf %246, %247 : vector<2x32xf32>
    %249 = vector.extract_strided_slice %235 {offsets = [0, 32], sizes = [2, 32], strides = [1, 1]} : vector<2x192xf32> to vector<2x32xf32>
    %250 = vector.extract_strided_slice %240 {offsets = [0, 32], sizes = [2, 32], strides = [1, 1]} : vector<2x192xf32> to vector<2x32xf32>
    %251 = arith.addf %249, %250 : vector<2x32xf32>
    %252 = arith.negf %251 : vector<2x32xf32>
    %253 = math.exp %252 : vector<2x32xf32>
    %cst_59 = arith.constant 1.000000e+00 : f32
    %254 = vector.broadcast %cst_59 : f32 to vector<2x32xf32>
    %255 = arith.addf %254, %253 : vector<2x32xf32>
    %256 = arith.divf %254, %255 : vector<2x32xf32>
    %257 = vector.extract_strided_slice %235 {offsets = [0, 64], sizes = [2, 32], strides = [1, 1]} : vector<2x192xf32> to vector<2x32xf32>
    %258 = vector.extract_strided_slice %240 {offsets = [0, 64], sizes = [2, 32], strides = [1, 1]} : vector<2x192xf32> to vector<2x32xf32>
    %259 = vector.broadcast %1 : vector<1x32xf32> to vector<2x32xf32>
    %260 = arith.addf %258, %259 : vector<2x32xf32>
    %261 = arith.mulf %248, %260 : vector<2x32xf32>
    %262 = arith.addf %257, %261 : vector<2x32xf32>
    %263 = math.tanh %262 : vector<2x32xf32>
    %cst_60 = arith.constant 1.000000e+00 : f32
    %264 = vector.broadcast %cst_60 : f32 to vector<2x32xf32>
    %265 = arith.subf %264, %256 : vector<2x32xf32>
    %266 = arith.mulf %265, %263 : vector<2x32xf32>
    %267 = vector.extract_strided_slice %231 {offsets = [0, 0], sizes = [2, 32], strides = [1, 1]} : vector<2x64xf32> to vector<2x32xf32>
    %268 = arith.mulf %256, %267 : vector<2x32xf32>
    %269 = arith.addf %266, %268 : vector<2x32xf32>
    %270 = vector.extract_strided_slice %238 {offsets = [0, 96], sizes = [2, 32], strides = [1, 1]} : vector<2x192xf32> to vector<2x32xf32>
    %271 = vector.extract_strided_slice %240 {offsets = [0, 96], sizes = [2, 32], strides = [1, 1]} : vector<2x192xf32> to vector<2x32xf32>
    %272 = arith.addf %270, %271 : vector<2x32xf32>
    %273 = arith.negf %272 : vector<2x32xf32>
    %274 = math.exp %273 : vector<2x32xf32>
    %cst_61 = arith.constant 1.000000e+00 : f32
    %275 = vector.broadcast %cst_61 : f32 to vector<2x32xf32>
    %276 = arith.addf %275, %274 : vector<2x32xf32>
    %277 = arith.divf %275, %276 : vector<2x32xf32>
    %278 = vector.extract_strided_slice %238 {offsets = [0, 128], sizes = [2, 32], strides = [1, 1]} : vector<2x192xf32> to vector<2x32xf32>
    %279 = vector.extract_strided_slice %240 {offsets = [0, 128], sizes = [2, 32], strides = [1, 1]} : vector<2x192xf32> to vector<2x32xf32>
    %280 = arith.addf %278, %279 : vector<2x32xf32>
    %281 = arith.negf %280 : vector<2x32xf32>
    %282 = math.exp %281 : vector<2x32xf32>
    %cst_62 = arith.constant 1.000000e+00 : f32
    %283 = vector.broadcast %cst_62 : f32 to vector<2x32xf32>
    %284 = arith.addf %283, %282 : vector<2x32xf32>
    %285 = arith.divf %283, %284 : vector<2x32xf32>
    %286 = vector.extract_strided_slice %238 {offsets = [0, 160], sizes = [2, 32], strides = [1, 1]} : vector<2x192xf32> to vector<2x32xf32>
    %287 = vector.extract_strided_slice %240 {offsets = [0, 160], sizes = [2, 32], strides = [1, 1]} : vector<2x192xf32> to vector<2x32xf32>
    %288 = vector.broadcast %2 : vector<1x32xf32> to vector<2x32xf32>
    %289 = arith.addf %287, %288 : vector<2x32xf32>
    %290 = arith.mulf %277, %289 : vector<2x32xf32>
    %291 = arith.addf %286, %290 : vector<2x32xf32>
    %292 = math.tanh %291 : vector<2x32xf32>
    %cst_63 = arith.constant 1.000000e+00 : f32
    %293 = vector.broadcast %cst_63 : f32 to vector<2x32xf32>
    %294 = arith.subf %293, %285 : vector<2x32xf32>
    %295 = arith.mulf %294, %292 : vector<2x32xf32>
    %296 = vector.extract_strided_slice %231 {offsets = [0, 32], sizes = [2, 32], strides = [1, 1]} : vector<2x64xf32> to vector<2x32xf32>
    %297 = arith.mulf %285, %296 : vector<2x32xf32>
    %298 = arith.addf %295, %297 : vector<2x32xf32>
    %299 = arith.index_cast %c3_i32 : i32 to index
    %c0_64 = arith.constant 0 : index
    %c0_65 = arith.constant 0 : index
    %300 = vector.load %arg7[%299, %c0_64, %c0_65] : memref<8x2x64xf32, #tpu.memory_space<vmem>>, vector<1x2x32xf32>
    %301 = vector.shape_cast %300 : vector<1x2x32xf32> to vector<2x32xf32>
    %302 = vector.shape_cast %269 : vector<2x32xf32> to vector<1x2x32xf32>
    tpu.vector_store %arg7[%299, %c0_64, %c0_65], %302 {strides = array<i32>} : memref<8x2x64xf32, #tpu.memory_space<vmem>>, vector<1x2x32xf32>,
    %303 = arith.index_cast %232 : i32 to index
    %c0_66 = arith.constant 0 : index
    %c32_67 = arith.constant 32 : index
    %304 = vector.load %arg7[%303, %c0_66, %c32_67] : memref<8x2x64xf32, #tpu.memory_space<vmem>>, vector<1x2x32xf32>
    %305 = vector.shape_cast %304 : vector<1x2x32xf32> to vector<2x32xf32>
    %306 = vector.shape_cast %298 : vector<2x32xf32> to vector<1x2x32xf32>
    tpu.vector_store %arg7[%303, %c0_66, %c32_67], %306 {strides = array<i32>} : memref<8x2x64xf32, #tpu.memory_space<vmem>>, vector<1x2x32xf32>,
    %307 = tpu.concatenate %269, %298 in 1 : vector<2x32xf32>, vector<2x32xf32> -> vector<2x64xf32>
    %c4_i32 = arith.constant 4 : i32
    %c7_i32_68 = arith.constant 7 : i32
    %308 = arith.subi %c7_i32_68, %c4_i32 : i32
    %309 = arith.index_cast %c4_i32 : i32 to index
    %c0_69 = arith.constant 0 : index
    %c0_70 = arith.constant 0 : index
    %310 = vector.load %arg0[%309, %c0_69, %c0_70] : memref<8x2x192xf32, #tpu.memory_space<vmem>>, vector<1x2x192xf32>
    %311 = vector.shape_cast %310 : vector<1x2x192xf32> to vector<2x192xf32>
    %312 = arith.index_cast %308 : i32 to index
    %c0_71 = arith.constant 0 : index
    %c0_72 = arith.constant 0 : index
    %313 = vector.load %arg0[%312, %c0_71, %c0_72] : memref<8x2x192xf32, #tpu.memory_space<vmem>>, vector<1x2x192xf32>
    %314 = vector.shape_cast %313 : vector<1x2x192xf32> to vector<2x192xf32>
    %315 = arith.truncf %307 : vector<2x64xf32> to vector<2x64xbf16>
    %cst_73 = arith.constant dense<0.000000e+00> : vector<2x192xf32>
    %316 = tpu.matmul %315, %0, %cst_73 {dimension_numbers = #tpu.dot_dimension_numbers<[1], [0], [0], [1], [0, 0, 1, 1], [], []>} : vector<2x64xbf16>, vector<64x192xbf16>, vector<2x192xf32> -> vector<2x192xf32>
    %317 = vector.extract_strided_slice %311 {offsets = [0, 0], sizes = [2, 32], strides = [1, 1]} : vector<2x192xf32> to vector<2x32xf32>
    %318 = vector.extract_strided_slice %316 {offsets = [0, 0], sizes = [2, 32], strides = [1, 1]} : vector<2x192xf32> to vector<2x32xf32>
    %319 = arith.addf %317, %318 : vector<2x32xf32>
    %320 = arith.negf %319 : vector<2x32xf32>
    %321 = math.exp %320 : vector<2x32xf32>
    %cst_74 = arith.constant 1.000000e+00 : f32
    %322 = vector.broadcast %cst_74 : f32 to vector<2x32xf32>
    %323 = arith.addf %322, %321 : vector<2x32xf32>
    %324 = arith.divf %322, %323 : vector<2x32xf32>
    %325 = vector.extract_strided_slice %311 {offsets = [0, 32], sizes = [2, 32], strides = [1, 1]} : vector<2x192xf32> to vector<2x32xf32>
    %326 = vector.extract_strided_slice %316 {offsets = [0, 32], sizes = [2, 32], strides = [1, 1]} : vector<2x192xf32> to vector<2x32xf32>
    %327 = arith.addf %325, %326 : vector<2x32xf32>
    %328 = arith.negf %327 : vector<2x32xf32>
    %329 = math.exp %328 : vector<2x32xf32>
    %cst_75 = arith.constant 1.000000e+00 : f32
    %330 = vector.broadcast %cst_75 : f32 to vector<2x32xf32>
    %331 = arith.addf %330, %329 : vector<2x32xf32>
    %332 = arith.divf %330, %331 : vector<2x32xf32>
    %333 = vector.extract_strided_slice %311 {offsets = [0, 64], sizes = [2, 32], strides = [1, 1]} : vector<2x192xf32> to vector<2x32xf32>
    %334 = vector.extract_strided_slice %316 {offsets = [0, 64], sizes = [2, 32], strides = [1, 1]} : vector<2x192xf32> to vector<2x32xf32>
    %335 = vector.broadcast %1 : vector<1x32xf32> to vector<2x32xf32>
    %336 = arith.addf %334, %335 : vector<2x32xf32>
    %337 = arith.mulf %324, %336 : vector<2x32xf32>
    %338 = arith.addf %333, %337 : vector<2x32xf32>
    %339 = math.tanh %338 : vector<2x32xf32>
    %cst_76 = arith.constant 1.000000e+00 : f32
    %340 = vector.broadcast %cst_76 : f32 to vector<2x32xf32>
    %341 = arith.subf %340, %332 : vector<2x32xf32>
    %342 = arith.mulf %341, %339 : vector<2x32xf32>
    %343 = vector.extract_strided_slice %307 {offsets = [0, 0], sizes = [2, 32], strides = [1, 1]} : vector<2x64xf32> to vector<2x32xf32>
    %344 = arith.mulf %332, %343 : vector<2x32xf32>
    %345 = arith.addf %342, %344 : vector<2x32xf32>
    %346 = vector.extract_strided_slice %314 {offsets = [0, 96], sizes = [2, 32], strides = [1, 1]} : vector<2x192xf32> to vector<2x32xf32>
    %347 = vector.extract_strided_slice %316 {offsets = [0, 96], sizes = [2, 32], strides = [1, 1]} : vector<2x192xf32> to vector<2x32xf32>
    %348 = arith.addf %346, %347 : vector<2x32xf32>
    %349 = arith.negf %348 : vector<2x32xf32>
    %350 = math.exp %349 : vector<2x32xf32>
    %cst_77 = arith.constant 1.000000e+00 : f32
    %351 = vector.broadcast %cst_77 : f32 to vector<2x32xf32>
    %352 = arith.addf %351, %350 : vector<2x32xf32>
    %353 = arith.divf %351, %352 : vector<2x32xf32>
    %354 = vector.extract_strided_slice %314 {offsets = [0, 128], sizes = [2, 32], strides = [1, 1]} : vector<2x192xf32> to vector<2x32xf32>
    %355 = vector.extract_strided_slice %316 {offsets = [0, 128], sizes = [2, 32], strides = [1, 1]} : vector<2x192xf32> to vector<2x32xf32>
    %356 = arith.addf %354, %355 : vector<2x32xf32>
    %357 = arith.negf %356 : vector<2x32xf32>
    %358 = math.exp %357 : vector<2x32xf32>
    %cst_78 = arith.constant 1.000000e+00 : f32
    %359 = vector.broadcast %cst_78 : f32 to vector<2x32xf32>
    %360 = arith.addf %359, %358 : vector<2x32xf32>
    %361 = arith.divf %359, %360 : vector<2x32xf32>
    %362 = vector.extract_strided_slice %314 {offsets = [0, 160], sizes = [2, 32], strides = [1, 1]} : vector<2x192xf32> to vector<2x32xf32>
    %363 = vector.extract_strided_slice %316 {offsets = [0, 160], sizes = [2, 32], strides = [1, 1]} : vector<2x192xf32> to vector<2x32xf32>
    %364 = vector.broadcast %2 : vector<1x32xf32> to vector<2x32xf32>
    %365 = arith.addf %363, %364 : vector<2x32xf32>
    %366 = arith.mulf %353, %365 : vector<2x32xf32>
    %367 = arith.addf %362, %366 : vector<2x32xf32>
    %368 = math.tanh %367 : vector<2x32xf32>
    %cst_79 = arith.constant 1.000000e+00 : f32
    %369 = vector.broadcast %cst_79 : f32 to vector<2x32xf32>
    %370 = arith.subf %369, %361 : vector<2x32xf32>
    %371 = arith.mulf %370, %368 : vector<2x32xf32>
    %372 = vector.extract_strided_slice %307 {offsets = [0, 32], sizes = [2, 32], strides = [1, 1]} : vector<2x64xf32> to vector<2x32xf32>
    %373 = arith.mulf %361, %372 : vector<2x32xf32>
    %374 = arith.addf %371, %373 : vector<2x32xf32>
    %375 = arith.index_cast %c4_i32 : i32 to index
    %c0_80 = arith.constant 0 : index
    %c0_81 = arith.constant 0 : index
    %376 = vector.load %arg7[%375, %c0_80, %c0_81] : memref<8x2x64xf32, #tpu.memory_space<vmem>>, vector<1x2x32xf32>
    %377 = vector.shape_cast %376 : vector<1x2x32xf32> to vector<2x32xf32>
    %378 = vector.shape_cast %345 : vector<2x32xf32> to vector<1x2x32xf32>
    tpu.vector_store %arg7[%375, %c0_80, %c0_81], %378 {strides = array<i32>} : memref<8x2x64xf32, #tpu.memory_space<vmem>>, vector<1x2x32xf32>,
    %379 = arith.index_cast %308 : i32 to index
    %c0_82 = arith.constant 0 : index
    %c32_83 = arith.constant 32 : index
    %380 = vector.load %arg7[%379, %c0_82, %c32_83] : memref<8x2x64xf32, #tpu.memory_space<vmem>>, vector<1x2x32xf32>
    %381 = vector.shape_cast %380 : vector<1x2x32xf32> to vector<2x32xf32>
    %382 = vector.shape_cast %374 : vector<2x32xf32> to vector<1x2x32xf32>
    tpu.vector_store %arg7[%379, %c0_82, %c32_83], %382 {strides = array<i32>} : memref<8x2x64xf32, #tpu.memory_space<vmem>>, vector<1x2x32xf32>,
    %383 = tpu.concatenate %345, %374 in 1 : vector<2x32xf32>, vector<2x32xf32> -> vector<2x64xf32>
    %c5_i32 = arith.constant 5 : i32
    %c7_i32_84 = arith.constant 7 : i32
    %384 = arith.subi %c7_i32_84, %c5_i32 : i32
    %385 = arith.index_cast %c5_i32 : i32 to index
    %c0_85 = arith.constant 0 : index
    %c0_86 = arith.constant 0 : index
    %386 = vector.load %arg0[%385, %c0_85, %c0_86] : memref<8x2x192xf32, #tpu.memory_space<vmem>>, vector<1x2x192xf32>
    %387 = vector.shape_cast %386 : vector<1x2x192xf32> to vector<2x192xf32>
    %388 = arith.index_cast %384 : i32 to index
    %c0_87 = arith.constant 0 : index
    %c0_88 = arith.constant 0 : index
    %389 = vector.load %arg0[%388, %c0_87, %c0_88] : memref<8x2x192xf32, #tpu.memory_space<vmem>>, vector<1x2x192xf32>
    %390 = vector.shape_cast %389 : vector<1x2x192xf32> to vector<2x192xf32>
    %391 = arith.truncf %383 : vector<2x64xf32> to vector<2x64xbf16>
    %cst_89 = arith.constant dense<0.000000e+00> : vector<2x192xf32>
    %392 = tpu.matmul %391, %0, %cst_89 {dimension_numbers = #tpu.dot_dimension_numbers<[1], [0], [0], [1], [0, 0, 1, 1], [], []>} : vector<2x64xbf16>, vector<64x192xbf16>, vector<2x192xf32> -> vector<2x192xf32>
    %393 = vector.extract_strided_slice %387 {offsets = [0, 0], sizes = [2, 32], strides = [1, 1]} : vector<2x192xf32> to vector<2x32xf32>
    %394 = vector.extract_strided_slice %392 {offsets = [0, 0], sizes = [2, 32], strides = [1, 1]} : vector<2x192xf32> to vector<2x32xf32>
    %395 = arith.addf %393, %394 : vector<2x32xf32>
    %396 = arith.negf %395 : vector<2x32xf32>
    %397 = math.exp %396 : vector<2x32xf32>
    %cst_90 = arith.constant 1.000000e+00 : f32
    %398 = vector.broadcast %cst_90 : f32 to vector<2x32xf32>
    %399 = arith.addf %398, %397 : vector<2x32xf32>
    %400 = arith.divf %398, %399 : vector<2x32xf32>
    %401 = vector.extract_strided_slice %387 {offsets = [0, 32], sizes = [2, 32], strides = [1, 1]} : vector<2x192xf32> to vector<2x32xf32>
    %402 = vector.extract_strided_slice %392 {offsets = [0, 32], sizes = [2, 32], strides = [1, 1]} : vector<2x192xf32> to vector<2x32xf32>
    %403 = arith.addf %401, %402 : vector<2x32xf32>
    %404 = arith.negf %403 : vector<2x32xf32>
    %405 = math.exp %404 : vector<2x32xf32>
    %cst_91 = arith.constant 1.000000e+00 : f32
    %406 = vector.broadcast %cst_91 : f32 to vector<2x32xf32>
    %407 = arith.addf %406, %405 : vector<2x32xf32>
    %408 = arith.divf %406, %407 : vector<2x32xf32>
    %409 = vector.extract_strided_slice %387 {offsets = [0, 64], sizes = [2, 32], strides = [1, 1]} : vector<2x192xf32> to vector<2x32xf32>
    %410 = vector.extract_strided_slice %392 {offsets = [0, 64], sizes = [2, 32], strides = [1, 1]} : vector<2x192xf32> to vector<2x32xf32>
    %411 = vector.broadcast %1 : vector<1x32xf32> to vector<2x32xf32>
    %412 = arith.addf %410, %411 : vector<2x32xf32>
    %413 = arith.mulf %400, %412 : vector<2x32xf32>
    %414 = arith.addf %409, %413 : vector<2x32xf32>
    %415 = math.tanh %414 : vector<2x32xf32>
    %cst_92 = arith.constant 1.000000e+00 : f32
    %416 = vector.broadcast %cst_92 : f32 to vector<2x32xf32>
    %417 = arith.subf %416, %408 : vector<2x32xf32>
    %418 = arith.mulf %417, %415 : vector<2x32xf32>
    %419 = vector.extract_strided_slice %383 {offsets = [0, 0], sizes = [2, 32], strides = [1, 1]} : vector<2x64xf32> to vector<2x32xf32>
    %420 = arith.mulf %408, %419 : vector<2x32xf32>
    %421 = arith.addf %418, %420 : vector<2x32xf32>
    %422 = vector.extract_strided_slice %390 {offsets = [0, 96], sizes = [2, 32], strides = [1, 1]} : vector<2x192xf32> to vector<2x32xf32>
    %423 = vector.extract_strided_slice %392 {offsets = [0, 96], sizes = [2, 32], strides = [1, 1]} : vector<2x192xf32> to vector<2x32xf32>
    %424 = arith.addf %422, %423 : vector<2x32xf32>
    %425 = arith.negf %424 : vector<2x32xf32>
    %426 = math.exp %425 : vector<2x32xf32>
    %cst_93 = arith.constant 1.000000e+00 : f32
    %427 = vector.broadcast %cst_93 : f32 to vector<2x32xf32>
    %428 = arith.addf %427, %426 : vector<2x32xf32>
    %429 = arith.divf %427, %428 : vector<2x32xf32>
    %430 = vector.extract_strided_slice %390 {offsets = [0, 128], sizes = [2, 32], strides = [1, 1]} : vector<2x192xf32> to vector<2x32xf32>
    %431 = vector.extract_strided_slice %392 {offsets = [0, 128], sizes = [2, 32], strides = [1, 1]} : vector<2x192xf32> to vector<2x32xf32>
    %432 = arith.addf %430, %431 : vector<2x32xf32>
    %433 = arith.negf %432 : vector<2x32xf32>
    %434 = math.exp %433 : vector<2x32xf32>
    %cst_94 = arith.constant 1.000000e+00 : f32
    %435 = vector.broadcast %cst_94 : f32 to vector<2x32xf32>
    %436 = arith.addf %435, %434 : vector<2x32xf32>
    %437 = arith.divf %435, %436 : vector<2x32xf32>
    %438 = vector.extract_strided_slice %390 {offsets = [0, 160], sizes = [2, 32], strides = [1, 1]} : vector<2x192xf32> to vector<2x32xf32>
    %439 = vector.extract_strided_slice %392 {offsets = [0, 160], sizes = [2, 32], strides = [1, 1]} : vector<2x192xf32> to vector<2x32xf32>
    %440 = vector.broadcast %2 : vector<1x32xf32> to vector<2x32xf32>
    %441 = arith.addf %439, %440 : vector<2x32xf32>
    %442 = arith.mulf %429, %441 : vector<2x32xf32>
    %443 = arith.addf %438, %442 : vector<2x32xf32>
    %444 = math.tanh %443 : vector<2x32xf32>
    %cst_95 = arith.constant 1.000000e+00 : f32
    %445 = vector.broadcast %cst_95 : f32 to vector<2x32xf32>
    %446 = arith.subf %445, %437 : vector<2x32xf32>
    %447 = arith.mulf %446, %444 : vector<2x32xf32>
    %448 = vector.extract_strided_slice %383 {offsets = [0, 32], sizes = [2, 32], strides = [1, 1]} : vector<2x64xf32> to vector<2x32xf32>
    %449 = arith.mulf %437, %448 : vector<2x32xf32>
    %450 = arith.addf %447, %449 : vector<2x32xf32>
    %451 = arith.index_cast %c5_i32 : i32 to index
    %c0_96 = arith.constant 0 : index
    %c0_97 = arith.constant 0 : index
    %452 = vector.load %arg7[%451, %c0_96, %c0_97] : memref<8x2x64xf32, #tpu.memory_space<vmem>>, vector<1x2x32xf32>
    %453 = vector.shape_cast %452 : vector<1x2x32xf32> to vector<2x32xf32>
    %454 = vector.shape_cast %421 : vector<2x32xf32> to vector<1x2x32xf32>
    tpu.vector_store %arg7[%451, %c0_96, %c0_97], %454 {strides = array<i32>} : memref<8x2x64xf32, #tpu.memory_space<vmem>>, vector<1x2x32xf32>,
    %455 = arith.index_cast %384 : i32 to index
    %c0_98 = arith.constant 0 : index
    %c32_99 = arith.constant 32 : index
    %456 = vector.load %arg7[%455, %c0_98, %c32_99] : memref<8x2x64xf32, #tpu.memory_space<vmem>>, vector<1x2x32xf32>
    %457 = vector.shape_cast %456 : vector<1x2x32xf32> to vector<2x32xf32>
    %458 = vector.shape_cast %450 : vector<2x32xf32> to vector<1x2x32xf32>
    tpu.vector_store %arg7[%455, %c0_98, %c32_99], %458 {strides = array<i32>} : memref<8x2x64xf32, #tpu.memory_space<vmem>>, vector<1x2x32xf32>,
    %459 = tpu.concatenate %421, %450 in 1 : vector<2x32xf32>, vector<2x32xf32> -> vector<2x64xf32>
    %c6_i32 = arith.constant 6 : i32
    %c7_i32_100 = arith.constant 7 : i32
    %460 = arith.subi %c7_i32_100, %c6_i32 : i32
    %461 = arith.index_cast %c6_i32 : i32 to index
    %c0_101 = arith.constant 0 : index
    %c0_102 = arith.constant 0 : index
    %462 = vector.load %arg0[%461, %c0_101, %c0_102] : memref<8x2x192xf32, #tpu.memory_space<vmem>>, vector<1x2x192xf32>
    %463 = vector.shape_cast %462 : vector<1x2x192xf32> to vector<2x192xf32>
    %464 = arith.index_cast %460 : i32 to index
    %c0_103 = arith.constant 0 : index
    %c0_104 = arith.constant 0 : index
    %465 = vector.load %arg0[%464, %c0_103, %c0_104] : memref<8x2x192xf32, #tpu.memory_space<vmem>>, vector<1x2x192xf32>
    %466 = vector.shape_cast %465 : vector<1x2x192xf32> to vector<2x192xf32>
    %467 = arith.truncf %459 : vector<2x64xf32> to vector<2x64xbf16>
    %cst_105 = arith.constant dense<0.000000e+00> : vector<2x192xf32>
    %468 = tpu.matmul %467, %0, %cst_105 {dimension_numbers = #tpu.dot_dimension_numbers<[1], [0], [0], [1], [0, 0, 1, 1], [], []>} : vector<2x64xbf16>, vector<64x192xbf16>, vector<2x192xf32> -> vector<2x192xf32>
    %469 = vector.extract_strided_slice %463 {offsets = [0, 0], sizes = [2, 32], strides = [1, 1]} : vector<2x192xf32> to vector<2x32xf32>
    %470 = vector.extract_strided_slice %468 {offsets = [0, 0], sizes = [2, 32], strides = [1, 1]} : vector<2x192xf32> to vector<2x32xf32>
    %471 = arith.addf %469, %470 : vector<2x32xf32>
    %472 = arith.negf %471 : vector<2x32xf32>
    %473 = math.exp %472 : vector<2x32xf32>
    %cst_106 = arith.constant 1.000000e+00 : f32
    %474 = vector.broadcast %cst_106 : f32 to vector<2x32xf32>
    %475 = arith.addf %474, %473 : vector<2x32xf32>
    %476 = arith.divf %474, %475 : vector<2x32xf32>
    %477 = vector.extract_strided_slice %463 {offsets = [0, 32], sizes = [2, 32], strides = [1, 1]} : vector<2x192xf32> to vector<2x32xf32>
    %478 = vector.extract_strided_slice %468 {offsets = [0, 32], sizes = [2, 32], strides = [1, 1]} : vector<2x192xf32> to vector<2x32xf32>
    %479 = arith.addf %477, %478 : vector<2x32xf32>
    %480 = arith.negf %479 : vector<2x32xf32>
    %481 = math.exp %480 : vector<2x32xf32>
    %cst_107 = arith.constant 1.000000e+00 : f32
    %482 = vector.broadcast %cst_107 : f32 to vector<2x32xf32>
    %483 = arith.addf %482, %481 : vector<2x32xf32>
    %484 = arith.divf %482, %483 : vector<2x32xf32>
    %485 = vector.extract_strided_slice %463 {offsets = [0, 64], sizes = [2, 32], strides = [1, 1]} : vector<2x192xf32> to vector<2x32xf32>
    %486 = vector.extract_strided_slice %468 {offsets = [0, 64], sizes = [2, 32], strides = [1, 1]} : vector<2x192xf32> to vector<2x32xf32>
    %487 = vector.broadcast %1 : vector<1x32xf32> to vector<2x32xf32>
    %488 = arith.addf %486, %487 : vector<2x32xf32>
    %489 = arith.mulf %476, %488 : vector<2x32xf32>
    %490 = arith.addf %485, %489 : vector<2x32xf32>
    %491 = math.tanh %490 : vector<2x32xf32>
    %cst_108 = arith.constant 1.000000e+00 : f32
    %492 = vector.broadcast %cst_108 : f32 to vector<2x32xf32>
    %493 = arith.subf %492, %484 : vector<2x32xf32>
    %494 = arith.mulf %493, %491 : vector<2x32xf32>
    %495 = vector.extract_strided_slice %459 {offsets = [0, 0], sizes = [2, 32], strides = [1, 1]} : vector<2x64xf32> to vector<2x32xf32>
    %496 = arith.mulf %484, %495 : vector<2x32xf32>
    %497 = arith.addf %494, %496 : vector<2x32xf32>
    %498 = vector.extract_strided_slice %466 {offsets = [0, 96], sizes = [2, 32], strides = [1, 1]} : vector<2x192xf32> to vector<2x32xf32>
    %499 = vector.extract_strided_slice %468 {offsets = [0, 96], sizes = [2, 32], strides = [1, 1]} : vector<2x192xf32> to vector<2x32xf32>
    %500 = arith.addf %498, %499 : vector<2x32xf32>
    %501 = arith.negf %500 : vector<2x32xf32>
    %502 = math.exp %501 : vector<2x32xf32>
    %cst_109 = arith.constant 1.000000e+00 : f32
    %503 = vector.broadcast %cst_109 : f32 to vector<2x32xf32>
    %504 = arith.addf %503, %502 : vector<2x32xf32>
    %505 = arith.divf %503, %504 : vector<2x32xf32>
    %506 = vector.extract_strided_slice %466 {offsets = [0, 128], sizes = [2, 32], strides = [1, 1]} : vector<2x192xf32> to vector<2x32xf32>
    %507 = vector.extract_strided_slice %468 {offsets = [0, 128], sizes = [2, 32], strides = [1, 1]} : vector<2x192xf32> to vector<2x32xf32>
    %508 = arith.addf %506, %507 : vector<2x32xf32>
    %509 = arith.negf %508 : vector<2x32xf32>
    %510 = math.exp %509 : vector<2x32xf32>
    %cst_110 = arith.constant 1.000000e+00 : f32
    %511 = vector.broadcast %cst_110 : f32 to vector<2x32xf32>
    %512 = arith.addf %511, %510 : vector<2x32xf32>
    %513 = arith.divf %511, %512 : vector<2x32xf32>
    %514 = vector.extract_strided_slice %466 {offsets = [0, 160], sizes = [2, 32], strides = [1, 1]} : vector<2x192xf32> to vector<2x32xf32>
    %515 = vector.extract_strided_slice %468 {offsets = [0, 160], sizes = [2, 32], strides = [1, 1]} : vector<2x192xf32> to vector<2x32xf32>
    %516 = vector.broadcast %2 : vector<1x32xf32> to vector<2x32xf32>
    %517 = arith.addf %515, %516 : vector<2x32xf32>
    %518 = arith.mulf %505, %517 : vector<2x32xf32>
    %519 = arith.addf %514, %518 : vector<2x32xf32>
    %520 = math.tanh %519 : vector<2x32xf32>
    %cst_111 = arith.constant 1.000000e+00 : f32
    %521 = vector.broadcast %cst_111 : f32 to vector<2x32xf32>
    %522 = arith.subf %521, %513 : vector<2x32xf32>
    %523 = arith.mulf %522, %520 : vector<2x32xf32>
    %524 = vector.extract_strided_slice %459 {offsets = [0, 32], sizes = [2, 32], strides = [1, 1]} : vector<2x64xf32> to vector<2x32xf32>
    %525 = arith.mulf %513, %524 : vector<2x32xf32>
    %526 = arith.addf %523, %525 : vector<2x32xf32>
    %527 = arith.index_cast %c6_i32 : i32 to index
    %c0_112 = arith.constant 0 : index
    %c0_113 = arith.constant 0 : index
    %528 = vector.load %arg7[%527, %c0_112, %c0_113] : memref<8x2x64xf32, #tpu.memory_space<vmem>>, vector<1x2x32xf32>
    %529 = vector.shape_cast %528 : vector<1x2x32xf32> to vector<2x32xf32>
    %530 = vector.shape_cast %497 : vector<2x32xf32> to vector<1x2x32xf32>
    tpu.vector_store %arg7[%527, %c0_112, %c0_113], %530 {strides = array<i32>} : memref<8x2x64xf32, #tpu.memory_space<vmem>>, vector<1x2x32xf32>,
    %531 = arith.index_cast %460 : i32 to index
    %c0_114 = arith.constant 0 : index
    %c32_115 = arith.constant 32 : index
    %532 = vector.load %arg7[%531, %c0_114, %c32_115] : memref<8x2x64xf32, #tpu.memory_space<vmem>>, vector<1x2x32xf32>
    %533 = vector.shape_cast %532 : vector<1x2x32xf32> to vector<2x32xf32>
    %534 = vector.shape_cast %526 : vector<2x32xf32> to vector<1x2x32xf32>
    tpu.vector_store %arg7[%531, %c0_114, %c32_115], %534 {strides = array<i32>} : memref<8x2x64xf32, #tpu.memory_space<vmem>>, vector<1x2x32xf32>,
    %535 = tpu.concatenate %497, %526 in 1 : vector<2x32xf32>, vector<2x32xf32> -> vector<2x64xf32>
    %c7_i32_116 = arith.constant 7 : i32
    %c7_i32_117 = arith.constant 7 : i32
    %536 = arith.subi %c7_i32_117, %c7_i32_116 : i32
    %537 = arith.index_cast %c7_i32_116 : i32 to index
    %c0_118 = arith.constant 0 : index
    %c0_119 = arith.constant 0 : index
    %538 = vector.load %arg0[%537, %c0_118, %c0_119] : memref<8x2x192xf32, #tpu.memory_space<vmem>>, vector<1x2x192xf32>
    %539 = vector.shape_cast %538 : vector<1x2x192xf32> to vector<2x192xf32>
    %540 = arith.index_cast %536 : i32 to index
    %c0_120 = arith.constant 0 : index
    %c0_121 = arith.constant 0 : index
    %541 = vector.load %arg0[%540, %c0_120, %c0_121] : memref<8x2x192xf32, #tpu.memory_space<vmem>>, vector<1x2x192xf32>
    %542 = vector.shape_cast %541 : vector<1x2x192xf32> to vector<2x192xf32>
    %543 = arith.truncf %535 : vector<2x64xf32> to vector<2x64xbf16>
    %cst_122 = arith.constant dense<0.000000e+00> : vector<2x192xf32>
    %544 = tpu.matmul %543, %0, %cst_122 {dimension_numbers = #tpu.dot_dimension_numbers<[1], [0], [0], [1], [0, 0, 1, 1], [], []>} : vector<2x64xbf16>, vector<64x192xbf16>, vector<2x192xf32> -> vector<2x192xf32>
    %545 = vector.extract_strided_slice %539 {offsets = [0, 0], sizes = [2, 32], strides = [1, 1]} : vector<2x192xf32> to vector<2x32xf32>
    %546 = vector.extract_strided_slice %544 {offsets = [0, 0], sizes = [2, 32], strides = [1, 1]} : vector<2x192xf32> to vector<2x32xf32>
    %547 = arith.addf %545, %546 : vector<2x32xf32>
    %548 = arith.negf %547 : vector<2x32xf32>
    %549 = math.exp %548 : vector<2x32xf32>
    %cst_123 = arith.constant 1.000000e+00 : f32
    %550 = vector.broadcast %cst_123 : f32 to vector<2x32xf32>
    %551 = arith.addf %550, %549 : vector<2x32xf32>
    %552 = arith.divf %550, %551 : vector<2x32xf32>
    %553 = vector.extract_strided_slice %539 {offsets = [0, 32], sizes = [2, 32], strides = [1, 1]} : vector<2x192xf32> to vector<2x32xf32>
    %554 = vector.extract_strided_slice %544 {offsets = [0, 32], sizes = [2, 32], strides = [1, 1]} : vector<2x192xf32> to vector<2x32xf32>
    %555 = arith.addf %553, %554 : vector<2x32xf32>
    %556 = arith.negf %555 : vector<2x32xf32>
    %557 = math.exp %556 : vector<2x32xf32>
    %cst_124 = arith.constant 1.000000e+00 : f32
    %558 = vector.broadcast %cst_124 : f32 to vector<2x32xf32>
    %559 = arith.addf %558, %557 : vector<2x32xf32>
    %560 = arith.divf %558, %559 : vector<2x32xf32>
    %561 = vector.extract_strided_slice %539 {offsets = [0, 64], sizes = [2, 32], strides = [1, 1]} : vector<2x192xf32> to vector<2x32xf32>
    %562 = vector.extract_strided_slice %544 {offsets = [0, 64], sizes = [2, 32], strides = [1, 1]} : vector<2x192xf32> to vector<2x32xf32>
    %563 = vector.broadcast %1 : vector<1x32xf32> to vector<2x32xf32>
    %564 = arith.addf %562, %563 : vector<2x32xf32>
    %565 = arith.mulf %552, %564 : vector<2x32xf32>
    %566 = arith.addf %561, %565 : vector<2x32xf32>
    %567 = math.tanh %566 : vector<2x32xf32>
    %cst_125 = arith.constant 1.000000e+00 : f32
    %568 = vector.broadcast %cst_125 : f32 to vector<2x32xf32>
    %569 = arith.subf %568, %560 : vector<2x32xf32>
    %570 = arith.mulf %569, %567 : vector<2x32xf32>
    %571 = vector.extract_strided_slice %535 {offsets = [0, 0], sizes = [2, 32], strides = [1, 1]} : vector<2x64xf32> to vector<2x32xf32>
    %572 = arith.mulf %560, %571 : vector<2x32xf32>
    %573 = arith.addf %570, %572 : vector<2x32xf32>
    %574 = vector.extract_strided_slice %542 {offsets = [0, 96], sizes = [2, 32], strides = [1, 1]} : vector<2x192xf32> to vector<2x32xf32>
    %575 = vector.extract_strided_slice %544 {offsets = [0, 96], sizes = [2, 32], strides = [1, 1]} : vector<2x192xf32> to vector<2x32xf32>
    %576 = arith.addf %574, %575 : vector<2x32xf32>
    %577 = arith.negf %576 : vector<2x32xf32>
    %578 = math.exp %577 : vector<2x32xf32>
    %cst_126 = arith.constant 1.000000e+00 : f32
    %579 = vector.broadcast %cst_126 : f32 to vector<2x32xf32>
    %580 = arith.addf %579, %578 : vector<2x32xf32>
    %581 = arith.divf %579, %580 : vector<2x32xf32>
    %582 = vector.extract_strided_slice %542 {offsets = [0, 128], sizes = [2, 32], strides = [1, 1]} : vector<2x192xf32> to vector<2x32xf32>
    %583 = vector.extract_strided_slice %544 {offsets = [0, 128], sizes = [2, 32], strides = [1, 1]} : vector<2x192xf32> to vector<2x32xf32>
    %584 = arith.addf %582, %583 : vector<2x32xf32>
    %585 = arith.negf %584 : vector<2x32xf32>
    %586 = math.exp %585 : vector<2x32xf32>
    %cst_127 = arith.constant 1.000000e+00 : f32
    %587 = vector.broadcast %cst_127 : f32 to vector<2x32xf32>
    %588 = arith.addf %587, %586 : vector<2x32xf32>
    %589 = arith.divf %587, %588 : vector<2x32xf32>
    %590 = vector.extract_strided_slice %542 {offsets = [0, 160], sizes = [2, 32], strides = [1, 1]} : vector<2x192xf32> to vector<2x32xf32>
    %591 = vector.extract_strided_slice %544 {offsets = [0, 160], sizes = [2, 32], strides = [1, 1]} : vector<2x192xf32> to vector<2x32xf32>
    %592 = vector.broadcast %2 : vector<1x32xf32> to vector<2x32xf32>
    %593 = arith.addf %591, %592 : vector<2x32xf32>
    %594 = arith.mulf %581, %593 : vector<2x32xf32>
    %595 = arith.addf %590, %594 : vector<2x32xf32>
    %596 = math.tanh %595 : vector<2x32xf32>
    %cst_128 = arith.constant 1.000000e+00 : f32
    %597 = vector.broadcast %cst_128 : f32 to vector<2x32xf32>
    %598 = arith.subf %597, %589 : vector<2x32xf32>
    %599 = arith.mulf %598, %596 : vector<2x32xf32>
    %600 = vector.extract_strided_slice %535 {offsets = [0, 32], sizes = [2, 32], strides = [1, 1]} : vector<2x64xf32> to vector<2x32xf32>
    %601 = arith.mulf %589, %600 : vector<2x32xf32>
    %602 = arith.addf %599, %601 : vector<2x32xf32>
    %603 = arith.index_cast %c7_i32_116 : i32 to index
    %c0_129 = arith.constant 0 : index
    %c0_130 = arith.constant 0 : index
    %604 = vector.load %arg7[%603, %c0_129, %c0_130] : memref<8x2x64xf32, #tpu.memory_space<vmem>>, vector<1x2x32xf32>
    %605 = vector.shape_cast %604 : vector<1x2x32xf32> to vector<2x32xf32>
    %606 = vector.shape_cast %573 : vector<2x32xf32> to vector<1x2x32xf32>
    tpu.vector_store %arg7[%603, %c0_129, %c0_130], %606 {strides = array<i32>} : memref<8x2x64xf32, #tpu.memory_space<vmem>>, vector<1x2x32xf32>,
    %607 = arith.index_cast %536 : i32 to index
    %c0_131 = arith.constant 0 : index
    %c32_132 = arith.constant 32 : index
    %608 = vector.load %arg7[%607, %c0_131, %c32_132] : memref<8x2x64xf32, #tpu.memory_space<vmem>>, vector<1x2x32xf32>
    %609 = vector.shape_cast %608 : vector<1x2x32xf32> to vector<2x32xf32>
    %610 = vector.shape_cast %602 : vector<2x32xf32> to vector<1x2x32xf32>
    tpu.vector_store %arg7[%607, %c0_131, %c32_132], %610 {strides = array<i32>} : memref<8x2x64xf32, #tpu.memory_space<vmem>>, vector<1x2x32xf32>,
    %611 = tpu.concatenate %573, %602 in 1 : vector<2x32xf32>, vector<2x32xf32> -> vector<2x64xf32>
    %c8_i32 = arith.constant 8 : i32
    %612 = vector.extract_strided_slice %611 {offsets = [0, 0], sizes = [2, 32], strides = [1, 1]} : vector<2x64xf32> to vector<2x32xf32>
    %c0_133 = arith.constant 0 : index
    %c0_134 = arith.constant 0 : index
    %c0_135 = arith.constant 0 : index
    %613 = vector.load %arg8[%c0_133, %c0_134, %c0_135] : memref<2x2x32xf32, #tpu.memory_space<vmem>>, vector<1x2x32xf32>
    %614 = vector.shape_cast %613 : vector<1x2x32xf32> to vector<2x32xf32>
    %615 = vector.shape_cast %612 : vector<2x32xf32> to vector<1x2x32xf32>
    tpu.vector_store %arg8[%c0_133, %c0_134, %c0_135], %615 {strides = array<i32>} : memref<2x2x32xf32, #tpu.memory_space<vmem>>, vector<1x2x32xf32>,
    %616 = vector.extract_strided_slice %611 {offsets = [0, 32], sizes = [2, 32], strides = [1, 1]} : vector<2x64xf32> to vector<2x32xf32>
    %c1 = arith.constant 1 : index
    %c0_136 = arith.constant 0 : index
    %c0_137 = arith.constant 0 : index
    %617 = vector.load %arg8[%c1, %c0_136, %c0_137] : memref<2x2x32xf32, #tpu.memory_space<vmem>>, vector<1x2x32xf32>
    %618 = vector.shape_cast %617 : vector<1x2x32xf32> to vector<2x32xf32>
    %619 = vector.shape_cast %616 : vector<2x32xf32> to vector<1x2x32xf32>
    tpu.vector_store %arg8[%c1, %c0_136, %c0_137], %619 {strides = array<i32>} : memref<2x2x32xf32, #tpu.memory_space<vmem>>, vector<1x2x32xf32>,
    %c0_138 = arith.constant 0 : index
    %c0_139 = arith.constant 0 : index
    %c0_140 = arith.constant 0 : index
    %620 = vector.load %arg7[%c0_138, %c0_139, %c0_140] : memref<8x2x64xf32, #tpu.memory_space<vmem>>, vector<8x2x64xf32>
    %cst_141 = arith.constant dense<0.000000e+00> : vector<8x2xf32>
    %621 = vector.multi_reduction <add>, %620, %cst_141 [2] : vector<8x2x64xf32> to vector<8x2xf32>
    %622 = vector.shape_cast %621 : vector<8x2xf32> to vector<8x2x1xf32>
    %cst_142 = arith.constant 6.400000e+01 : f32
    %623 = vector.broadcast %cst_142 : f32 to vector<8x2x1xf32>
    %624 = arith.divf %622, %623 : vector<8x2x1xf32>
    %625 = vector.broadcast %624 : vector<8x2x1xf32> to vector<8x2x64xf32>
    %626 = arith.subf %620, %625 : vector<8x2x64xf32>
    %627 = arith.mulf %626, %626 : vector<8x2x64xf32>
    %cst_143 = arith.constant dense<0.000000e+00> : vector<8x2xf32>
    %628 = vector.multi_reduction <add>, %627, %cst_143 [2] : vector<8x2x64xf32> to vector<8x2xf32>
    %629 = vector.shape_cast %628 : vector<8x2xf32> to vector<8x2x1xf32>
    %cst_144 = arith.constant 6.400000e+01 : f32
    %630 = vector.broadcast %cst_144 : f32 to vector<8x2x1xf32>
    %631 = arith.divf %629, %630 : vector<8x2x1xf32>
    %cst_145 = arith.constant 9.99999974E-6 : f32
    %632 = vector.broadcast %cst_145 : f32 to vector<8x2x1xf32>
    %633 = arith.addf %631, %632 : vector<8x2x1xf32>
    %634 = math.rsqrt %633 : vector<8x2x1xf32>
    %635 = vector.broadcast %634 : vector<8x2x1xf32> to vector<8x2x64xf32>
    %636 = arith.mulf %626, %635 : vector<8x2x64xf32>
    %c0_146 = arith.constant 0 : index
    %c0_147 = arith.constant 0 : index
    %c0_148 = arith.constant 0 : index
    %637 = vector.load %arg5[%c0_146, %c0_147, %c0_148] : memref<1x1x64xf32, #tpu.memory_space<vmem>>, vector<1x1x64xf32>
    %638 = vector.broadcast %637 : vector<1x1x64xf32> to vector<8x2x64xf32>
    %639 = arith.mulf %636, %638 : vector<8x2x64xf32>
    %c0_149 = arith.constant 0 : index
    %c0_150 = arith.constant 0 : index
    %c0_151 = arith.constant 0 : index
    %640 = vector.load %arg6[%c0_149, %c0_150, %c0_151] : memref<1x1x64xf32, #tpu.memory_space<vmem>>, vector<1x1x64xf32>
    %641 = vector.broadcast %640 : vector<1x1x64xf32> to vector<8x2x64xf32>
    %642 = arith.addf %639, %641 : vector<8x2x64xf32>
    %c0_152 = arith.constant 0 : index
    %c0_153 = arith.constant 0 : index
    %c0_154 = arith.constant 0 : index
    %643 = vector.load %arg7[%c0_152, %c0_153, %c0_154] : memref<8x2x64xf32, #tpu.memory_space<vmem>>, vector<8x2x64xf32>
    tpu.vector_store %arg7[%c0_152, %c0_153, %c0_154], %642 {strides = array<i32>} : memref<8x2x64xf32, #tpu.memory_space<vmem>>, vector<8x2x64xf32>,
    return
  }
}

</mosaic_0001>

<bundles_post_ra>
// kernel: _lambda_.6
= control target key start
LH: loop header
LB: loop body
LE: loop exit
PB: predicated region body
PF: predicated region fallthrough
CT: control target
= control target key end

     0   :  { %vm76_vm0 = vcmask 523264   ;;  %s253_s1 = inlined_call_operand.vmem [shape: bf16[64,192], index: 1, kind: input, shape index: {}]   ;;  %s254_s0 = inlined_call_operand.vmem [shape: bf16[16,64], index: 0, kind: input, shape index: {}]   ;;  %s255_s2 = inlined_call_operand.vmem [shape: f32[1,192], index: 2, kind: input, shape index: {}]   ;;  %s256_s3 = inlined_call_operand.vmem [shape: f32[16,192], index: 3, kind: output, shape index: {}]  }
   0x1   :  { %v146_v0 = vld [vmem:[%s253_s1 + $0x30] sm:$0xf]  ;;  %v162_v1 = vld [vmem:[%s253_s1 + $0x34] sm:$0xf0]  ;;  %v161_v2 = vld [vmem:[%s253_s1 + $0x34] sm:$0xf] }
   0x2   :  { %v147_v3 = vor.u32 %v162_v1, %v146_v0  ;;  %v148_v4 = vld [vmem:[%s253_s1 + $0x38] sm:$0xf0]  ;;  %v138_v5 = vld [vmem:[%s253_s1 + $0x20] sm:$0xf]  ;;  %v160_v6 = vld [vmem:[%s253_s1 + $0x24] sm:$0xf0] }
   0x3   :  { %v151_v7 = vor.u32 %v161_v2, %v148_v4  ;;  %v159_v8 = vld [vmem:[%s253_s1 + $0x24] sm:$0xf]  ;;  %v140_v9 = vld [vmem:[%s253_s1 + $0x28] sm:$0xf0]  ;;  %v139_v10 = vor.u32 %v160_v6, %v138_v5  ;;  %v130_v12 = vld [vmem:[%s253_s1 + $0x10] sm:$0xf] }
   0x4   :  { %84 = vmatpush.bf16.msra.mxu0 %v147_v3  ;;  %v143_v11 = vor.u32 %v159_v8, %v140_v9  ;;  %v158_v13 = vld [vmem:[%s253_s1 + $0x14] sm:$0xf0]  ;;  %v157_v14 = vld [vmem:[%s253_s1 + $0x14] sm:$0xf]  ;;  %v132_v15 = vld [vmem:[%s253_s1 + $0x18] sm:$0xf0] }
   0x5   :  { %98 = vmatpush.bf16.msra.mxu1 %v151_v7  ;;  %v131_v16 = vor.u32 %v158_v13, %v130_v12  ;;  %v135_v17 = vor.u32 %v157_v14, %v132_v15  ;;  %v122_v18 = vld [vmem:[%s253_s1] sm:$0xf]  ;;  %v156_v19 = vld [vmem:[%s253_s1 + $0x4] sm:$0xf0]  ;;  %v155_v20 = vld [vmem:[%s253_s1 + $0x4] sm:$0xf] }
   0x6   :  { %v124_v21 = vld [vmem:[%s253_s1 + $0x8] sm:$0xf0]  ;;  %v123_v22 = vor.u32 %v156_v19, %v122_v18  ;;  %v154_v24 = vld [vmem:[%s254_s0] sm:$0xff] }
   0x7   :  { %v127_v23 = vor.u32 %v155_v20, %v124_v21  ;;  %v25_v25 = vld [vmem:[%s255_s2] sm:$0x3] }
   0x8   :  { %85 = vmatpush.bf16.msra.mxu0 %v139_v10  ;;  %v27_v26 = vperm.slane %v25_v25, 0  ;;  %v28_v27 = vperm.slane %v25_v25, 1 }
   0x9   :  { %99 = vmatpush.bf16.msra.mxu1 %v143_v11 }
   0xc   :  { %86 = vmatpush.bf16.msra.mxu0 %v131_v16 }
   0xd   :  { %100 = vmatpush.bf16.msra.mxu1 %v135_v17 }
  0x10   :  { %87 = vmatpush.bf16.msra.mxu0 %v123_v22 }
  0x11   :  { %101 = vmatpush.bf16.msra.mxu1 %v127_v23 }
  0x13   :  { %152 = vmatmul.msk.bf16.vlgmr.msra.gmra.mxu0 %vm76_vm0, %v154_v24 }
  0x14   :  { %153 = vmatmul.msk.bf16.vlgmr.msra.gmra.mxu1 %vm76_vm0, %v154_v24 }
  0x90   :  { %v89_v28 = vpop.f32.mrf.mxu0 }
  0x91   :  { %v90_v29 = vadd.f32 %v89_v28, %v27_v26  ;;  %v103_v30 = vpop.f32.mrf.mxu1 }
  0x92   :  { %v104_v31 = vadd.f32 %v103_v30, %v28_v27 }
  0x93   :  { %108 = vst [vmem:[%s256_s3] sm:$0xff] %v90_v29 }
  0x94   :  { %109 = vst.msk [vmem:[%s256_s3 + $0x8] sm:$0xff] %vm76_vm0, %v104_v31 }
  0x98   :  { %v91_v32 = vpop.f32.mrf.mxu0 }
  0x99   :  { %v92_v33 = vadd.f32 %v91_v32, %v27_v26  ;;  %v105_v34 = vpop.f32.mrf.mxu1 }
  0x9a   :  { %v106_v35 = vadd.f32 %v105_v34, %v28_v27 }
  0x9b   :  { %110 = vst [vmem:[%s256_s3 + $0x10] sm:$0xff] %v92_v33 }
  0x9c   :  { %111 = vst.msk [vmem:[%s256_s3 + $0x18] sm:$0xff] %vm76_vm0, %v106_v35 }

// kernel: _lambda_.4
= control target key start
LH: loop header
LB: loop body
LE: loop exit
PB: predicated region body
PF: predicated region fallthrough
CT: control target
= control target key end

     0   :  { %8 = vsyncpa [#allocation3], 0  ;;  %s224_s0 = inlined_call_operand.hbm [shape: f32[16,16], index: 0, kind: input, shape index: {}]   ;;  %s225_s1 = inlined_call_operand.hbm [shape: bf16[16,192], index: 1, kind: input, shape index: {}]   ;;  %s226_s2 = inlined_call_operand.vmem [shape: f32[1,192], index: 2, kind: input, shape index: {}]   ;;  %s227_s3 = inlined_call_operand.vmem [shape: f32[16,192], index: 3, kind: output, shape index: {}]  }
   0x1   :  { %s14_s14 = sshll.u32 %s224_s0, 4  ;;  %s15_s14 = int_to_ptr.hbm [resolvable:$true] %s14_s14 }
   0x2   :  { %9 = vsyncpa [#allocation5], 0  ;;  %s179_s15 = smov [#allocation2]   ;;  %s27_s19 = sshll.u32 %s225_s1, 4  ;;  %s28_s19 = int_to_ptr.hbm [resolvable:$true] %s27_s19 }
   0x3   :  { %s16_s16 = sshll.u32 %s179_s15, 4  ;;  %s180_s20 = smov 128   ;;  %s17_s16 = int_to_ptr.vmem [resolvable:$true] %s16_s16 }
   0x4   :  { %s181_s21 = smov 8   ;;  %s182_s22 = smov [#allocation4]  }
   0x5   :  { %22 = dma.hbm_to_vmem [thread:$0]  %s15_s14, 256, %s17_s16, [#allocation3], %s180_s20, %s180_s20, %s181_s21  }
   0x6   :  { %s29_s23 = sshll.u32 %s182_s22, 4  ;;  %s30_s23 = int_to_ptr.vmem [resolvable:$true] %s29_s23 }
   0x7   :  { %35 = dma.hbm_to_vmem [thread:$0]  %s28_s19, 256, %s30_s23, [#allocation5], %s180_s20, %s180_s20, %s181_s21  }
   0x8   :  { %175 = dma.done.wait [#allocation3], 256  }
   0x9   :  { %176 = vsyncadd [#allocation3], 4294967040 }
   0xa   :  { %177 = dma.done.wait [#allocation5], 256  }
   0xb   :  { %178 = vsyncadd [#allocation5], 4294967040  ;;  %v113_v0 = vld [vmem:[#allocation4] sm:$0xf]  ;;  %v122_v1 = vld [vmem:[#allocation4 + $0x4] sm:$0xf0] }
   0xc   :  { %v121_v2 = vld [vmem:[#allocation4 + $0x4] sm:$0xf]  ;;  %v114_v3 = vor.u32 %v122_v1, %v113_v0  ;;  %v115_v4 = vld [vmem:[#allocation4 + $0x8] sm:$0xf0]  ;;  %v47_v5 = vld [vmem:[#allocation2] sm:$0xff]  ;;  %vm68_vm0 = vcmask 130048  }
   0xd   :  { %v48_v6 = vld [vmem:[#allocation2 + $0x8] sm:$0xff]  ;;  %v118_v7 = vor.u32 %v121_v2, %v115_v4  ;;  %v52_v9 = vld [vmem:[%s226_s2] sm:$0x3]  ;;  %vm101_vm1 = vcmask 523264  }
   0xe   :  { %v49_v8 = vpack.c.bf16 %v48_v6, %v47_v5  ;;  %79 = vmatpush.bf16.msra.mxu0 %v114_v3  ;;  %v54_v10 = vperm.slane %v52_v9, 0  ;;  %v55_v11 = vperm.slane %v52_v9, 1 }
   0xf   :  { %93 = vmatpush.bf16.msra.mxu1 %v118_v7 }
  0x11   :  { %119 = vmatmul.msk.bf16.vlgmr.msra.gmra.mxu0 %vm68_vm0, %v49_v8 }
  0x12   :  { %120 = vmatmul.msk.bf16.vlgmr.msra.gmra.mxu1 %vm68_vm0, %v49_v8 }
  0x8e   :  { %v81_v12 = vpop.f32.mrf.mxu0 }
  0x8f   :  { %v82_v13 = vadd.f32 %v81_v12, %v54_v10  ;;  %v95_v14 = vpop.f32.mrf.mxu1 }
  0x90   :  { %v96_v15 = vadd.f32 %v95_v14, %v55_v11 }
  0x91   :  { %100 = vst [vmem:[%s227_s3] sm:$0xff] %v82_v13 }
  0x92   :  { %102 = vst.msk [vmem:[%s227_s3 + $0x8] sm:$0xff] %vm101_vm1, %v96_v15 }
  0x96   :  { %v83_v16 = vpop.f32.mrf.mxu0 }
  0x97   :  { %v84_v17 = vadd.f32 %v83_v16, %v54_v10  ;;  %v97_v18 = vpop.f32.mrf.mxu1 }
  0x98   :  { %v98_v19 = vadd.f32 %v97_v18, %v55_v11 }
  0x99   :  { %103 = vst [vmem:[%s227_s3 + $0x10] sm:$0xff] %v84_v17 }
  0x9a   :  { %104 = vst.msk [vmem:[%s227_s3 + $0x18] sm:$0xff] %vm101_vm1, %v98_v19 }
  0x9b   :  { %109 = vsyncpa [#allocation3], 1 }
  0x9c   :  { %110 = vsyncpa [#allocation5], 1 }

// kernel: _lambda_.5
= control target key start
LH: loop header
LB: loop body
LE: loop exit
PB: predicated region body
PF: predicated region fallthrough
CT: control target
= control target key end

     0   :  { %14 = vsyncpa [#allocation3], 0  ;;  %s1747_s30 = smov [#allocation2]   ;;  %s1748_s10 = smov 128   ;;  %s2248_s0 = inlined_call_operand.vmem [shape: f32[8,2,192], index: 0, kind: input, shape index: {}]   ;;  %s2249_s1 = inlined_call_operand.vmem [shape: f32[2,64], index: 1, kind: input, shape index: {}]   ;;  %s2250_s2 = inlined_call_operand.hbm [shape: bf16[64,192], index: 2, kind: input, shape index: {}]   ;;  %s2251_s3 = inlined_call_operand.vmem [shape: f32[1,32], index: 3, kind: input, shape index: {}]   ;;  %s2252_s4 = inlined_call_operand.vmem [shape: f32[1,32], index: 4, kind: input, shape index: {}]   ;;  %s2253_s5 = inlined_call_operand.vmem [shape: f32[1,1,64], index: 5, kind: input, shape index: {}]   ;;  %s2254_s6 = inlined_call_operand.vmem [shape: f32[1,1,64], index: 6, kind: input, shape index: {}]   ;;  %s2255_s7 = inlined_call_operand.vmem [shape: f32[8,2,64], index: 7, kind: output, shape index: {0}]   ;;  %s2256_s8 = inlined_call_operand.vmem [shape: f32[2,2,32], index: 8, kind: output, shape index: {1}]  }
   0x1   :  { %s23_s29 = sshll.u32 %s2250_s2, 4  ;;  %s25_s9 = sshll.u32 %s1747_s30, 4  ;;  %s24_s29 = int_to_ptr.hbm [resolvable:$true] %s23_s29  ;;  %s26_s9 = int_to_ptr.vmem [resolvable:$true] %s25_s9 }
   0x2   :  { %s1749_s5 = smov 8  }
   0x3   :  { %31 = dma.hbm_to_vmem [thread:$0]  %s24_s29, 1024, %s26_s9, [#allocation3], %s1748_s10, %s1748_s10, %s1749_s5  }
   0x4   :  { %1745 = dma.done.wait [#allocation3], 1024  }
   0x5   :  { %1746 = vsyncadd [#allocation3], 4294966272  ;;  %v1503_v0 = vld [vmem:[#allocation2 + $0x30] sm:$0xf]  ;;  %v1584_v1 = vld [vmem:[#allocation2 + $0x34] sm:$0xf0] }
   0x6   :  { %v1583_v2 = vld [vmem:[#allocation2 + $0x34] sm:$0xf]  ;;  %v1801_v3 = vor.u32 %v1584_v1, %v1503_v0  ;;  %v1505_v4 = vld [vmem:[#allocation2 + $0x38] sm:$0xf0]  ;;  %v1495_v5 = vld [vmem:[#allocation2 + $0x20] sm:$0xf] }
   0x7   :  { %v1582_v6 = vld [vmem:[#allocation2 + $0x24] sm:$0xf0]  ;;  %v1803_v7 = vor.u32 %v1583_v2, %v1505_v4  ;;  %v1581_v8 = vld [vmem:[#allocation2 + $0x24] sm:$0xf]  ;;  %v1497_v9 = vld [vmem:[#allocation2 + $0x28] sm:$0xf0] }
   0x8   :  { %108 = vmatpush.bf16.msra.mxu0 %v1801_v3  ;;  %v1806_v10 = vor.u32 %v1582_v6, %v1495_v5  ;;  %291 = vmatpush.bf16.msra.mxu2 %v1801_v3  ;;  %v1810_v11 = vor.u32 %v1581_v8, %v1497_v9  ;;  %v1487_v12 = vld [vmem:[#allocation2 + $0x10] sm:$0xf]  ;;  %v1580_v13 = vld [vmem:[#allocation2 + $0x14] sm:$0xf0]  ;;  %v1579_v14 = vld [vmem:[#allocation2 + $0x14] sm:$0xf] }
   0x9   :  { %121 = vmatpush.bf16.msra.mxu1 %v1803_v7  ;;  %304 = vmatpush.bf16.msra.mxu3 %v1803_v7  ;;  %v1489_v15 = vld [vmem:[#allocation2 + $0x18] sm:$0xf0]  ;;  %v1591_v16 = vld [vmem:[%s2252_s4] ss:$0 sm:$0xff]  ;;  %v1820_v18 = vor.u32 %v1580_v13, %v1487_v12  ;;  %v1479_v20 = vld [vmem:[#allocation2] sm:$0xf] }
   0xa   :  { %v1592_v17 = vld [vmem:[%s2251_s3] ss:$0 sm:$0xff]  ;;  %v1824_v19 = vor.u32 %v1579_v14, %v1489_v15  ;;  %v1578_v21 = vld [vmem:[#allocation2 + $0x4] sm:$0xf0]  ;;  %s1750_s13 = smov 32   ;;  %s1751_s4 = smov 64  }
   0xb   :  { %224 = vrot.lane.b32.xlu1 %v1591_v16, %s1750_s13  ;;  %v1577_v22 = vld [vmem:[#allocation2 + $0x4] sm:$0xf]  ;;  %v1481_v23 = vld [vmem:[#allocation2 + $0x8] sm:$0xf0]  ;;  %152 = vrot.lane.b32.xlu0 %v1592_v17, %s1751_s4  ;;  %v1830_v24 = vor.u32 %v1578_v21, %v1479_v20  ;;  %v1835_v25 = vld [vmem:[%s2249_s1] sm:$0x3] }
   0xc   :  { %109 = vmatpush.bf16.msra.mxu0 %v1806_v10  ;;  %292 = vmatpush.bf16.msra.mxu2 %v1806_v10  ;;  %v1839_v26 = vor.u32 %v1577_v22, %v1481_v23  ;;  %v59_v27 = vpack.c.bf16 %v1835_v25, %v1835_v25  ;;  %vm100_vm0 = vcmask 523264   ;;  %v1476_v28 = vld [vmem:[%s2248_s0 + $0x1c] sm:$0xf]  ;;  %s1752_s16 = smov 96   ;;  %v56_v43 = vld [vmem:[%s2248_s0] sm:$0xf] }
   0xd   :  { %122 = vmatpush.bf16.msra.mxu1 %v1810_v11  ;;  %305 = vmatpush.bf16.msra.mxu3 %v1810_v11  ;;  %v200_v30 = vrot.slane %v1476_v28, 2  ;;  %vm277_vm13 = vcmask 261120  }
  0x10   :  { %110 = vmatpush.bf16.msra.mxu0 %v1820_v18  ;;  %293 = vmatpush.bf16.msra.mxu2 %v1820_v18 }
  0x11   :  { %123 = vmatpush.bf16.msra.mxu1 %v1824_v19  ;;  %306 = vmatpush.bf16.msra.mxu3 %v1824_v19 }
  0x14   :  { %111 = vmatpush.bf16.msra.mxu0 %v1830_v24  ;;  %294 = vmatpush.bf16.msra.mxu2 %v1830_v24 }
  0x15   :  { %124 = vmatpush.bf16.msra.mxu1 %v1839_v26  ;;  %307 = vmatpush.bf16.msra.mxu3 %v1839_v26 }
  0x17   :  { %1509 = vmatmul.msk.bf16.vlgmr.msra.gmra.mxu0 %vm100_vm0, %v59_v27 }
  0x18   :  { %462 = vmatpush.bf16.msrb.mxu0 %v1801_v3  ;;  %633 = vmatpush.bf16.msrb.mxu2 %v1801_v3 }
  0x19   :  { %475 = vmatpush.bf16.msrb.mxu1 %v1803_v7  ;;  %646 = vmatpush.bf16.msrb.mxu3 %v1803_v7 }
  0x1a   :  { %1510 = vmatmul.msk.bf16.vlgmr.msra.gmra.mxu1 %vm100_vm0, %v59_v27 }
  0x1c   :  { %463 = vmatpush.bf16.msrb.mxu0 %v1806_v10  ;;  %634 = vmatpush.bf16.msrb.mxu2 %v1806_v10 }
  0x1d   :  { %476 = vmatpush.bf16.msrb.mxu1 %v1810_v11  ;;  %647 = vmatpush.bf16.msrb.mxu3 %v1810_v11 }
  0x20   :  { %464 = vmatpush.bf16.msrb.mxu0 %v1820_v18  ;;  %635 = vmatpush.bf16.msrb.mxu2 %v1820_v18 }
  0x21   :  { %477 = vmatpush.bf16.msrb.mxu1 %v1824_v19  ;;  %648 = vmatpush.bf16.msrb.mxu3 %v1824_v19 }
  0x24   :  { %465 = vmatpush.bf16.msrb.mxu0 %v1830_v24  ;;  %636 = vmatpush.bf16.msrb.mxu2 %v1830_v24 }
  0x25   :  { %478 = vmatpush.bf16.msrb.mxu1 %v1839_v26  ;;  %649 = vmatpush.bf16.msrb.mxu3 %v1839_v26 }
  0x28   :  { %802 = vmatpush.bf16.msra.mxu0 %v1801_v3 }
  0x29   :  { %815 = vmatpush.bf16.msra.mxu1 %v1803_v7 }
  0x2c   :  { %803 = vmatpush.bf16.msra.mxu0 %v1806_v10 }
  0x2d   :  { %816 = vmatpush.bf16.msra.mxu1 %v1810_v11 }
  0x30   :  { %804 = vmatpush.bf16.msra.mxu0 %v1820_v18 }
  0x31   :  { %817 = vmatpush.bf16.msra.mxu1 %v1824_v19 }
  0x34   :  { %805 = vmatpush.bf16.msra.mxu0 %v1830_v24 }
  0x35   :  { %818 = vmatpush.bf16.msra.mxu1 %v1839_v26 }
  0x7d   :  { %v1877_v29 = vpop.permute.xlu0 %152  ;;  %v1879_v31 = vpop.permute.xlu1 %224 }
  0x94   :  { %v113_v32 = vpop.f32.mrf.mxu0 }
  0x95   :  { %v155_v33 = vadd.f32 %v1877_v29, %v113_v32  ;;  %v179_v39 = vadd.f32 %v1476_v28, %v113_v32  ;;  %v130_v44 = vadd.f32 %v113_v32, %v56_v43 }
  0x97   :  { %v126_v34 = vpop.f32.mrf.mxu1  ;;  %157 = vrot.lane.b32.xlu0 %v155_v33, %s1751_s4  ;;  %v1512_v40 = vmul.f32 -1.442695, %v179_v39  ;;  %v1511_v46 = vmul.f32 -1.442695, %v130_v44 }
  0x98   :  { %v202_v35 = vadd.f32 %v200_v30, %v126_v34  ;;  %v227_v36 = vadd.f32 %v1879_v31, %v126_v34 }
  0x99   :  { %1593 = vpow2.f32 %v1512_v40 }
  0x9a   :  { %229 = vrot.lane.b32.xlu2 %v227_v36, %s1751_s4  ;;  %v1513_v15 = vmul.f32 -1.442695, %v202_v35 }
  0x9c   :  { %v115_v37 = vpop.f32.mrf.mxu0 }
  0x9f   :  { %v128_v38 = vpop.f32.mrf.mxu1  ;;  %v1594_v41 = vpop.eup %1593 }
  0xa0   :  { %v183_v42 = vadd.f32 1.0, %v1594_v41 }
  0xa2   :  { %233 = vrot.lane.b32.xlu2 %v1476_v28, %s1752_s16  ;;  %1595 = vrcp.f32 %v183_v42  ;;  %v195_v53 = vand.u32 2147483648, %v183_v42  ;;  %vm189_vm2 = vweird.f32 %v183_v42  ;;  %v193_v54 = vand.u32 2147483647, %v183_v42 }
  0xa3   :  { %1597 = vpow2.f32 %v1511_v46 }
  0xa4   :  { %v196_v56 = vor.u32 1.1754944e-38, %v195_v53  ;;  %vm194_vm4 = vcmp.eq.f32.partialorder %v193_v54, 8.507059e+37 }
  0xa8   :  { %v1596_v45 = vpop.eup %1595 }
  0xa9   :  { %v185_v47 = vmul.f32 %v1596_v45, %v183_v42  ;;  %v1598_v49 = vpop.eup %1597  ;;  %vm190_vm1 = vweird.f32 %v1596_v45 }
  0xaa   :  { %174 = vrot.lane.b32.xlu2 %v1835_v25, %s1750_s13  ;;  %v134_v51 = vadd.f32 1.0, %v1598_v49  ;;  %vm191_vm3 = vmor %vm189_vm2, %vm190_vm1 }
  0xab   :  { %v186_v48 = vsub.f32 1.0, %v185_v47 }
  0xac   :  { %1599 = vrcp.f32 %v134_v51  ;;  %v146_v1 = vand.u32 2147483648, %v134_v51  ;;  %vm140_vm6 = vweird.f32 %v134_v51  ;;  %v144_v2 = vand.u32 2147483647, %v134_v51 }
  0xad   :  { %v187_v50 = vmul.f32 %v1596_v45, %v186_v48 }
  0xae   :  { %v147_v5 = vor.u32 1.1754944e-38, %v146_v1  ;;  %vm145_vm8 = vcmp.eq.f32.partialorder %v144_v2, 8.507059e+37 }
  0xaf   :  { %v188_v52 = vadd.f32 %v1596_v45, %v187_v50 }
  0xb1   :  { %v192_v55 = vsel %vm191_vm3, %v1596_v45, %v188_v52 }
  0xb2   :  { %v197_v57 = vsel %vm194_vm4, %v196_v56, %v192_v55  ;;  %v1600_v59 = vpop.eup %1599 }
  0xb3   :  { %v136_v61 = vmul.f32 %v1600_v59, %v134_v51  ;;  %vm141_vm5 = vweird.f32 %v1600_v59 }
  0xb4   :  { %vm142_vm7 = vmor %vm140_vm6, %vm141_vm5 }
  0xb5   :  { %v137_v62 = vsub.f32 1.0, %v136_v61 }
  0xb7   :  { %v138_v63 = vmul.f32 %v1600_v59, %v137_v62 }
  0xb9   :  { %v139_v0 = vadd.f32 %v1600_v59, %v138_v63 }
  0xbb   :  { %v143_v4 = vsel %vm142_vm7, %v1600_v59, %v139_v0 }
  0xbc   :  { %v148_v6 = vsel %vm145_vm8, %v147_v5, %v143_v4  ;;  %v1515_v5 = vld [vmem:[%s2248_s0 + $0x4] sm:$0xf] }
  0xbd   :  { %v167_v38 = vsub.f32 1.0, %v148_v6 }
  0xf4   :  { %v230_v58 = vpop.permute.xlu2 %229 }
  0xf5   :  { %v232_v60 = vmul.f32 %v230_v58, %v197_v57  ;;  %v1516_v58 = vld [vmem:[%s2248_s0 + $0x18] sm:$0xf] }
  0xf6   :  { %v378_v59 = vrot.slane %v1516_v58, 2 }
  0xf7   :  { %238 = vrot.lane.b32.xlu0 %v232_v60, %s1750_s13 }
  0xfc   :  { %v234_v23 = vpop.permute.xlu2 %233 }
  0xff   :  { %245 = vrot.lane.b32.xlu0 %v1835_v25, %s1752_s16  ;;  %v235_v25 = vrot.slane %v234_v23, 2 }
 0x104   :  { %v175_v36 = vpop.permute.xlu2 %174 }
 0x105   :  { %v177_v40 = vmul.f32 %v175_v36, %v148_v6 }
 0x109   :  { %v158_v8 = vpop.permute.xlu0 %157 }
 0x10a   :  { %v160_v9 = vmul.f32 %v158_v8, %v148_v6 }
 0x10c   :  { %162 = vrot.lane.b32.xlu1 %v160_v9, %s1751_s4 }
 0x169   :  { %v239_v27 = vpop.permute.xlu0 %238 }
 0x16a   :  { %v241_v30 = vadd.f32 %v239_v27, %v235_v25 }
 0x171   :  { %v246_v45 = vpop.permute.xlu0 %245 }
 0x17e   :  { %v163_v12 = vpop.permute.xlu1 %162 }
 0x17f   :  { %v165_v13 = vadd.f32 %v163_v12, %v56_v43 }
 0x181   :  { %1601 = vtanh.f32 %v165_v13 }
 0x182   :  { %1603 = vpow2.f32 %v1513_v15 }
 0x187   :  { %v1602_v14 = vpop.eup %1601 }
 0x188   :  { %169 = vrot.lane.b32.xlu1 %v1602_v14, %s1752_s16  ;;  %v1604_v16 = vpop.eup %1603 }
 0x189   :  { %v206_v17 = vadd.f32 1.0, %v1604_v16 }
 0x18b   :  { %1605 = vrcp.f32 %v206_v17  ;;  %vm212_vm9 = vweird.f32 %v206_v17  ;;  %v218_v32 = vand.u32 2147483648, %v206_v17  ;;  %v216_v34 = vand.u32 2147483647, %v206_v17 }
 0x18c   :  { %1607 = vtanh.f32 %v241_v30 }
 0x18d   :  { %v219_v35 = vor.u32 1.1754944e-38, %v218_v32  ;;  %vm217_vm12 = vcmp.eq.f32.partialorder %v216_v34, 8.507059e+37 }
 0x191   :  { %v1606_v20 = vpop.eup %1605 }
 0x192   :  { %v208_v21 = vmul.f32 %v1606_v20, %v206_v17  ;;  %vm213_vm10 = vweird.f32 %v1606_v20  ;;  %v1608_v44 = vpop.eup %1607 }
 0x193   :  { %vm214_vm11 = vmor %vm212_vm9, %vm213_vm10 }
 0x194   :  { %v209_v22 = vsub.f32 1.0, %v208_v21 }
 0x196   :  { %v210_v28 = vmul.f32 %v1606_v20, %v209_v22 }
 0x198   :  { %v211_v33 = vadd.f32 %v1606_v20, %v210_v28 }
 0x19a   :  { %v215_v37 = vsel %vm214_vm11, %v1606_v20, %v211_v33 }
 0x19b   :  { %v220_v42 = vsel %vm217_vm12, %v219_v35, %v215_v37 }
 0x19c   :  { %v243_v46 = vsub.f32 1.0, %v220_v42  ;;  %v248_v48 = vmul.f32 %v246_v45, %v220_v42 }
 0x19e   :  { %v244_v47 = vmul.f32 %v1608_v44, %v243_v46 }
 0x1a0   :  { %v249_v49 = vadd.f32 %v248_v48, %v244_v47 }
 0x1fa   :  { %v170_v39 = vpop.permute.xlu1 %169 }
 0x1fb   :  { %v172_v41 = vmul.f32 %v170_v39, %v167_v38 }
 0x1fd   :  { %v178_v43 = vadd.f32 %v177_v40, %v172_v41 }
 0x1ff   :  { %251 = vst [vmem:[#allocation1] ss:$4 sm:$0xff] %v178_v43 }
 0x206   :  { %v1896_v50 = vld.sshfl [vmem:[#allocation1] sm:$0xff pattern:$0x73625140] }
 0x207   :  { %259 = vst [vmem:[#allocation1] ss:$4 sm:$0xff] %v249_v49 }
 0x20e   :  { %v1898_v51 = vld.sshfl [vmem:[#allocation1] sm:$0xff pattern:$0x73625140] }
 0x20f   :  { %267 = vst [vmem:[#allocation1] ss:$4 sm:$0xff] %v178_v43 }
 0x216   :  { %v268_v52 = vld.sshfl [vmem:[#allocation1] sm:$0xff pattern:$0x73625140] }
 0x217   :  { %272 = vst [vmem:[#allocation1] ss:$4 sm:$0xff] %v249_v49  ;;  %269 = vrot.lane.b32.xlu1 %v268_v52, %s1752_s16 }
 0x21e   :  { %v273_v53 = vld.sshfl [vmem:[#allocation1] sm:$0xff pattern:$0x73625140] }
 0x21f   :  { %274 = vrot.lane.b32.xlu2 %v273_v53, %s1750_s13 }
 0x279   :  { %v275_v54 = vpop.permute.xlu2 %274 }
 0x289   :  { %v270_v55 = vpop.permute.xlu1 %269 }
 0x28a   :  { %v1903_v56 = vsel %vm277_vm13, %v270_v55, %v275_v54 }
 0x28b   :  { %v283_v57 = vpack.c.bf16 %v1903_v56, %v1903_v56 }
 0x28d   :  { %1517 = vmatmul.msk.bf16.vlgmr.msra.gmra.mxu2 %vm100_vm0, %v283_v57  ;;  %1518 = vmatmul.msk.bf16.vlgmr.msra.gmra.mxu3 %vm100_vm0, %v283_v57 }
 0x28e   :  { %969 = vmatpush.bf16.msra.mxu2 %v1801_v3  ;;  %982 = vmatpush.bf16.msra.mxu3 %v1803_v7 }
 0x292   :  { %970 = vmatpush.bf16.msra.mxu2 %v1806_v10  ;;  %983 = vmatpush.bf16.msra.mxu3 %v1810_v11 }
 0x296   :  { %971 = vmatpush.bf16.msra.mxu2 %v1820_v18  ;;  %984 = vmatpush.bf16.msra.mxu3 %v1824_v19 }
 0x29a   :  { %972 = vmatpush.bf16.msra.mxu2 %v1830_v24  ;;  %985 = vmatpush.bf16.msra.mxu3 %v1839_v26 }
 0x310   :  { %v296_v60 = vpop.f32.mrf.mxu2  ;;  %v309_v61 = vpop.f32.mrf.mxu3 }
 0x311   :  { %v333_v62 = vadd.f32 %v296_v60, %v1877_v29  ;;  %v357_v63 = vadd.f32 %v1516_v58, %v296_v60  ;;  %v380_v0 = vadd.f32 %v378_v59, %v309_v61  ;;  %v400_v1 = vadd.f32 %v309_v61, %v1879_v31 }
 0x312   :  { %v313_v6 = vadd.f32 %v1515_v5, %v296_v60 }
 0x313   :  { %335 = vrot.lane.b32.xlu0 %v333_v62, %s1751_s4  ;;  %402 = vrot.lane.b32.xlu2 %v400_v1, %s1751_s4  ;;  %v1520_v9 = vmul.f32 -1.442695, %v357_v63  ;;  %v1521_v49 = vmul.f32 -1.442695, %v380_v0 }
 0x314   :  { %v1519_v8 = vmul.f32 -1.442695, %v313_v6 }
 0x316   :  { %1609 = vpow2.f32 %v1519_v8 }
 0x317   :  { %1611 = vpow2.f32 %v1520_v9 }
 0x318   :  { %v298_v2 = vpop.f32.mrf.mxu2  ;;  %v311_v4 = vpop.f32.mrf.mxu3 }
 0x31b   :  { %406 = vrot.lane.b32.xlu0 %v1516_v58, %s1752_s16 }
 0x31c   :  { %v1610_v12 = vpop.eup %1609 }
 0x31d   :  { %v317_v13 = vadd.f32 1.0, %v1610_v12  ;;  %v1612_v14 = vpop.eup %1611 }
 0x31e   :  { %v361_v15 = vadd.f32 1.0, %v1612_v14 }
 0x31f   :  { %1613 = vrcp.f32 %v317_v13  ;;  %v329_v28 = vand.u32 2147483648, %v317_v13  ;;  %vm323_vm15 = vweird.f32 %v317_v13  ;;  %v327_v30 = vand.u32 2147483647, %v317_v13 }
 0x320   :  { %1615 = vrcp.f32 %v361_v15  ;;  %v373_v39 = vand.u32 2147483648, %v361_v15  ;;  %vm367_vm4 = vweird.f32 %v361_v15  ;;  %v371_v40 = vand.u32 2147483647, %v361_v15 }
 0x321   :  { %v330_v34 = vor.u32 1.1754944e-38, %v329_v28  ;;  %vm328_vm2 = vcmp.eq.f32.partialorder %v327_v30, 8.507059e+37 }
 0x322   :  { %v374_v43 = vor.u32 1.1754944e-38, %v373_v39  ;;  %vm372_vm6 = vcmp.eq.f32.partialorder %v371_v40, 8.507059e+37 }
 0x323   :  { %352 = vrot.lane.b32.xlu0 %v1903_v56, %s1750_s13 }
 0x325   :  { %v1614_v16 = vpop.eup %1613 }
 0x326   :  { %v319_v17 = vmul.f32 %v1614_v16, %v317_v13  ;;  %v1616_v21 = vpop.eup %1615  ;;  %vm324_vm14 = vweird.f32 %v1614_v16 }
 0x327   :  { %v363_v22 = vmul.f32 %v1616_v21, %v361_v15  ;;  %vm325_vm1 = vmor %vm323_vm15, %vm324_vm14  ;;  %vm368_vm3 = vweird.f32 %v1616_v21 }
 0x328   :  { %v320_v20 = vsub.f32 1.0, %v319_v17  ;;  %vm369_vm5 = vmor %vm367_vm4, %vm368_vm3 }
 0x329   :  { %v364_v25 = vsub.f32 1.0, %v363_v22 }
 0x32a   :  { %v321_v23 = vmul.f32 %v1614_v16, %v320_v20 }
 0x32b   :  { %v365_v32 = vmul.f32 %v1616_v21, %v364_v25 }
 0x32c   :  { %v322_v27 = vadd.f32 %v1614_v16, %v321_v23 }
 0x32d   :  { %v366_v37 = vadd.f32 %v1616_v21, %v365_v32 }
 0x32e   :  { %v326_v33 = vsel %vm325_vm1, %v1614_v16, %v322_v27 }
 0x32f   :  { %v331_v35 = vsel %vm328_vm2, %v330_v34, %v326_v33  ;;  %v370_v41 = vsel %vm369_vm5, %v1616_v21, %v366_v37  ;;  %v1525_v34 = vld [vmem:[%s2248_s0 + $0x14] sm:$0xf] }
 0x330   :  { %v375_v44 = vsel %vm372_vm6, %v374_v43, %v370_v41  ;;  %v345_v4 = vsub.f32 1.0, %v331_v35 }
 0x36d   :  { %v403_v42 = vpop.permute.xlu2 %402 }
 0x36e   :  { %v405_v45 = vmul.f32 %v403_v42, %v375_v44  ;;  %v1524_v44 = vld [vmem:[%s2248_s0 + $0x8] sm:$0xf] }
 0x385   :  { %v336_v36 = vpop.permute.xlu0 %335 }
 0x386   :  { %v338_v38 = vmul.f32 %v336_v36, %v331_v35  ;;  %v549_v36 = vrot.slane %v1525_v34, 2 }
 0x388   :  { %340 = vrot.lane.b32.xlu1 %v338_v38, %s1751_s4 }
 0x38d   :  { %v407_v58 = vpop.permute.xlu0 %406 }
 0x38e   :  { %v408_v59 = vrot.slane %v407_v58, 2 }
 0x390   :  { %411 = vrot.lane.b32.xlu1 %v405_v45, %s1750_s13 }
 0x395   :  { %v353_v2 = vpop.permute.xlu0 %352 }
 0x396   :  { %v355_v8 = vmul.f32 %v353_v2, %v331_v35 }
 0x398   :  { %418 = vrot.lane.b32.xlu1 %v1903_v56, %s1752_s16 }
 0x3fa   :  { %v341_v46 = vpop.permute.xlu1 %340 }
 0x3fb   :  { %v343_v47 = vadd.f32 %v1515_v5, %v341_v46 }
 0x3fd   :  { %1617 = vtanh.f32 %v343_v47 }
 0x3fe   :  { %1619 = vpow2.f32 %v1521_v49 }
 0x402   :  { %v412_v60 = vpop.permute.xlu1 %411 }
 0x403   :  { %v1618_v48 = vpop.eup %1617  ;;  %v414_v62 = vadd.f32 %v412_v60, %v408_v59 }
 0x404   :  { %347 = vrot.lane.b32.xlu2 %v1618_v48, %s1752_s16  ;;  %v1620_v52 = vpop.eup %1619 }
 0x405   :  { %v384_v53 = vadd.f32 1.0, %v1620_v52 }
 0x407   :  { %1621 = vrcp.f32 %v384_v53  ;;  %v396_v63 = vand.u32 2147483648, %v384_v53  ;;  %vm390_vm8 = vweird.f32 %v384_v53  ;;  %v394_v1 = vand.u32 2147483647, %v384_v53 }
 0x408   :  { %1623 = vtanh.f32 %v414_v62 }
 0x409   :  { %v397_v5 = vor.u32 1.1754944e-38, %v396_v63  ;;  %vm395_vm10 = vcmp.eq.f32.partialorder %v394_v1, 8.507059e+37 }
 0x40a   :  { %v419_v15 = vpop.permute.xlu1 %418 }
 0x40d   :  { %v1622_v54 = vpop.eup %1621 }
 0x40e   :  { %v386_v55 = vmul.f32 %v1622_v54, %v384_v53  ;;  %vm391_vm7 = vweird.f32 %v1622_v54  ;;  %v1624_v14 = vpop.eup %1623 }
 0x40f   :  { %vm392_vm9 = vmor %vm390_vm8, %vm391_vm7 }
 0x410   :  { %v387_v57 = vsub.f32 1.0, %v386_v55 }
 0x412   :  { %v388_v61 = vmul.f32 %v1622_v54, %v387_v57 }
 0x414   :  { %v389_v56 = vadd.f32 %v1622_v54, %v388_v61 }
 0x416   :  { %v393_v0 = vsel %vm392_vm9, %v1622_v54, %v389_v56 }
 0x417   :  { %v398_v12 = vsel %vm395_vm10, %v397_v5, %v393_v0 }
 0x418   :  { %v416_v16 = vsub.f32 1.0, %v398_v12  ;;  %v421_v20 = vmul.f32 %v419_v15, %v398_v12 }
 0x41a   :  { %v417_v17 = vmul.f32 %v1624_v14, %v416_v16 }
 0x41c   :  { %v422_v21 = vadd.f32 %v421_v20, %v417_v17 }
 0x45e   :  { %v348_v6 = vpop.permute.xlu2 %347 }
 0x45f   :  { %v350_v9 = vmul.f32 %v348_v6, %v345_v4 }
 0x461   :  { %v356_v13 = vadd.f32 %v355_v8, %v350_v9 }
 0x463   :  { %424 = vst [vmem:[#allocation1] ss:$4 sm:$0xff] %v356_v13 }
 0x46a   :  { %v1935_v22 = vld.sshfl [vmem:[#allocation1] sm:$0xff pattern:$0x73625140] }
 0x46b   :  { %432 = vst [vmem:[#allocation1] ss:$4 sm:$0xff] %v422_v21 }
 0x472   :  { %v1937_v23 = vld.sshfl [vmem:[#allocation1] sm:$0xff pattern:$0x73625140] }
 0x473   :  { %439 = vst [vmem:[#allocation1] ss:$4 sm:$0xff] %v356_v13 }
 0x47a   :  { %v440_v25 = vld.sshfl [vmem:[#allocation1] sm:$0xff pattern:$0x73625140] }
 0x47b   :  { %444 = vst [vmem:[#allocation1] ss:$4 sm:$0xff] %v422_v21  ;;  %441 = vrot.lane.b32.xlu2 %v440_v25, %s1752_s16 }
 0x482   :  { %v445_v27 = vld.sshfl [vmem:[#allocation1] sm:$0xff pattern:$0x73625140] }
 0x483   :  { %446 = vrot.lane.b32.xlu0 %v445_v27, %s1750_s13 }
 0x4d5   :  { %v442_v28 = vpop.permute.xlu2 %441 }
 0x4f5   :  { %v447_v30 = vpop.permute.xlu0 %446 }
 0x4f6   :  { %v1942_v32 = vsel %vm277_vm13, %v442_v28, %v447_v30 }
 0x4f7   :  { %v454_v33 = vpack.c.bf16 %v1942_v32, %v1942_v32 }
 0x4f9   :  { %1526 = vmatmul.msk.bf16.vlgmr.msrb.gmra.mxu0 %vm100_vm0, %v454_v33  ;;  %1527 = vmatmul.msk.bf16.vlgmr.msrb.gmra.mxu1 %vm100_vm0, %v454_v33 }
 0x4fa   :  { %1136 = vmatpush.bf16.msrb.mxu0 %v1801_v3  ;;  %1149 = vmatpush.bf16.msrb.mxu1 %v1803_v7 }
 0x4fe   :  { %1137 = vmatpush.bf16.msrb.mxu0 %v1806_v10  ;;  %1150 = vmatpush.bf16.msrb.mxu1 %v1810_v11 }
 0x502   :  { %1138 = vmatpush.bf16.msrb.mxu0 %v1820_v18  ;;  %1151 = vmatpush.bf16.msrb.mxu1 %v1824_v19 }
 0x506   :  { %1139 = vmatpush.bf16.msrb.mxu0 %v1830_v24  ;;  %1152 = vmatpush.bf16.msrb.mxu1 %v1839_v26 }
 0x576   :  { %v467_v35 = vpop.f32.mrf.mxu0  ;;  %v480_v37 = vpop.f32.mrf.mxu1 }
 0x577   :  { %v504_v38 = vadd.f32 %v467_v35, %v1877_v29  ;;  %v528_v39 = vadd.f32 %v1525_v34, %v467_v35  ;;  %v551_v40 = vadd.f32 %v549_v36, %v480_v37  ;;  %v571_v41 = vadd.f32 %v480_v37, %v1879_v31 }
 0x578   :  { %v484_v45 = vadd.f32 %v1524_v44, %v467_v35 }
 0x579   :  { %506 = vrot.lane.b32.xlu1 %v504_v38, %s1751_s4  ;;  %573 = vrot.lane.b32.xlu0 %v571_v41, %s1751_s4  ;;  %v1529_v47 = vmul.f32 -1.442695, %v528_v39  ;;  %v1530_v27 = vmul.f32 -1.442695, %v551_v40 }
 0x57a   :  { %v1528_v46 = vmul.f32 -1.442695, %v484_v45 }
 0x57c   :  { %1625 = vpow2.f32 %v1528_v46 }
 0x57d   :  { %1627 = vpow2.f32 %v1529_v47 }
 0x57e   :  { %v469_v42 = vpop.f32.mrf.mxu0  ;;  %v482_v43 = vpop.f32.mrf.mxu1 }
 0x581   :  { %577 = vrot.lane.b32.xlu1 %v1525_v34, %s1752_s16 }
 0x582   :  { %v1626_v48 = vpop.eup %1625 }
 0x583   :  { %v488_v49 = vadd.f32 1.0, %v1626_v48  ;;  %v1628_v52 = vpop.eup %1627 }
 0x584   :  { %v532_v53 = vadd.f32 1.0, %v1628_v52 }
 0x585   :  { %1629 = vrcp.f32 %v488_v49  ;;  %v500_v56 = vand.u32 2147483648, %v488_v49  ;;  %vm494_vm12 = vweird.f32 %v488_v49  ;;  %v498_v63 = vand.u32 2147483647, %v488_v49 }
 0x586   :  { %1631 = vrcp.f32 %v532_v53  ;;  %v544_v9 = vand.u32 2147483648, %v532_v53  ;;  %vm538_vm2 = vweird.f32 %v532_v53  ;;  %v542_v12 = vand.u32 2147483647, %v532_v53 }
 0x587   :  { %v501_v0 = vor.u32 1.1754944e-38, %v500_v56  ;;  %vm499_vm15 = vcmp.eq.f32.partialorder %v498_v63, 8.507059e+37 }
 0x588   :  { %v545_v14 = vor.u32 1.1754944e-38, %v544_v9  ;;  %vm543_vm4 = vcmp.eq.f32.partialorder %v542_v12, 8.507059e+37 }
 0x589   :  { %523 = vrot.lane.b32.xlu1 %v1942_v32, %s1750_s13 }
 0x58b   :  { %v1630_v54 = vpop.eup %1629 }
 0x58c   :  { %v490_v55 = vmul.f32 %v1630_v54, %v488_v49  ;;  %v1632_v58 = vpop.eup %1631  ;;  %vm495_vm11 = vweird.f32 %v1630_v54 }
 0x58d   :  { %v534_v60 = vmul.f32 %v1632_v58, %v532_v53  ;;  %vm496_vm14 = vmor %vm494_vm12, %vm495_vm11  ;;  %vm539_vm1 = vweird.f32 %v1632_v58 }
 0x58e   :  { %v491_v57 = vsub.f32 1.0, %v490_v55  ;;  %vm540_vm3 = vmor %vm538_vm2, %vm539_vm1 }
 0x58f   :  { %v535_v62 = vsub.f32 1.0, %v534_v60 }
 0x590   :  { %v492_v59 = vmul.f32 %v1630_v54, %v491_v57 }
 0x591   :  { %v536_v2 = vmul.f32 %v1632_v58, %v535_v62 }
 0x592   :  { %v493_v61 = vadd.f32 %v1630_v54, %v492_v59 }
 0x593   :  { %v537_v8 = vadd.f32 %v1632_v58, %v536_v2 }
 0x594   :  { %v497_v1 = vsel %vm496_vm14, %v1630_v54, %v493_v61 }
 0x595   :  { %v502_v5 = vsel %vm499_vm15, %v501_v0, %v497_v1  ;;  %v541_v13 = vsel %vm540_vm3, %v1632_v58, %v537_v8 }
 0x596   :  { %v546_v16 = vsel %vm543_vm4, %v545_v14, %v541_v13  ;;  %v516_v45 = vsub.f32 1.0, %v502_v5 }
 0x5eb   :  { %v507_v4 = vpop.permute.xlu1 %506  ;;  %v574_v15 = vpop.permute.xlu0 %573 }
 0x5ec   :  { %v509_v6 = vmul.f32 %v507_v4, %v502_v5  ;;  %v576_v17 = vmul.f32 %v574_v15, %v546_v16 }
 0x5ee   :  { %511 = vrot.lane.b32.xlu2 %v509_v6, %s1751_s4 }
 0x5f3   :  { %v578_v35 = vpop.permute.xlu1 %577 }
 0x5f4   :  { %v579_v37 = vrot.slane %v578_v35, 2 }
 0x5f6   :  { %582 = vrot.lane.b32.xlu2 %v576_v17, %s1750_s13 }
 0x5fe   :  { %589 = vrot.lane.b32.xlu2 %v1942_v32, %s1752_s16 }
 0x648   :  { %v512_v20 = vpop.permute.xlu2 %511 }
 0x649   :  { %v514_v21 = vadd.f32 %v1524_v44, %v512_v20  ;;  %v524_v44 = vpop.permute.xlu1 %523 }
 0x64a   :  { %v526_v48 = vmul.f32 %v524_v44, %v502_v5  ;;  %v1534_v5 = vld [vmem:[%s2248_s0 + $0x10] sm:$0xf] }
 0x64b   :  { %1633 = vtanh.f32 %v514_v21  ;;  %v720_v6 = vrot.slane %v1534_v5, 2 }
 0x64c   :  { %1635 = vpow2.f32 %v1530_v27 }
 0x650   :  { %v583_v38 = vpop.permute.xlu2 %582 }
 0x651   :  { %v1634_v25 = vpop.eup %1633  ;;  %v585_v41 = vadd.f32 %v583_v38, %v579_v37 }
 0x652   :  { %518 = vrot.lane.b32.xlu0 %v1634_v25, %s1752_s16  ;;  %v1636_v28 = vpop.eup %1635 }
 0x653   :  { %v555_v30 = vadd.f32 1.0, %v1636_v28 }
 0x655   :  { %1637 = vrcp.f32 %v555_v30  ;;  %v567_v42 = vand.u32 2147483648, %v555_v30  ;;  %vm561_vm6 = vweird.f32 %v555_v30  ;;  %v565_v43 = vand.u32 2147483647, %v555_v30 }
 0x656   :  { %1639 = vtanh.f32 %v585_v41 }
 0x657   :  { %v568_v46 = vor.u32 1.1754944e-38, %v567_v42  ;;  %vm566_vm8 = vcmp.eq.f32.partialorder %v565_v43, 8.507059e+37 }
 0x658   :  { %v590_v55 = vpop.permute.xlu2 %589 }
 0x65b   :  { %v1638_v33 = vpop.eup %1637 }
 0x65c   :  { %v557_v34 = vmul.f32 %v1638_v33, %v555_v30  ;;  %vm562_vm5 = vweird.f32 %v1638_v33  ;;  %v1640_v54 = vpop.eup %1639 }
 0x65d   :  { %vm563_vm7 = vmor %vm561_vm6, %vm562_vm5 }
 0x65e   :  { %v558_v36 = vsub.f32 1.0, %v557_v34 }
 0x660   :  { %v559_v39 = vmul.f32 %v1638_v33, %v558_v36 }
 0x662   :  { %v560_v32 = vadd.f32 %v1638_v33, %v559_v39 }
 0x664   :  { %v564_v40 = vsel %vm563_vm7, %v1638_v33, %v560_v32 }
 0x665   :  { %v569_v52 = vsel %vm566_vm8, %v568_v46, %v564_v40 }
 0x666   :  { %v587_v57 = vsub.f32 1.0, %v569_v52  ;;  %v592_v59 = vmul.f32 %v590_v55, %v569_v52 }
 0x668   :  { %v588_v58 = vmul.f32 %v1640_v54, %v587_v57 }
 0x66a   :  { %v593_v60 = vadd.f32 %v592_v59, %v588_v58 }
 0x6c4   :  { %v519_v47 = vpop.permute.xlu0 %518 }
 0x6c5   :  { %v521_v49 = vmul.f32 %v519_v47, %v516_v45 }
 0x6c7   :  { %v527_v53 = vadd.f32 %v526_v48, %v521_v49 }
 0x6c9   :  { %595 = vst [vmem:[#allocation1] ss:$4 sm:$0xff] %v527_v53 }
 0x6d0   :  { %v1974_v61 = vld.sshfl [vmem:[#allocation1] sm:$0xff pattern:$0x73625140] }
 0x6d1   :  { %603 = vst [vmem:[#allocation1] ss:$4 sm:$0xff] %v593_v60 }
 0x6d8   :  { %v1976_v62 = vld.sshfl [vmem:[#allocation1] sm:$0xff pattern:$0x73625140] }
 0x6d9   :  { %610 = vst [vmem:[#allocation1] ss:$4 sm:$0xff] %v527_v53 }
 0x6e0   :  { %v611_v56 = vld.sshfl [vmem:[#allocation1] sm:$0xff pattern:$0x73625140] }
 0x6e1   :  { %615 = vst [vmem:[#allocation1] ss:$4 sm:$0xff] %v593_v60  ;;  %612 = vrot.lane.b32.xlu0 %v611_v56, %s1752_s16 }
 0x6e8   :  { %v616_v63 = vld.sshfl [vmem:[#allocation1] sm:$0xff pattern:$0x73625140] }
 0x6e9   :  { %617 = vrot.lane.b32.xlu1 %v616_v63, %s1750_s13 }
 0x753   :  { %v613_v1 = vpop.permute.xlu0 %612 }
 0x75b   :  { %v618_v2 = vpop.permute.xlu1 %617 }
 0x75c   :  { %v1981_v0 = vsel %vm277_vm13, %v613_v1, %v618_v2 }
 0x75d   :  { %v625_v4 = vpack.c.bf16 %v1981_v0, %v1981_v0 }
 0x75f   :  { %1535 = vmatmul.msk.bf16.vlgmr.msrb.gmra.mxu2 %vm100_vm0, %v625_v4  ;;  %1536 = vmatmul.msk.bf16.vlgmr.msrb.gmra.mxu3 %vm100_vm0, %v625_v4 }
 0x760   :  { %1303 = vmatpush.bf16.msrb.mxu2 %v1801_v3  ;;  %1316 = vmatpush.bf16.msrb.mxu3 %v1803_v7 }
 0x764   :  { %1304 = vmatpush.bf16.msrb.mxu2 %v1806_v10  ;;  %1317 = vmatpush.bf16.msrb.mxu3 %v1810_v11 }
 0x768   :  { %1305 = vmatpush.bf16.msrb.mxu2 %v1820_v18  ;;  %1318 = vmatpush.bf16.msrb.mxu3 %v1824_v19 }
 0x76c   :  { %1306 = vmatpush.bf16.msrb.mxu2 %v1830_v24  ;;  %1319 = vmatpush.bf16.msrb.mxu3 %v1839_v26  ;;  %v1533_v24 = vld [vmem:[%s2248_s0 + $0xc] sm:$0xf] }
 0x7e2   :  { %v638_v3 = vpop.f32.mrf.mxu2  ;;  %v651_v8 = vpop.f32.mrf.mxu3 }
 0x7e3   :  { %v675_v7 = vadd.f32 %v638_v3, %v1877_v29  ;;  %v699_v10 = vadd.f32 %v1534_v5, %v638_v3  ;;  %v722_v9 = vadd.f32 %v720_v6, %v651_v8  ;;  %v742_v11 = vadd.f32 %v651_v8, %v1879_v31 }
 0x7e4   :  { %v655_v26 = vadd.f32 %v1533_v24, %v638_v3 }
 0x7e5   :  { %677 = vrot.lane.b32.xlu2 %v675_v7, %s1751_s4  ;;  %744 = vrot.lane.b32.xlu1 %v742_v11, %s1751_s4  ;;  %v1538_v16 = vmul.f32 -1.442695, %v699_v10  ;;  %v1539_v55 = vmul.f32 -1.442695, %v722_v9 }
 0x7e6   :  { %v1537_v12 = vmul.f32 -1.442695, %v655_v26 }
 0x7e8   :  { %1641 = vpow2.f32 %v1537_v12 }
 0x7ea   :  { %v640_v18 = vpop.f32.mrf.mxu2  ;;  %v653_v19 = vpop.f32.mrf.mxu3 }
 0x7ed   :  { %748 = vrot.lane.b32.xlu2 %v1534_v5, %s1752_s16 }
 0x7ee   :  { %v1642_v13 = vpop.eup %1641 }
 0x7ef   :  { %v659_v14 = vadd.f32 1.0, %v1642_v13 }
 0x7f1   :  { %1643 = vrcp.f32 %v659_v14  ;;  %v671_v30 = vand.u32 2147483648, %v659_v14  ;;  %vm665_vm10 = vweird.f32 %v659_v14  ;;  %v669_v33 = vand.u32 2147483647, %v659_v14 }
 0x7f2   :  { %1645 = vpow2.f32 %v1538_v16 }
 0x7f3   :  { %v672_v36 = vor.u32 1.1754944e-38, %v671_v30  ;;  %vm670_vm12 = vcmp.eq.f32.partialorder %v669_v33, 8.507059e+37 }
 0x7f5   :  { %694 = vrot.lane.b32.xlu2 %v1981_v0, %s1750_s13 }
 0x7f7   :  { %v1644_v15 = vpop.eup %1643 }
 0x7f8   :  { %v661_v17 = vmul.f32 %v1644_v15, %v659_v14  ;;  %v1646_v25 = vpop.eup %1645  ;;  %vm666_vm9 = vweird.f32 %v1644_v15 }
 0x7f9   :  { %v703_v27 = vadd.f32 1.0, %v1646_v25  ;;  %vm667_vm11 = vmor %vm665_vm10, %vm666_vm9 }
 0x7fa   :  { %v662_v20 = vsub.f32 1.0, %v661_v17 }
 0x7fb   :  { %1647 = vrcp.f32 %v703_v27  ;;  %v715_v44 = vand.u32 2147483648, %v703_v27  ;;  %vm709_vm15 = vweird.f32 %v703_v27  ;;  %v713_v40 = vand.u32 2147483647, %v703_v27 }
 0x7fc   :  { %v663_v21 = vmul.f32 %v1644_v15, %v662_v20 }
 0x7fd   :  { %v716_v46 = vor.u32 1.1754944e-38, %v715_v44  ;;  %vm714_vm2 = vcmp.eq.f32.partialorder %v713_v40, 8.507059e+37  ;;  %v1542_v40 = vld [vmem:[%s2248_s0 + $0x10] sm:$0xf] }
 0x7fe   :  { %v664_v28 = vadd.f32 %v1644_v15, %v663_v21 }
 0x800   :  { %v668_v34 = vsel %vm667_vm11, %v1644_v15, %v664_v28 }
 0x801   :  { %v673_v37 = vsel %vm670_vm12, %v672_v36, %v668_v34  ;;  %v1648_v39 = vpop.eup %1647  ;;  %v1543_v36 = vld [vmem:[%s2248_s0 + $0xc] sm:$0xf] }
 0x802   :  { %v705_v41 = vmul.f32 %v1648_v39, %v703_v27  ;;  %vm710_vm14 = vweird.f32 %v1648_v39  ;;  %v687_v10 = vsub.f32 1.0, %v673_v37 }
 0x803   :  { %vm711_vm1 = vmor %vm709_vm15, %vm710_vm14 }
 0x804   :  { %v706_v32 = vsub.f32 1.0, %v705_v41 }
 0x806   :  { %v707_v42 = vmul.f32 %v1648_v39, %v706_v32 }
 0x808   :  { %v708_v43 = vadd.f32 %v1648_v39, %v707_v42 }
 0x80a   :  { %v712_v45 = vsel %vm711_vm1, %v1648_v39, %v708_v43 }
 0x80b   :  { %v717_v48 = vsel %vm714_vm2, %v716_v46, %v712_v45 }
 0x83f   :  { %v678_v35 = vpop.permute.xlu2 %677 }
 0x840   :  { %v680_v38 = vmul.f32 %v678_v35, %v673_v37  ;;  %v889_v35 = vrot.slane %v1543_v36, 2 }
 0x842   :  { %682 = vrot.lane.b32.xlu0 %v680_v38, %s1751_s4 }
 0x847   :  { %v749_v63 = vpop.permute.xlu2 %748 }
 0x848   :  { %v750_v1 = vrot.slane %v749_v63, 2 }
 0x84f   :  { %v695_v8 = vpop.permute.xlu2 %694 }
 0x850   :  { %v697_v18 = vmul.f32 %v695_v8, %v673_v37 }
 0x857   :  { %v745_v47 = vpop.permute.xlu1 %744 }
 0x858   :  { %v747_v49 = vmul.f32 %v745_v47, %v717_v48 }
 0x85a   :  { %753 = vrot.lane.b32.xlu0 %v747_v49, %s1750_s13 }
 0x862   :  { %760 = vrot.lane.b32.xlu0 %v1981_v0, %s1752_s16 }
 0x8b4   :  { %v683_v52 = vpop.permute.xlu0 %682 }
 0x8b5   :  { %v685_v53 = vadd.f32 %v1533_v24, %v683_v52 }
 0x8b7   :  { %1649 = vtanh.f32 %v685_v53 }
 0x8b8   :  { %1651 = vpow2.f32 %v1539_v55 }
 0x8bd   :  { %v1650_v54 = vpop.eup %1649 }
 0x8be   :  { %689 = vrot.lane.b32.xlu1 %v1650_v54, %s1752_s16  ;;  %v1652_v57 = vpop.eup %1651 }
 0x8bf   :  { %v726_v58 = vadd.f32 1.0, %v1652_v57 }
 0x8c1   :  { %1653 = vrcp.f32 %v726_v58  ;;  %v738_v6 = vand.u32 2147483648, %v726_v58  ;;  %vm732_vm4 = vweird.f32 %v726_v58  ;;  %v736_v3 = vand.u32 2147483647, %v726_v58 }
 0x8c3   :  { %v739_v9 = vor.u32 1.1754944e-38, %v738_v6  ;;  %vm737_vm6 = vcmp.eq.f32.partialorder %v736_v3, 8.507059e+37 }
 0x8c7   :  { %v1654_v59 = vpop.eup %1653 }
 0x8c8   :  { %v728_v60 = vmul.f32 %v1654_v59, %v726_v58  ;;  %vm733_vm3 = vweird.f32 %v1654_v59 }
 0x8c9   :  { %vm734_vm5 = vmor %vm732_vm4, %vm733_vm3 }
 0x8ca   :  { %v729_v56 = vsub.f32 1.0, %v728_v60 }
 0x8cc   :  { %v754_v2 = vpop.permute.xlu0 %753  ;;  %v730_v4 = vmul.f32 %v1654_v59, %v729_v56 }
 0x8cd   :  { %v756_v5 = vadd.f32 %v754_v2, %v750_v1 }
 0x8ce   :  { %v731_v0 = vadd.f32 %v1654_v59, %v730_v4 }
 0x8cf   :  { %1655 = vtanh.f32 %v756_v5 }
 0x8d0   :  { %v735_v7 = vsel %vm734_vm5, %v1654_v59, %v731_v0 }
 0x8d1   :  { %v740_v24 = vsel %vm737_vm6, %v739_v9, %v735_v7 }
 0x8d2   :  { %v758_v14 = vsub.f32 1.0, %v740_v24 }
 0x8d4   :  { %v761_v13 = vpop.permute.xlu0 %760 }
 0x8d5   :  { %v1656_v12 = vpop.eup %1655  ;;  %v763_v16 = vmul.f32 %v761_v13, %v740_v24 }
 0x8d6   :  { %v759_v15 = vmul.f32 %v1656_v12, %v758_v14 }
 0x8d8   :  { %v764_v17 = vadd.f32 %v763_v16, %v759_v15 }
 0x930   :  { %v690_v11 = vpop.permute.xlu1 %689 }
 0x931   :  { %v692_v19 = vmul.f32 %v690_v11, %v687_v10 }
 0x933   :  { %v698_v26 = vadd.f32 %v697_v18, %v692_v19 }
 0x935   :  { %766 = vst [vmem:[#allocation1] ss:$4 sm:$0xff] %v698_v26 }
 0x93c   :  { %v2013_v20 = vld.sshfl [vmem:[#allocation1] sm:$0xff pattern:$0x73625140] }
 0x93d   :  { %774 = vst [vmem:[#allocation1] ss:$4 sm:$0xff] %v764_v17 }
 0x944   :  { %v2015_v21 = vld.sshfl [vmem:[#allocation1] sm:$0xff pattern:$0x73625140] }
 0x945   :  { %781 = vst [vmem:[#allocation1] ss:$4 sm:$0xff] %v698_v26 }
 0x94c   :  { %v782_v25 = vld.sshfl [vmem:[#allocation1] sm:$0xff pattern:$0x73625140] }
 0x94d   :  { %783 = vrot.lane.b32.xlu1 %v782_v25, %s1752_s16  ;;  %786 = vst [vmem:[#allocation1] ss:$4 sm:$0xff] %v764_v17 }
 0x954   :  { %v787_v27 = vld.sshfl [vmem:[#allocation1] sm:$0xff pattern:$0x73625140] }
 0x955   :  { %788 = vrot.lane.b32.xlu2 %v787_v27, %s1750_s13 }
 0x9af   :  { %v789_v28 = vpop.permute.xlu2 %788 }
 0x9bf   :  { %v784_v30 = vpop.permute.xlu1 %783 }
 0x9c0   :  { %v2020_v33 = vsel %vm277_vm13, %v784_v30, %v789_v28 }
 0x9c1   :  { %v794_v34 = vpack.c.bf16 %v2020_v33, %v2020_v33 }
 0x9c3   :  { %1544 = vmatmul.msk.bf16.vlgmr.msra.gmra.mxu0 %vm100_vm0, %v794_v34  ;;  %1545 = vmatmul.msk.bf16.vlgmr.msra.gmra.mxu1 %vm100_vm0, %v794_v34 }
 0xa40   :  { %v807_v37 = vpop.f32.mrf.mxu0  ;;  %v820_v38 = vpop.f32.mrf.mxu1 }
 0xa41   :  { %v844_v39 = vadd.f32 %v807_v37, %v1877_v29  ;;  %v868_v41 = vadd.f32 %v1543_v36, %v807_v37  ;;  %v891_v32 = vadd.f32 %v889_v35, %v820_v38  ;;  %v911_v42 = vadd.f32 %v820_v38, %v1879_v31 }
 0xa42   :  { %v824_v45 = vadd.f32 %v1542_v40, %v807_v37 }
 0xa43   :  { %846 = vrot.lane.b32.xlu0 %v844_v39, %s1751_s4  ;;  %913 = vrot.lane.b32.xlu2 %v911_v42, %s1751_s4  ;;  %v1547_v47 = vmul.f32 -1.442695, %v868_v41  ;;  %v1548_v15 = vmul.f32 -1.442695, %v891_v32 }
 0xa44   :  { %v1546_v46 = vmul.f32 -1.442695, %v824_v45 }
 0xa46   :  { %1657 = vpow2.f32 %v1546_v46 }
 0xa47   :  { %1659 = vpow2.f32 %v1547_v47 }
 0xa48   :  { %v809_v43 = vpop.f32.mrf.mxu0  ;;  %v822_v44 = vpop.f32.mrf.mxu1 }
 0xa4b   :  { %917 = vrot.lane.b32.xlu0 %v1543_v36, %s1752_s16 }
 0xa4c   :  { %v1658_v48 = vpop.eup %1657 }
 0xa4d   :  { %v828_v49 = vadd.f32 1.0, %v1658_v48  ;;  %v1660_v52 = vpop.eup %1659 }
 0xa4e   :  { %v872_v53 = vadd.f32 1.0, %v1660_v52 }
 0xa4f   :  { %1661 = vrcp.f32 %v828_v49  ;;  %v840_v1 = vand.u32 2147483648, %v828_v49  ;;  %vm834_vm8 = vweird.f32 %v828_v49  ;;  %v838_v2 = vand.u32 2147483647, %v828_v49 }
 0xa50   :  { %1663 = vrcp.f32 %v872_v53  ;;  %v884_v10 = vand.u32 2147483648, %v872_v53  ;;  %vm878_vm12 = vweird.f32 %v872_v53  ;;  %v882_v9 = vand.u32 2147483647, %v872_v53 }
 0xa51   :  { %v841_v0 = vor.u32 1.1754944e-38, %v840_v1  ;;  %vm839_vm10 = vcmp.eq.f32.partialorder %v838_v2, 8.507059e+37 }
 0xa52   :  { %v885_v18 = vor.u32 1.1754944e-38, %v884_v10  ;;  %vm883_vm15 = vcmp.eq.f32.partialorder %v882_v9, 8.507059e+37 }
 0xa53   :  { %863 = vrot.lane.b32.xlu0 %v2020_v33, %s1750_s13 }
 0xa55   :  { %v1662_v54 = vpop.eup %1661 }
 0xa56   :  { %v830_v55 = vmul.f32 %v1662_v54, %v828_v49  ;;  %v1664_v58 = vpop.eup %1663  ;;  %vm835_vm7 = vweird.f32 %v1662_v54 }
 0xa57   :  { %v874_v59 = vmul.f32 %v1664_v58, %v872_v53  ;;  %vm836_vm9 = vmor %vm834_vm8, %vm835_vm7  ;;  %vm879_vm11 = vweird.f32 %v1664_v58 }
 0xa58   :  { %v831_v57 = vsub.f32 1.0, %v830_v55  ;;  %vm880_vm14 = vmor %vm878_vm12, %vm879_vm11 }
 0xa59   :  { %v875_v56 = vsub.f32 1.0, %v874_v59 }
 0xa5a   :  { %v832_v60 = vmul.f32 %v1662_v54, %v831_v57 }
 0xa5b   :  { %v876_v4 = vmul.f32 %v1664_v58, %v875_v56 }
 0xa5c   :  { %v833_v63 = vadd.f32 %v1662_v54, %v832_v60 }
 0xa5d   :  { %v877_v8 = vadd.f32 %v1664_v58, %v876_v4  ;;  %v1552_v4 = vld [vmem:[%s2248_s0 + $0x8] sm:$0xf] }
 0xa5e   :  { %v837_v5 = vsel %vm836_vm9, %v1662_v54, %v833_v63 }
 0xa5f   :  { %v842_v3 = vsel %vm839_vm10, %v841_v0, %v837_v5  ;;  %v881_v11 = vsel %vm880_vm14, %v1664_v58, %v877_v8  ;;  %v1056_v5 = vrot.slane %v1552_v4, 2 }
 0xa60   :  { %v886_v24 = vsel %vm883_vm15, %v885_v18, %v881_v11  ;;  %v856_v42 = vsub.f32 1.0, %v842_v3  ;;  %v1551_v18 = vld [vmem:[%s2248_s0 + $0x14] sm:$0xf] }
 0xa9d   :  { %v914_v19 = vpop.permute.xlu2 %913 }
 0xa9e   :  { %v916_v26 = vmul.f32 %v914_v19, %v886_v24 }
 0xab5   :  { %v847_v6 = vpop.permute.xlu0 %846 }
 0xab6   :  { %v849_v7 = vmul.f32 %v847_v6, %v842_v3 }
 0xab8   :  { %851 = vrot.lane.b32.xlu1 %v849_v7, %s1751_s4 }
 0xabd   :  { %v918_v30 = vpop.permute.xlu0 %917 }
 0xabe   :  { %v919_v34 = vrot.slane %v918_v30, 2 }
 0xac0   :  { %922 = vrot.lane.b32.xlu1 %v916_v26, %s1750_s13 }
 0xac5   :  { %v864_v41 = vpop.permute.xlu0 %863 }
 0xac8   :  { %929 = vrot.lane.b32.xlu1 %v2020_v33, %s1752_s16 }
 0xb2a   :  { %v852_v12 = vpop.permute.xlu1 %851 }
 0xb2b   :  { %v854_v13 = vadd.f32 %v1542_v40, %v852_v12  ;;  %v866_v40 = vmul.f32 %v864_v41, %v842_v3 }
 0xb2d   :  { %1665 = vtanh.f32 %v854_v13 }
 0xb2e   :  { %1667 = vpow2.f32 %v1548_v15 }
 0xb32   :  { %v923_v36 = vpop.permute.xlu1 %922 }
 0xb33   :  { %v1666_v14 = vpop.eup %1665  ;;  %v925_v37 = vadd.f32 %v923_v36, %v919_v34 }
 0xb34   :  { %858 = vrot.lane.b32.xlu2 %v1666_v14, %s1752_s16  ;;  %v1668_v16 = vpop.eup %1667 }
 0xb35   :  { %v895_v17 = vadd.f32 1.0, %v1668_v16 }
 0xb37   :  { %1669 = vrcp.f32 %v895_v17  ;;  %v907_v38 = vand.u32 2147483648, %v895_v17  ;;  %vm901_vm2 = vweird.f32 %v895_v17  ;;  %v905_v39 = vand.u32 2147483647, %v895_v17 }
 0xb38   :  { %1671 = vtanh.f32 %v925_v37 }
 0xb39   :  { %v908_v43 = vor.u32 1.1754944e-38, %v907_v38  ;;  %vm906_vm4 = vcmp.eq.f32.partialorder %v905_v39, 8.507059e+37 }
 0xb3a   :  { %v930_v49 = vpop.permute.xlu1 %929 }
 0xb3d   :  { %v1670_v25 = vpop.eup %1669 }
 0xb3e   :  { %v897_v27 = vmul.f32 %v1670_v25, %v895_v17  ;;  %vm902_vm1 = vweird.f32 %v1670_v25  ;;  %v1672_v48 = vpop.eup %1671 }
 0xb3f   :  { %vm903_vm3 = vmor %vm901_vm2, %vm902_vm1 }
 0xb40   :  { %v898_v28 = vsub.f32 1.0, %v897_v27 }
 0xb42   :  { %v899_v35 = vmul.f32 %v1670_v25, %v898_v28 }
 0xb44   :  { %v900_v33 = vadd.f32 %v1670_v25, %v899_v35 }
 0xb46   :  { %v904_v32 = vsel %vm903_vm3, %v1670_v25, %v900_v33 }
 0xb47   :  { %v909_v46 = vsel %vm906_vm4, %v908_v43, %v904_v32 }
 0xb48   :  { %v927_v52 = vsub.f32 1.0, %v909_v46  ;;  %v932_v54 = vmul.f32 %v930_v49, %v909_v46 }
 0xb4a   :  { %v928_v53 = vmul.f32 %v1672_v48, %v927_v52 }
 0xb4c   :  { %v933_v55 = vadd.f32 %v932_v54, %v928_v53 }
 0xb8e   :  { %v859_v44 = vpop.permute.xlu2 %858 }
 0xb8f   :  { %v861_v45 = vmul.f32 %v859_v44, %v856_v42 }
 0xb91   :  { %v867_v47 = vadd.f32 %v866_v40, %v861_v45 }
 0xb93   :  { %935 = vst [vmem:[#allocation1] ss:$4 sm:$0xff] %v867_v47 }
 0xb9a   :  { %v2044_v57 = vld.sshfl [vmem:[#allocation1] sm:$0xff pattern:$0x73625140] }
 0xb9b   :  { %942 = vst [vmem:[#allocation1] ss:$4 sm:$0xff] %v933_v55 }
 0xba2   :  { %v2046_v58 = vld.sshfl [vmem:[#allocation1] sm:$0xff pattern:$0x73625140] }
 0xba3   :  { %948 = vst [vmem:[#allocation1] ss:$4 sm:$0xff] %v867_v47 }
 0xbaa   :  { %v949_v59 = vld.sshfl [vmem:[#allocation1] sm:$0xff pattern:$0x73625140] }
 0xbab   :  { %950 = vrot.lane.b32.xlu2 %v949_v59, %s1752_s16  ;;  %953 = vst [vmem:[#allocation1] ss:$4 sm:$0xff] %v933_v55 }
 0xbb2   :  { %v954_v60 = vld.sshfl [vmem:[#allocation1] sm:$0xff pattern:$0x73625140] }
 0xbb3   :  { %955 = vrot.lane.b32.xlu0 %v954_v60, %s1750_s13 }
 0xc05   :  { %v951_v56 = vpop.permute.xlu2 %950 }
 0xc25   :  { %v956_v63 = vpop.permute.xlu0 %955 }
 0xc26   :  { %v2051_v1 = vsel %vm277_vm13, %v951_v56, %v956_v63 }
 0xc27   :  { %v961_v2 = vpack.c.bf16 %v2051_v1, %v2051_v1 }
 0xc29   :  { %1553 = vmatmul.msk.bf16.vlgmr.msra.gmra.mxu2 %vm100_vm0, %v961_v2  ;;  %1554 = vmatmul.msk.bf16.vlgmr.msra.gmra.mxu3 %vm100_vm0, %v961_v2 }
 0xcac   :  { %v974_v0 = vpop.f32.mrf.mxu2  ;;  %v987_v6 = vpop.f32.mrf.mxu3 }
 0xcad   :  { %v1011_v3 = vadd.f32 %v974_v0, %v1877_v29  ;;  %v1035_v8 = vadd.f32 %v1552_v4, %v974_v0  ;;  %v1058_v7 = vadd.f32 %v1056_v5, %v987_v6  ;;  %v1078_v10 = vadd.f32 %v987_v6, %v1879_v31 }
 0xcae   :  { %v991_v19 = vadd.f32 %v1551_v18, %v974_v0 }
 0xcaf   :  { %1013 = vrot.lane.b32.xlu1 %v1011_v3, %s1751_s4  ;;  %1080 = vrot.lane.b32.xlu0 %v1078_v10, %s1751_s4  ;;  %v1556_v26 = vmul.f32 -1.442695, %v1035_v8  ;;  %v1557_v55 = vmul.f32 -1.442695, %v1058_v7 }
 0xcb0   :  { %v1555_v24 = vmul.f32 -1.442695, %v991_v19 }
 0xcb2   :  { %1673 = vpow2.f32 %v1555_v24 }
 0xcb3   :  { %1675 = vpow2.f32 %v1556_v26 }
 0xcb4   :  { %v976_v9 = vpop.f32.mrf.mxu2  ;;  %v989_v11 = vpop.f32.mrf.mxu3 }
 0xcb7   :  { %1084 = vrot.lane.b32.xlu1 %v1552_v4, %s1752_s16 }
 0xcb8   :  { %v1674_v12 = vpop.eup %1673 }
 0xcb9   :  { %v995_v13 = vadd.f32 1.0, %v1674_v12  ;;  %v1676_v14 = vpop.eup %1675 }
 0xcba   :  { %v1039_v15 = vadd.f32 1.0, %v1676_v14 }
 0xcbb   :  { %1677 = vrcp.f32 %v995_v13  ;;  %v1007_v35 = vand.u32 2147483648, %v995_v13  ;;  %vm1001_vm6 = vweird.f32 %v995_v13  ;;  %v1005_v37 = vand.u32 2147483647, %v995_v13 }
 0xcbc   :  { %1679 = vrcp.f32 %v1039_v15  ;;  %v1051_v44 = vand.u32 2147483648, %v1039_v15  ;;  %vm1045_vm10 = vweird.f32 %v1039_v15  ;;  %v1049_v40 = vand.u32 2147483647, %v1039_v15 }
 0xcbd   :  { %v1008_v39 = vor.u32 1.1754944e-38, %v1007_v35  ;;  %vm1006_vm8 = vcmp.eq.f32.partialorder %v1005_v37, 8.507059e+37 }
 0xcbe   :  { %v1052_v47 = vor.u32 1.1754944e-38, %v1051_v44  ;;  %vm1050_vm12 = vcmp.eq.f32.partialorder %v1049_v40, 8.507059e+37 }
 0xcbf   :  { %1030 = vrot.lane.b32.xlu1 %v2051_v1, %s1750_s13 }
 0xcc1   :  { %v1678_v16 = vpop.eup %1677 }
 0xcc2   :  { %v997_v17 = vmul.f32 %v1678_v16, %v995_v13  ;;  %v1680_v27 = vpop.eup %1679  ;;  %vm1002_vm5 = vweird.f32 %v1678_v16 }
 0xcc3   :  { %v1041_v28 = vmul.f32 %v1680_v27, %v1039_v15  ;;  %vm1003_vm7 = vmor %vm1001_vm6, %vm1002_vm5  ;;  %vm1046_vm9 = vweird.f32 %v1680_v27 }
 0xcc4   :  { %v998_v25 = vsub.f32 1.0, %v997_v17  ;;  %vm1047_vm11 = vmor %vm1045_vm10, %vm1046_vm9 }
 0xcc5   :  { %v1042_v34 = vsub.f32 1.0, %v1041_v28 }
 0xcc6   :  { %v999_v30 = vmul.f32 %v1678_v16, %v998_v25 }
 0xcc7   :  { %v1043_v33 = vmul.f32 %v1680_v27, %v1042_v34 }
 0xcc8   :  { %v1000_v36 = vadd.f32 %v1678_v16, %v999_v30 }
 0xcc9   :  { %v1044_v42 = vadd.f32 %v1680_v27, %v1043_v33 }
 0xcca   :  { %v1004_v38 = vsel %vm1003_vm7, %v1678_v16, %v1000_v36 }
 0xccb   :  { %v1009_v32 = vsel %vm1006_vm8, %v1008_v39, %v1004_v38  ;;  %v1048_v45 = vsel %vm1047_vm11, %v1680_v27, %v1044_v42  ;;  %v1561_v39 = vld [vmem:[%s2248_s0 + $0x4] sm:$0xf] }
 0xccc   :  { %v1053_v48 = vsel %vm1050_vm12, %v1052_v47, %v1048_v45  ;;  %v1023_v11 = vsub.f32 1.0, %v1009_v32 }
 0xd21   :  { %v1014_v41 = vpop.permute.xlu1 %1013  ;;  %v1081_v46 = vpop.permute.xlu0 %1080 }
 0xd22   :  { %v1016_v43 = vmul.f32 %v1014_v41, %v1009_v32  ;;  %v1083_v49 = vmul.f32 %v1081_v46, %v1053_v48  ;;  %v1223_v41 = vrot.slane %v1561_v39, 2  ;;  %v1560_v48 = vld [vmem:[%s2248_s0 + $0x18] sm:$0xf] }
 0xd24   :  { %1018 = vrot.lane.b32.xlu2 %v1016_v43, %s1751_s4 }
 0xd29   :  { %v1085_v4 = vpop.permute.xlu1 %1084 }
 0xd2a   :  { %v1086_v5 = vrot.slane %v1085_v4, 2 }
 0xd2c   :  { %1089 = vrot.lane.b32.xlu2 %v1083_v49, %s1750_s13 }
 0xd31   :  { %v1031_v9 = vpop.permute.xlu1 %1030 }
 0xd32   :  { %v1033_v24 = vmul.f32 %v1031_v9, %v1009_v32 }
 0xd34   :  { %1096 = vrot.lane.b32.xlu2 %v2051_v1, %s1752_s16 }
 0xd7e   :  { %v1019_v52 = vpop.permute.xlu2 %1018 }
 0xd7f   :  { %v1021_v53 = vadd.f32 %v1551_v18, %v1019_v52 }
 0xd81   :  { %1681 = vtanh.f32 %v1021_v53 }
 0xd82   :  { %1683 = vpow2.f32 %v1557_v55 }
 0xd86   :  { %v1090_v0 = vpop.permute.xlu2 %1089 }
 0xd87   :  { %v1682_v54 = vpop.eup %1681  ;;  %v1092_v3 = vadd.f32 %v1090_v0, %v1086_v5 }
 0xd88   :  { %1025 = vrot.lane.b32.xlu0 %v1682_v54, %s1752_s16  ;;  %v1684_v59 = vpop.eup %1683 }
 0xd89   :  { %v1062_v60 = vadd.f32 1.0, %v1684_v59 }
 0xd8b   :  { %1685 = vrcp.f32 %v1062_v60  ;;  %v1074_v8 = vand.u32 2147483648, %v1062_v60  ;;  %vm1068_vm15 = vweird.f32 %v1062_v60  ;;  %v1072_v10 = vand.u32 2147483647, %v1062_v60 }
 0xd8c   :  { %1687 = vtanh.f32 %v1092_v3 }
 0xd8d   :  { %v1075_v18 = vor.u32 1.1754944e-38, %v1074_v8  ;;  %vm1073_vm2 = vcmp.eq.f32.partialorder %v1072_v10, 8.507059e+37 }
 0xd8e   :  { %v1097_v15 = vpop.permute.xlu2 %1096 }
 0xd91   :  { %v1686_v56 = vpop.eup %1685 }
 0xd92   :  { %v1064_v63 = vmul.f32 %v1686_v56, %v1062_v60  ;;  %vm1069_vm14 = vweird.f32 %v1686_v56  ;;  %v1688_v14 = vpop.eup %1687 }
 0xd93   :  { %vm1070_vm1 = vmor %vm1068_vm15, %vm1069_vm14 }
 0xd94   :  { %v1065_v2 = vsub.f32 1.0, %v1064_v63 }
 0xd96   :  { %v1066_v6 = vmul.f32 %v1686_v56, %v1065_v2 }
 0xd98   :  { %v1067_v1 = vadd.f32 %v1686_v56, %v1066_v6 }
 0xd9a   :  { %v1071_v7 = vsel %vm1070_vm1, %v1686_v56, %v1067_v1 }
 0xd9b   :  { %v1076_v12 = vsel %vm1073_vm2, %v1075_v18, %v1071_v7 }
 0xd9c   :  { %v1094_v16 = vsub.f32 1.0, %v1076_v12  ;;  %v1099_v25 = vmul.f32 %v1097_v15, %v1076_v12 }
 0xd9e   :  { %v1095_v17 = vmul.f32 %v1688_v14, %v1094_v16 }
 0xda0   :  { %v1100_v27 = vadd.f32 %v1099_v25, %v1095_v17 }
 0xdfa   :  { %v1026_v19 = vpop.permute.xlu0 %1025 }
 0xdfb   :  { %v1028_v26 = vmul.f32 %v1026_v19, %v1023_v11 }
 0xdfd   :  { %v1034_v13 = vadd.f32 %v1033_v24, %v1028_v26 }
 0xdff   :  { %1102 = vst [vmem:[#allocation1] ss:$4 sm:$0xff] %v1034_v13 }
 0xe06   :  { %v2075_v28 = vld.sshfl [vmem:[#allocation1] sm:$0xff pattern:$0x73625140] }
 0xe07   :  { %1109 = vst [vmem:[#allocation1] ss:$4 sm:$0xff] %v1100_v27 }
 0xe0e   :  { %v2077_v30 = vld.sshfl [vmem:[#allocation1] sm:$0xff pattern:$0x73625140] }
 0xe0f   :  { %1115 = vst [vmem:[#allocation1] ss:$4 sm:$0xff] %v1034_v13 }
 0xe16   :  { %v1116_v34 = vld.sshfl [vmem:[#allocation1] sm:$0xff pattern:$0x73625140] }
 0xe17   :  { %1117 = vrot.lane.b32.xlu0 %v1116_v34, %s1752_s16  ;;  %1120 = vst [vmem:[#allocation1] ss:$4 sm:$0xff] %v1100_v27 }
 0xe1e   :  { %v1121_v36 = vld.sshfl [vmem:[#allocation1] sm:$0xff pattern:$0x73625140] }
 0xe1f   :  { %1122 = vrot.lane.b32.xlu1 %v1121_v36, %s1750_s13 }
 0xe89   :  { %v1118_v35 = vpop.permute.xlu0 %1117 }
 0xe91   :  { %v1123_v37 = vpop.permute.xlu1 %1122 }
 0xe92   :  { %v2082_v33 = vsel %vm277_vm13, %v1118_v35, %v1123_v37 }
 0xe93   :  { %v1128_v38 = vpack.c.bf16 %v2082_v33, %v2082_v33 }
 0xe95   :  { %1562 = vmatmul.msk.bf16.vlgmr.msrb.gmra.mxu0 %vm100_vm0, %v1128_v38  ;;  %1563 = vmatmul.msk.bf16.vlgmr.msrb.gmra.mxu1 %vm100_vm0, %v1128_v38 }
 0xf12   :  { %v1141_v32 = vpop.f32.mrf.mxu0  ;;  %v1154_v42 = vpop.f32.mrf.mxu1 }
 0xf13   :  { %v1178_v43 = vadd.f32 %v1141_v32, %v1877_v29  ;;  %v1202_v44 = vadd.f32 %v1561_v39, %v1141_v32  ;;  %v1225_v40 = vadd.f32 %v1223_v41, %v1154_v42  ;;  %v1245_v45 = vadd.f32 %v1154_v42, %v1879_v31 }
 0xf14   :  { %v1158_v49 = vadd.f32 %v1560_v48, %v1141_v32 }
 0xf15   :  { %1180 = vrot.lane.b32.xlu2 %v1178_v43, %s1751_s4  ;;  %1247 = vrot.lane.b32.xlu1 %v1245_v45, %s1751_s4  ;;  %v1565_v59 = vmul.f32 -1.442695, %v1202_v44  ;;  %v1566_v36 = vmul.f32 -1.442695, %v1225_v40 }
 0xf16   :  { %v1564_v52 = vmul.f32 -1.442695, %v1158_v49 }
 0xf18   :  { %1689 = vpow2.f32 %v1564_v52 }
 0xf1a   :  { %v1143_v46 = vpop.f32.mrf.mxu0  ;;  %v1156_v47 = vpop.f32.mrf.mxu1 }
 0xf1d   :  { %1251 = vrot.lane.b32.xlu2 %v1561_v39, %s1752_s16 }
 0xf1e   :  { %v1690_v53 = vpop.eup %1689 }
 0xf1f   :  { %v1162_v54 = vadd.f32 1.0, %v1690_v53 }
 0xf21   :  { %1691 = vrcp.f32 %v1162_v54  ;;  %v1174_v0 = vand.u32 2147483648, %v1162_v54  ;;  %vm1168_vm4 = vweird.f32 %v1162_v54  ;;  %v1172_v6 = vand.u32 2147483647, %v1162_v54 }
 0xf22   :  { %1693 = vpow2.f32 %v1565_v59 }
 0xf23   :  { %v1175_v1 = vor.u32 1.1754944e-38, %v1174_v0  ;;  %vm1173_vm6 = vcmp.eq.f32.partialorder %v1172_v6, 8.507059e+37 }
 0xf25   :  { %1197 = vrot.lane.b32.xlu2 %v2082_v33, %s1750_s13 }
 0xf27   :  { %v1692_v55 = vpop.eup %1691 }
 0xf28   :  { %v1164_v60 = vmul.f32 %v1692_v55, %v1162_v54  ;;  %v1694_v2 = vpop.eup %1693  ;;  %vm1169_vm3 = vweird.f32 %v1692_v55 }
 0xf29   :  { %v1206_v4 = vadd.f32 1.0, %v1694_v2  ;;  %vm1170_vm5 = vmor %vm1168_vm4, %vm1169_vm3 }
 0xf2a   :  { %v1165_v56 = vsub.f32 1.0, %v1164_v60 }
 0xf2b   :  { %1695 = vrcp.f32 %v1206_v4  ;;  %v1218_v26 = vand.u32 2147483648, %v1206_v4  ;;  %vm1212_vm8 = vweird.f32 %v1206_v4  ;;  %v1216_v12 = vand.u32 2147483647, %v1206_v4 }
 0xf2c   :  { %v1166_v63 = vmul.f32 %v1692_v55, %v1165_v56 }
 0xf2d   :  { %v1219_v14 = vor.u32 1.1754944e-38, %v1218_v26  ;;  %vm1217_vm10 = vcmp.eq.f32.partialorder %v1216_v12, 8.507059e+37 }
 0xf2e   :  { %v1167_v5 = vadd.f32 %v1692_v55, %v1166_v63 }
 0xf30   :  { %v1171_v3 = vsel %vm1170_vm5, %v1692_v55, %v1167_v5 }
 0xf31   :  { %v1176_v10 = vsel %vm1173_vm6, %v1175_v1, %v1171_v3  ;;  %v1696_v7 = vpop.eup %1695 }
 0xf32   :  { %v1208_v11 = vmul.f32 %v1696_v7, %v1206_v4  ;;  %vm1213_vm7 = vweird.f32 %v1696_v7  ;;  %v1190_v49 = vsub.f32 1.0, %v1176_v10 }
 0xf33   :  { %vm1214_vm9 = vmor %vm1212_vm8, %vm1213_vm7 }
 0xf34   :  { %v1209_v18 = vsub.f32 1.0, %v1208_v11 }
 0xf36   :  { %v1210_v19 = vmul.f32 %v1696_v7, %v1209_v18  ;;  %v1294_v18 = vld [vmem:[%s2248_s0] sm:$0xf] }
 0xf38   :  { %v1211_v24 = vadd.f32 %v1696_v7, %v1210_v19  ;;  %v1390_v19 = vrot.slane %v1294_v18, 2 }
 0xf3a   :  { %v1215_v13 = vsel %vm1214_vm9, %v1696_v7, %v1211_v24 }
 0xf3b   :  { %v1220_v15 = vsel %vm1217_vm10, %v1219_v14, %v1215_v13 }
 0xf6f   :  { %v1181_v8 = vpop.permute.xlu2 %1180 }
 0xf70   :  { %v1183_v9 = vmul.f32 %v1181_v8, %v1176_v10 }
 0xf72   :  { %1185 = vrot.lane.b32.xlu0 %v1183_v9, %s1751_s4 }
 0xf77   :  { %v1252_v32 = vpop.permute.xlu2 %1251 }
 0xf78   :  { %v1253_v42 = vrot.slane %v1252_v32, 2 }
 0xf87   :  { %v1248_v16 = vpop.permute.xlu1 %1247 }
 0xf88   :  { %v1250_v17 = vmul.f32 %v1248_v16, %v1220_v15 }
 0xf8a   :  { %1256 = vrot.lane.b32.xlu0 %v1250_v17, %s1750_s13 }
 0xf92   :  { %1263 = vrot.lane.b32.xlu0 %v2082_v33, %s1752_s16 }
 0xfe4   :  { %v1186_v25 = vpop.permute.xlu0 %1185 }
 0xfe5   :  { %v1188_v27 = vadd.f32 %v1560_v48, %v1186_v25  ;;  %v1198_v48 = vpop.permute.xlu2 %1197  ;;  %v1569_v25 = vld [vmem:[%s2248_s0 + $0x1c] sm:$0xf] }
 0xfe6   :  { %v1200_v54 = vmul.f32 %v1198_v48, %v1176_v10 }
 0xfe7   :  { %1697 = vtanh.f32 %v1188_v27 }
 0xfe8   :  { %1699 = vpow2.f32 %v1566_v36 }
 0xfed   :  { %v1698_v34 = vpop.eup %1697 }
 0xfee   :  { %1192 = vrot.lane.b32.xlu1 %v1698_v34, %s1752_s16  ;;  %v1700_v35 = vpop.eup %1699 }
 0xfef   :  { %v1229_v37 = vadd.f32 1.0, %v1700_v35 }
 0xff1   :  { %1701 = vrcp.f32 %v1229_v37  ;;  %v1241_v46 = vand.u32 2147483648, %v1229_v37  ;;  %vm1235_vm12 = vweird.f32 %v1229_v37  ;;  %v1239_v47 = vand.u32 2147483647, %v1229_v37 }
 0xff3   :  { %v1242_v52 = vor.u32 1.1754944e-38, %v1241_v46  ;;  %vm1240_vm15 = vcmp.eq.f32.partialorder %v1239_v47, 8.507059e+37 }
 0xff7   :  { %v1702_v38 = vpop.eup %1701 }
 0xff8   :  { %v1231_v39 = vmul.f32 %v1702_v38, %v1229_v37  ;;  %vm1236_vm11 = vweird.f32 %v1702_v38 }
 0xff9   :  { %vm1237_vm14 = vmor %vm1235_vm12, %vm1236_vm11  ;;  %vm256_vm12 = vcmask 254976  }
 0xffa   :  { %v1232_v41 = vsub.f32 1.0, %v1231_v39 }
 0xffc   :  { %v1257_v43 = vpop.permute.xlu0 %1256  ;;  %v1233_v44 = vmul.f32 %v1702_v38, %v1232_v41 }
 0xffd   :  { %v1259_v45 = vadd.f32 %v1257_v43, %v1253_v42 }
 0xffe   :  { %v1234_v33 = vadd.f32 %v1702_v38, %v1233_v44 }
 0xfff   :  { %1703 = vtanh.f32 %v1259_v45 }
0x1000   :  { %v1238_v40 = vsel %vm1237_vm14, %v1702_v38, %v1234_v33  ;;  %vm265_vm14 = vcmask 517376  }
0x1001   :  { %v1243_v59 = vsel %vm1240_vm15, %v1242_v52, %v1238_v40 }
0x1002   :  { %v1261_v2 = vsub.f32 1.0, %v1243_v59 }
0x1004   :  { %v1264_v63 = vpop.permute.xlu0 %1263 }
0x1005   :  { %v1704_v56 = vpop.eup %1703  ;;  %v1266_v5 = vmul.f32 %v1264_v63, %v1243_v59 }
0x1006   :  { %v1262_v4 = vmul.f32 %v1704_v56, %v1261_v2 }
0x1008   :  { %v1267_v0 = vadd.f32 %v1266_v5, %v1262_v4 }
0x1060   :  { %v1193_v53 = vpop.permute.xlu1 %1192 }
0x1061   :  { %v1195_v55 = vmul.f32 %v1193_v53, %v1190_v49 }
0x1063   :  { %v1201_v60 = vadd.f32 %v1200_v54, %v1195_v55 }
0x1065   :  { %1269 = vst [vmem:[#allocation1] ss:$4 sm:$0xff] %v1201_v60 }
0x106c   :  { %v2106_v6 = vld.sshfl [vmem:[#allocation1] sm:$0xff pattern:$0x73625140] }
0x106d   :  { %1276 = vst [vmem:[#allocation1] ss:$4 sm:$0xff] %v1267_v0 }
0x1074   :  { %v2108_v3 = vld.sshfl [vmem:[#allocation1] sm:$0xff pattern:$0x73625140] }
0x1075   :  { %1282 = vst [vmem:[#allocation1] ss:$4 sm:$0xff] %v1201_v60 }
0x107c   :  { %v1283_v1 = vld.sshfl [vmem:[#allocation1] sm:$0xff pattern:$0x73625140] }
0x107d   :  { %1284 = vrot.lane.b32.xlu1 %v1283_v1, %s1752_s16  ;;  %1287 = vst [vmem:[#allocation1] ss:$4 sm:$0xff] %v1267_v0 }
0x1084   :  { %v1288_v8 = vld.sshfl [vmem:[#allocation1] sm:$0xff pattern:$0x73625140] }
0x1085   :  { %1289 = vrot.lane.b32.xlu2 %v1288_v8, %s1750_s13 }
0x10df   :  { %v1290_v10 = vpop.permute.xlu2 %1289 }
0x10ef   :  { %v1285_v9 = vpop.permute.xlu1 %1284 }
0x10f0   :  { %v2113_v7 = vsel %vm277_vm13, %v1285_v9, %v1290_v10 }
0x10f1   :  { %v1295_v11 = vpack.c.bf16 %v2113_v7, %v2113_v7 }
0x10f3   :  { %1570 = vmatmul.msk.bf16.vlgmr.msrb.gmra.mxu2 %vm100_vm0, %v1295_v11  ;;  %1571 = vmatmul.msk.bf16.vlgmr.msrb.gmra.mxu3 %vm100_vm0, %v1295_v11 }
0x1176   :  { %v1308_v24 = vpop.f32.mrf.mxu2  ;;  %v1321_v26 = vpop.f32.mrf.mxu3 }
0x1177   :  { %v1345_v12 = vadd.f32 %v1308_v24, %v1877_v29  ;;  %v1369_v13 = vadd.f32 %v1308_v24, %v1294_v18  ;;  %v1392_v14 = vadd.f32 %v1390_v19, %v1321_v26  ;;  %v1412_v15 = vadd.f32 %v1321_v26, %v1879_v31 }
0x1178   :  { %v1325_v29 = vadd.f32 %v1569_v25, %v1308_v24 }
0x1179   :  { %1347 = vrot.lane.b32.xlu0 %v1345_v12, %s1751_s4  ;;  %1414 = vrot.lane.b32.xlu2 %v1412_v15, %s1751_s4  ;;  %v1573_v34 = vmul.f32 -1.442695, %v1369_v13  ;;  %v1574_v5 = vmul.f32 -1.442695, %v1392_v14 }
0x117a   :  { %v1572_v27 = vmul.f32 -1.442695, %v1325_v29 }
0x117c   :  { %1705 = vpow2.f32 %v1572_v27 }
0x117d   :  { %1707 = vpow2.f32 %v1573_v34 }
0x117e   :  { %v1310_v16 = vpop.f32.mrf.mxu2  ;;  %v1323_v17 = vpop.f32.mrf.mxu3 }
0x1181   :  { %1418 = vrot.lane.b32.xlu0 %v1294_v18, %s1752_s16 }
0x1182   :  { %v1706_v31 = vpop.eup %1705 }
0x1183   :  { %v1329_v36 = vadd.f32 1.0, %v1706_v31  ;;  %v1708_v35 = vpop.eup %1707 }
0x1184   :  { %v1373_v37 = vadd.f32 1.0, %v1708_v35 }
0x1185   :  { %1709 = vrcp.f32 %v1329_v36  ;;  %v1341_v33 = vand.u32 2147483648, %v1329_v36  ;;  %vm1335_vm1 = vweird.f32 %v1329_v36  ;;  %v1339_v46 = vand.u32 2147483647, %v1329_v36 }
0x1186   :  { %1711 = vrcp.f32 %v1373_v37  ;;  %v1385_v55 = vand.u32 2147483648, %v1373_v37  ;;  %vm1379_vm5 = vweird.f32 %v1373_v37  ;;  %v1383_v59 = vand.u32 2147483647, %v1373_v37 }
0x1187   :  { %v1342_v40 = vor.u32 1.1754944e-38, %v1341_v33  ;;  %vm1340_vm3 = vcmp.eq.f32.partialorder %v1339_v46, 8.507059e+37  ;;  %1713 = vpow2.f32 %v1574_v5 }
0x1188   :  { %v1386_v63 = vor.u32 1.1754944e-38, %v1385_v55  ;;  %vm1384_vm7 = vcmp.eq.f32.partialorder %v1383_v59, 8.507059e+37 }
0x1189   :  { %1364 = vrot.lane.b32.xlu0 %v2113_v7, %s1750_s13 }
0x118b   :  { %v1710_v38 = vpop.eup %1709 }
0x118c   :  { %v1331_v39 = vmul.f32 %v1710_v38, %v1329_v36  ;;  %v1712_v32 = vpop.eup %1711  ;;  %vm1336_vm0 = vweird.f32 %v1710_v38 }
0x118d   :  { %v1375_v42 = vmul.f32 %v1712_v32, %v1373_v37  ;;  %vm1337_vm2 = vmor %vm1335_vm1, %vm1336_vm0  ;;  %vm1380_vm4 = vweird.f32 %v1712_v32  ;;  %v1714_v0 = vpop.eup %1713 }
0x118e   :  { %v1332_v41 = vsub.f32 1.0, %v1331_v39  ;;  %vm1381_vm6 = vmor %vm1379_vm5, %vm1380_vm4  ;;  %v1396_v1 = vadd.f32 1.0, %v1714_v0 }
0x118f   :  { %v1376_v44 = vsub.f32 1.0, %v1375_v42 }
0x1190   :  { %v1333_v43 = vmul.f32 %v1710_v38, %v1332_v41  ;;  %1715 = vrcp.f32 %v1396_v1  ;;  %vm1402_vm9 = vweird.f32 %v1396_v1 }
0x1191   :  { %v1377_v47 = vmul.f32 %v1712_v32, %v1376_v44 }
0x1192   :  { %v1334_v45 = vadd.f32 %v1710_v38, %v1333_v43 }
0x1193   :  { %v1378_v53 = vadd.f32 %v1712_v32, %v1377_v47 }
0x1194   :  { %v1338_v48 = vsel %vm1337_vm2, %v1710_v38, %v1334_v45 }
0x1195   :  { %v2132_v52 = vsel %vm1340_vm3, %v1342_v40, %v1338_v48  ;;  %v1382_v60 = vsel %vm1381_vm6, %v1712_v32, %v1378_v53 }
0x1196   :  { %v1387_v2 = vsel %vm1384_vm7, %v1386_v63, %v1382_v60  ;;  %v1716_v8 = vpop.eup %1715  ;;  %v1357_v38 = vsub.f32 1.0, %v2132_v52 }
0x1197   :  { %v1398_v10 = vmul.f32 %v1716_v8, %v1396_v1  ;;  %vm1403_vm8 = vweird.f32 %v1716_v8 }
0x1198   :  { %vm1404_vm10 = vmor %vm1402_vm9, %vm1403_vm8 }
0x11d3   :  { %v1415_v56 = vpop.permute.xlu2 %1414 }
0x11d4   :  { %v1417_v4 = vmul.f32 %v1415_v56, %v1387_v2 }
0x11eb   :  { %v1348_v49 = vpop.permute.xlu0 %1347 }
0x11ec   :  { %v1350_v54 = vmul.f32 %v1348_v49, %v2132_v52 }
0x11ee   :  { %1352 = vrot.lane.b32.xlu1 %v1350_v54, %s1751_s4 }
0x11f3   :  { %v1419_v11 = vpop.permute.xlu0 %1418 }
0x11f6   :  { %1423 = vrot.lane.b32.xlu1 %v1417_v4, %s1750_s13 }
0x11fb   :  { %v1365_v37 = vpop.permute.xlu0 %1364 }
0x11fc   :  { %v1367_v41 = vmul.f32 %v1365_v37, %v2132_v52 }
0x11fe   :  { %1430 = vrot.lane.b32.xlu1 %v2113_v7, %s1752_s16 }
0x1206   :  { %253 = vrot.lane.b32.xlu1 %v1896_v50, %s1752_s16  ;;  %v1399_v50 = vsub.f32 1.0, %v1398_v10 }
0x120e   :  { %434 = vrot.lane.b32.xlu1 %v1937_v23, %s1750_s13  ;;  %v1400_v23 = vmul.f32 %v1716_v8, %v1399_v50 }
0x1210   :  { %v1401_v18 = vadd.f32 %v1716_v8, %v1400_v23 }
0x1212   :  { %v1405_v12 = vsel %vm1404_vm10, %v1716_v8, %v1401_v18 }
0x1216   :  { %768 = vrot.lane.b32.xlu1 %v2013_v20, %s1752_s16  ;;  %v1420_v20 = vrot.slane %v1419_v11, 2 }
0x121e   :  { %944 = vrot.lane.b32.xlu1 %v2046_v58, %s1750_s13  ;;  %v1408_v58 = vand.u32 2147483648, %v1396_v1 }
0x1220   :  { %v1409_v13 = vor.u32 1.1754944e-38, %v1408_v58 }
0x1226   :  { %1271 = vrot.lane.b32.xlu1 %v2106_v6, %s1752_s16  ;;  %v1406_v6 = vand.u32 2147483647, %v1396_v1 }
0x1228   :  { %vm1407_vm11 = vcmp.eq.f32.partialorder %v1406_v6, 8.507059e+37 }
0x1229   :  { %v1410_v14 = vsel %vm1407_vm11, %v1409_v13, %v1405_v12 }
0x122a   :  { %v1428_v15 = vsub.f32 1.0, %v1410_v14 }
0x1260   :  { %v1353_v9 = vpop.permute.xlu1 %1352 }
0x1261   :  { %v1355_v7 = vadd.f32 %v1569_v25, %v1353_v9 }
0x1263   :  { %1717 = vtanh.f32 %v1355_v7 }
0x1268   :  { %v1424_v19 = vpop.permute.xlu1 %1423 }
0x1269   :  { %v1718_v24 = vpop.eup %1717  ;;  %v1426_v26 = vadd.f32 %v1424_v19, %v1420_v20 }
0x126a   :  { %1359 = vrot.lane.b32.xlu2 %v1718_v24, %s1752_s16 }
0x126b   :  { %1719 = vtanh.f32 %v1426_v26 }
0x1270   :  { %v1431_v16 = vpop.permute.xlu1 %1430 }
0x1271   :  { %v1720_v17 = vpop.eup %1719  ;;  %v1433_v25 = vmul.f32 %v1431_v16, %v1410_v14 }
0x1272   :  { %v1429_v29 = vmul.f32 %v1720_v17, %v1428_v15  ;;  %261 = vrot.lane.b32.xlu2 %v1898_v51, %s1750_s13 }
0x1274   :  { %v1434_v27 = vadd.f32 %v1433_v25, %v1429_v29 }
0x1278   :  { %v254_v34 = vpop.permute.xlu1 %253 }
0x1279   :  { %257 = vst.msk [vmem:[%s2255_s7] sm:$0x3] %vm256_vm12, %v254_v34 }
0x1280   :  { %v435_v31 = vpop.permute.xlu1 %434 }
0x1281   :  { %1523 = vst.msk [vmem:[%s2255_s7 + $0xc] sm:$0x3] %vm265_vm14, %v435_v31 }
0x1288   :  { %v769_v36 = vpop.permute.xlu1 %768 }
0x1289   :  { %1540 = vst.msk [vmem:[%s2255_s7 + $0x6] sm:$0x3] %vm256_vm12, %v769_v36 }
0x1290   :  { %v945_v51 = vpop.permute.xlu1 %944 }
0x1291   :  { %1550 = vst.msk [vmem:[%s2255_s7 + $0x6] sm:$0x3] %vm265_vm14, %v945_v51 }
0x1298   :  { %v1272_v35 = vpop.permute.xlu1 %1271 }
0x1299   :  { %1567 = vst.msk [vmem:[%s2255_s7 + $0xc] sm:$0x3] %vm256_vm12, %v1272_v35 }
0x12c4   :  { %v1360_v39 = vpop.permute.xlu2 %1359 }
0x12c5   :  { %v1362_v32 = vmul.f32 %v1360_v39, %v1357_v38 }
0x12c7   :  { %v1368_v42 = vadd.f32 %v1367_v41, %v1362_v32 }
0x12c9   :  { %1436 = vst [vmem:[#allocation1] ss:$4 sm:$0xff] %v1368_v42 }
0x12cc   :  { %v262_v43 = vpop.permute.xlu2 %261 }
0x12cd   :  { %1514 = vst.msk [vmem:[%s2255_s7 + $0xe] sm:$0x3] %vm265_vm14, %v262_v43 }
0x12d0   :  { %v1437_v44 = vld.sshfl [vmem:[#allocation1] sm:$0xff pattern:$0x73625140] }
0x12d1   :  { %1443 = vst [vmem:[#allocation1] ss:$4 sm:$0xff] %v1434_v27 }
0x12d8   :  { %v1444_v45 = vld.sshfl [vmem:[#allocation1] sm:$0xff pattern:$0x73625140] }
0x12d9   :  { %1445 = vrot.lane.b32.xlu1 %v1444_v45, %s1750_s13  ;;  %1449 = vst [vmem:[#allocation1] ss:$4 sm:$0xff] %v1368_v42 }
0x12e0   :  { %v1450_v33 = vld.sshfl [vmem:[#allocation1] sm:$0xff pattern:$0x73625140] }
0x12e1   :  { %1451 = vrot.lane.b32.xlu2 %v1450_v33, %s1752_s16  ;;  %1454 = vst [vmem:[#allocation1] ss:$4 sm:$0xff] %v1434_v27 }
0x12e8   :  { %v1455_v46 = vld.sshfl [vmem:[#allocation1] sm:$0xff pattern:$0x73625140] }
0x12e9   :  { %597 = vrot.lane.b32.xlu2 %v1974_v61, %s1752_s16  ;;  %1456 = vrot.lane.b32.xlu0 %v1455_v46, %s1750_s13 }
0x12f1   :  { %776 = vrot.lane.b32.xlu2 %v2015_v21, %s1750_s13  ;;  %426 = vrot.lane.b32.xlu0 %v1935_v22, %s1752_s16 }
0x12f9   :  { %1104 = vrot.lane.b32.xlu2 %v2075_v28, %s1752_s16  ;;  %605 = vrot.lane.b32.xlu0 %v1976_v62, %s1750_s13 }
0x1301   :  { %1278 = vrot.lane.b32.xlu2 %v2108_v3, %s1750_s13  ;;  %937 = vrot.lane.b32.xlu0 %v2044_v57, %s1752_s16 }
0x1309   :  { %1111 = vrot.lane.b32.xlu0 %v2077_v30, %s1750_s13 }
0x1311   :  { %1438 = vrot.lane.b32.xlu0 %v1437_v44, %s1752_s16 }
0x133b   :  { %v1452_v61 = vpop.permute.xlu2 %1451 }
0x1343   :  { %v598_v21 = vpop.permute.xlu2 %597 }
0x1344   :  { %1531 = vst.msk [vmem:[%s2255_s7 + $0x4] sm:$0x3] %vm256_vm12, %v598_v21 }
0x134b   :  { %v777_v22 = vpop.permute.xlu2 %776  ;;  %v1446_v62 = vpop.permute.xlu1 %1445 }
0x134c   :  { %1541 = vst.msk [vmem:[%s2255_s7 + $0x8] sm:$0x3] %vm265_vm14, %v777_v22 }
0x134d   :  { %1448 = vst.msk [vmem:[%s2255_s7] sm:$0x3] %vm265_vm14, %v1446_v62 }
0x1353   :  { %v1105_v57 = vpop.permute.xlu2 %1104 }
0x135b   :  { %v1457_v28 = vpop.permute.xlu0 %1456  ;;  %v1279_v47 = vpop.permute.xlu2 %1278 }
0x135c   :  { %v1459_v30 = vsel %vm277_vm13, %v1452_v61, %v1457_v28 }
0x135d   :  { %1462 = vrot.lane.b32.xlu2 %v1459_v30, %s1752_s16  ;;  %1460 = vst.msk [vmem:[%s2256_s8] sm:$0x3] %vm256_vm12, %v1459_v30 }
0x1363   :  { %v427_v3 = vpop.permute.xlu0 %426 }
0x1364   :  { %1522 = vst.msk [vmem:[%s2255_s7 + $0x2] sm:$0x3] %vm256_vm12, %v427_v3 }
0x1365   :  { %1568 = vst.msk [vmem:[%s2255_s7 + $0x2] sm:$0x3] %vm265_vm14, %v1279_v47 }
0x136b   :  { %v606_v48 = vpop.permute.xlu0 %605 }
0x136c   :  { %1532 = vst.msk [vmem:[%s2255_s7 + $0xa] sm:$0x3] %vm265_vm14, %v606_v48 }
0x136d   :  { %1558 = vst.msk [vmem:[%s2255_s7 + $0xa] sm:$0x3] %vm256_vm12, %v1105_v57 }
0x1373   :  { %v938_v40 = vpop.permute.xlu0 %937 }
0x1374   :  { %1549 = vst.msk [vmem:[%s2255_s7 + $0x8] sm:$0x3] %vm256_vm12, %v938_v40 }
0x137b   :  { %v1112_v49 = vpop.permute.xlu0 %1111 }
0x137c   :  { %1559 = vst.msk [vmem:[%s2255_s7 + $0x4] sm:$0x3] %vm265_vm14, %v1112_v49 }
0x1383   :  { %v1439_v52 = vpop.permute.xlu0 %1438 }
0x1384   :  { %1575 = vst.msk [vmem:[%s2255_s7 + $0xe] sm:$0x3] %vm256_vm12, %v1439_v52 }
0x13b7   :  { %v1463_v53 = vpop.permute.xlu2 %1462 }
0x13b8   :  { %1576 = vst.msk [vmem:[%s2256_s8 + $0x2] sm:$0x3] %vm256_vm12, %v1463_v53 }
0x13b9   :  { %1475 = vsyncpa [#allocation3], 1 }

// kernel: _lambda_.7
= control target key start
LH: loop header
LB: loop body
LE: loop exit
PB: predicated region body
PF: predicated region fallthrough
CT: control target
= control target key end

     0   :  { %s1975_s15 = smov 32   ;;  %s2597_s0 = inlined_call_operand.vmem [shape: f32[8,2,192], index: 0, kind: input, shape index: {}]   ;;  %s2598_s1 = inlined_call_operand.vmem [shape: f32[2,64], index: 1, kind: input, shape index: {}]   ;;  %s2599_s2 = inlined_call_operand.vmem [shape: bf16[64,192], index: 2, kind: input, shape index: {}]   ;;  %s2600_s3 = inlined_call_operand.vmem [shape: f32[1,32], index: 3, kind: input, shape index: {}]   ;;  %s2601_s4 = inlined_call_operand.vmem [shape: f32[1,32], index: 4, kind: input, shape index: {}]   ;;  %s2602_s5 = inlined_call_operand.vmem [shape: f32[1,1,64], index: 5, kind: input, shape index: {}]   ;;  %s2603_s6 = inlined_call_operand.vmem [shape: f32[1,1,64], index: 6, kind: input, shape index: {}]   ;;  %s2604_s7 = inlined_call_operand.hbm [shape: f32[8,2,64], index: 7, kind: output, shape index: {0}]   ;;  %s2605_s8 = inlined_call_operand.vmem [shape: f32[2,2,32], index: 8, kind: output, shape index: {1}]  }
   0x1   :  { %v1725_v0 = vld [vmem:[%s2599_s2 + $0x30] sm:$0xf]  ;;  %v1792_v1 = vld [vmem:[%s2599_s2 + $0x34] sm:$0xf0]  ;;  %v1791_v2 = vld [vmem:[%s2599_s2 + $0x34] sm:$0xf] }
   0x2   :  { %v2035_v3 = vor.u32 %v1792_v1, %v1725_v0  ;;  %v1727_v4 = vld [vmem:[%s2599_s2 + $0x38] sm:$0xf0]  ;;  %v1717_v5 = vld [vmem:[%s2599_s2 + $0x20] sm:$0xf]  ;;  %v1790_v6 = vld [vmem:[%s2599_s2 + $0x24] sm:$0xf0] }
   0x3   :  { %v2046_v7 = vor.u32 %v1791_v2, %v1727_v4  ;;  %v1789_v8 = vld [vmem:[%s2599_s2 + $0x24] sm:$0xf]  ;;  %v1719_v9 = vld [vmem:[%s2599_s2 + $0x28] sm:$0xf0]  ;;  %v2055_v10 = vor.u32 %v1790_v6, %v1717_v5  ;;  %v1709_v12 = vld [vmem:[%s2599_s2 + $0x10] sm:$0xf] }
   0x4   :  { %93 = vmatpush.bf16.msra.mxu0 %v2035_v3  ;;  %276 = vmatpush.bf16.msra.mxu2 %v2035_v3  ;;  %v2059_v11 = vor.u32 %v1789_v8, %v1719_v9  ;;  %v1788_v13 = vld [vmem:[%s2599_s2 + $0x14] sm:$0xf0]  ;;  %v1787_v14 = vld [vmem:[%s2599_s2 + $0x14] sm:$0xf]  ;;  %v1711_v15 = vld [vmem:[%s2599_s2 + $0x18] sm:$0xf0] }
   0x5   :  { %106 = vmatpush.bf16.msra.mxu1 %v2046_v7  ;;  %289 = vmatpush.bf16.msra.mxu3 %v2046_v7  ;;  %v1701_v16 = vld [vmem:[%s2599_s2] sm:$0xf]  ;;  %v2081_v18 = vor.u32 %v1788_v13, %v1709_v12  ;;  %v2088_v20 = vor.u32 %v1787_v14, %v1711_v15  ;;  %v1786_v21 = vld [vmem:[%s2599_s2 + $0x4] sm:$0xf0] }
   0x6   :  { %v1799_v17 = vld [vmem:[%s2601_s4] ss:$0 sm:$0xff] }
   0x7   :  { %v1800_v19 = vld [vmem:[%s2600_s3] ss:$0 sm:$0xff]  ;;  %209 = vrot.lane.b32.xlu1 %v1799_v17, %s1975_s15 }
   0x8   :  { %94 = vmatpush.bf16.msra.mxu0 %v2055_v10  ;;  %277 = vmatpush.bf16.msra.mxu2 %v2055_v10 }
   0x9   :  { %107 = vmatpush.bf16.msra.mxu1 %v2059_v11 }
   0xa   :  { %14 = vsyncpa [#allocation3], 0  ;;  %v1785_v22 = vld [vmem:[%s2599_s2 + $0x4] sm:$0xf]  ;;  %v1703_v23 = vld [vmem:[%s2599_s2 + $0x8] sm:$0xf0]  ;;  %290 = vmatpush.bf16.msra.mxu3 %v2059_v11  ;;  %v2103_v24 = vor.u32 %v1786_v21, %v1701_v16 }
   0xb   :  { %s1976_s18 = smov 64   ;;  %v2108_v25 = vld [vmem:[%s2598_s1] sm:$0x3]  ;;  %v2112_v26 = vor.u32 %v1785_v22, %v1703_v23  ;;  %vm85_vm0 = vcmask 523264   ;;  %v1698_v28 = vld [vmem:[%s2597_s0 + $0x1c] sm:$0xf] }
   0xc   :  { %137 = vrot.lane.b32.xlu0 %v1800_v19, %s1976_s18  ;;  %95 = vmatpush.bf16.msra.mxu0 %v2081_v18  ;;  %v44_v27 = vpack.c.bf16 %v2108_v25, %v2108_v25  ;;  %v185_v30 = vrot.slane %v1698_v28, 2  ;;  %s1977_s21 = smov 96   ;;  %v41_v43 = vld [vmem:[%s2597_s0] sm:$0xf]  ;;  %vm262_vm13 = vcmask 261120   ;;  %s1682_s12 = sshll.u32 %s2604_s7, 4  ;;  %s1683_s12 = int_to_ptr.hbm [resolvable:$true] %s1682_s12 }
   0xd   :  { %278 = vmatpush.bf16.msra.mxu2 %v2081_v18  ;;  %108 = vmatpush.bf16.msra.mxu1 %v2088_v20  ;;  %s1979_s13 = smov [#allocation2]  }
   0xe   :  { %291 = vmatpush.bf16.msra.mxu3 %v2088_v20  ;;  %s1680_s14 = sshll.u32 %s1979_s13, 4  ;;  %s1681_s14 = int_to_ptr.vmem [resolvable:$true] %s1680_s14 }
  0x10   :  { %96 = vmatpush.bf16.msra.mxu0 %v2103_v24 }
  0x11   :  { %279 = vmatpush.bf16.msra.mxu2 %v2103_v24  ;;  %109 = vmatpush.bf16.msra.mxu1 %v2112_v26 }
  0x12   :  { %292 = vmatpush.bf16.msra.mxu3 %v2112_v26 }
  0x13   :  { %1731 = vmatmul.msk.bf16.vlgmr.msra.gmra.mxu0 %vm85_vm0, %v44_v27 }
  0x14   :  { %447 = vmatpush.bf16.msrb.mxu0 %v2035_v3  ;;  %1732 = vmatmul.msk.bf16.vlgmr.msra.gmra.mxu1 %vm85_vm0, %v44_v27 }
  0x15   :  { %460 = vmatpush.bf16.msrb.mxu1 %v2046_v7  ;;  %618 = vmatpush.bf16.msrb.mxu2 %v2035_v3 }
  0x16   :  { %631 = vmatpush.bf16.msrb.mxu3 %v2046_v7 }
  0x18   :  { %448 = vmatpush.bf16.msrb.mxu0 %v2055_v10 }
  0x19   :  { %461 = vmatpush.bf16.msrb.mxu1 %v2059_v11  ;;  %619 = vmatpush.bf16.msrb.mxu2 %v2055_v10 }
  0x1a   :  { %632 = vmatpush.bf16.msrb.mxu3 %v2059_v11 }
  0x1c   :  { %449 = vmatpush.bf16.msrb.mxu0 %v2081_v18 }
  0x1d   :  { %462 = vmatpush.bf16.msrb.mxu1 %v2088_v20  ;;  %620 = vmatpush.bf16.msrb.mxu2 %v2081_v18 }
  0x1e   :  { %633 = vmatpush.bf16.msrb.mxu3 %v2088_v20 }
  0x20   :  { %450 = vmatpush.bf16.msrb.mxu0 %v2103_v24 }
  0x21   :  { %463 = vmatpush.bf16.msrb.mxu1 %v2112_v26  ;;  %621 = vmatpush.bf16.msrb.mxu2 %v2103_v24 }
  0x22   :  { %634 = vmatpush.bf16.msrb.mxu3 %v2112_v26 }
  0x24   :  { %787 = vmatpush.bf16.msra.mxu0 %v2035_v3 }
  0x25   :  { %800 = vmatpush.bf16.msra.mxu1 %v2046_v7 }
  0x28   :  { %788 = vmatpush.bf16.msra.mxu0 %v2055_v10 }
  0x29   :  { %801 = vmatpush.bf16.msra.mxu1 %v2059_v11 }
  0x2c   :  { %789 = vmatpush.bf16.msra.mxu0 %v2081_v18 }
  0x2d   :  { %802 = vmatpush.bf16.msra.mxu1 %v2088_v20 }
  0x30   :  { %790 = vmatpush.bf16.msra.mxu0 %v2103_v24 }
  0x31   :  { %803 = vmatpush.bf16.msra.mxu1 %v2112_v26 }
  0x79   :  { %v2152_v31 = vpop.permute.xlu1 %209 }
  0x7e   :  { %v2150_v29 = vpop.permute.xlu0 %137 }
  0x90   :  { %v98_v32 = vpop.f32.mrf.mxu0 }
  0x91   :  { %v140_v33 = vadd.f32 %v2150_v29, %v98_v32  ;;  %v111_v34 = vpop.f32.mrf.mxu1  ;;  %v164_v39 = vadd.f32 %v1698_v28, %v98_v32  ;;  %v115_v44 = vadd.f32 %v98_v32, %v41_v43 }
  0x92   :  { %v187_v35 = vadd.f32 %v185_v30, %v111_v34  ;;  %v212_v36 = vadd.f32 %v2152_v31, %v111_v34 }
  0x93   :  { %142 = vrot.lane.b32.xlu0 %v140_v33, %s1976_s18  ;;  %v1734_v40 = vmul.f32 -1.442695, %v164_v39  ;;  %v1733_v46 = vmul.f32 -1.442695, %v115_v44 }
  0x94   :  { %214 = vrot.lane.b32.xlu2 %v212_v36, %s1976_s18  ;;  %v1735_v15 = vmul.f32 -1.442695, %v187_v35 }
  0x95   :  { %1803 = vpow2.f32 %v1734_v40 }
  0x98   :  { %v100_v37 = vpop.f32.mrf.mxu0 }
  0x99   :  { %v113_v38 = vpop.f32.mrf.mxu1 }
  0x9b   :  { %v1804_v41 = vpop.eup %1803 }
  0x9c   :  { %218 = vrot.lane.b32.xlu2 %v1698_v28, %s1977_s21  ;;  %v168_v42 = vadd.f32 1.0, %v1804_v41 }
  0x9e   :  { %1805 = vrcp.f32 %v168_v42  ;;  %v180_v53 = vand.u32 2147483648, %v168_v42  ;;  %vm174_vm2 = vweird.f32 %v168_v42  ;;  %v178_v54 = vand.u32 2147483647, %v168_v42 }
  0x9f   :  { %1807 = vpow2.f32 %v1733_v46 }
  0xa0   :  { %v181_v56 = vor.u32 1.1754944e-38, %v180_v53  ;;  %vm179_vm4 = vcmp.eq.f32.partialorder %v178_v54, 8.507059e+37 }
  0xa4   :  { %159 = vrot.lane.b32.xlu2 %v2108_v25, %s1975_s15  ;;  %v1806_v45 = vpop.eup %1805 }
  0xa5   :  { %v170_v47 = vmul.f32 %v1806_v45, %v168_v42  ;;  %v1808_v49 = vpop.eup %1807  ;;  %vm175_vm1 = vweird.f32 %v1806_v45 }
  0xa6   :  { %v119_v51 = vadd.f32 1.0, %v1808_v49  ;;  %vm176_vm3 = vmor %vm174_vm2, %vm175_vm1 }
  0xa7   :  { %v171_v48 = vsub.f32 1.0, %v170_v47 }
  0xa8   :  { %1809 = vrcp.f32 %v119_v51  ;;  %v131_v1 = vand.u32 2147483648, %v119_v51  ;;  %vm125_vm6 = vweird.f32 %v119_v51  ;;  %v129_v2 = vand.u32 2147483647, %v119_v51 }
  0xa9   :  { %v172_v50 = vmul.f32 %v1806_v45, %v171_v48 }
  0xaa   :  { %v132_v5 = vor.u32 1.1754944e-38, %v131_v1  ;;  %vm130_vm8 = vcmp.eq.f32.partialorder %v129_v2, 8.507059e+37 }
  0xab   :  { %v173_v52 = vadd.f32 %v1806_v45, %v172_v50 }
  0xad   :  { %v177_v55 = vsel %vm176_vm3, %v1806_v45, %v173_v52 }
  0xae   :  { %v182_v57 = vsel %vm179_vm4, %v181_v56, %v177_v55  ;;  %v1810_v59 = vpop.eup %1809 }
  0xaf   :  { %v121_v61 = vmul.f32 %v1810_v59, %v119_v51  ;;  %vm126_vm5 = vweird.f32 %v1810_v59 }
  0xb0   :  { %vm127_vm7 = vmor %vm125_vm6, %vm126_vm5 }
  0xb1   :  { %v122_v62 = vsub.f32 1.0, %v121_v61 }
  0xb3   :  { %v123_v63 = vmul.f32 %v1810_v59, %v122_v62 }
  0xb5   :  { %v124_v0 = vadd.f32 %v1810_v59, %v123_v63 }
  0xb7   :  { %v128_v4 = vsel %vm127_vm7, %v1810_v59, %v124_v0 }
  0xb8   :  { %v133_v6 = vsel %vm130_vm8, %v132_v5, %v128_v4  ;;  %v1736_v5 = vld [vmem:[%s2597_s0 + $0x4] sm:$0xf] }
  0xb9   :  { %v152_v38 = vsub.f32 1.0, %v133_v6 }
  0xee   :  { %v215_v58 = vpop.permute.xlu2 %214 }
  0xef   :  { %v217_v60 = vmul.f32 %v215_v58, %v182_v57  ;;  %v1737_v58 = vld [vmem:[%s2597_s0 + $0x18] sm:$0xf] }
  0xf0   :  { %v363_v59 = vrot.slane %v1737_v58, 2 }
  0xf1   :  { %223 = vrot.lane.b32.xlu0 %v217_v60, %s1975_s15 }
  0xf6   :  { %v219_v23 = vpop.permute.xlu2 %218 }
  0xf9   :  { %230 = vrot.lane.b32.xlu0 %v2108_v25, %s1977_s21  ;;  %v220_v25 = vrot.slane %v219_v23, 2 }
  0xfe   :  { %v160_v36 = vpop.permute.xlu2 %159 }
  0xff   :  { %v162_v40 = vmul.f32 %v160_v36, %v133_v6 }
 0x105   :  { %v143_v8 = vpop.permute.xlu0 %142 }
 0x106   :  { %v145_v9 = vmul.f32 %v143_v8, %v133_v6 }
 0x108   :  { %147 = vrot.lane.b32.xlu1 %v145_v9, %s1976_s18 }
 0x163   :  { %v224_v27 = vpop.permute.xlu0 %223 }
 0x164   :  { %v226_v30 = vadd.f32 %v224_v27, %v220_v25 }
 0x16b   :  { %v231_v45 = vpop.permute.xlu0 %230 }
 0x17a   :  { %v148_v12 = vpop.permute.xlu1 %147 }
 0x17b   :  { %v150_v13 = vadd.f32 %v148_v12, %v41_v43 }
 0x17d   :  { %1811 = vtanh.f32 %v150_v13 }
 0x17e   :  { %1813 = vpow2.f32 %v1735_v15 }
 0x183   :  { %v1812_v14 = vpop.eup %1811 }
 0x184   :  { %154 = vrot.lane.b32.xlu1 %v1812_v14, %s1977_s21  ;;  %v1814_v16 = vpop.eup %1813 }
 0x185   :  { %v191_v17 = vadd.f32 1.0, %v1814_v16 }
 0x187   :  { %1815 = vrcp.f32 %v191_v17  ;;  %vm197_vm9 = vweird.f32 %v191_v17  ;;  %v203_v32 = vand.u32 2147483648, %v191_v17  ;;  %v201_v34 = vand.u32 2147483647, %v191_v17 }
 0x188   :  { %1817 = vtanh.f32 %v226_v30 }
 0x189   :  { %v204_v35 = vor.u32 1.1754944e-38, %v203_v32  ;;  %vm202_vm12 = vcmp.eq.f32.partialorder %v201_v34, 8.507059e+37 }
 0x18d   :  { %v1816_v19 = vpop.eup %1815 }
 0x18e   :  { %v193_v21 = vmul.f32 %v1816_v19, %v191_v17  ;;  %vm198_vm10 = vweird.f32 %v1816_v19  ;;  %v1818_v44 = vpop.eup %1817 }
 0x18f   :  { %vm199_vm11 = vmor %vm197_vm9, %vm198_vm10 }
 0x190   :  { %v194_v22 = vsub.f32 1.0, %v193_v21 }
 0x192   :  { %v195_v28 = vmul.f32 %v1816_v19, %v194_v22 }
 0x194   :  { %v196_v33 = vadd.f32 %v1816_v19, %v195_v28 }
 0x196   :  { %v200_v37 = vsel %vm199_vm11, %v1816_v19, %v196_v33 }
 0x197   :  { %v205_v42 = vsel %vm202_vm12, %v204_v35, %v200_v37 }
 0x198   :  { %v228_v46 = vsub.f32 1.0, %v205_v42  ;;  %v233_v48 = vmul.f32 %v231_v45, %v205_v42 }
 0x19a   :  { %v229_v47 = vmul.f32 %v1818_v44, %v228_v46 }
 0x19c   :  { %v234_v49 = vadd.f32 %v233_v48, %v229_v47 }
 0x1f6   :  { %v155_v39 = vpop.permute.xlu1 %154 }
 0x1f7   :  { %v157_v41 = vmul.f32 %v155_v39, %v152_v38 }
 0x1f9   :  { %v163_v43 = vadd.f32 %v162_v40, %v157_v41 }
 0x1fb   :  { %236 = vst [vmem:[#allocation1] ss:$4 sm:$0xff] %v163_v43 }
 0x202   :  { %v2169_v50 = vld.sshfl [vmem:[#allocation1] sm:$0xff pattern:$0x73625140] }
 0x203   :  { %244 = vst [vmem:[#allocation1] ss:$4 sm:$0xff] %v234_v49 }
 0x20a   :  { %v2171_v51 = vld.sshfl [vmem:[#allocation1] sm:$0xff pattern:$0x73625140] }
 0x20b   :  { %252 = vst [vmem:[#allocation1] ss:$4 sm:$0xff] %v163_v43 }
 0x212   :  { %v253_v52 = vld.sshfl [vmem:[#allocation1] sm:$0xff pattern:$0x73625140] }
 0x213   :  { %257 = vst [vmem:[#allocation1] ss:$4 sm:$0xff] %v234_v49  ;;  %254 = vrot.lane.b32.xlu1 %v253_v52, %s1977_s21 }
 0x21a   :  { %v258_v53 = vld.sshfl [vmem:[#allocation1] sm:$0xff pattern:$0x73625140] }
 0x21b   :  { %259 = vrot.lane.b32.xlu2 %v258_v53, %s1975_s15 }
 0x275   :  { %v260_v54 = vpop.permute.xlu2 %259 }
 0x285   :  { %v255_v55 = vpop.permute.xlu1 %254 }
 0x286   :  { %v2176_v56 = vsel %vm262_vm13, %v255_v55, %v260_v54 }
 0x287   :  { %v268_v57 = vpack.c.bf16 %v2176_v56, %v2176_v56 }
 0x289   :  { %1738 = vmatmul.msk.bf16.vlgmr.msra.gmra.mxu2 %vm85_vm0, %v268_v57  ;;  %1739 = vmatmul.msk.bf16.vlgmr.msra.gmra.mxu3 %vm85_vm0, %v268_v57 }
 0x28a   :  { %954 = vmatpush.bf16.msra.mxu2 %v2035_v3  ;;  %967 = vmatpush.bf16.msra.mxu3 %v2046_v7 }
 0x28e   :  { %955 = vmatpush.bf16.msra.mxu2 %v2055_v10  ;;  %968 = vmatpush.bf16.msra.mxu3 %v2059_v11 }
 0x292   :  { %956 = vmatpush.bf16.msra.mxu2 %v2081_v18  ;;  %969 = vmatpush.bf16.msra.mxu3 %v2088_v20 }
 0x296   :  { %957 = vmatpush.bf16.msra.mxu2 %v2103_v24  ;;  %970 = vmatpush.bf16.msra.mxu3 %v2112_v26 }
 0x30c   :  { %v281_v60 = vpop.f32.mrf.mxu2  ;;  %v294_v61 = vpop.f32.mrf.mxu3 }
 0x30d   :  { %v318_v62 = vadd.f32 %v281_v60, %v2150_v29  ;;  %v342_v63 = vadd.f32 %v1737_v58, %v281_v60  ;;  %v365_v0 = vadd.f32 %v363_v59, %v294_v61  ;;  %v385_v1 = vadd.f32 %v294_v61, %v2152_v31 }
 0x30e   :  { %v298_v6 = vadd.f32 %v1736_v5, %v281_v60 }
 0x30f   :  { %320 = vrot.lane.b32.xlu0 %v318_v62, %s1976_s18  ;;  %387 = vrot.lane.b32.xlu2 %v385_v1, %s1976_s18  ;;  %v1741_v9 = vmul.f32 -1.442695, %v342_v63  ;;  %v1742_v49 = vmul.f32 -1.442695, %v365_v0 }
 0x310   :  { %v1740_v8 = vmul.f32 -1.442695, %v298_v6 }
 0x312   :  { %1819 = vpow2.f32 %v1740_v8 }
 0x313   :  { %1821 = vpow2.f32 %v1741_v9 }
 0x314   :  { %v283_v2 = vpop.f32.mrf.mxu2  ;;  %v296_v4 = vpop.f32.mrf.mxu3 }
 0x317   :  { %391 = vrot.lane.b32.xlu0 %v1737_v58, %s1977_s21 }
 0x318   :  { %v1820_v12 = vpop.eup %1819 }
 0x319   :  { %v302_v13 = vadd.f32 1.0, %v1820_v12  ;;  %v1822_v14 = vpop.eup %1821 }
 0x31a   :  { %v346_v15 = vadd.f32 1.0, %v1822_v14 }
 0x31b   :  { %1823 = vrcp.f32 %v302_v13  ;;  %v314_v28 = vand.u32 2147483648, %v302_v13  ;;  %vm308_vm15 = vweird.f32 %v302_v13  ;;  %v312_v30 = vand.u32 2147483647, %v302_v13 }
 0x31c   :  { %1825 = vrcp.f32 %v346_v15  ;;  %v358_v39 = vand.u32 2147483648, %v346_v15  ;;  %vm352_vm4 = vweird.f32 %v346_v15  ;;  %v356_v40 = vand.u32 2147483647, %v346_v15 }
 0x31d   :  { %v315_v34 = vor.u32 1.1754944e-38, %v314_v28  ;;  %vm313_vm2 = vcmp.eq.f32.partialorder %v312_v30, 8.507059e+37 }
 0x31e   :  { %v359_v43 = vor.u32 1.1754944e-38, %v358_v39  ;;  %vm357_vm6 = vcmp.eq.f32.partialorder %v356_v40, 8.507059e+37 }
 0x31f   :  { %337 = vrot.lane.b32.xlu0 %v2176_v56, %s1975_s15 }
 0x321   :  { %v1824_v16 = vpop.eup %1823 }
 0x322   :  { %v304_v17 = vmul.f32 %v1824_v16, %v302_v13  ;;  %v1826_v21 = vpop.eup %1825  ;;  %vm309_vm14 = vweird.f32 %v1824_v16 }
 0x323   :  { %v348_v22 = vmul.f32 %v1826_v21, %v346_v15  ;;  %vm310_vm1 = vmor %vm308_vm15, %vm309_vm14  ;;  %vm353_vm3 = vweird.f32 %v1826_v21 }
 0x324   :  { %v305_v19 = vsub.f32 1.0, %v304_v17  ;;  %vm354_vm5 = vmor %vm352_vm4, %vm353_vm3 }
 0x325   :  { %v349_v25 = vsub.f32 1.0, %v348_v22 }
 0x326   :  { %v306_v23 = vmul.f32 %v1824_v16, %v305_v19 }
 0x327   :  { %v350_v32 = vmul.f32 %v1826_v21, %v349_v25 }
 0x328   :  { %v307_v27 = vadd.f32 %v1824_v16, %v306_v23 }
 0x329   :  { %v351_v37 = vadd.f32 %v1826_v21, %v350_v32 }
 0x32a   :  { %v311_v33 = vsel %vm310_vm1, %v1824_v16, %v307_v27 }
 0x32b   :  { %v316_v35 = vsel %vm313_vm2, %v315_v34, %v311_v33  ;;  %v355_v41 = vsel %vm354_vm5, %v1826_v21, %v351_v37  ;;  %v1744_v34 = vld [vmem:[%s2597_s0 + $0x14] sm:$0xf] }
 0x32c   :  { %v360_v44 = vsel %vm357_vm6, %v359_v43, %v355_v41  ;;  %v330_v4 = vsub.f32 1.0, %v316_v35 }
 0x369   :  { %v388_v42 = vpop.permute.xlu2 %387 }
 0x36a   :  { %v390_v45 = vmul.f32 %v388_v42, %v360_v44  ;;  %v1743_v44 = vld [vmem:[%s2597_s0 + $0x8] sm:$0xf] }
 0x381   :  { %v321_v36 = vpop.permute.xlu0 %320 }
 0x382   :  { %v323_v38 = vmul.f32 %v321_v36, %v316_v35  ;;  %v534_v36 = vrot.slane %v1744_v34, 2 }
 0x384   :  { %325 = vrot.lane.b32.xlu1 %v323_v38, %s1976_s18 }
 0x389   :  { %v392_v58 = vpop.permute.xlu0 %391 }
 0x38a   :  { %v393_v59 = vrot.slane %v392_v58, 2 }
 0x38c   :  { %396 = vrot.lane.b32.xlu1 %v390_v45, %s1975_s15 }
 0x391   :  { %v338_v2 = vpop.permute.xlu0 %337 }
 0x392   :  { %v340_v8 = vmul.f32 %v338_v2, %v316_v35 }
 0x394   :  { %403 = vrot.lane.b32.xlu1 %v2176_v56, %s1977_s21 }
 0x3f6   :  { %v326_v46 = vpop.permute.xlu1 %325 }
 0x3f7   :  { %v328_v47 = vadd.f32 %v1736_v5, %v326_v46 }
 0x3f9   :  { %1827 = vtanh.f32 %v328_v47 }
 0x3fa   :  { %1829 = vpow2.f32 %v1742_v49 }
 0x3fe   :  { %v397_v60 = vpop.permute.xlu1 %396 }
 0x3ff   :  { %v1828_v48 = vpop.eup %1827  ;;  %v399_v62 = vadd.f32 %v397_v60, %v393_v59 }
 0x400   :  { %332 = vrot.lane.b32.xlu2 %v1828_v48, %s1977_s21  ;;  %v1830_v52 = vpop.eup %1829 }
 0x401   :  { %v369_v53 = vadd.f32 1.0, %v1830_v52 }
 0x403   :  { %1831 = vrcp.f32 %v369_v53  ;;  %v381_v63 = vand.u32 2147483648, %v369_v53  ;;  %vm375_vm8 = vweird.f32 %v369_v53  ;;  %v379_v1 = vand.u32 2147483647, %v369_v53 }
 0x404   :  { %1833 = vtanh.f32 %v399_v62 }
 0x405   :  { %v382_v5 = vor.u32 1.1754944e-38, %v381_v63  ;;  %vm380_vm10 = vcmp.eq.f32.partialorder %v379_v1, 8.507059e+37 }
 0x406   :  { %v404_v15 = vpop.permute.xlu1 %403 }
 0x409   :  { %v1832_v54 = vpop.eup %1831 }
 0x40a   :  { %v371_v55 = vmul.f32 %v1832_v54, %v369_v53  ;;  %vm376_vm7 = vweird.f32 %v1832_v54  ;;  %v1834_v14 = vpop.eup %1833 }
 0x40b   :  { %vm377_vm9 = vmor %vm375_vm8, %vm376_vm7 }
 0x40c   :  { %v372_v57 = vsub.f32 1.0, %v371_v55 }
 0x40e   :  { %v373_v61 = vmul.f32 %v1832_v54, %v372_v57 }
 0x410   :  { %v374_v56 = vadd.f32 %v1832_v54, %v373_v61 }
 0x412   :  { %v378_v0 = vsel %vm377_vm9, %v1832_v54, %v374_v56 }
 0x413   :  { %v383_v12 = vsel %vm380_vm10, %v382_v5, %v378_v0 }
 0x414   :  { %v401_v16 = vsub.f32 1.0, %v383_v12  ;;  %v406_v19 = vmul.f32 %v404_v15, %v383_v12 }
 0x416   :  { %v402_v17 = vmul.f32 %v1834_v14, %v401_v16 }
 0x418   :  { %v407_v21 = vadd.f32 %v406_v19, %v402_v17 }
 0x45a   :  { %v333_v6 = vpop.permute.xlu2 %332 }
 0x45b   :  { %v335_v9 = vmul.f32 %v333_v6, %v330_v4 }
 0x45d   :  { %v341_v13 = vadd.f32 %v340_v8, %v335_v9 }
 0x45f   :  { %409 = vst [vmem:[#allocation1] ss:$4 sm:$0xff] %v341_v13 }
 0x466   :  { %v2208_v22 = vld.sshfl [vmem:[#allocation1] sm:$0xff pattern:$0x73625140] }
 0x467   :  { %417 = vst [vmem:[#allocation1] ss:$4 sm:$0xff] %v407_v21 }
 0x46e   :  { %v2210_v23 = vld.sshfl [vmem:[#allocation1] sm:$0xff pattern:$0x73625140] }
 0x46f   :  { %424 = vst [vmem:[#allocation1] ss:$4 sm:$0xff] %v341_v13 }
 0x476   :  { %v425_v25 = vld.sshfl [vmem:[#allocation1] sm:$0xff pattern:$0x73625140] }
 0x477   :  { %429 = vst [vmem:[#allocation1] ss:$4 sm:$0xff] %v407_v21  ;;  %426 = vrot.lane.b32.xlu2 %v425_v25, %s1977_s21 }
 0x47e   :  { %v430_v27 = vld.sshfl [vmem:[#allocation1] sm:$0xff pattern:$0x73625140] }
 0x47f   :  { %431 = vrot.lane.b32.xlu0 %v430_v27, %s1975_s15 }
 0x4d1   :  { %v427_v28 = vpop.permute.xlu2 %426 }
 0x4f1   :  { %v432_v30 = vpop.permute.xlu0 %431 }
 0x4f2   :  { %v2215_v32 = vsel %vm262_vm13, %v427_v28, %v432_v30 }
 0x4f3   :  { %v439_v33 = vpack.c.bf16 %v2215_v32, %v2215_v32 }
 0x4f5   :  { %1745 = vmatmul.msk.bf16.vlgmr.msrb.gmra.mxu0 %vm85_vm0, %v439_v33  ;;  %1746 = vmatmul.msk.bf16.vlgmr.msrb.gmra.mxu1 %vm85_vm0, %v439_v33 }
 0x4f6   :  { %1121 = vmatpush.bf16.msrb.mxu0 %v2035_v3  ;;  %1134 = vmatpush.bf16.msrb.mxu1 %v2046_v7 }
 0x4fa   :  { %1122 = vmatpush.bf16.msrb.mxu0 %v2055_v10  ;;  %1135 = vmatpush.bf16.msrb.mxu1 %v2059_v11 }
 0x4fe   :  { %1123 = vmatpush.bf16.msrb.mxu0 %v2081_v18  ;;  %1136 = vmatpush.bf16.msrb.mxu1 %v2088_v20 }
 0x502   :  { %1124 = vmatpush.bf16.msrb.mxu0 %v2103_v24  ;;  %1137 = vmatpush.bf16.msrb.mxu1 %v2112_v26 }
 0x572   :  { %v452_v35 = vpop.f32.mrf.mxu0  ;;  %v465_v37 = vpop.f32.mrf.mxu1 }
 0x573   :  { %v489_v38 = vadd.f32 %v452_v35, %v2150_v29  ;;  %v513_v39 = vadd.f32 %v1744_v34, %v452_v35  ;;  %v536_v40 = vadd.f32 %v534_v36, %v465_v37  ;;  %v556_v41 = vadd.f32 %v465_v37, %v2152_v31 }
 0x574   :  { %v469_v45 = vadd.f32 %v1743_v44, %v452_v35 }
 0x575   :  { %491 = vrot.lane.b32.xlu1 %v489_v38, %s1976_s18  ;;  %558 = vrot.lane.b32.xlu0 %v556_v41, %s1976_s18  ;;  %v1748_v47 = vmul.f32 -1.442695, %v513_v39  ;;  %v1749_v27 = vmul.f32 -1.442695, %v536_v40 }
 0x576   :  { %v1747_v46 = vmul.f32 -1.442695, %v469_v45 }
 0x578   :  { %1835 = vpow2.f32 %v1747_v46 }
 0x579   :  { %1837 = vpow2.f32 %v1748_v47 }
 0x57a   :  { %v454_v42 = vpop.f32.mrf.mxu0  ;;  %v467_v43 = vpop.f32.mrf.mxu1 }
 0x57d   :  { %562 = vrot.lane.b32.xlu1 %v1744_v34, %s1977_s21 }
 0x57e   :  { %v1836_v48 = vpop.eup %1835 }
 0x57f   :  { %v473_v49 = vadd.f32 1.0, %v1836_v48  ;;  %v1838_v52 = vpop.eup %1837 }
 0x580   :  { %v517_v53 = vadd.f32 1.0, %v1838_v52 }
 0x581   :  { %1839 = vrcp.f32 %v473_v49  ;;  %v485_v56 = vand.u32 2147483648, %v473_v49  ;;  %vm479_vm12 = vweird.f32 %v473_v49  ;;  %v483_v63 = vand.u32 2147483647, %v473_v49 }
 0x582   :  { %1841 = vrcp.f32 %v517_v53  ;;  %v529_v9 = vand.u32 2147483648, %v517_v53  ;;  %vm523_vm2 = vweird.f32 %v517_v53  ;;  %v527_v12 = vand.u32 2147483647, %v517_v53 }
 0x583   :  { %v486_v0 = vor.u32 1.1754944e-38, %v485_v56  ;;  %vm484_vm15 = vcmp.eq.f32.partialorder %v483_v63, 8.507059e+37 }
 0x584   :  { %v530_v14 = vor.u32 1.1754944e-38, %v529_v9  ;;  %vm528_vm4 = vcmp.eq.f32.partialorder %v527_v12, 8.507059e+37 }
 0x585   :  { %508 = vrot.lane.b32.xlu1 %v2215_v32, %s1975_s15 }
 0x587   :  { %v1840_v54 = vpop.eup %1839 }
 0x588   :  { %v475_v55 = vmul.f32 %v1840_v54, %v473_v49  ;;  %v1842_v58 = vpop.eup %1841  ;;  %vm480_vm11 = vweird.f32 %v1840_v54 }
 0x589   :  { %v519_v60 = vmul.f32 %v1842_v58, %v517_v53  ;;  %vm481_vm14 = vmor %vm479_vm12, %vm480_vm11  ;;  %vm524_vm1 = vweird.f32 %v1842_v58 }
 0x58a   :  { %v476_v57 = vsub.f32 1.0, %v475_v55  ;;  %vm525_vm3 = vmor %vm523_vm2, %vm524_vm1 }
 0x58b   :  { %v520_v62 = vsub.f32 1.0, %v519_v60 }
 0x58c   :  { %v477_v59 = vmul.f32 %v1840_v54, %v476_v57 }
 0x58d   :  { %v521_v2 = vmul.f32 %v1842_v58, %v520_v62 }
 0x58e   :  { %v478_v61 = vadd.f32 %v1840_v54, %v477_v59 }
 0x58f   :  { %v522_v8 = vadd.f32 %v1842_v58, %v521_v2 }
 0x590   :  { %v482_v1 = vsel %vm481_vm14, %v1840_v54, %v478_v61 }
 0x591   :  { %v487_v5 = vsel %vm484_vm15, %v486_v0, %v482_v1  ;;  %v526_v13 = vsel %vm525_vm3, %v1842_v58, %v522_v8 }
 0x592   :  { %v531_v16 = vsel %vm528_vm4, %v530_v14, %v526_v13  ;;  %v501_v45 = vsub.f32 1.0, %v487_v5 }
 0x5e7   :  { %v492_v4 = vpop.permute.xlu1 %491  ;;  %v559_v15 = vpop.permute.xlu0 %558 }
 0x5e8   :  { %v494_v6 = vmul.f32 %v492_v4, %v487_v5  ;;  %v561_v17 = vmul.f32 %v559_v15, %v531_v16 }
 0x5ea   :  { %496 = vrot.lane.b32.xlu2 %v494_v6, %s1976_s18 }
 0x5ef   :  { %v563_v35 = vpop.permute.xlu1 %562 }
 0x5f0   :  { %v564_v37 = vrot.slane %v563_v35, 2 }
 0x5f2   :  { %567 = vrot.lane.b32.xlu2 %v561_v17, %s1975_s15 }
 0x5fa   :  { %574 = vrot.lane.b32.xlu2 %v2215_v32, %s1977_s21 }
 0x644   :  { %v497_v19 = vpop.permute.xlu2 %496 }
 0x645   :  { %v499_v21 = vadd.f32 %v1743_v44, %v497_v19  ;;  %v509_v44 = vpop.permute.xlu1 %508 }
 0x646   :  { %v511_v48 = vmul.f32 %v509_v44, %v487_v5  ;;  %v1751_v5 = vld [vmem:[%s2597_s0 + $0x10] sm:$0xf] }
 0x647   :  { %1843 = vtanh.f32 %v499_v21  ;;  %v705_v6 = vrot.slane %v1751_v5, 2 }
 0x648   :  { %1845 = vpow2.f32 %v1749_v27 }
 0x64c   :  { %v568_v38 = vpop.permute.xlu2 %567 }
 0x64d   :  { %v1844_v25 = vpop.eup %1843  ;;  %v570_v41 = vadd.f32 %v568_v38, %v564_v37 }
 0x64e   :  { %503 = vrot.lane.b32.xlu0 %v1844_v25, %s1977_s21  ;;  %v1846_v28 = vpop.eup %1845 }
 0x64f   :  { %v540_v30 = vadd.f32 1.0, %v1846_v28 }
 0x651   :  { %1847 = vrcp.f32 %v540_v30  ;;  %v552_v42 = vand.u32 2147483648, %v540_v30  ;;  %vm546_vm6 = vweird.f32 %v540_v30  ;;  %v550_v43 = vand.u32 2147483647, %v540_v30 }
 0x652   :  { %1849 = vtanh.f32 %v570_v41 }
 0x653   :  { %v553_v46 = vor.u32 1.1754944e-38, %v552_v42  ;;  %vm551_vm8 = vcmp.eq.f32.partialorder %v550_v43, 8.507059e+37 }
 0x654   :  { %v575_v55 = vpop.permute.xlu2 %574 }
 0x657   :  { %v1848_v33 = vpop.eup %1847 }
 0x658   :  { %v542_v34 = vmul.f32 %v1848_v33, %v540_v30  ;;  %vm547_vm5 = vweird.f32 %v1848_v33  ;;  %v1850_v54 = vpop.eup %1849 }
 0x659   :  { %vm548_vm7 = vmor %vm546_vm6, %vm547_vm5 }
 0x65a   :  { %v543_v36 = vsub.f32 1.0, %v542_v34 }
 0x65c   :  { %v544_v39 = vmul.f32 %v1848_v33, %v543_v36 }
 0x65e   :  { %v545_v32 = vadd.f32 %v1848_v33, %v544_v39 }
 0x660   :  { %v549_v40 = vsel %vm548_vm7, %v1848_v33, %v545_v32 }
 0x661   :  { %v554_v52 = vsel %vm551_vm8, %v553_v46, %v549_v40 }
 0x662   :  { %v572_v57 = vsub.f32 1.0, %v554_v52  ;;  %v577_v59 = vmul.f32 %v575_v55, %v554_v52 }
 0x664   :  { %v573_v58 = vmul.f32 %v1850_v54, %v572_v57 }
 0x666   :  { %v578_v60 = vadd.f32 %v577_v59, %v573_v58 }
 0x6c0   :  { %v504_v47 = vpop.permute.xlu0 %503 }
 0x6c1   :  { %v506_v49 = vmul.f32 %v504_v47, %v501_v45 }
 0x6c3   :  { %v512_v53 = vadd.f32 %v511_v48, %v506_v49 }
 0x6c5   :  { %580 = vst [vmem:[#allocation1] ss:$4 sm:$0xff] %v512_v53 }
 0x6cc   :  { %v2247_v61 = vld.sshfl [vmem:[#allocation1] sm:$0xff pattern:$0x73625140] }
 0x6cd   :  { %588 = vst [vmem:[#allocation1] ss:$4 sm:$0xff] %v578_v60 }
 0x6d4   :  { %v2249_v62 = vld.sshfl [vmem:[#allocation1] sm:$0xff pattern:$0x73625140] }
 0x6d5   :  { %595 = vst [vmem:[#allocation1] ss:$4 sm:$0xff] %v512_v53 }
 0x6dc   :  { %v596_v56 = vld.sshfl [vmem:[#allocation1] sm:$0xff pattern:$0x73625140] }
 0x6dd   :  { %600 = vst [vmem:[#allocation1] ss:$4 sm:$0xff] %v578_v60  ;;  %597 = vrot.lane.b32.xlu0 %v596_v56, %s1977_s21 }
 0x6e4   :  { %v601_v63 = vld.sshfl [vmem:[#allocation1] sm:$0xff pattern:$0x73625140] }
 0x6e5   :  { %602 = vrot.lane.b32.xlu1 %v601_v63, %s1975_s15 }
 0x74f   :  { %v598_v1 = vpop.permute.xlu0 %597 }
 0x757   :  { %v603_v2 = vpop.permute.xlu1 %602 }
 0x758   :  { %v2254_v0 = vsel %vm262_vm13, %v598_v1, %v603_v2 }
 0x759   :  { %v610_v4 = vpack.c.bf16 %v2254_v0, %v2254_v0 }
 0x75b   :  { %1752 = vmatmul.msk.bf16.vlgmr.msrb.gmra.mxu2 %vm85_vm0, %v610_v4  ;;  %1753 = vmatmul.msk.bf16.vlgmr.msrb.gmra.mxu3 %vm85_vm0, %v610_v4 }
 0x75c   :  { %1288 = vmatpush.bf16.msrb.mxu2 %v2035_v3  ;;  %1301 = vmatpush.bf16.msrb.mxu3 %v2046_v7 }
 0x760   :  { %1289 = vmatpush.bf16.msrb.mxu2 %v2055_v10  ;;  %1302 = vmatpush.bf16.msrb.mxu3 %v2059_v11 }
 0x764   :  { %1290 = vmatpush.bf16.msrb.mxu2 %v2081_v18  ;;  %1303 = vmatpush.bf16.msrb.mxu3 %v2088_v20 }
 0x768   :  { %1291 = vmatpush.bf16.msrb.mxu2 %v2103_v24  ;;  %1304 = vmatpush.bf16.msrb.mxu3 %v2112_v26  ;;  %v1750_v24 = vld [vmem:[%s2597_s0 + $0xc] sm:$0xf] }
 0x7de   :  { %v623_v3 = vpop.f32.mrf.mxu2  ;;  %v636_v8 = vpop.f32.mrf.mxu3 }
 0x7df   :  { %v660_v7 = vadd.f32 %v623_v3, %v2150_v29  ;;  %v684_v10 = vadd.f32 %v1751_v5, %v623_v3  ;;  %v707_v9 = vadd.f32 %v705_v6, %v636_v8  ;;  %v727_v11 = vadd.f32 %v636_v8, %v2152_v31 }
 0x7e0   :  { %v640_v26 = vadd.f32 %v1750_v24, %v623_v3 }
 0x7e1   :  { %662 = vrot.lane.b32.xlu2 %v660_v7, %s1976_s18  ;;  %729 = vrot.lane.b32.xlu1 %v727_v11, %s1976_s18  ;;  %v1755_v16 = vmul.f32 -1.442695, %v684_v10  ;;  %v1756_v55 = vmul.f32 -1.442695, %v707_v9 }
 0x7e2   :  { %v1754_v12 = vmul.f32 -1.442695, %v640_v26 }
 0x7e4   :  { %1851 = vpow2.f32 %v1754_v12 }
 0x7e6   :  { %v625_v18 = vpop.f32.mrf.mxu2  ;;  %v638_v20 = vpop.f32.mrf.mxu3 }
 0x7e9   :  { %733 = vrot.lane.b32.xlu2 %v1751_v5, %s1977_s21 }
 0x7ea   :  { %v1852_v13 = vpop.eup %1851 }
 0x7eb   :  { %v644_v14 = vadd.f32 1.0, %v1852_v13 }
 0x7ed   :  { %1853 = vrcp.f32 %v644_v14  ;;  %v656_v30 = vand.u32 2147483648, %v644_v14  ;;  %vm650_vm10 = vweird.f32 %v644_v14  ;;  %v654_v33 = vand.u32 2147483647, %v644_v14 }
 0x7ee   :  { %1855 = vpow2.f32 %v1755_v16 }
 0x7ef   :  { %v657_v36 = vor.u32 1.1754944e-38, %v656_v30  ;;  %vm655_vm12 = vcmp.eq.f32.partialorder %v654_v33, 8.507059e+37 }
 0x7f1   :  { %679 = vrot.lane.b32.xlu2 %v2254_v0, %s1975_s15 }
 0x7f3   :  { %v1854_v15 = vpop.eup %1853 }
 0x7f4   :  { %v646_v17 = vmul.f32 %v1854_v15, %v644_v14  ;;  %v1856_v25 = vpop.eup %1855  ;;  %vm651_vm9 = vweird.f32 %v1854_v15 }
 0x7f5   :  { %v688_v27 = vadd.f32 1.0, %v1856_v25  ;;  %vm652_vm11 = vmor %vm650_vm10, %vm651_vm9 }
 0x7f6   :  { %v647_v19 = vsub.f32 1.0, %v646_v17 }
 0x7f7   :  { %1857 = vrcp.f32 %v688_v27  ;;  %v700_v44 = vand.u32 2147483648, %v688_v27  ;;  %vm694_vm15 = vweird.f32 %v688_v27  ;;  %v698_v40 = vand.u32 2147483647, %v688_v27 }
 0x7f8   :  { %v648_v21 = vmul.f32 %v1854_v15, %v647_v19 }
 0x7f9   :  { %v701_v46 = vor.u32 1.1754944e-38, %v700_v44  ;;  %vm699_vm2 = vcmp.eq.f32.partialorder %v698_v40, 8.507059e+37  ;;  %v1757_v40 = vld [vmem:[%s2597_s0 + $0x10] sm:$0xf] }
 0x7fa   :  { %v649_v28 = vadd.f32 %v1854_v15, %v648_v21 }
 0x7fc   :  { %v653_v34 = vsel %vm652_vm11, %v1854_v15, %v649_v28 }
 0x7fd   :  { %v658_v37 = vsel %vm655_vm12, %v657_v36, %v653_v34  ;;  %v1858_v39 = vpop.eup %1857  ;;  %v1758_v36 = vld [vmem:[%s2597_s0 + $0xc] sm:$0xf] }
 0x7fe   :  { %v690_v41 = vmul.f32 %v1858_v39, %v688_v27  ;;  %vm695_vm14 = vweird.f32 %v1858_v39  ;;  %v672_v10 = vsub.f32 1.0, %v658_v37 }
 0x7ff   :  { %vm696_vm1 = vmor %vm694_vm15, %vm695_vm14 }
 0x800   :  { %v691_v32 = vsub.f32 1.0, %v690_v41 }
 0x802   :  { %v692_v42 = vmul.f32 %v1858_v39, %v691_v32 }
 0x804   :  { %v693_v43 = vadd.f32 %v1858_v39, %v692_v42 }
 0x806   :  { %v697_v45 = vsel %vm696_vm1, %v1858_v39, %v693_v43 }
 0x807   :  { %v702_v48 = vsel %vm699_vm2, %v701_v46, %v697_v45 }
 0x83b   :  { %v663_v35 = vpop.permute.xlu2 %662 }
 0x83c   :  { %v665_v38 = vmul.f32 %v663_v35, %v658_v37  ;;  %v874_v35 = vrot.slane %v1758_v36, 2 }
 0x83e   :  { %667 = vrot.lane.b32.xlu0 %v665_v38, %s1976_s18 }
 0x843   :  { %v734_v63 = vpop.permute.xlu2 %733 }
 0x844   :  { %v735_v1 = vrot.slane %v734_v63, 2 }
 0x84b   :  { %v680_v8 = vpop.permute.xlu2 %679 }
 0x84c   :  { %v682_v18 = vmul.f32 %v680_v8, %v658_v37 }
 0x853   :  { %v730_v47 = vpop.permute.xlu1 %729 }
 0x854   :  { %v732_v49 = vmul.f32 %v730_v47, %v702_v48 }
 0x856   :  { %738 = vrot.lane.b32.xlu0 %v732_v49, %s1975_s15 }
 0x85e   :  { %745 = vrot.lane.b32.xlu0 %v2254_v0, %s1977_s21 }
 0x8b0   :  { %v668_v52 = vpop.permute.xlu0 %667 }
 0x8b1   :  { %v670_v53 = vadd.f32 %v1750_v24, %v668_v52 }
 0x8b3   :  { %1859 = vtanh.f32 %v670_v53 }
 0x8b4   :  { %1861 = vpow2.f32 %v1756_v55 }
 0x8b9   :  { %v1860_v54 = vpop.eup %1859 }
 0x8ba   :  { %674 = vrot.lane.b32.xlu1 %v1860_v54, %s1977_s21  ;;  %v1862_v57 = vpop.eup %1861 }
 0x8bb   :  { %v711_v58 = vadd.f32 1.0, %v1862_v57 }
 0x8bd   :  { %1863 = vrcp.f32 %v711_v58  ;;  %v723_v6 = vand.u32 2147483648, %v711_v58  ;;  %vm717_vm4 = vweird.f32 %v711_v58  ;;  %v721_v3 = vand.u32 2147483647, %v711_v58 }
 0x8bf   :  { %v724_v9 = vor.u32 1.1754944e-38, %v723_v6  ;;  %vm722_vm6 = vcmp.eq.f32.partialorder %v721_v3, 8.507059e+37 }
 0x8c3   :  { %v1864_v59 = vpop.eup %1863 }
 0x8c4   :  { %v713_v60 = vmul.f32 %v1864_v59, %v711_v58  ;;  %vm718_vm3 = vweird.f32 %v1864_v59 }
 0x8c5   :  { %vm719_vm5 = vmor %vm717_vm4, %vm718_vm3 }
 0x8c6   :  { %v714_v56 = vsub.f32 1.0, %v713_v60 }
 0x8c8   :  { %v739_v2 = vpop.permute.xlu0 %738  ;;  %v715_v4 = vmul.f32 %v1864_v59, %v714_v56 }
 0x8c9   :  { %v741_v5 = vadd.f32 %v739_v2, %v735_v1 }
 0x8ca   :  { %v716_v0 = vadd.f32 %v1864_v59, %v715_v4 }
 0x8cb   :  { %1865 = vtanh.f32 %v741_v5 }
 0x8cc   :  { %v720_v7 = vsel %vm719_vm5, %v1864_v59, %v716_v0 }
 0x8cd   :  { %v725_v24 = vsel %vm722_vm6, %v724_v9, %v720_v7 }
 0x8ce   :  { %v743_v14 = vsub.f32 1.0, %v725_v24 }
 0x8d0   :  { %v746_v13 = vpop.permute.xlu0 %745 }
 0x8d1   :  { %v1866_v12 = vpop.eup %1865  ;;  %v748_v16 = vmul.f32 %v746_v13, %v725_v24 }
 0x8d2   :  { %v744_v15 = vmul.f32 %v1866_v12, %v743_v14 }
 0x8d4   :  { %v749_v17 = vadd.f32 %v748_v16, %v744_v15 }
 0x92c   :  { %v675_v11 = vpop.permute.xlu1 %674 }
 0x92d   :  { %v677_v20 = vmul.f32 %v675_v11, %v672_v10 }
 0x92f   :  { %v683_v26 = vadd.f32 %v682_v18, %v677_v20 }
 0x931   :  { %751 = vst [vmem:[#allocation1] ss:$4 sm:$0xff] %v683_v26 }
 0x938   :  { %v2286_v19 = vld.sshfl [vmem:[#allocation1] sm:$0xff pattern:$0x73625140] }
 0x939   :  { %759 = vst [vmem:[#allocation1] ss:$4 sm:$0xff] %v749_v17 }
 0x940   :  { %v2288_v21 = vld.sshfl [vmem:[#allocation1] sm:$0xff pattern:$0x73625140] }
 0x941   :  { %766 = vst [vmem:[#allocation1] ss:$4 sm:$0xff] %v683_v26 }
 0x948   :  { %v767_v25 = vld.sshfl [vmem:[#allocation1] sm:$0xff pattern:$0x73625140] }
 0x949   :  { %768 = vrot.lane.b32.xlu1 %v767_v25, %s1977_s21  ;;  %771 = vst [vmem:[#allocation1] ss:$4 sm:$0xff] %v749_v17 }
 0x950   :  { %v772_v27 = vld.sshfl [vmem:[#allocation1] sm:$0xff pattern:$0x73625140] }
 0x951   :  { %773 = vrot.lane.b32.xlu2 %v772_v27, %s1975_s15 }
 0x9ab   :  { %v774_v28 = vpop.permute.xlu2 %773 }
 0x9bb   :  { %v769_v30 = vpop.permute.xlu1 %768 }
 0x9bc   :  { %v2293_v33 = vsel %vm262_vm13, %v769_v30, %v774_v28 }
 0x9bd   :  { %v779_v34 = vpack.c.bf16 %v2293_v33, %v2293_v33 }
 0x9bf   :  { %1759 = vmatmul.msk.bf16.vlgmr.msra.gmra.mxu0 %vm85_vm0, %v779_v34  ;;  %1760 = vmatmul.msk.bf16.vlgmr.msra.gmra.mxu1 %vm85_vm0, %v779_v34 }
 0xa3c   :  { %v792_v37 = vpop.f32.mrf.mxu0  ;;  %v805_v38 = vpop.f32.mrf.mxu1 }
 0xa3d   :  { %v829_v39 = vadd.f32 %v792_v37, %v2150_v29  ;;  %v853_v41 = vadd.f32 %v1758_v36, %v792_v37  ;;  %v876_v32 = vadd.f32 %v874_v35, %v805_v38  ;;  %v896_v42 = vadd.f32 %v805_v38, %v2152_v31 }
 0xa3e   :  { %v809_v45 = vadd.f32 %v1757_v40, %v792_v37 }
 0xa3f   :  { %831 = vrot.lane.b32.xlu0 %v829_v39, %s1976_s18  ;;  %898 = vrot.lane.b32.xlu2 %v896_v42, %s1976_s18  ;;  %v1762_v47 = vmul.f32 -1.442695, %v853_v41  ;;  %v1763_v15 = vmul.f32 -1.442695, %v876_v32 }
 0xa40   :  { %v1761_v46 = vmul.f32 -1.442695, %v809_v45 }
 0xa42   :  { %1867 = vpow2.f32 %v1761_v46 }
 0xa43   :  { %1869 = vpow2.f32 %v1762_v47 }
 0xa44   :  { %v794_v43 = vpop.f32.mrf.mxu0  ;;  %v807_v44 = vpop.f32.mrf.mxu1 }
 0xa47   :  { %902 = vrot.lane.b32.xlu0 %v1758_v36, %s1977_s21 }
 0xa48   :  { %v1868_v48 = vpop.eup %1867 }
 0xa49   :  { %v813_v49 = vadd.f32 1.0, %v1868_v48  ;;  %v1870_v52 = vpop.eup %1869 }
 0xa4a   :  { %v857_v53 = vadd.f32 1.0, %v1870_v52 }
 0xa4b   :  { %1871 = vrcp.f32 %v813_v49  ;;  %v825_v1 = vand.u32 2147483648, %v813_v49  ;;  %vm819_vm8 = vweird.f32 %v813_v49  ;;  %v823_v2 = vand.u32 2147483647, %v813_v49 }
 0xa4c   :  { %1873 = vrcp.f32 %v857_v53  ;;  %v869_v10 = vand.u32 2147483648, %v857_v53  ;;  %vm863_vm12 = vweird.f32 %v857_v53  ;;  %v867_v9 = vand.u32 2147483647, %v857_v53 }
 0xa4d   :  { %v826_v0 = vor.u32 1.1754944e-38, %v825_v1  ;;  %vm824_vm10 = vcmp.eq.f32.partialorder %v823_v2, 8.507059e+37 }
 0xa4e   :  { %v870_v18 = vor.u32 1.1754944e-38, %v869_v10  ;;  %vm868_vm15 = vcmp.eq.f32.partialorder %v867_v9, 8.507059e+37 }
 0xa4f   :  { %848 = vrot.lane.b32.xlu0 %v2293_v33, %s1975_s15 }
 0xa51   :  { %v1872_v54 = vpop.eup %1871 }
 0xa52   :  { %v815_v55 = vmul.f32 %v1872_v54, %v813_v49  ;;  %v1874_v58 = vpop.eup %1873  ;;  %vm820_vm7 = vweird.f32 %v1872_v54 }
 0xa53   :  { %v859_v59 = vmul.f32 %v1874_v58, %v857_v53  ;;  %vm821_vm9 = vmor %vm819_vm8, %vm820_vm7  ;;  %vm864_vm11 = vweird.f32 %v1874_v58 }
 0xa54   :  { %v816_v57 = vsub.f32 1.0, %v815_v55  ;;  %vm865_vm14 = vmor %vm863_vm12, %vm864_vm11 }
 0xa55   :  { %v860_v56 = vsub.f32 1.0, %v859_v59 }
 0xa56   :  { %v817_v60 = vmul.f32 %v1872_v54, %v816_v57 }
 0xa57   :  { %v861_v4 = vmul.f32 %v1874_v58, %v860_v56 }
 0xa58   :  { %v818_v63 = vadd.f32 %v1872_v54, %v817_v60 }
 0xa59   :  { %v862_v8 = vadd.f32 %v1874_v58, %v861_v4  ;;  %v1765_v4 = vld [vmem:[%s2597_s0 + $0x8] sm:$0xf] }
 0xa5a   :  { %v822_v5 = vsel %vm821_vm9, %v1872_v54, %v818_v63 }
 0xa5b   :  { %v827_v3 = vsel %vm824_vm10, %v826_v0, %v822_v5  ;;  %v866_v11 = vsel %vm865_vm14, %v1874_v58, %v862_v8  ;;  %v1041_v5 = vrot.slane %v1765_v4, 2 }
 0xa5c   :  { %v871_v24 = vsel %vm868_vm15, %v870_v18, %v866_v11  ;;  %v841_v42 = vsub.f32 1.0, %v827_v3  ;;  %v1764_v18 = vld [vmem:[%s2597_s0 + $0x14] sm:$0xf] }
 0xa99   :  { %v899_v20 = vpop.permute.xlu2 %898 }
 0xa9a   :  { %v901_v26 = vmul.f32 %v899_v20, %v871_v24 }
 0xab1   :  { %v832_v6 = vpop.permute.xlu0 %831 }
 0xab2   :  { %v834_v7 = vmul.f32 %v832_v6, %v827_v3 }
 0xab4   :  { %836 = vrot.lane.b32.xlu1 %v834_v7, %s1976_s18 }
 0xab9   :  { %v903_v30 = vpop.permute.xlu0 %902 }
 0xaba   :  { %v904_v34 = vrot.slane %v903_v30, 2 }
 0xabc   :  { %907 = vrot.lane.b32.xlu1 %v901_v26, %s1975_s15 }
 0xac1   :  { %v849_v41 = vpop.permute.xlu0 %848 }
 0xac4   :  { %914 = vrot.lane.b32.xlu1 %v2293_v33, %s1977_s21 }
 0xb26   :  { %v837_v12 = vpop.permute.xlu1 %836 }
 0xb27   :  { %v839_v13 = vadd.f32 %v1757_v40, %v837_v12  ;;  %v851_v40 = vmul.f32 %v849_v41, %v827_v3 }
 0xb29   :  { %1875 = vtanh.f32 %v839_v13 }
 0xb2a   :  { %1877 = vpow2.f32 %v1763_v15 }
 0xb2e   :  { %v908_v36 = vpop.permute.xlu1 %907 }
 0xb2f   :  { %v1876_v14 = vpop.eup %1875  ;;  %v910_v37 = vadd.f32 %v908_v36, %v904_v34 }
 0xb30   :  { %843 = vrot.lane.b32.xlu2 %v1876_v14, %s1977_s21  ;;  %v1878_v16 = vpop.eup %1877 }
 0xb31   :  { %v880_v17 = vadd.f32 1.0, %v1878_v16 }
 0xb33   :  { %1879 = vrcp.f32 %v880_v17  ;;  %v892_v38 = vand.u32 2147483648, %v880_v17  ;;  %vm886_vm2 = vweird.f32 %v880_v17  ;;  %v890_v39 = vand.u32 2147483647, %v880_v17 }
 0xb34   :  { %1881 = vtanh.f32 %v910_v37 }
 0xb35   :  { %v893_v43 = vor.u32 1.1754944e-38, %v892_v38  ;;  %vm891_vm4 = vcmp.eq.f32.partialorder %v890_v39, 8.507059e+37 }
 0xb36   :  { %v915_v49 = vpop.permute.xlu1 %914 }
 0xb39   :  { %v1880_v25 = vpop.eup %1879 }
 0xb3a   :  { %v882_v27 = vmul.f32 %v1880_v25, %v880_v17  ;;  %vm887_vm1 = vweird.f32 %v1880_v25  ;;  %v1882_v48 = vpop.eup %1881 }
 0xb3b   :  { %vm888_vm3 = vmor %vm886_vm2, %vm887_vm1 }
 0xb3c   :  { %v883_v28 = vsub.f32 1.0, %v882_v27 }
 0xb3e   :  { %v884_v35 = vmul.f32 %v1880_v25, %v883_v28 }
 0xb40   :  { %v885_v33 = vadd.f32 %v1880_v25, %v884_v35 }
 0xb42   :  { %v889_v32 = vsel %vm888_vm3, %v1880_v25, %v885_v33 }
 0xb43   :  { %v894_v46 = vsel %vm891_vm4, %v893_v43, %v889_v32 }
 0xb44   :  { %v912_v52 = vsub.f32 1.0, %v894_v46  ;;  %v917_v54 = vmul.f32 %v915_v49, %v894_v46 }
 0xb46   :  { %v913_v53 = vmul.f32 %v1882_v48, %v912_v52 }
 0xb48   :  { %v918_v55 = vadd.f32 %v917_v54, %v913_v53 }
 0xb8a   :  { %v844_v44 = vpop.permute.xlu2 %843 }
 0xb8b   :  { %v846_v45 = vmul.f32 %v844_v44, %v841_v42 }
 0xb8d   :  { %v852_v47 = vadd.f32 %v851_v40, %v846_v45 }
 0xb8f   :  { %920 = vst [vmem:[#allocation1] ss:$4 sm:$0xff] %v852_v47 }
 0xb96   :  { %v2317_v57 = vld.sshfl [vmem:[#allocation1] sm:$0xff pattern:$0x73625140] }
 0xb97   :  { %927 = vst [vmem:[#allocation1] ss:$4 sm:$0xff] %v918_v55 }
 0xb9e   :  { %v2319_v58 = vld.sshfl [vmem:[#allocation1] sm:$0xff pattern:$0x73625140] }
 0xb9f   :  { %933 = vst [vmem:[#allocation1] ss:$4 sm:$0xff] %v852_v47 }
 0xba6   :  { %v934_v59 = vld.sshfl [vmem:[#allocation1] sm:$0xff pattern:$0x73625140] }
 0xba7   :  { %935 = vrot.lane.b32.xlu2 %v934_v59, %s1977_s21  ;;  %938 = vst [vmem:[#allocation1] ss:$4 sm:$0xff] %v918_v55 }
 0xbae   :  { %v939_v60 = vld.sshfl [vmem:[#allocation1] sm:$0xff pattern:$0x73625140] }
 0xbaf   :  { %940 = vrot.lane.b32.xlu0 %v939_v60, %s1975_s15 }
 0xc01   :  { %v936_v56 = vpop.permute.xlu2 %935 }
 0xc21   :  { %v941_v63 = vpop.permute.xlu0 %940 }
 0xc22   :  { %v2324_v1 = vsel %vm262_vm13, %v936_v56, %v941_v63 }
 0xc23   :  { %v946_v2 = vpack.c.bf16 %v2324_v1, %v2324_v1 }
 0xc25   :  { %1766 = vmatmul.msk.bf16.vlgmr.msra.gmra.mxu2 %vm85_vm0, %v946_v2  ;;  %1767 = vmatmul.msk.bf16.vlgmr.msra.gmra.mxu3 %vm85_vm0, %v946_v2 }
 0xca8   :  { %v959_v0 = vpop.f32.mrf.mxu2  ;;  %v972_v6 = vpop.f32.mrf.mxu3 }
 0xca9   :  { %v996_v3 = vadd.f32 %v959_v0, %v2150_v29  ;;  %v1020_v8 = vadd.f32 %v1765_v4, %v959_v0  ;;  %v1043_v7 = vadd.f32 %v1041_v5, %v972_v6  ;;  %v1063_v10 = vadd.f32 %v972_v6, %v2152_v31 }
 0xcaa   :  { %v976_v20 = vadd.f32 %v1764_v18, %v959_v0 }
 0xcab   :  { %998 = vrot.lane.b32.xlu1 %v996_v3, %s1976_s18  ;;  %1065 = vrot.lane.b32.xlu0 %v1063_v10, %s1976_s18  ;;  %v1769_v26 = vmul.f32 -1.442695, %v1020_v8  ;;  %v1770_v55 = vmul.f32 -1.442695, %v1043_v7 }
 0xcac   :  { %v1768_v24 = vmul.f32 -1.442695, %v976_v20 }
 0xcae   :  { %1883 = vpow2.f32 %v1768_v24 }
 0xcaf   :  { %1885 = vpow2.f32 %v1769_v26 }
 0xcb0   :  { %v961_v9 = vpop.f32.mrf.mxu2  ;;  %v974_v11 = vpop.f32.mrf.mxu3 }
 0xcb3   :  { %1069 = vrot.lane.b32.xlu1 %v1765_v4, %s1977_s21 }
 0xcb4   :  { %v1884_v12 = vpop.eup %1883 }
 0xcb5   :  { %v980_v13 = vadd.f32 1.0, %v1884_v12  ;;  %v1886_v14 = vpop.eup %1885 }
 0xcb6   :  { %v1024_v15 = vadd.f32 1.0, %v1886_v14 }
 0xcb7   :  { %1887 = vrcp.f32 %v980_v13  ;;  %v992_v35 = vand.u32 2147483648, %v980_v13  ;;  %vm986_vm6 = vweird.f32 %v980_v13  ;;  %v990_v37 = vand.u32 2147483647, %v980_v13 }
 0xcb8   :  { %1889 = vrcp.f32 %v1024_v15  ;;  %v1036_v44 = vand.u32 2147483648, %v1024_v15  ;;  %vm1030_vm10 = vweird.f32 %v1024_v15  ;;  %v1034_v40 = vand.u32 2147483647, %v1024_v15 }
 0xcb9   :  { %v993_v39 = vor.u32 1.1754944e-38, %v992_v35  ;;  %vm991_vm8 = vcmp.eq.f32.partialorder %v990_v37, 8.507059e+37 }
 0xcba   :  { %v1037_v47 = vor.u32 1.1754944e-38, %v1036_v44  ;;  %vm1035_vm12 = vcmp.eq.f32.partialorder %v1034_v40, 8.507059e+37 }
 0xcbb   :  { %1015 = vrot.lane.b32.xlu1 %v2324_v1, %s1975_s15 }
 0xcbd   :  { %v1888_v16 = vpop.eup %1887 }
 0xcbe   :  { %v982_v17 = vmul.f32 %v1888_v16, %v980_v13  ;;  %v1890_v27 = vpop.eup %1889  ;;  %vm987_vm5 = vweird.f32 %v1888_v16 }
 0xcbf   :  { %v1026_v28 = vmul.f32 %v1890_v27, %v1024_v15  ;;  %vm988_vm7 = vmor %vm986_vm6, %vm987_vm5  ;;  %vm1031_vm9 = vweird.f32 %v1890_v27 }
 0xcc0   :  { %v983_v25 = vsub.f32 1.0, %v982_v17  ;;  %vm1032_vm11 = vmor %vm1030_vm10, %vm1031_vm9 }
 0xcc1   :  { %v1027_v34 = vsub.f32 1.0, %v1026_v28 }
 0xcc2   :  { %v984_v30 = vmul.f32 %v1888_v16, %v983_v25 }
 0xcc3   :  { %v1028_v33 = vmul.f32 %v1890_v27, %v1027_v34 }
 0xcc4   :  { %v985_v36 = vadd.f32 %v1888_v16, %v984_v30 }
 0xcc5   :  { %v1029_v42 = vadd.f32 %v1890_v27, %v1028_v33 }
 0xcc6   :  { %v989_v38 = vsel %vm988_vm7, %v1888_v16, %v985_v36 }
 0xcc7   :  { %v994_v32 = vsel %vm991_vm8, %v993_v39, %v989_v38  ;;  %v1033_v45 = vsel %vm1032_vm11, %v1890_v27, %v1029_v42  ;;  %v1772_v39 = vld [vmem:[%s2597_s0 + $0x4] sm:$0xf] }
 0xcc8   :  { %v1038_v48 = vsel %vm1035_vm12, %v1037_v47, %v1033_v45  ;;  %v1008_v11 = vsub.f32 1.0, %v994_v32 }
 0xd1d   :  { %v999_v41 = vpop.permute.xlu1 %998  ;;  %v1066_v46 = vpop.permute.xlu0 %1065 }
 0xd1e   :  { %v1001_v43 = vmul.f32 %v999_v41, %v994_v32  ;;  %v1068_v49 = vmul.f32 %v1066_v46, %v1038_v48  ;;  %v1208_v41 = vrot.slane %v1772_v39, 2  ;;  %v1771_v48 = vld [vmem:[%s2597_s0 + $0x18] sm:$0xf] }
 0xd20   :  { %1003 = vrot.lane.b32.xlu2 %v1001_v43, %s1976_s18 }
 0xd25   :  { %v1070_v4 = vpop.permute.xlu1 %1069 }
 0xd26   :  { %v1071_v5 = vrot.slane %v1070_v4, 2 }
 0xd28   :  { %1074 = vrot.lane.b32.xlu2 %v1068_v49, %s1975_s15 }
 0xd2d   :  { %v1016_v9 = vpop.permute.xlu1 %1015 }
 0xd2e   :  { %v1018_v24 = vmul.f32 %v1016_v9, %v994_v32 }
 0xd30   :  { %1081 = vrot.lane.b32.xlu2 %v2324_v1, %s1977_s21 }
 0xd7a   :  { %v1004_v52 = vpop.permute.xlu2 %1003 }
 0xd7b   :  { %v1006_v53 = vadd.f32 %v1764_v18, %v1004_v52 }
 0xd7d   :  { %1891 = vtanh.f32 %v1006_v53 }
 0xd7e   :  { %1893 = vpow2.f32 %v1770_v55 }
 0xd82   :  { %v1075_v0 = vpop.permute.xlu2 %1074 }
 0xd83   :  { %v1892_v54 = vpop.eup %1891  ;;  %v1077_v3 = vadd.f32 %v1075_v0, %v1071_v5 }
 0xd84   :  { %1010 = vrot.lane.b32.xlu0 %v1892_v54, %s1977_s21  ;;  %v1894_v59 = vpop.eup %1893 }
 0xd85   :  { %v1047_v60 = vadd.f32 1.0, %v1894_v59 }
 0xd87   :  { %1895 = vrcp.f32 %v1047_v60  ;;  %v1059_v8 = vand.u32 2147483648, %v1047_v60  ;;  %vm1053_vm15 = vweird.f32 %v1047_v60  ;;  %v1057_v10 = vand.u32 2147483647, %v1047_v60 }
 0xd88   :  { %1897 = vtanh.f32 %v1077_v3 }
 0xd89   :  { %v1060_v18 = vor.u32 1.1754944e-38, %v1059_v8  ;;  %vm1058_vm2 = vcmp.eq.f32.partialorder %v1057_v10, 8.507059e+37 }
 0xd8a   :  { %v1082_v15 = vpop.permute.xlu2 %1081 }
 0xd8d   :  { %v1896_v56 = vpop.eup %1895 }
 0xd8e   :  { %v1049_v63 = vmul.f32 %v1896_v56, %v1047_v60  ;;  %vm1054_vm14 = vweird.f32 %v1896_v56  ;;  %v1898_v14 = vpop.eup %1897 }
 0xd8f   :  { %vm1055_vm1 = vmor %vm1053_vm15, %vm1054_vm14 }
 0xd90   :  { %v1050_v2 = vsub.f32 1.0, %v1049_v63 }
 0xd92   :  { %v1051_v6 = vmul.f32 %v1896_v56, %v1050_v2 }
 0xd94   :  { %v1052_v1 = vadd.f32 %v1896_v56, %v1051_v6 }
 0xd96   :  { %v1056_v7 = vsel %vm1055_vm1, %v1896_v56, %v1052_v1  ;;  %vm250_vm1 = vcmask 517376  }
 0xd97   :  { %v1061_v12 = vsel %vm1058_vm2, %v1060_v18, %v1056_v7 }
 0xd98   :  { %v1079_v16 = vsub.f32 1.0, %v1061_v12  ;;  %v1084_v25 = vmul.f32 %v1082_v15, %v1061_v12 }
 0xd9a   :  { %v1080_v17 = vmul.f32 %v1898_v14, %v1079_v16 }
 0xd9c   :  { %v1085_v27 = vadd.f32 %v1084_v25, %v1080_v17 }
 0xdf6   :  { %v1011_v20 = vpop.permute.xlu0 %1010 }
 0xdf7   :  { %v1013_v26 = vmul.f32 %v1011_v20, %v1008_v11 }
 0xdf9   :  { %v1019_v13 = vadd.f32 %v1018_v24, %v1013_v26 }
 0xdfb   :  { %1087 = vst [vmem:[#allocation1] ss:$4 sm:$0xff] %v1019_v13 }
 0xe02   :  { %v2348_v28 = vld.sshfl [vmem:[#allocation1] sm:$0xff pattern:$0x73625140] }
 0xe03   :  { %1094 = vst [vmem:[#allocation1] ss:$4 sm:$0xff] %v1085_v27 }
 0xe0a   :  { %v2350_v30 = vld.sshfl [vmem:[#allocation1] sm:$0xff pattern:$0x73625140] }
 0xe0b   :  { %1100 = vst [vmem:[#allocation1] ss:$4 sm:$0xff] %v1019_v13 }
 0xe12   :  { %v1101_v34 = vld.sshfl [vmem:[#allocation1] sm:$0xff pattern:$0x73625140] }
 0xe13   :  { %1102 = vrot.lane.b32.xlu0 %v1101_v34, %s1977_s21  ;;  %1105 = vst [vmem:[#allocation1] ss:$4 sm:$0xff] %v1085_v27 }
 0xe1a   :  { %v1106_v36 = vld.sshfl [vmem:[#allocation1] sm:$0xff pattern:$0x73625140] }
 0xe1b   :  { %1107 = vrot.lane.b32.xlu1 %v1106_v36, %s1975_s15 }
 0xe85   :  { %v1103_v35 = vpop.permute.xlu0 %1102 }
 0xe8d   :  { %v1108_v37 = vpop.permute.xlu1 %1107 }
 0xe8e   :  { %v2355_v33 = vsel %vm262_vm13, %v1103_v35, %v1108_v37 }
 0xe8f   :  { %v1113_v38 = vpack.c.bf16 %v2355_v33, %v2355_v33 }
 0xe91   :  { %1773 = vmatmul.msk.bf16.vlgmr.msrb.gmra.mxu0 %vm85_vm0, %v1113_v38  ;;  %1774 = vmatmul.msk.bf16.vlgmr.msrb.gmra.mxu1 %vm85_vm0, %v1113_v38 }
 0xf0e   :  { %v1126_v32 = vpop.f32.mrf.mxu0  ;;  %v1139_v42 = vpop.f32.mrf.mxu1 }
 0xf0f   :  { %v1163_v43 = vadd.f32 %v1126_v32, %v2150_v29  ;;  %v1187_v44 = vadd.f32 %v1772_v39, %v1126_v32  ;;  %v1210_v40 = vadd.f32 %v1208_v41, %v1139_v42  ;;  %v1230_v45 = vadd.f32 %v1139_v42, %v2152_v31 }
 0xf10   :  { %v1143_v49 = vadd.f32 %v1771_v48, %v1126_v32 }
 0xf11   :  { %1165 = vrot.lane.b32.xlu2 %v1163_v43, %s1976_s18  ;;  %1232 = vrot.lane.b32.xlu1 %v1230_v45, %s1976_s18  ;;  %v1776_v59 = vmul.f32 -1.442695, %v1187_v44  ;;  %v1777_v36 = vmul.f32 -1.442695, %v1210_v40 }
 0xf12   :  { %v1775_v52 = vmul.f32 -1.442695, %v1143_v49 }
 0xf14   :  { %1899 = vpow2.f32 %v1775_v52 }
 0xf16   :  { %v1128_v46 = vpop.f32.mrf.mxu0  ;;  %v1141_v47 = vpop.f32.mrf.mxu1 }
 0xf19   :  { %1236 = vrot.lane.b32.xlu2 %v1772_v39, %s1977_s21 }
 0xf1a   :  { %v1900_v53 = vpop.eup %1899 }
 0xf1b   :  { %v1147_v54 = vadd.f32 1.0, %v1900_v53 }
 0xf1d   :  { %1901 = vrcp.f32 %v1147_v54  ;;  %v1159_v0 = vand.u32 2147483648, %v1147_v54  ;;  %vm1153_vm4 = vweird.f32 %v1147_v54  ;;  %v1157_v6 = vand.u32 2147483647, %v1147_v54 }
 0xf1e   :  { %1903 = vpow2.f32 %v1776_v59 }
 0xf1f   :  { %v1160_v1 = vor.u32 1.1754944e-38, %v1159_v0  ;;  %vm1158_vm6 = vcmp.eq.f32.partialorder %v1157_v6, 8.507059e+37 }
 0xf21   :  { %1182 = vrot.lane.b32.xlu2 %v2355_v33, %s1975_s15 }
 0xf23   :  { %v1902_v55 = vpop.eup %1901 }
 0xf24   :  { %v1149_v60 = vmul.f32 %v1902_v55, %v1147_v54  ;;  %v1904_v2 = vpop.eup %1903  ;;  %vm1154_vm3 = vweird.f32 %v1902_v55 }
 0xf25   :  { %v1191_v4 = vadd.f32 1.0, %v1904_v2  ;;  %vm1155_vm5 = vmor %vm1153_vm4, %vm1154_vm3 }
 0xf26   :  { %v1150_v56 = vsub.f32 1.0, %v1149_v60 }
 0xf27   :  { %1905 = vrcp.f32 %v1191_v4  ;;  %v1203_v26 = vand.u32 2147483648, %v1191_v4  ;;  %vm1197_vm8 = vweird.f32 %v1191_v4  ;;  %v1201_v12 = vand.u32 2147483647, %v1191_v4 }
 0xf28   :  { %v1151_v63 = vmul.f32 %v1902_v55, %v1150_v56 }
 0xf29   :  { %v1204_v14 = vor.u32 1.1754944e-38, %v1203_v26  ;;  %vm1202_vm10 = vcmp.eq.f32.partialorder %v1201_v12, 8.507059e+37 }
 0xf2a   :  { %v1152_v5 = vadd.f32 %v1902_v55, %v1151_v63 }
 0xf2c   :  { %v1156_v3 = vsel %vm1155_vm5, %v1902_v55, %v1152_v5 }
 0xf2d   :  { %v1161_v10 = vsel %vm1158_vm6, %v1160_v1, %v1156_v3  ;;  %v1906_v7 = vpop.eup %1905 }
 0xf2e   :  { %v1193_v11 = vmul.f32 %v1906_v7, %v1191_v4  ;;  %vm1198_vm7 = vweird.f32 %v1906_v7  ;;  %v1175_v49 = vsub.f32 1.0, %v1161_v10 }
 0xf2f   :  { %vm1199_vm9 = vmor %vm1197_vm8, %vm1198_vm7 }
 0xf30   :  { %v1194_v18 = vsub.f32 1.0, %v1193_v11 }
 0xf32   :  { %v1195_v20 = vmul.f32 %v1906_v7, %v1194_v18  ;;  %v1279_v18 = vld [vmem:[%s2597_s0] sm:$0xf] }
 0xf34   :  { %v1196_v24 = vadd.f32 %v1906_v7, %v1195_v20  ;;  %v1375_v20 = vrot.slane %v1279_v18, 2 }
 0xf36   :  { %v1200_v13 = vsel %vm1199_vm9, %v1906_v7, %v1196_v24 }
 0xf37   :  { %v1205_v15 = vsel %vm1202_vm10, %v1204_v14, %v1200_v13 }
 0xf6b   :  { %v1166_v8 = vpop.permute.xlu2 %1165 }
 0xf6c   :  { %v1168_v9 = vmul.f32 %v1166_v8, %v1161_v10 }
 0xf6e   :  { %1170 = vrot.lane.b32.xlu0 %v1168_v9, %s1976_s18 }
 0xf73   :  { %v1237_v32 = vpop.permute.xlu2 %1236 }
 0xf74   :  { %v1238_v42 = vrot.slane %v1237_v32, 2 }
 0xf83   :  { %v1233_v16 = vpop.permute.xlu1 %1232 }
 0xf84   :  { %v1235_v17 = vmul.f32 %v1233_v16, %v1205_v15 }
 0xf86   :  { %1241 = vrot.lane.b32.xlu0 %v1235_v17, %s1975_s15 }
 0xf8e   :  { %1248 = vrot.lane.b32.xlu0 %v2355_v33, %s1977_s21 }
 0xfe0   :  { %v1171_v25 = vpop.permute.xlu0 %1170 }
 0xfe1   :  { %v1173_v27 = vadd.f32 %v1771_v48, %v1171_v25  ;;  %v1183_v48 = vpop.permute.xlu2 %1182 }
 0xfe2   :  { %v1185_v54 = vmul.f32 %v1183_v48, %v1161_v10 }
 0xfe3   :  { %1907 = vtanh.f32 %v1173_v27 }
 0xfe4   :  { %1909 = vpow2.f32 %v1777_v36 }
 0xfe9   :  { %v1908_v34 = vpop.eup %1907 }
 0xfea   :  { %1177 = vrot.lane.b32.xlu1 %v1908_v34, %s1977_s21  ;;  %v1910_v35 = vpop.eup %1909 }
 0xfeb   :  { %v1214_v37 = vadd.f32 1.0, %v1910_v35 }
 0xfed   :  { %1911 = vrcp.f32 %v1214_v37  ;;  %v1226_v46 = vand.u32 2147483648, %v1214_v37  ;;  %vm1220_vm12 = vweird.f32 %v1214_v37  ;;  %v1224_v47 = vand.u32 2147483647, %v1214_v37 }
 0xfef   :  { %v1227_v52 = vor.u32 1.1754944e-38, %v1226_v46  ;;  %vm1225_vm15 = vcmp.eq.f32.partialorder %v1224_v47, 8.507059e+37 }
 0xff3   :  { %v1912_v38 = vpop.eup %1911 }
 0xff4   :  { %v1216_v39 = vmul.f32 %v1912_v38, %v1214_v37  ;;  %vm1221_vm11 = vweird.f32 %v1912_v38 }
 0xff5   :  { %vm1222_vm14 = vmor %vm1220_vm12, %vm1221_vm11 }
 0xff6   :  { %v1217_v41 = vsub.f32 1.0, %v1216_v39 }
 0xff8   :  { %v1242_v43 = vpop.permute.xlu0 %1241  ;;  %v1218_v44 = vmul.f32 %v1912_v38, %v1217_v41 }
 0xff9   :  { %v1244_v45 = vadd.f32 %v1242_v43, %v1238_v42 }
 0xffa   :  { %v1219_v33 = vadd.f32 %v1912_v38, %v1218_v44 }
 0xffb   :  { %1913 = vtanh.f32 %v1244_v45 }
 0xffc   :  { %v1223_v40 = vsel %vm1222_vm14, %v1912_v38, %v1219_v33 }
 0xffd   :  { %v1228_v59 = vsel %vm1225_vm15, %v1227_v52, %v1223_v40  ;;  %vm1460_vm15 = vcmask 517120  }
 0xffe   :  { %v1246_v2 = vsub.f32 1.0, %v1228_v59 }
0x1000   :  { %v1249_v63 = vpop.permute.xlu0 %1248 }
0x1001   :  { %v1914_v56 = vpop.eup %1913  ;;  %v1251_v5 = vmul.f32 %v1249_v63, %v1228_v59 }
0x1002   :  { %v1247_v4 = vmul.f32 %v1914_v56, %v1246_v2 }
0x1004   :  { %v1252_v0 = vadd.f32 %v1251_v5, %v1247_v4 }
0x105c   :  { %v1178_v53 = vpop.permute.xlu1 %1177 }
0x105d   :  { %v1180_v55 = vmul.f32 %v1178_v53, %v1175_v49 }
0x105f   :  { %v1186_v60 = vadd.f32 %v1185_v54, %v1180_v55 }
0x1061   :  { %1254 = vst [vmem:[#allocation1] ss:$4 sm:$0xff] %v1186_v60 }
0x1068   :  { %v1255_v6 = vld.sshfl [vmem:[#allocation1] sm:$0xff pattern:$0x73625140] }
0x1069   :  { %1261 = vst [vmem:[#allocation1] ss:$4 sm:$0xff] %v1252_v0 }
0x1070   :  { %v1262_v3 = vld.sshfl [vmem:[#allocation1] sm:$0xff pattern:$0x73625140] }
0x1071   :  { %1267 = vst [vmem:[#allocation1] ss:$4 sm:$0xff] %v1186_v60 }
0x1078   :  { %v1268_v1 = vld.sshfl [vmem:[#allocation1] sm:$0xff pattern:$0x73625140] }
0x1079   :  { %1269 = vrot.lane.b32.xlu1 %v1268_v1, %s1977_s21  ;;  %1272 = vst [vmem:[#allocation1] ss:$4 sm:$0xff] %v1252_v0 }
0x1080   :  { %v1273_v8 = vld.sshfl [vmem:[#allocation1] sm:$0xff pattern:$0x73625140] }
0x1081   :  { %1274 = vrot.lane.b32.xlu2 %v1273_v8, %s1975_s15 }
0x10db   :  { %v1275_v10 = vpop.permute.xlu2 %1274 }
0x10eb   :  { %v1270_v9 = vpop.permute.xlu1 %1269 }
0x10ec   :  { %v2382_v7 = vsel %vm262_vm13, %v1270_v9, %v1275_v10 }
0x10ed   :  { %v1280_v11 = vpack.c.bf16 %v2382_v7, %v2382_v7 }
0x10ef   :  { %1779 = vmatmul.msk.bf16.vlgmr.msrb.gmra.mxu2 %vm85_vm0, %v1280_v11  ;;  %1780 = vmatmul.msk.bf16.vlgmr.msrb.gmra.mxu3 %vm85_vm0, %v1280_v11  ;;  %vm241_vm0 = vcmask 254976  }
0x1172   :  { %v1293_v24 = vpop.f32.mrf.mxu2  ;;  %v1306_v26 = vpop.f32.mrf.mxu3 }
0x1173   :  { %v1330_v12 = vadd.f32 %v1293_v24, %v2150_v29  ;;  %v1354_v13 = vadd.f32 %v1293_v24, %v1279_v18  ;;  %v2392_v14 = vadd.f32 %v1375_v20, %v1306_v26  ;;  %v1397_v15 = vadd.f32 %v1306_v26, %v2152_v31  ;;  %v2421_v29 = vld [vmem:[%s2597_s0 + $0x1c] sm:$0xf] }
0x1174   :  { %v1310_v31 = vadd.f32 %v2421_v29, %v1293_v24 }
0x1175   :  { %1332 = vrot.lane.b32.xlu0 %v1330_v12, %s1976_s18  ;;  %1399 = vrot.lane.b32.xlu2 %v1397_v15, %s1976_s18 }
0x117a   :  { %v1295_v16 = vpop.f32.mrf.mxu2  ;;  %v1308_v17 = vpop.f32.mrf.mxu3 }
0x117d   :  { %1403 = vrot.lane.b32.xlu0 %v1279_v18, %s1977_s21  ;;  %238 = vrot.lane.b32.xlu2 %v2169_v50, %s1977_s21  ;;  %v1781_v50 = vmul.f32 -1.442695, %v1310_v31 }
0x117f   :  { %1915 = vpow2.f32 %v1781_v50 }
0x1185   :  { %1349 = vrot.lane.b32.xlu0 %v2382_v7, %s1975_s15  ;;  %419 = vrot.lane.b32.xlu2 %v2210_v23, %s1975_s15  ;;  %v1916_v23 = vpop.eup %1915 }
0x118d   :  { %246 = vrot.lane.b32.xlu0 %v2171_v51, %s1975_s15  ;;  %753 = vrot.lane.b32.xlu2 %v2286_v19, %s1977_s21  ;;  %v1782_v51 = vmul.f32 -1.442695, %v1354_v13 }
0x118f   :  { %1917 = vpow2.f32 %v1782_v51 }
0x1195   :  { %582 = vrot.lane.b32.xlu0 %v2247_v61, %s1977_s21  ;;  %929 = vrot.lane.b32.xlu2 %v2319_v58, %s1975_s15  ;;  %v1314_v61 = vadd.f32 1.0, %v1916_v23  ;;  %v1918_v19 = vpop.eup %1917 }
0x1197   :  { %1919 = vrcp.f32 %v1314_v61  ;;  %v1326_v32 = vand.u32 2147483648, %v1314_v61  ;;  %vm1320_vm3 = vweird.f32 %v1314_v61  ;;  %v1324_v42 = vand.u32 2147483647, %v1314_v61 }
0x1199   :  { %v1327_v45 = vor.u32 1.1754944e-38, %v1326_v32  ;;  %vm1325_vm5 = vcmp.eq.f32.partialorder %v1324_v42, 8.507059e+37 }
0x119d   :  { %761 = vrot.lane.b32.xlu0 %v2288_v21, %s1975_s15  ;;  %1256 = vrot.lane.b32.xlu2 %v1255_v6, %s1977_s21  ;;  %v1358_v21 = vadd.f32 1.0, %v1918_v19  ;;  %v1783_v6 = vmul.f32 -1.442695, %v2392_v14 }
0x119f   :  { %1921 = vrcp.f32 %v1358_v21  ;;  %v1370_v49 = vand.u32 2147483648, %v1358_v21  ;;  %vm1364_vm7 = vweird.f32 %v1358_v21  ;;  %v1368_v52 = vand.u32 2147483647, %v1358_v21 }
0x11a0   :  { %1923 = vpow2.f32 %v1783_v6 }
0x11a1   :  { %v1371_v54 = vor.u32 1.1754944e-38, %v1370_v49  ;;  %vm1369_vm9 = vcmp.eq.f32.partialorder %v1368_v52, 8.507059e+37  ;;  %v1978_v52 = vmov 64.0  }
0x11a5   :  { %1089 = vrot.lane.b32.xlu0 %v2348_v28, %s1977_s21  ;;  %v1920_v28 = vpop.eup %1919 }
0x11a6   :  { %v1316_v25 = vmul.f32 %v1920_v28, %v1314_v61  ;;  %v1922_v36 = vpop.eup %1921  ;;  %vm1321_vm2 = vweird.f32 %v1920_v28 }
0x11a7   :  { %v1360_v35 = vmul.f32 %v1922_v36, %v1358_v21  ;;  %vm1322_vm4 = vmor %vm1320_vm3, %vm1321_vm2  ;;  %vm1365_vm6 = vweird.f32 %v1922_v36 }
0x11a8   :  { %v1317_v34 = vsub.f32 1.0, %v1316_v25  ;;  %vm1366_vm8 = vmor %vm1364_vm7, %vm1365_vm6 }
0x11a9   :  { %v1361_v38 = vsub.f32 1.0, %v1360_v35 }
0x11aa   :  { %v1318_v37 = vmul.f32 %v1920_v28, %v1317_v34 }
0x11ab   :  { %v1362_v43 = vmul.f32 %v1922_v36, %v1361_v38 }
0x11ac   :  { %v1319_v41 = vadd.f32 %v1920_v28, %v1318_v37 }
0x11ad   :  { %1263 = vrot.lane.b32.xlu0 %v1262_v3, %s1975_s15  ;;  %v1363_v47 = vadd.f32 %v1922_v36, %v1362_v43  ;;  %v1924_v3 = vpop.eup %1923 }
0x11ae   :  { %v1323_v44 = vsel %vm1322_vm4, %v1920_v28, %v1319_v41 }
0x11af   :  { %v2426_v46 = vsel %vm1325_vm5, %v1327_v45, %v1323_v44  ;;  %v1367_v53 = vsel %vm1366_vm8, %v1922_v36, %v1363_v47 }
0x11b0   :  { %v1372_v55 = vsel %vm1369_vm9, %v1371_v54, %v1367_v53  ;;  %v1342_v36 = vsub.f32 1.0, %v2426_v46 }
0x11cf   :  { %v1400_v58 = vpop.permute.xlu2 %1399 }
0x11d0   :  { %v1402_v60 = vmul.f32 %v1400_v58, %v1372_v55 }
0x11d7   :  { %v239_v27 = vpop.permute.xlu2 %238 }
0x11d8   :  { %242 = vst.msk [vmem:[#allocation2] sm:$0x3] %vm241_vm0, %v239_v27 }
0x11df   :  { %v420_v39 = vpop.permute.xlu2 %419 }
0x11e0   :  { %423 = vst.msk [vmem:[#allocation2 + $0xc] sm:$0x3] %vm250_vm1, %v420_v39 }
0x11e7   :  { %v1333_v33 = vpop.permute.xlu0 %1332  ;;  %v754_v48 = vpop.permute.xlu2 %753 }
0x11e8   :  { %v1335_v40 = vmul.f32 %v1333_v33, %v2426_v46  ;;  %757 = vst.msk [vmem:[#allocation2 + $0x6] sm:$0x3] %vm241_vm0, %v754_v48 }
0x11ea   :  { %1337 = vrot.lane.b32.xlu1 %v1335_v40, %s1976_s18 }
0x11ef   :  { %v1404_v59 = vpop.permute.xlu0 %1403  ;;  %v930_v56 = vpop.permute.xlu2 %929 }
0x11f0   :  { %932 = vst.msk [vmem:[#allocation2 + $0x6] sm:$0x3] %vm250_vm1, %v930_v56  ;;  %v1405_v11 = vrot.slane %v1404_v59, 2 }
0x11f2   :  { %1408 = vrot.lane.b32.xlu1 %v1402_v60, %s1975_s15 }
0x11f7   :  { %v2433_v63 = vpop.permute.xlu0 %1349  ;;  %v1257_v2 = vpop.permute.xlu2 %1256  ;;  %v1455_v45 = vld [vmem:[#allocation2 + $0x6] sm:$0x3] }
0x11f8   :  { %1259 = vst.msk [vmem:[#allocation2 + $0xc] sm:$0x3] %vm241_vm0, %v1257_v2  ;;  %v1352_v37 = vmul.f32 %v2433_v63, %v2426_v46  ;;  %v1470_v46 = vsel %vm1460_vm15, %v1455_v45, 0.0 }
0x11fa   :  { %1415 = vrot.lane.b32.xlu1 %v2382_v7, %s1977_s21 }
0x11ff   :  { %v247_v4 = vpop.permute.xlu0 %246  ;;  %v1458_v48 = vld [vmem:[#allocation2 + $0xc] sm:$0x3] }
0x1200   :  { %251 = vst.msk [vmem:[#allocation2 + $0xe] sm:$0x3] %vm250_vm1, %v247_v4  ;;  %v1479_v40 = vsel %vm1460_vm15, %v1458_v48, 0.0 }
0x1202   :  { %411 = vrot.lane.b32.xlu1 %v2208_v22, %s1977_s21  ;;  %v1381_v22 = vadd.f32 1.0, %v1924_v3 }
0x1204   :  { %1925 = vrcp.f32 %v1381_v22  ;;  %vm1387_vm11 = vweird.f32 %v1381_v22 }
0x1207   :  { %v583_v5 = vpop.permute.xlu0 %582 }
0x1208   :  { %586 = vst.msk [vmem:[#allocation2 + $0x4] sm:$0x3] %vm241_vm0, %v583_v5 }
0x120a   :  { %590 = vrot.lane.b32.xlu1 %v2249_v62, %s1975_s15  ;;  %v1926_v1 = vpop.eup %1925 }
0x120b   :  { %v1383_v8 = vmul.f32 %v1926_v1, %v1381_v22  ;;  %vm1388_vm10 = vweird.f32 %v1926_v1 }
0x120c   :  { %vm1389_vm12 = vmor %vm1387_vm11, %vm1388_vm10 }
0x120d   :  { %v1384_v10 = vsub.f32 1.0, %v1383_v8 }
0x120f   :  { %v762_v0 = vpop.permute.xlu0 %761  ;;  %v1385_v7 = vmul.f32 %v1926_v1, %v1384_v10 }
0x1210   :  { %765 = vst.msk [vmem:[#allocation2 + $0x8] sm:$0x3] %vm250_vm1, %v762_v0 }
0x1211   :  { %v1386_v18 = vadd.f32 %v1926_v1, %v1385_v7 }
0x1212   :  { %922 = vrot.lane.b32.xlu1 %v2317_v57, %s1977_s21  ;;  %v1393_v57 = vand.u32 2147483648, %v1381_v22 }
0x1213   :  { %v1390_v12 = vsel %vm1389_vm12, %v1926_v1, %v1386_v18 }
0x1214   :  { %v1394_v13 = vor.u32 1.1754944e-38, %v1393_v57 }
0x1217   :  { %v1090_v15 = vpop.permute.xlu0 %1089 }
0x121a   :  { %1096 = vrot.lane.b32.xlu1 %v2350_v30, %s1975_s15  ;;  %v1391_v30 = vand.u32 2147483647, %v1381_v22 }
0x121c   :  { %vm1392_vm14 = vcmp.eq.f32.partialorder %v1391_v30, 8.507059e+37 }
0x121d   :  { %v1395_v14 = vsel %vm1392_vm14, %v1394_v13, %v1390_v12 }
0x121e   :  { %v1413_v16 = vsub.f32 1.0, %v1395_v14 }
0x121f   :  { %v1264_v61 = vpop.permute.xlu0 %1263 }
0x125c   :  { %v1338_v9 = vpop.permute.xlu1 %1337 }
0x125d   :  { %v1340_v62 = vadd.f32 %v2421_v29, %v1338_v9 }
0x125f   :  { %1927 = vtanh.f32 %v1340_v62 }
0x1264   :  { %v1409_v20 = vpop.permute.xlu1 %1408 }
0x1265   :  { %v1928_v24 = vpop.eup %1927  ;;  %v1411_v26 = vadd.f32 %v1409_v20, %v1405_v11 }
0x1266   :  { %1344 = vrot.lane.b32.xlu2 %v1928_v24, %s1977_s21 }
0x1267   :  { %1929 = vtanh.f32 %v1411_v26 }
0x1268   :  { %1931 = vrcp.f32 %v1978_v52 }
0x126c   :  { %v1416_v17 = vpop.permute.xlu1 %1415 }
0x126d   :  { %v1930_v29 = vpop.eup %1929  ;;  %v1418_v31 = vmul.f32 %v1416_v17, %v1395_v14 }
0x126e   :  { %v1414_v50 = vmul.f32 %v1930_v29, %v1413_v16  ;;  %v1932_v53 = vpop.eup %1931 }
0x126f   :  { %v1486_v54 = vmul.f32 64.0, %v1932_v53  ;;  %vm1490_vm2 = vweird.f32 %v1932_v53 }
0x1270   :  { %v1419_v51 = vadd.f32 %v1418_v31, %v1414_v50 }
0x1271   :  { %v1487_v59 = vsub.f32 1.0, %v1486_v54 }
0x1273   :  { %v1488_v60 = vmul.f32 %v1932_v53, %v1487_v59 }
0x1274   :  { %v412_v23 = vpop.permute.xlu1 %411 }
0x1275   :  { %415 = vst.msk [vmem:[#allocation2 + $0x2] sm:$0x3] %vm241_vm0, %v412_v23  ;;  %v1489_v63 = vadd.f32 %v1932_v53, %v1488_v60 }
0x1276   :  { %1266 = vst.msk [vmem:[#allocation2 + $0x2] sm:$0x3] %vm250_vm1, %v1264_v61 }
0x1277   :  { %v2475_v2 = vsel %vm1490_vm2, %v1932_v53, %v1489_v63 }
0x127c   :  { %v591_v19 = vpop.permute.xlu1 %590 }
0x127d   :  { %594 = vst.msk [vmem:[#allocation2 + $0xa] sm:$0x3] %vm250_vm1, %v591_v19  ;;  %v1453_v43 = vld [vmem:[#allocation2 + $0x2] sm:$0x3] }
0x127e   :  { %1092 = vst.msk [vmem:[#allocation2 + $0xa] sm:$0x3] %vm241_vm0, %v1090_v15  ;;  %v1464_v44 = vsel %vm1460_vm15, %v1453_v43, 0.0 }
0x1284   :  { %v923_v21 = vpop.permute.xlu1 %922 }
0x1285   :  { %925 = vst.msk [vmem:[#allocation2 + $0x8] sm:$0x3] %vm241_vm0, %v923_v21  ;;  %v1457_v33 = vld [vmem:[#allocation2 + $0xa] sm:$0x3] }
0x1286   :  { %v1476_v47 = vsel %vm1460_vm15, %v1457_v33, 0.0 }
0x128c   :  { %v1097_v58 = vpop.permute.xlu1 %1096  ;;  %v1456_v28 = vld [vmem:[#allocation2 + $0x8] sm:$0x3] }
0x128d   :  { %1099 = vst.msk [vmem:[#allocation2 + $0x4] sm:$0x3] %vm250_vm1, %v1097_v58  ;;  %v1473_v25 = vsel %vm1460_vm15, %v1456_v28, 0.0 }
0x128e   :  { %1474 = vadd.xlane.f32.xlu0 %v1473_v25 }
0x1294   :  { %v2459_v27 = vld [vmem:[#allocation2 + $0x4] sm:$0x3] }
0x1295   :  { %v1467_v34 = vsel %vm1460_vm15, %v2459_v27, 0.0 }
0x1296   :  { %1468 = vadd.xlane.f32.xlu2 %v1467_v34 }
0x12c0   :  { %v1345_v35 = vpop.permute.xlu2 %1344 }
0x12c1   :  { %v1347_v38 = vmul.f32 %v1345_v35, %v1342_v36 }
0x12c3   :  { %v1353_v39 = vadd.f32 %v1352_v37, %v1347_v38 }
0x12c5   :  { %1421 = vst [vmem:[#allocation1] ss:$4 sm:$0xff] %v1353_v39 }
0x12cc   :  { %v1422_v41 = vld.sshfl [vmem:[#allocation1] sm:$0xff pattern:$0x73625140] }
0x12cd   :  { %1423 = vrot.lane.b32.xlu1 %v1422_v41, %s1977_s21  ;;  %1428 = vst [vmem:[#allocation1] ss:$4 sm:$0xff] %v1419_v51 }
0x12d4   :  { %v1429_v32 = vld.sshfl [vmem:[#allocation1] sm:$0xff pattern:$0x73625140] }
0x12d5   :  { %1430 = vrot.lane.b32.xlu2 %v1429_v32, %s1975_s15  ;;  %1434 = vst [vmem:[#allocation1] ss:$4 sm:$0xff] %v1353_v39 }
0x12dc   :  { %v1435_v42 = vld.sshfl [vmem:[#allocation1] sm:$0xff pattern:$0x73625140] }
0x12dd   :  { %1439 = vst [vmem:[#allocation1] ss:$4 sm:$0xff] %v1419_v51 }
0x12e4   :  { %v1440_v49 = vld.sshfl [vmem:[#allocation1] sm:$0xff pattern:$0x73625140] }
0x12f7   :  { %1465 = vadd.xlane.f32.xlu1 %v1464_v44 }
0x12fe   :  { %1471 = vadd.xlane.f32.xlu2 %v1470_v46 }
0x12ff   :  { %1477 = vadd.xlane.f32.xlu1 %v1476_v47 }
0x1301   :  { %v1475_v4 = vpop.xlane.xlu0 %1474 }
0x1302   :  { %v1496_v5 = vmul.f32 %v2475_v2, %v1475_v4 }
0x1304   :  { %v1504_v0 = vsub.f32 %v1456_v28, %v1496_v5 }
0x1306   :  { %1480 = vadd.xlane.f32.xlu2 %v1479_v40  ;;  %v1512_v3 = vmul.f32 %v1504_v0, %v1504_v0 }
0x1308   :  { %v1528_v22 = vsel %vm1460_vm15, %v1512_v3, 0.0 }
0x1309   :  { %v1469_v55 = vpop.xlane.xlu2 %1468 }
0x130a   :  { %v1494_v26 = vmul.f32 %v2475_v2, %v1469_v55 }
0x130c   :  { %v2497_v14 = vsub.f32 %v2459_v27, %v1494_v26 }
0x130e   :  { %v1510_v29 = vmul.f32 %v2497_v14, %v2497_v14 }
0x1310   :  { %v1522_v50 = vsel %vm1460_vm15, %v1510_v29, 0.0 }
0x1318   :  { %1436 = vrot.lane.b32.xlu1 %v1435_v42, %s1977_s21 }
0x131e   :  { %1441 = vrot.lane.b32.xlu2 %v1440_v49, %s1975_s15 }
0x132f   :  { %v1431_v56 = vpop.permute.xlu2 %1430 }
0x1330   :  { %1433 = vst.msk [vmem:[#allocation2] sm:$0x3] %vm250_vm1, %v1431_v56 }
0x1337   :  { %v2494_v12 = vld [vmem:[#allocation2] sm:$0x3] }
0x1338   :  { %v1461_v15 = vsel %vm1460_vm15, %v2494_v12, 0.0 }
0x133f   :  { %v1424_v6 = vpop.permute.xlu1 %1423 }
0x1340   :  { %1426 = vst.msk [vmem:[#allocation2 + $0xe] sm:$0x3] %vm241_vm0, %v1424_v6 }
0x1347   :  { %1529 = vadd.xlane.f32.xlu2 %v1528_v22  ;;  %v1459_v20 = vld [vmem:[#allocation2 + $0xe] sm:$0x3] }
0x1348   :  { %v1482_v24 = vsel %vm1460_vm15, %v1459_v20, 0.0 }
0x136a   :  { %v1466_v1 = vpop.xlane.xlu1 %1465 }
0x136b   :  { %v1493_v8 = vmul.f32 %v2475_v2, %v1466_v1 }
0x136d   :  { %v2481_v10 = vsub.f32 %v1453_v43, %v1493_v8  ;;  %v2528_v43 = vld [vmem:[%s2602_s5] ss:$0 sm:$0xff] }
0x136f   :  { %v1509_v9 = vmul.f32 %v2481_v10, %v2481_v10 }
0x1371   :  { %v1472_v62 = vpop.xlane.xlu2 %1471  ;;  %v1519_v7 = vsel %vm1460_vm15, %v1509_v9, 0.0 }
0x1372   :  { %v1495_v11 = vmul.f32 %v2475_v2, %v1472_v62  ;;  %1520 = vadd.xlane.f32.xlu0 %v1519_v7  ;;  %v1478_v16 = vpop.xlane.xlu1 %1477 }
0x1373   :  { %v1497_v17 = vmul.f32 %v2475_v2, %v1478_v16 }
0x1374   :  { %v2487_v18 = vsub.f32 %v1455_v45, %v1495_v11  ;;  %v2533_v45 = vld [vmem:[%s2603_s6] ss:$0 sm:$0xff] }
0x1375   :  { %v2504_v31 = vsub.f32 %v1457_v33, %v1497_v17 }
0x1376   :  { %v1511_v57 = vmul.f32 %v2487_v18, %v2487_v18 }
0x1377   :  { %v1513_v21 = vmul.f32 %v2504_v31, %v2504_v31 }
0x1378   :  { %v1525_v30 = vsel %vm1460_vm15, %v1511_v57, 0.0 }
0x1379   :  { %1526 = vadd.xlane.f32.xlu1 %v1525_v30  ;;  %v1481_v13 = vpop.xlane.xlu2 %1480  ;;  %v1531_v28 = vsel %vm1460_vm15, %v1513_v21, 0.0 }
0x137a   :  { %1483 = vadd.xlane.f32.xlu0 %v1482_v24  ;;  %v1498_v19 = vmul.f32 %v2475_v2, %v1481_v13 }
0x137c   :  { %v2518_v58 = vsub.f32 %v1458_v48, %v1498_v19 }
0x137e   :  { %v1514_v25 = vmul.f32 %v2518_v58, %v2518_v58 }
0x1380   :  { %v1534_v27 = vsel %vm1460_vm15, %v1514_v25, 0.0 }
0x1381   :  { %v1442_v51 = vpop.permute.xlu2 %1441 }
0x1382   :  { %1462 = vadd.xlane.f32.xlu0 %v1461_v15 }
0x138a   :  { %1523 = vadd.xlane.f32.xlu0 %v1522_v50  ;;  %v1437_v23 = vpop.permute.xlu1 %1436 }
0x138b   :  { %v2508_v61 = vsel %vm262_vm13, %v1437_v23, %v1442_v51 }
0x138c   :  { %1445 = vst.msk [vmem:[%s2605_s8] sm:$0x3] %vm241_vm0, %v2508_v61 }
0x1392   :  { %1532 = vadd.xlane.f32.xlu0 %v1531_v28 }
0x139a   :  { %1535 = vadd.xlane.f32.xlu0 %v1534_v27 }
0x13ba   :  { %v1530_v34 = vpop.xlane.xlu2 %1529 }
0x13bb   :  { %v1544_v36 = vmul.f32 %v1530_v34, %v2475_v2 }
0x13bd   :  { %v1552_v35 = vadd.f32 1e-05, %v1544_v36 }
0x13bf   :  { %1933 = vrsqrt.f32 %v1552_v35  ;;  %vm1602_vm1 = vweird.f32 %v1552_v35 }
0x13c5   :  { %v1934_v37 = vpop.eup %1933 }
0x13c6   :  { %v1597_v38 = vmul.f32 %v1934_v37, %v1552_v35  ;;  %vm1603_vm13 = vweird.f32 %v1934_v37 }
0x13c7   :  { %vm1604_vm3 = vmor %vm1602_vm1, %vm1603_vm13 }
0x13c8   :  { %v1598_v39 = vmul.f32 %v1934_v37, %v1597_v38 }
0x13ca   :  { %v1599_v41 = vmul.f32 0.5, %v1598_v39 }
0x13cc   :  { %v1600_v32 = vsub.f32 1.5, %v1599_v41 }
0x13ce   :  { %v1601_v42 = vmul.f32 %v1934_v37, %v1600_v32 }
0x13d0   :  { %v1605_v44 = vsel %vm1604_vm3, %v1934_v37, %v1601_v42 }
0x13d1   :  { %v1640_v33 = vmul.f32 %v1605_v44, %v1504_v0 }
0x13d3   :  { %v1652_v46 = vmul.f32 %v2528_v43, %v1640_v33 }
0x13d5   :  { %v1664_v47 = vadd.f32 %v2533_v45, %v1652_v46 }
0x13d7   :  { %1672 = vst.msk [vmem:[#allocation2 + $0x8] sm:$0x3] %vm1460_vm15, %v1664_v47 }
0x13e5   :  { %v1521_v48 = vpop.xlane.xlu0 %1520 }
0x13e6   :  { %v1541_v40 = vmul.f32 %v1521_v48, %v2475_v2 }
0x13e8   :  { %v1549_v49 = vadd.f32 1e-05, %v1541_v40 }
0x13ea   :  { %1935 = vrsqrt.f32 %v1549_v49  ;;  %vm1572_vm5 = vweird.f32 %v1549_v49 }
0x13ec   :  { %v1527_v52 = vpop.xlane.xlu1 %1526 }
0x13ed   :  { %v1543_v53 = vmul.f32 %v1527_v52, %v2475_v2  ;;  %v1484_v54 = vpop.xlane.xlu0 %1483 }
0x13ee   :  { %v1499_v55 = vmul.f32 %v2475_v2, %v1484_v54 }
0x13ef   :  { %v1551_v59 = vadd.f32 1e-05, %v1543_v53 }
0x13f0   :  { %v1936_v60 = vpop.eup %1935  ;;  %v2541_v56 = vsub.f32 %v1459_v20, %v1499_v55 }
0x13f1   :  { %v1567_v63 = vmul.f32 %v1936_v60, %v1549_v49  ;;  %1937 = vrsqrt.f32 %v1551_v59  ;;  %vm1573_vm4 = vweird.f32 %v1936_v60  ;;  %vm1592_vm8 = vweird.f32 %v1551_v59 }
0x13f2   :  { %v1515_v4 = vmul.f32 %v2541_v56, %v2541_v56  ;;  %vm1574_vm6 = vmor %vm1572_vm5, %vm1573_vm4 }
0x13f3   :  { %v1568_v5 = vmul.f32 %v1936_v60, %v1567_v63 }
0x13f4   :  { %v1537_v0 = vsel %vm1460_vm15, %v1515_v4, 0.0 }
0x13f5   :  { %v1569_v6 = vmul.f32 0.5, %v1568_v5  ;;  %v1463_v3 = vpop.xlane.xlu0 %1462  ;;  %1538 = vadd.xlane.f32.xlu0 %v1537_v0 }
0x13f6   :  { %v1492_v22 = vmul.f32 %v2475_v2, %v1463_v3 }
0x13f7   :  { %v1938_v1 = vpop.eup %1937  ;;  %v1570_v8 = vsub.f32 1.5, %v1569_v6 }
0x13f8   :  { %v1587_v9 = vmul.f32 %v1938_v1, %v1551_v59  ;;  %v2548_v62 = vsub.f32 %v2494_v12, %v1492_v22  ;;  %vm1593_vm7 = vweird.f32 %v1938_v1 }
0x13f9   :  { %v1571_v7 = vmul.f32 %v1936_v60, %v1570_v8  ;;  %vm1594_vm9 = vmor %vm1592_vm8, %vm1593_vm7 }
0x13fa   :  { %v1588_v11 = vmul.f32 %v1938_v1, %v1587_v9  ;;  %v1508_v57 = vmul.f32 %v2548_v62, %v2548_v62 }
0x13fb   :  { %v1575_v20 = vsel %vm1574_vm6, %v1936_v60, %v1571_v7 }
0x13fc   :  { %v1637_v30 = vmul.f32 %v1575_v20, %v2481_v10  ;;  %v1589_v24 = vmul.f32 0.5, %v1588_v11  ;;  %v1516_v26 = vsel %vm1460_vm15, %v1508_v57, 0.0 }
0x13fd   :  { %v1524_v13 = vpop.xlane.xlu0 %1523  ;;  %1517 = vadd.xlane.f32.xlu0 %v1516_v26 }
0x13fe   :  { %v1649_v15 = vmul.f32 %v2528_v43, %v1637_v30  ;;  %v1590_v16 = vsub.f32 1.5, %v1589_v24  ;;  %v1542_v12 = vmul.f32 %v1524_v13, %v2475_v2 }
0x1400   :  { %v1661_v17 = vadd.f32 %v2533_v45, %v1649_v15  ;;  %v1591_v29 = vmul.f32 %v1938_v1, %v1590_v16  ;;  %v1550_v50 = vadd.f32 1e-05, %v1542_v12 }
0x1402   :  { %1669 = vst.msk [vmem:[#allocation2 + $0x2] sm:$0x3] %vm1460_vm15, %v1661_v17  ;;  %v1595_v10 = vsel %vm1594_vm9, %v1938_v1, %v1591_v29  ;;  %1939 = vrsqrt.f32 %v1550_v50  ;;  %vm1582_vm11 = vweird.f32 %v1550_v50 }
0x1403   :  { %v1639_v51 = vmul.f32 %v1595_v10, %v2487_v18 }
0x1405   :  { %v1651_v23 = vmul.f32 %v2528_v43, %v1639_v51  ;;  %v1533_v19 = vpop.xlane.xlu0 %1532 }
0x1406   :  { %v1545_v21 = vmul.f32 %v1533_v19, %v2475_v2 }
0x1407   :  { %v1663_v28 = vadd.f32 %v2533_v45, %v1651_v23 }
0x1408   :  { %v1940_v25 = vpop.eup %1939  ;;  %v1553_v27 = vadd.f32 1e-05, %v1545_v21 }
0x1409   :  { %1671 = vst.msk [vmem:[#allocation2 + $0x6] sm:$0x3] %vm1460_vm15, %v1663_v28  ;;  %v1577_v34 = vmul.f32 %v1940_v25, %v1550_v50  ;;  %vm1583_vm10 = vweird.f32 %v1940_v25 }
0x140a   :  { %1941 = vrsqrt.f32 %v1553_v27  ;;  %vm1584_vm12 = vmor %vm1582_vm11, %vm1583_vm10  ;;  %vm1612_vm2 = vweird.f32 %v1553_v27 }
0x140b   :  { %v1578_v36 = vmul.f32 %v1940_v25, %v1577_v34 }
0x140d   :  { %v1579_v35 = vmul.f32 0.5, %v1578_v36  ;;  %v1536_v37 = vpop.xlane.xlu0 %1535 }
0x140e   :  { %v1546_v38 = vmul.f32 %v1536_v37, %v2475_v2 }
0x140f   :  { %v1580_v39 = vsub.f32 1.5, %v1579_v35 }
0x1410   :  { %v1942_v18 = vpop.eup %1941  ;;  %v1554_v41 = vadd.f32 1e-05, %v1546_v38 }
0x1411   :  { %v1581_v32 = vmul.f32 %v1940_v25, %v1580_v39  ;;  %v1607_v42 = vmul.f32 %v1942_v18, %v1553_v27  ;;  %1447 = vrot.lane.b32.xlu0 %v2508_v61, %s1977_s21  ;;  %vm1613_vm14 = vweird.f32 %v1942_v18 }
0x1412   :  { %1943 = vrsqrt.f32 %v1554_v41  ;;  %vm1614_vm13 = vmor %vm1612_vm2, %vm1613_vm14  ;;  %vm1622_vm3 = vweird.f32 %v1554_v41 }
0x1413   :  { %v1585_v44 = vsel %vm1584_vm12, %v1940_v25, %v1581_v32  ;;  %v1608_v33 = vmul.f32 %v1942_v18, %v1607_v42 }
0x1414   :  { %v1638_v46 = vmul.f32 %v1585_v44, %v2497_v14 }
0x1415   :  { %v1609_v47 = vmul.f32 0.5, %v1608_v33 }
0x1416   :  { %v1650_v48 = vmul.f32 %v2528_v43, %v1638_v46 }
0x1417   :  { %v1610_v40 = vsub.f32 1.5, %v1609_v47 }
0x1418   :  { %v1944_v49 = vpop.eup %1943  ;;  %v1662_v52 = vadd.f32 %v2533_v45, %v1650_v48 }
0x1419   :  { %v1611_v53 = vmul.f32 %v1942_v18, %v1610_v40  ;;  %v1617_v54 = vmul.f32 %v1944_v49, %v1554_v41  ;;  %vm1623_vm1 = vweird.f32 %v1944_v49 }
0x141a   :  { %1670 = vst.msk [vmem:[#allocation2 + $0x4] sm:$0x3] %vm1460_vm15, %v1662_v52  ;;  %vm1624_vm4 = vmor %vm1622_vm3, %vm1623_vm1 }
0x141b   :  { %v1615_v61 = vsel %vm1614_vm13, %v1942_v18, %v1611_v53  ;;  %v1618_v55 = vmul.f32 %v1944_v49, %v1617_v54 }
0x141c   :  { %v1641_v59 = vmul.f32 %v1615_v61, %v2504_v31 }
0x141d   :  { %v1619_v60 = vmul.f32 0.5, %v1618_v55 }
0x141e   :  { %v1653_v14 = vmul.f32 %v2528_v43, %v1641_v59 }
0x141f   :  { %v1620_v63 = vsub.f32 1.5, %v1619_v60 }
0x1420   :  { %v1665_v4 = vadd.f32 %v2533_v45, %v1653_v14 }
0x1421   :  { %v1621_v5 = vmul.f32 %v1944_v49, %v1620_v63 }
0x1422   :  { %1673 = vst.msk [vmem:[#allocation2 + $0xa] sm:$0x3] %vm1460_vm15, %v1665_v4 }
0x1423   :  { %v1625_v0 = vsel %vm1624_vm4, %v1944_v49, %v1621_v5 }
0x1424   :  { %v1642_v6 = vmul.f32 %v1625_v0, %v2518_v58 }
0x1426   :  { %v1654_v3 = vmul.f32 %v2528_v43, %v1642_v6 }
0x1428   :  { %v1666_v22 = vadd.f32 %v2533_v45, %v1654_v3 }
0x142a   :  { %1674 = vst.msk [vmem:[#allocation2 + $0xc] sm:$0x3] %vm1460_vm15, %v1666_v22 }
0x1468   :  { %v1539_v31 = vpop.xlane.xlu0 %1538 }
0x1469   :  { %v1547_v1 = vmul.f32 %v1539_v31, %v2475_v2 }
0x146b   :  { %v1555_v8 = vadd.f32 1e-05, %v1547_v1 }
0x146d   :  { %1945 = vrsqrt.f32 %v1555_v8  ;;  %vm1632_vm6 = vweird.f32 %v1555_v8 }
0x1470   :  { %v1518_v9 = vpop.xlane.xlu0 %1517 }
0x1471   :  { %v1540_v7 = vmul.f32 %v1518_v9, %v2475_v2 }
0x1473   :  { %v1946_v11 = vpop.eup %1945  ;;  %v1548_v57 = vadd.f32 1e-05, %v1540_v7 }
0x1474   :  { %v1627_v20 = vmul.f32 %v1946_v11, %v1555_v8  ;;  %vm1633_vm5 = vweird.f32 %v1946_v11 }
0x1475   :  { %1947 = vrsqrt.f32 %v1548_v57  ;;  %vm1634_vm7 = vmor %vm1632_vm6, %vm1633_vm5  ;;  %vm1562_vm9 = vweird.f32 %v1548_v57 }
0x1476   :  { %v1628_v30 = vmul.f32 %v1946_v11, %v1627_v20 }
0x1478   :  { %v1629_v58 = vmul.f32 0.5, %v1628_v30 }
0x147a   :  { %v1630_v24 = vsub.f32 1.5, %v1629_v58 }
0x147b   :  { %v1948_v26 = vpop.eup %1947 }
0x147c   :  { %v1631_v13 = vmul.f32 %v1946_v11, %v1630_v24  ;;  %v1557_v15 = vmul.f32 %v1948_v26, %v1548_v57  ;;  %vm1563_vm8 = vweird.f32 %v1948_v26 }
0x147d   :  { %vm1564_vm10 = vmor %vm1562_vm9, %vm1563_vm8 }
0x147e   :  { %v1635_v16 = vsel %vm1634_vm7, %v1946_v11, %v1631_v13  ;;  %v1558_v12 = vmul.f32 %v1948_v26, %v1557_v15 }
0x147f   :  { %v1643_v17 = vmul.f32 %v1635_v16, %v2541_v56 }
0x1480   :  { %v1559_v29 = vmul.f32 0.5, %v1558_v12 }
0x1481   :  { %v1655_v2 = vmul.f32 %v2528_v43, %v1643_v17 }
0x1482   :  { %v1560_v50 = vsub.f32 1.5, %v1559_v29 }
0x1483   :  { %v1667_v10 = vadd.f32 %v2533_v45, %v1655_v2  ;;  %v1448_v51 = vpop.permute.xlu0 %1447 }
0x1484   :  { %v1561_v23 = vmul.f32 %v1948_v26, %v1560_v50  ;;  %1784 = vst.msk [vmem:[%s2605_s8 + $0x2] sm:$0x3] %vm241_vm0, %v1448_v51  ;;  %s1980_s8 = smov 2  }
0x1485   :  { %1675 = vst.msk [vmem:[#allocation2 + $0xe] sm:$0x3] %vm1460_vm15, %v1667_v10 }
0x1486   :  { %v1565_v19 = vsel %vm1564_vm10, %v1948_v26, %v1561_v23 }
0x1487   :  { %v1636_v56 = vmul.f32 %v1565_v19, %v2548_v62 }
0x1489   :  { %v1648_v21 = vmul.f32 %v2528_v43, %v1636_v56 }
0x148b   :  { %v1660_v28 = vadd.f32 %v2533_v45, %v1648_v21 }
0x148d   :  { %1668 = vst.msk [vmem:[#allocation2] sm:$0x3] %vm1460_vm15, %v1660_v28 }
0x148e   :  { %1688 = dma.vmem_to_hbm [thread:$0]  %s1681_s14, 256, %s1683_s12, [#allocation3], %s1975_s15, %s1975_s15, %s1980_s8  }
0x148f   :  { %1973 = dma.done.wait [#allocation3], 256  }
0x1490   :  { %1974 = vsyncadd [#allocation3], 4294967040 }
0x1491   :  { %1697 = vsyncpa [#allocation3], 1 }

</bundles_post_ra>
